<compile_context>
chip_gen: v5e
topology: v5e:2x2
jax: 0.10.0
libtpu: 0.0.40
codegen_flags: <defaults>
</compile_context>

<pallas_src>
import functools
import math

import numpy as np
import jax
import jax.numpy as jnp
from jax import lax
from jax.experimental import pallas as pl
from jax.experimental.pallas import tpu as pltpu

SCALE_FACTOR = 1.5


def _round_up(v, m):
    return (v + m - 1) // m * m


# ----------------------------------------------------------------------------
# Fused EDSR kernel
# ----------------------------------------------------------------------------
def _edsr_kernel(xk_ref, m1_ref, w1_ref, b1_ref, w2_ref, b2_ref,
                 up_ref, w3_ref, b3_ref, out_ref, *, H, W, Ho, W1p, Wp):
    # xk_ref : (1, H+10, W1p, 27) bf16   input, (kw, cin) pre-merged on lanes
    # m1_ref : (M1, 1) f32               conv2 zero-padding mask on the conv1 grid
    # w1_ref : (9, 27, 64) bf16          conv1 weights per kh slab, row = kw*3+cin
    # b1_ref : (1, 64) f32
    # w2_ref : (9, 64, 64) bf16          conv2 weights per tap (kh*3+kw, cin, cout)
    # b2_ref : (1, 64) f32
    # up_ref : (H*W, P) bf16             transposed padded bicubic upsample operator
    # w3_ref : (64, 200) bf16            conv3 weights, col = 8*(kh*5+kw) + cout
    # b3_ref : (3, 1) f32
    # out_ref: (1, 3, Ho*Wp) f32         channel-major, ho-major (padded width) lanes
    H1 = H + 2
    M1 = H1 * W1p
    M2 = H * W

    x = xk_ref[0]                                        # (H+10, W1p, 27)

    # ---- conv1 (9x9, 3->64) + bias + ReLU: 9 accumulated K=27 MXU matmuls ----
    acc1 = jnp.zeros((M1, 64), jnp.float32)
    for kh in range(9):
        slab = x[kh:kh + H1].reshape(M1, 27)             # retiling-free (W1p % 8 == 0)
        acc1 = acc1 + jnp.dot(slab, w1_ref[kh],
                              preferred_element_type=jnp.float32)
    # mask forces the conv2 zero-padding ring (and W1p filler columns) to 0
    a1 = jnp.maximum(acc1 + b1_ref[...], 0.0) * m1_ref[...]
    a1 = a1.astype(jnp.bfloat16).reshape(H1, W1p, 64)

    # ---- conv2 (3x3, 64->64) + bias + ReLU: per-tap K=64 matmuls -------------
    acc2 = jnp.zeros((M2, 64), jnp.float32)
    for kh in range(3):
        for kw in range(3):
            tap = a1[kh:kh + H, kw:kw + W, :].reshape(M2, 64)
            acc2 = acc2 + jnp.dot(tap, w2_ref[kh * 3 + kw],
                                  preferred_element_type=jnp.float32)
    a2 = jnp.maximum(acc2 + b2_ref[...], 0.0).astype(jnp.bfloat16)   # (M2, 64)

    # ---- bicubic x1.5 upsample + conv3 zero pad: one channel-major matmul ----
    # zp_cm[c, r] = sum_q a2[q, c] * up[q, r]   (r = flattened padded output grid)
    zp_cm = lax.dot_general(a2, up_ref[...], (((0,), (0,)), ((), ())),
                            preferred_element_type=jnp.float32)      # (64, P)
    zp_cm = zp_cm.astype(jnp.bfloat16)

    # ---- conv3 (5x5, 64->3): one channel matmul + 25 lane-shifted adds -------
    # y[8*tap + co, r] = sum_c w3[co, c, tap] * zp_cm[c, r]
    y = lax.dot_general(w3_ref[...], zp_cm, (((0,), (0,)), ((), ())),
                        preferred_element_type=jnp.float32)          # (200, P)
    Mo = Ho * Wp
    acc3 = jnp.zeros((8, Mo), jnp.float32)                           # rows 3..7 stay 0
    for kh in range(5):
        for kw in range(5):
            t = kh * 5 + kw
            s = kh * Wp + kw
            acc3 = acc3 + y[8 * t:8 * t + 8, s:s + Mo]   # 8-aligned rows, lane roll
    out_ref[0] = (acc3[:3, :] + b3_ref[...]).astype(out_ref.dtype)


# ----------------------------------------------------------------------------
# Compiler params / VMEM estimate
# ----------------------------------------------------------------------------
def _padded_block_bytes(shape, itemsize):
    shape = tuple(int(d) for d in shape)
    if len(shape) == 1:
        shape = (1,) + shape
    *major, s, l = shape
    rows = 1
    for d in major:
        rows *= d
    return rows * _round_up(s, 8) * _round_up(l, 128) * itemsize


def _compiler_params(block_bytes):
    # Double-buffered pipeline blocks + headroom for in-kernel temporaries.
    # TODO(synk): when spatial row-block tiling lands for large images, derive
    # this per-chip (v7x: 64 MiB/TC) from the 128-lane-padded footprints.
    est = 2 * sum(block_bytes) + (24 << 20)
    limit = int(min(max(est, 32 << 20), 100 << 20))
    return pltpu.CompilerParams(dimension_semantics=("parallel",),
                                vmem_limit_bytes=limit)


# ----------------------------------------------------------------------------
# Host-side static operators (bicubic, PyTorch A=-0.75, align_corners=True)
# ----------------------------------------------------------------------------
def _cubic_weights(t, a=-0.75):
    def c1(x):   # |x| <= 1
        return ((a + 2.0) * x - (a + 3.0)) * x * x + 1.0

    def c2(x):   # 1 < |x| < 2
        return ((a * x - 5.0 * a) * x + 8.0 * a) * x - 4.0 * a

    return (c2(t + 1.0), c1(t), c1(1.0 - t), c2(2.0 - t))


def _bicubic_matrix(in_size, out_size):
    m = np.zeros((out_size, in_size), np.float64)
    scale = (in_size - 1) / (out_size - 1) if out_size > 1 else 0.0
    for o in range(out_size):
        real = scale * o
        i0 = int(math.floor(real))
        wts = _cubic_weights(real - i0)
        for j in range(4):
            idx = min(max(i0 - 1 + j, 0), in_size - 1)
            m[o, idx] += float(wts[j])
    return m


def _build_upsample_operator(H, W, Ho, Wo, Wp, P):
    # Dense operator mapping a2 (h-major, H*W rows) to the zero-padded (pad=2,
    # for conv3) bicubically upsampled grid, flattened ho-major with row
    # stride Wp and one extra zero slack row (P = (Ho+5)*Wp).
    mh = _bicubic_matrix(H, Ho)        # (Ho, H)
    mw = _bicubic_matrix(W, Wo)        # (Wo, W)
    op = np.zeros((P, H * W), np.float64)
    for ho in range(Ho):
        for wo in range(Wo):
            r = (ho + 2) * Wp + (wo + 2)
            op[r, :] = np.outer(mh[ho], mw[wo]).reshape(-1)
    return np.asarray(op.T, np.float32)   # (H*W, P)


# ----------------------------------------------------------------------------
# Parameters + forward
# ----------------------------------------------------------------------------
def make_params(key):
    k1, k2, k3, k4, k5, k6 = jax.random.split(key, 6)

    def init(k, shape, fan_in):
        return jax.random.normal(k, shape, jnp.float32) / math.sqrt(fan_in)

    return {
        "w1": init(k1, (9, 9, 3, 64), 9 * 9 * 3),     # HWIO
        "b1": 0.01 * jax.random.normal(k4, (64,), jnp.float32),
        "w2": init(k2, (3, 3, 64, 64), 3 * 3 * 64),
        "b2": 0.01 * jax.random.normal(k5, (64,), jnp.float32),
        "w3": init(k3, (5, 5, 64, 3), 5 * 5 * 64),
        "b3": 0.01 * jax.random.normal(k6, (3,), jnp.float32),
    }


def edsr_forward(x_nchw, params, up_opT, *, H, W, Ho, Wo, W1p, Wp, P):
    n = x_nchw.shape[0]
    H1 = H + 2
    M1 = H1 * W1p

    x = jnp.transpose(x_nchw, (0, 2, 3, 1)).astype(jnp.float32)       # NCHW -> NHWC
    # pad 5 = 4 (conv1) + 1 (conv2 halo); extra right/bottom zeros provide the
    # 9 kw-shifted copies and the 8-aligned W1p working width.
    xpad = jnp.pad(x, ((0, 0), (5, 5), (5, W1p + 8 - 5 - W), (0, 0)))
    xk = jnp.concatenate([xpad[:, :, kw:kw + W1p, :] for kw in range(9)],
                         axis=-1).astype(jnp.bfloat16)                # (n, H+10, W1p, 27)

    # conv2 zero-padding mask: keep only the valid conv1 output region so the
    # halo ring matches PyTorch's zero padding exactly.
    hh, ww = np.meshgrid(np.arange(H1), np.arange(W1p), indexing="ij")
    m1 = ((hh >= 1) & (hh <= H) & (ww >= 1) & (ww <= W)).astype(np.float32)
    m1 = jnp.asarray(m1.reshape(M1, 1))

    w1r = params["w1"].reshape(9, 27, 64).astype(jnp.bfloat16)
    b1 = params["b1"].reshape(1, 64).astype(jnp.float32)
    w2r = params["w2"].reshape(9, 64, 64).astype(jnp.bfloat16)
    b2 = params["b2"].reshape(1, 64).astype(jnp.float32)
    w3 = params["w3"].reshape(25, 64, 3)                               # (tap, cin, cout)
    w3r = jnp.pad(jnp.transpose(w3, (1, 0, 2)), ((0, 0), (0, 0), (0, 5)))
    w3r = w3r.reshape(64, 25 * 8).astype(jnp.bfloat16)                 # col = 8*tap + cout
    b3 = params["b3"].reshape(3, 1).astype(jnp.float32)

    blocks = [
        _padded_block_bytes((1, H + 10, W1p, 27), 2),
        _padded_block_bytes((M1, 1), 4),
        _padded_block_bytes((9, 27, 64), 2),
        _padded_block_bytes((1, 64), 4),
        _padded_block_bytes((9, 64, 64), 2),
        _padded_block_bytes((1, 64), 4),
        _padded_block_bytes((H * W, P), 2),
        _padded_block_bytes((64, 200), 2),
        _padded_block_bytes((3, 1), 4),
        _padded_block_bytes((1, 3, Ho * Wp), 4),
    ]

    kernel = functools.partial(_edsr_kernel, H=H, W=W, Ho=Ho, W1p=W1p, Wp=Wp)
    out = pl.pallas_call(
        kernel,
        out_shape=jax.ShapeDtypeStruct((n, 3, Ho * Wp), jnp.float32),
        grid=(n,),
        in_specs=[
            pl.BlockSpec((1, H + 10, W1p, 27), lambda i: (i, 0, 0, 0)),
            pl.BlockSpec((M1, 1), lambda i: (0, 0)),
            pl.BlockSpec((9, 27, 64), lambda i: (0, 0, 0)),
            pl.BlockSpec((1, 64), lambda i: (0, 0)),
            pl.BlockSpec((9, 64, 64), lambda i: (0, 0, 0)),
            pl.BlockSpec((1, 64), lambda i: (0, 0)),
            pl.BlockSpec((H * W, P), lambda i: (0, 0)),
            pl.BlockSpec((64, 200), lambda i: (0, 0)),
            pl.BlockSpec((3, 1), lambda i: (0, 0)),
        ],
        out_specs=pl.BlockSpec((1, 3, Ho * Wp), lambda i: (i, 0, 0)),
        compiler_params=_compiler_params(blocks),
    )(xk, m1, w1r, b1, w2r, b2, up_opT, w3r, b3)

    # drop the padded-width filler columns; already channel-major / ho-major (NCHW)
    return out.reshape(n, 3, Ho, Wp)[:, :, :, :Wo]


if __name__ == "__main__":
    key = jax.random.PRNGKey(0)
    pkey, xkey = jax.random.split(key)
    params = make_params(pkey)

    N, C, H, W = 2, 3, 16, 16
    x = jax.random.normal(xkey, (N, C, H, W), jnp.float32)

    Ho = int(math.floor(H * SCALE_FACTOR))
    Wo = int(math.floor(W * SCALE_FACTOR))
    W1p = _round_up(W + 2, 8)          # retiling-free conv1/conv2 working width
    Wp = Wo + 4                        # conv3 zero-padded width
    P = (Ho + 5) * Wp                  # flattened padded upsample grid (+ slack row)
    up_opT = jnp.asarray(_build_upsample_operator(H, W, Ho, Wo, Wp, P),
                         jnp.bfloat16)                                # (H*W, P)

    fwd = jax.jit(functools.partial(edsr_forward, H=H, W=W, Ho=Ho, Wo=Wo,
                                    W1p=W1p, Wp=Wp, P=P))
    out = fwd(x, params, up_opT)
    jax.block_until_ready(out)

    assert out.shape == (N, 3, Ho, Wo), out.shape
    assert out.dtype == jnp.float32
    print("KERNEL_OK")
</pallas_src>

<mosaic_0001>
module attributes {stable_mosaic.version = 11 : i64} {
  func.func @_edsr_kernel(%arg0: i32, %arg1: memref<1x26x24x27xbf16, #tpu.memory_space<vmem>>, %arg2: memref<432x1xf32, #tpu.memory_space<vmem>>, %arg3: memref<9x27x64xbf16, #tpu.memory_space<vmem>>, %arg4: memref<1x64xf32, #tpu.memory_space<vmem>>, %arg5: memref<9x64x64xbf16, #tpu.memory_space<vmem>>, %arg6: memref<1x64xf32, #tpu.memory_space<vmem>>, %arg7: memref<256x812xbf16, #tpu.memory_space<vmem>>, %arg8: memref<64x200xbf16, #tpu.memory_space<vmem>>, %arg9: memref<3x1xf32, #tpu.memory_space<vmem>>, %arg10: memref<1x3x672xf32, #tpu.memory_space<vmem>>) attributes {dimension_semantics = [#tpu.dimension_semantics<parallel>], iteration_bounds = array<i64: 2>, scalar_prefetch = 0 : i64, scratch_operands = 0 : i64, tpu.core_type = #tpu.core_type<tc>, window_params = [{transform_indices = @transform_0, window_bounds = array<i64: 1, 26, 24, 27>}, {pipeline_mode = #tpu.pipeline_mode<synchronous>, transform_indices = @transform_1, window_bounds = array<i64: 432, 1>}, {pipeline_mode = #tpu.pipeline_mode<synchronous>, transform_indices = @transform_2, window_bounds = array<i64: 9, 27, 64>}, {pipeline_mode = #tpu.pipeline_mode<synchronous>, transform_indices = @transform_3, window_bounds = array<i64: 1, 64>}, {pipeline_mode = #tpu.pipeline_mode<synchronous>, transform_indices = @transform_4, window_bounds = array<i64: 9, 64, 64>}, {pipeline_mode = #tpu.pipeline_mode<synchronous>, transform_indices = @transform_5, window_bounds = array<i64: 1, 64>}, {pipeline_mode = #tpu.pipeline_mode<synchronous>, transform_indices = @transform_6, window_bounds = array<i64: 256, 812>}, {pipeline_mode = #tpu.pipeline_mode<synchronous>, transform_indices = @transform_7, window_bounds = array<i64: 64, 200>}, {pipeline_mode = #tpu.pipeline_mode<synchronous>, transform_indices = @transform_8, window_bounds = array<i64: 3, 1>}, {transform_indices = @transform_9, window_bounds = array<i64: 1, 3, 672>}]} {
    %c0 = arith.constant 0 : index
    %c0_0 = arith.constant 0 : index
    %c0_1 = arith.constant 0 : index
    %c0_2 = arith.constant 0 : index
    %0 = vector.load %arg1[%c0, %c0_0, %c0_1, %c0_2] : memref<1x26x24x27xbf16, #tpu.memory_space<vmem>>, vector<1x26x24x27xbf16>
    %1 = vector.shape_cast %0 : vector<1x26x24x27xbf16> to vector<26x24x27xbf16>
    %cst = arith.constant 0.000000e+00 : f32
    %2 = vector.broadcast %cst : f32 to vector<432x64xf32>
    %3 = vector.extract_strided_slice %1 {offsets = [0, 0, 0], sizes = [18, 24, 27], strides = [1, 1, 1]} : vector<26x24x27xbf16> to vector<18x24x27xbf16>
    %4 = vector.shape_cast %3 : vector<18x24x27xbf16> to vector<432x27xbf16>
    %c0_3 = arith.constant 0 : index
    %c0_4 = arith.constant 0 : index
    %c0_5 = arith.constant 0 : index
    %5 = vector.load %arg3[%c0_3, %c0_4, %c0_5] : memref<9x27x64xbf16, #tpu.memory_space<vmem>>, vector<1x27x64xbf16>
    %6 = vector.shape_cast %5 : vector<1x27x64xbf16> to vector<27x64xbf16>
    %cst_6 = arith.constant dense<0.000000e+00> : vector<432x64xf32>
    %7 = tpu.matmul %4, %6, %cst_6 {dimension_numbers = #tpu.dot_dimension_numbers<[1], [0], [0], [1], [0, 0, 1, 1], [], []>} : vector<432x27xbf16>, vector<27x64xbf16>, vector<432x64xf32> -> vector<432x64xf32>
    %8 = arith.addf %2, %7 : vector<432x64xf32>
    %9 = vector.extract_strided_slice %1 {offsets = [1, 0, 0], sizes = [18, 24, 27], strides = [1, 1, 1]} : vector<26x24x27xbf16> to vector<18x24x27xbf16>
    %10 = vector.shape_cast %9 : vector<18x24x27xbf16> to vector<432x27xbf16>
    %c1 = arith.constant 1 : index
    %c0_7 = arith.constant 0 : index
    %c0_8 = arith.constant 0 : index
    %11 = vector.load %arg3[%c1, %c0_7, %c0_8] : memref<9x27x64xbf16, #tpu.memory_space<vmem>>, vector<1x27x64xbf16>
    %12 = vector.shape_cast %11 : vector<1x27x64xbf16> to vector<27x64xbf16>
    %cst_9 = arith.constant dense<0.000000e+00> : vector<432x64xf32>
    %13 = tpu.matmul %10, %12, %cst_9 {dimension_numbers = #tpu.dot_dimension_numbers<[1], [0], [0], [1], [0, 0, 1, 1], [], []>} : vector<432x27xbf16>, vector<27x64xbf16>, vector<432x64xf32> -> vector<432x64xf32>
    %14 = arith.addf %8, %13 : vector<432x64xf32>
    %15 = vector.extract_strided_slice %1 {offsets = [2, 0, 0], sizes = [18, 24, 27], strides = [1, 1, 1]} : vector<26x24x27xbf16> to vector<18x24x27xbf16>
    %16 = vector.shape_cast %15 : vector<18x24x27xbf16> to vector<432x27xbf16>
    %c2 = arith.constant 2 : index
    %c0_10 = arith.constant 0 : index
    %c0_11 = arith.constant 0 : index
    %17 = vector.load %arg3[%c2, %c0_10, %c0_11] : memref<9x27x64xbf16, #tpu.memory_space<vmem>>, vector<1x27x64xbf16>
    %18 = vector.shape_cast %17 : vector<1x27x64xbf16> to vector<27x64xbf16>
    %cst_12 = arith.constant dense<0.000000e+00> : vector<432x64xf32>
    %19 = tpu.matmul %16, %18, %cst_12 {dimension_numbers = #tpu.dot_dimension_numbers<[1], [0], [0], [1], [0, 0, 1, 1], [], []>} : vector<432x27xbf16>, vector<27x64xbf16>, vector<432x64xf32> -> vector<432x64xf32>
    %20 = arith.addf %14, %19 : vector<432x64xf32>
    %21 = vector.extract_strided_slice %1 {offsets = [3, 0, 0], sizes = [18, 24, 27], strides = [1, 1, 1]} : vector<26x24x27xbf16> to vector<18x24x27xbf16>
    %22 = vector.shape_cast %21 : vector<18x24x27xbf16> to vector<432x27xbf16>
    %c3 = arith.constant 3 : index
    %c0_13 = arith.constant 0 : index
    %c0_14 = arith.constant 0 : index
    %23 = vector.load %arg3[%c3, %c0_13, %c0_14] : memref<9x27x64xbf16, #tpu.memory_space<vmem>>, vector<1x27x64xbf16>
    %24 = vector.shape_cast %23 : vector<1x27x64xbf16> to vector<27x64xbf16>
    %cst_15 = arith.constant dense<0.000000e+00> : vector<432x64xf32>
    %25 = tpu.matmul %22, %24, %cst_15 {dimension_numbers = #tpu.dot_dimension_numbers<[1], [0], [0], [1], [0, 0, 1, 1], [], []>} : vector<432x27xbf16>, vector<27x64xbf16>, vector<432x64xf32> -> vector<432x64xf32>
    %26 = arith.addf %20, %25 : vector<432x64xf32>
    %27 = vector.extract_strided_slice %1 {offsets = [4, 0, 0], sizes = [18, 24, 27], strides = [1, 1, 1]} : vector<26x24x27xbf16> to vector<18x24x27xbf16>
    %28 = vector.shape_cast %27 : vector<18x24x27xbf16> to vector<432x27xbf16>
    %c4 = arith.constant 4 : index
    %c0_16 = arith.constant 0 : index
    %c0_17 = arith.constant 0 : index
    %29 = vector.load %arg3[%c4, %c0_16, %c0_17] : memref<9x27x64xbf16, #tpu.memory_space<vmem>>, vector<1x27x64xbf16>
    %30 = vector.shape_cast %29 : vector<1x27x64xbf16> to vector<27x64xbf16>
    %cst_18 = arith.constant dense<0.000000e+00> : vector<432x64xf32>
    %31 = tpu.matmul %28, %30, %cst_18 {dimension_numbers = #tpu.dot_dimension_numbers<[1], [0], [0], [1], [0, 0, 1, 1], [], []>} : vector<432x27xbf16>, vector<27x64xbf16>, vector<432x64xf32> -> vector<432x64xf32>
    %32 = arith.addf %26, %31 : vector<432x64xf32>
    %33 = vector.extract_strided_slice %1 {offsets = [5, 0, 0], sizes = [18, 24, 27], strides = [1, 1, 1]} : vector<26x24x27xbf16> to vector<18x24x27xbf16>
    %34 = vector.shape_cast %33 : vector<18x24x27xbf16> to vector<432x27xbf16>
    %c5 = arith.constant 5 : index
    %c0_19 = arith.constant 0 : index
    %c0_20 = arith.constant 0 : index
    %35 = vector.load %arg3[%c5, %c0_19, %c0_20] : memref<9x27x64xbf16, #tpu.memory_space<vmem>>, vector<1x27x64xbf16>
    %36 = vector.shape_cast %35 : vector<1x27x64xbf16> to vector<27x64xbf16>
    %cst_21 = arith.constant dense<0.000000e+00> : vector<432x64xf32>
    %37 = tpu.matmul %34, %36, %cst_21 {dimension_numbers = #tpu.dot_dimension_numbers<[1], [0], [0], [1], [0, 0, 1, 1], [], []>} : vector<432x27xbf16>, vector<27x64xbf16>, vector<432x64xf32> -> vector<432x64xf32>
    %38 = arith.addf %32, %37 : vector<432x64xf32>
    %39 = vector.extract_strided_slice %1 {offsets = [6, 0, 0], sizes = [18, 24, 27], strides = [1, 1, 1]} : vector<26x24x27xbf16> to vector<18x24x27xbf16>
    %40 = vector.shape_cast %39 : vector<18x24x27xbf16> to vector<432x27xbf16>
    %c6 = arith.constant 6 : index
    %c0_22 = arith.constant 0 : index
    %c0_23 = arith.constant 0 : index
    %41 = vector.load %arg3[%c6, %c0_22, %c0_23] : memref<9x27x64xbf16, #tpu.memory_space<vmem>>, vector<1x27x64xbf16>
    %42 = vector.shape_cast %41 : vector<1x27x64xbf16> to vector<27x64xbf16>
    %cst_24 = arith.constant dense<0.000000e+00> : vector<432x64xf32>
    %43 = tpu.matmul %40, %42, %cst_24 {dimension_numbers = #tpu.dot_dimension_numbers<[1], [0], [0], [1], [0, 0, 1, 1], [], []>} : vector<432x27xbf16>, vector<27x64xbf16>, vector<432x64xf32> -> vector<432x64xf32>
    %44 = arith.addf %38, %43 : vector<432x64xf32>
    %45 = vector.extract_strided_slice %1 {offsets = [7, 0, 0], sizes = [18, 24, 27], strides = [1, 1, 1]} : vector<26x24x27xbf16> to vector<18x24x27xbf16>
    %46 = vector.shape_cast %45 : vector<18x24x27xbf16> to vector<432x27xbf16>
    %c7 = arith.constant 7 : index
    %c0_25 = arith.constant 0 : index
    %c0_26 = arith.constant 0 : index
    %47 = vector.load %arg3[%c7, %c0_25, %c0_26] : memref<9x27x64xbf16, #tpu.memory_space<vmem>>, vector<1x27x64xbf16>
    %48 = vector.shape_cast %47 : vector<1x27x64xbf16> to vector<27x64xbf16>
    %cst_27 = arith.constant dense<0.000000e+00> : vector<432x64xf32>
    %49 = tpu.matmul %46, %48, %cst_27 {dimension_numbers = #tpu.dot_dimension_numbers<[1], [0], [0], [1], [0, 0, 1, 1], [], []>} : vector<432x27xbf16>, vector<27x64xbf16>, vector<432x64xf32> -> vector<432x64xf32>
    %50 = arith.addf %44, %49 : vector<432x64xf32>
    %51 = vector.extract_strided_slice %1 {offsets = [8, 0, 0], sizes = [18, 24, 27], strides = [1, 1, 1]} : vector<26x24x27xbf16> to vector<18x24x27xbf16>
    %52 = vector.shape_cast %51 : vector<18x24x27xbf16> to vector<432x27xbf16>
    %c8 = arith.constant 8 : index
    %c0_28 = arith.constant 0 : index
    %c0_29 = arith.constant 0 : index
    %53 = vector.load %arg3[%c8, %c0_28, %c0_29] : memref<9x27x64xbf16, #tpu.memory_space<vmem>>, vector<1x27x64xbf16>
    %54 = vector.shape_cast %53 : vector<1x27x64xbf16> to vector<27x64xbf16>
    %cst_30 = arith.constant dense<0.000000e+00> : vector<432x64xf32>
    %55 = tpu.matmul %52, %54, %cst_30 {dimension_numbers = #tpu.dot_dimension_numbers<[1], [0], [0], [1], [0, 0, 1, 1], [], []>} : vector<432x27xbf16>, vector<27x64xbf16>, vector<432x64xf32> -> vector<432x64xf32>
    %56 = arith.addf %50, %55 : vector<432x64xf32>
    %c0_31 = arith.constant 0 : index
    %c0_32 = arith.constant 0 : index
    %57 = vector.load %arg4[%c0_31, %c0_32] : memref<1x64xf32, #tpu.memory_space<vmem>>, vector<1x64xf32>
    %58 = vector.broadcast %57 : vector<1x64xf32> to vector<432x64xf32>
    %59 = arith.addf %56, %58 : vector<432x64xf32>
    %cst_33 = arith.constant 0.000000e+00 : f32
    %60 = vector.broadcast %cst_33 : f32 to vector<432x64xf32>
    %61 = arith.maximumf %59, %60 : vector<432x64xf32>
    %c0_34 = arith.constant 0 : index
    %c0_35 = arith.constant 0 : index
    %62 = vector.load %arg2[%c0_34, %c0_35] : memref<432x1xf32, #tpu.memory_space<vmem>>, vector<432x1xf32>
    %63 = vector.broadcast %62 : vector<432x1xf32> to vector<432x64xf32>
    %64 = arith.mulf %61, %63 : vector<432x64xf32>
    %65 = arith.truncf %64 : vector<432x64xf32> to vector<432x64xbf16>
    %66 = vector.shape_cast %65 : vector<432x64xbf16> to vector<18x24x64xbf16>
    %cst_36 = arith.constant 0.000000e+00 : f32
    %67 = vector.broadcast %cst_36 : f32 to vector<256x64xf32>
    %68 = vector.extract_strided_slice %66 {offsets = [0, 0, 0], sizes = [16, 16, 64], strides = [1, 1, 1]} : vector<18x24x64xbf16> to vector<16x16x64xbf16>
    %69 = vector.shape_cast %68 : vector<16x16x64xbf16> to vector<256x64xbf16>
    %c0_37 = arith.constant 0 : index
    %c0_38 = arith.constant 0 : index
    %c0_39 = arith.constant 0 : index
    %70 = vector.load %arg5[%c0_37, %c0_38, %c0_39] : memref<9x64x64xbf16, #tpu.memory_space<vmem>>, vector<1x64x64xbf16>
    %71 = vector.shape_cast %70 : vector<1x64x64xbf16> to vector<64x64xbf16>
    %cst_40 = arith.constant dense<0.000000e+00> : vector<256x64xf32>
    %72 = tpu.matmul %69, %71, %cst_40 {dimension_numbers = #tpu.dot_dimension_numbers<[1], [0], [0], [1], [0, 0, 1, 1], [], []>} : vector<256x64xbf16>, vector<64x64xbf16>, vector<256x64xf32> -> vector<256x64xf32>
    %73 = arith.addf %67, %72 : vector<256x64xf32>
    %74 = vector.extract_strided_slice %66 {offsets = [0, 1, 0], sizes = [16, 16, 64], strides = [1, 1, 1]} : vector<18x24x64xbf16> to vector<16x16x64xbf16>
    %75 = vector.shape_cast %74 : vector<16x16x64xbf16> to vector<256x64xbf16>
    %c1_41 = arith.constant 1 : index
    %c0_42 = arith.constant 0 : index
    %c0_43 = arith.constant 0 : index
    %76 = vector.load %arg5[%c1_41, %c0_42, %c0_43] : memref<9x64x64xbf16, #tpu.memory_space<vmem>>, vector<1x64x64xbf16>
    %77 = vector.shape_cast %76 : vector<1x64x64xbf16> to vector<64x64xbf16>
    %cst_44 = arith.constant dense<0.000000e+00> : vector<256x64xf32>
    %78 = tpu.matmul %75, %77, %cst_44 {dimension_numbers = #tpu.dot_dimension_numbers<[1], [0], [0], [1], [0, 0, 1, 1], [], []>} : vector<256x64xbf16>, vector<64x64xbf16>, vector<256x64xf32> -> vector<256x64xf32>
    %79 = arith.addf %73, %78 : vector<256x64xf32>
    %80 = vector.extract_strided_slice %66 {offsets = [0, 2, 0], sizes = [16, 16, 64], strides = [1, 1, 1]} : vector<18x24x64xbf16> to vector<16x16x64xbf16>
    %81 = vector.shape_cast %80 : vector<16x16x64xbf16> to vector<256x64xbf16>
    %c2_45 = arith.constant 2 : index
    %c0_46 = arith.constant 0 : index
    %c0_47 = arith.constant 0 : index
    %82 = vector.load %arg5[%c2_45, %c0_46, %c0_47] : memref<9x64x64xbf16, #tpu.memory_space<vmem>>, vector<1x64x64xbf16>
    %83 = vector.shape_cast %82 : vector<1x64x64xbf16> to vector<64x64xbf16>
    %cst_48 = arith.constant dense<0.000000e+00> : vector<256x64xf32>
    %84 = tpu.matmul %81, %83, %cst_48 {dimension_numbers = #tpu.dot_dimension_numbers<[1], [0], [0], [1], [0, 0, 1, 1], [], []>} : vector<256x64xbf16>, vector<64x64xbf16>, vector<256x64xf32> -> vector<256x64xf32>
    %85 = arith.addf %79, %84 : vector<256x64xf32>
    %86 = vector.extract_strided_slice %66 {offsets = [1, 0, 0], sizes = [16, 16, 64], strides = [1, 1, 1]} : vector<18x24x64xbf16> to vector<16x16x64xbf16>
    %87 = vector.shape_cast %86 : vector<16x16x64xbf16> to vector<256x64xbf16>
    %c3_49 = arith.constant 3 : index
    %c0_50 = arith.constant 0 : index
    %c0_51 = arith.constant 0 : index
    %88 = vector.load %arg5[%c3_49, %c0_50, %c0_51] : memref<9x64x64xbf16, #tpu.memory_space<vmem>>, vector<1x64x64xbf16>
    %89 = vector.shape_cast %88 : vector<1x64x64xbf16> to vector<64x64xbf16>
    %cst_52 = arith.constant dense<0.000000e+00> : vector<256x64xf32>
    %90 = tpu.matmul %87, %89, %cst_52 {dimension_numbers = #tpu.dot_dimension_numbers<[1], [0], [0], [1], [0, 0, 1, 1], [], []>} : vector<256x64xbf16>, vector<64x64xbf16>, vector<256x64xf32> -> vector<256x64xf32>
    %91 = arith.addf %85, %90 : vector<256x64xf32>
    %92 = vector.extract_strided_slice %66 {offsets = [1, 1, 0], sizes = [16, 16, 64], strides = [1, 1, 1]} : vector<18x24x64xbf16> to vector<16x16x64xbf16>
    %93 = vector.shape_cast %92 : vector<16x16x64xbf16> to vector<256x64xbf16>
    %c4_53 = arith.constant 4 : index
    %c0_54 = arith.constant 0 : index
    %c0_55 = arith.constant 0 : index
    %94 = vector.load %arg5[%c4_53, %c0_54, %c0_55] : memref<9x64x64xbf16, #tpu.memory_space<vmem>>, vector<1x64x64xbf16>
    %95 = vector.shape_cast %94 : vector<1x64x64xbf16> to vector<64x64xbf16>
    %cst_56 = arith.constant dense<0.000000e+00> : vector<256x64xf32>
    %96 = tpu.matmul %93, %95, %cst_56 {dimension_numbers = #tpu.dot_dimension_numbers<[1], [0], [0], [1], [0, 0, 1, 1], [], []>} : vector<256x64xbf16>, vector<64x64xbf16>, vector<256x64xf32> -> vector<256x64xf32>
    %97 = arith.addf %91, %96 : vector<256x64xf32>
    %98 = vector.extract_strided_slice %66 {offsets = [1, 2, 0], sizes = [16, 16, 64], strides = [1, 1, 1]} : vector<18x24x64xbf16> to vector<16x16x64xbf16>
    %99 = vector.shape_cast %98 : vector<16x16x64xbf16> to vector<256x64xbf16>
    %c5_57 = arith.constant 5 : index
    %c0_58 = arith.constant 0 : index
    %c0_59 = arith.constant 0 : index
    %100 = vector.load %arg5[%c5_57, %c0_58, %c0_59] : memref<9x64x64xbf16, #tpu.memory_space<vmem>>, vector<1x64x64xbf16>
    %101 = vector.shape_cast %100 : vector<1x64x64xbf16> to vector<64x64xbf16>
    %cst_60 = arith.constant dense<0.000000e+00> : vector<256x64xf32>
    %102 = tpu.matmul %99, %101, %cst_60 {dimension_numbers = #tpu.dot_dimension_numbers<[1], [0], [0], [1], [0, 0, 1, 1], [], []>} : vector<256x64xbf16>, vector<64x64xbf16>, vector<256x64xf32> -> vector<256x64xf32>
    %103 = arith.addf %97, %102 : vector<256x64xf32>
    %104 = vector.extract_strided_slice %66 {offsets = [2, 0, 0], sizes = [16, 16, 64], strides = [1, 1, 1]} : vector<18x24x64xbf16> to vector<16x16x64xbf16>
    %105 = vector.shape_cast %104 : vector<16x16x64xbf16> to vector<256x64xbf16>
    %c6_61 = arith.constant 6 : index
    %c0_62 = arith.constant 0 : index
    %c0_63 = arith.constant 0 : index
    %106 = vector.load %arg5[%c6_61, %c0_62, %c0_63] : memref<9x64x64xbf16, #tpu.memory_space<vmem>>, vector<1x64x64xbf16>
    %107 = vector.shape_cast %106 : vector<1x64x64xbf16> to vector<64x64xbf16>
    %cst_64 = arith.constant dense<0.000000e+00> : vector<256x64xf32>
    %108 = tpu.matmul %105, %107, %cst_64 {dimension_numbers = #tpu.dot_dimension_numbers<[1], [0], [0], [1], [0, 0, 1, 1], [], []>} : vector<256x64xbf16>, vector<64x64xbf16>, vector<256x64xf32> -> vector<256x64xf32>
    %109 = arith.addf %103, %108 : vector<256x64xf32>
    %110 = vector.extract_strided_slice %66 {offsets = [2, 1, 0], sizes = [16, 16, 64], strides = [1, 1, 1]} : vector<18x24x64xbf16> to vector<16x16x64xbf16>
    %111 = vector.shape_cast %110 : vector<16x16x64xbf16> to vector<256x64xbf16>
    %c7_65 = arith.constant 7 : index
    %c0_66 = arith.constant 0 : index
    %c0_67 = arith.constant 0 : index
    %112 = vector.load %arg5[%c7_65, %c0_66, %c0_67] : memref<9x64x64xbf16, #tpu.memory_space<vmem>>, vector<1x64x64xbf16>
    %113 = vector.shape_cast %112 : vector<1x64x64xbf16> to vector<64x64xbf16>
    %cst_68 = arith.constant dense<0.000000e+00> : vector<256x64xf32>
    %114 = tpu.matmul %111, %113, %cst_68 {dimension_numbers = #tpu.dot_dimension_numbers<[1], [0], [0], [1], [0, 0, 1, 1], [], []>} : vector<256x64xbf16>, vector<64x64xbf16>, vector<256x64xf32> -> vector<256x64xf32>
    %115 = arith.addf %109, %114 : vector<256x64xf32>
    %116 = vector.extract_strided_slice %66 {offsets = [2, 2, 0], sizes = [16, 16, 64], strides = [1, 1, 1]} : vector<18x24x64xbf16> to vector<16x16x64xbf16>
    %117 = vector.shape_cast %116 : vector<16x16x64xbf16> to vector<256x64xbf16>
    %c8_69 = arith.constant 8 : index
    %c0_70 = arith.constant 0 : index
    %c0_71 = arith.constant 0 : index
    %118 = vector.load %arg5[%c8_69, %c0_70, %c0_71] : memref<9x64x64xbf16, #tpu.memory_space<vmem>>, vector<1x64x64xbf16>
    %119 = vector.shape_cast %118 : vector<1x64x64xbf16> to vector<64x64xbf16>
    %cst_72 = arith.constant dense<0.000000e+00> : vector<256x64xf32>
    %120 = tpu.matmul %117, %119, %cst_72 {dimension_numbers = #tpu.dot_dimension_numbers<[1], [0], [0], [1], [0, 0, 1, 1], [], []>} : vector<256x64xbf16>, vector<64x64xbf16>, vector<256x64xf32> -> vector<256x64xf32>
    %121 = arith.addf %115, %120 : vector<256x64xf32>
    %c0_73 = arith.constant 0 : index
    %c0_74 = arith.constant 0 : index
    %122 = vector.load %arg6[%c0_73, %c0_74] : memref<1x64xf32, #tpu.memory_space<vmem>>, vector<1x64xf32>
    %123 = vector.broadcast %122 : vector<1x64xf32> to vector<256x64xf32>
    %124 = arith.addf %121, %123 : vector<256x64xf32>
    %cst_75 = arith.constant 0.000000e+00 : f32
    %125 = vector.broadcast %cst_75 : f32 to vector<256x64xf32>
    %126 = arith.maximumf %124, %125 : vector<256x64xf32>
    %127 = arith.truncf %126 : vector<256x64xf32> to vector<256x64xbf16>
    %c0_76 = arith.constant 0 : index
    %c0_77 = arith.constant 0 : index
    %128 = vector.load %arg7[%c0_76, %c0_77] : memref<256x812xbf16, #tpu.memory_space<vmem>>, vector<256x812xbf16>
    %cst_78 = arith.constant dense<0.000000e+00> : vector<64x812xf32>
    %129 = tpu.matmul %127, %128, %cst_78 {dimension_numbers = #tpu.dot_dimension_numbers<[0], [0], [1], [1], [0, 1, 1, 1], [], []>} : vector<256x64xbf16>, vector<256x812xbf16>, vector<64x812xf32> -> vector<64x812xf32>
    %130 = arith.truncf %129 : vector<64x812xf32> to vector<64x812xbf16>
    %c0_79 = arith.constant 0 : index
    %c0_80 = arith.constant 0 : index
    %131 = vector.load %arg8[%c0_79, %c0_80] : memref<64x200xbf16, #tpu.memory_space<vmem>>, vector<64x200xbf16>
    %cst_81 = arith.constant dense<0.000000e+00> : vector<200x812xf32>
    %132 = tpu.matmul %131, %130, %cst_81 {dimension_numbers = #tpu.dot_dimension_numbers<[0], [0], [1], [1], [0, 1, 1, 1], [], []>} : vector<64x200xbf16>, vector<64x812xbf16>, vector<200x812xf32> -> vector<200x812xf32>
    %cst_82 = arith.constant 0.000000e+00 : f32
    %133 = vector.broadcast %cst_82 : f32 to vector<8x672xf32>
    %134 = vector.extract_strided_slice %132 {offsets = [0, 0], sizes = [8, 672], strides = [1, 1]} : vector<200x812xf32> to vector<8x672xf32>
    %135 = arith.addf %133, %134 : vector<8x672xf32>
    %136 = vector.extract_strided_slice %132 {offsets = [8, 1], sizes = [8, 672], strides = [1, 1]} : vector<200x812xf32> to vector<8x672xf32>
    %137 = arith.addf %135, %136 : vector<8x672xf32>
    %138 = vector.extract_strided_slice %132 {offsets = [16, 2], sizes = [8, 672], strides = [1, 1]} : vector<200x812xf32> to vector<8x672xf32>
    %139 = arith.addf %137, %138 : vector<8x672xf32>
    %140 = vector.extract_strided_slice %132 {offsets = [24, 3], sizes = [8, 672], strides = [1, 1]} : vector<200x812xf32> to vector<8x672xf32>
    %141 = arith.addf %139, %140 : vector<8x672xf32>
    %142 = vector.extract_strided_slice %132 {offsets = [32, 4], sizes = [8, 672], strides = [1, 1]} : vector<200x812xf32> to vector<8x672xf32>
    %143 = arith.addf %141, %142 : vector<8x672xf32>
    %144 = vector.extract_strided_slice %132 {offsets = [40, 28], sizes = [8, 672], strides = [1, 1]} : vector<200x812xf32> to vector<8x672xf32>
    %145 = arith.addf %143, %144 : vector<8x672xf32>
    %146 = vector.extract_strided_slice %132 {offsets = [48, 29], sizes = [8, 672], strides = [1, 1]} : vector<200x812xf32> to vector<8x672xf32>
    %147 = arith.addf %145, %146 : vector<8x672xf32>
    %148 = vector.extract_strided_slice %132 {offsets = [56, 30], sizes = [8, 672], strides = [1, 1]} : vector<200x812xf32> to vector<8x672xf32>
    %149 = arith.addf %147, %148 : vector<8x672xf32>
    %150 = vector.extract_strided_slice %132 {offsets = [64, 31], sizes = [8, 672], strides = [1, 1]} : vector<200x812xf32> to vector<8x672xf32>
    %151 = arith.addf %149, %150 : vector<8x672xf32>
    %152 = vector.extract_strided_slice %132 {offsets = [72, 32], sizes = [8, 672], strides = [1, 1]} : vector<200x812xf32> to vector<8x672xf32>
    %153 = arith.addf %151, %152 : vector<8x672xf32>
    %154 = vector.extract_strided_slice %132 {offsets = [80, 56], sizes = [8, 672], strides = [1, 1]} : vector<200x812xf32> to vector<8x672xf32>
    %155 = arith.addf %153, %154 : vector<8x672xf32>
    %156 = vector.extract_strided_slice %132 {offsets = [88, 57], sizes = [8, 672], strides = [1, 1]} : vector<200x812xf32> to vector<8x672xf32>
    %157 = arith.addf %155, %156 : vector<8x672xf32>
    %158 = vector.extract_strided_slice %132 {offsets = [96, 58], sizes = [8, 672], strides = [1, 1]} : vector<200x812xf32> to vector<8x672xf32>
    %159 = arith.addf %157, %158 : vector<8x672xf32>
    %160 = vector.extract_strided_slice %132 {offsets = [104, 59], sizes = [8, 672], strides = [1, 1]} : vector<200x812xf32> to vector<8x672xf32>
    %161 = arith.addf %159, %160 : vector<8x672xf32>
    %162 = vector.extract_strided_slice %132 {offsets = [112, 60], sizes = [8, 672], strides = [1, 1]} : vector<200x812xf32> to vector<8x672xf32>
    %163 = arith.addf %161, %162 : vector<8x672xf32>
    %164 = vector.extract_strided_slice %132 {offsets = [120, 84], sizes = [8, 672], strides = [1, 1]} : vector<200x812xf32> to vector<8x672xf32>
    %165 = arith.addf %163, %164 : vector<8x672xf32>
    %166 = vector.extract_strided_slice %132 {offsets = [128, 85], sizes = [8, 672], strides = [1, 1]} : vector<200x812xf32> to vector<8x672xf32>
    %167 = arith.addf %165, %166 : vector<8x672xf32>
    %168 = vector.extract_strided_slice %132 {offsets = [136, 86], sizes = [8, 672], strides = [1, 1]} : vector<200x812xf32> to vector<8x672xf32>
    %169 = arith.addf %167, %168 : vector<8x672xf32>
    %170 = vector.extract_strided_slice %132 {offsets = [144, 87], sizes = [8, 672], strides = [1, 1]} : vector<200x812xf32> to vector<8x672xf32>
    %171 = arith.addf %169, %170 : vector<8x672xf32>
    %172 = vector.extract_strided_slice %132 {offsets = [152, 88], sizes = [8, 672], strides = [1, 1]} : vector<200x812xf32> to vector<8x672xf32>
    %173 = arith.addf %171, %172 : vector<8x672xf32>
    %174 = vector.extract_strided_slice %132 {offsets = [160, 112], sizes = [8, 672], strides = [1, 1]} : vector<200x812xf32> to vector<8x672xf32>
    %175 = arith.addf %173, %174 : vector<8x672xf32>
    %176 = vector.extract_strided_slice %132 {offsets = [168, 113], sizes = [8, 672], strides = [1, 1]} : vector<200x812xf32> to vector<8x672xf32>
    %177 = arith.addf %175, %176 : vector<8x672xf32>
    %178 = vector.extract_strided_slice %132 {offsets = [176, 114], sizes = [8, 672], strides = [1, 1]} : vector<200x812xf32> to vector<8x672xf32>
    %179 = arith.addf %177, %178 : vector<8x672xf32>
    %180 = vector.extract_strided_slice %132 {offsets = [184, 115], sizes = [8, 672], strides = [1, 1]} : vector<200x812xf32> to vector<8x672xf32>
    %181 = arith.addf %179, %180 : vector<8x672xf32>
    %182 = vector.extract_strided_slice %132 {offsets = [192, 116], sizes = [8, 672], strides = [1, 1]} : vector<200x812xf32> to vector<8x672xf32>
    %183 = arith.addf %181, %182 : vector<8x672xf32>
    %184 = vector.extract_strided_slice %183 {offsets = [0, 0], sizes = [3, 672], strides = [1, 1]} : vector<8x672xf32> to vector<3x672xf32>
    %c0_83 = arith.constant 0 : index
    %c0_84 = arith.constant 0 : index
    %185 = vector.load %arg9[%c0_83, %c0_84] : memref<3x1xf32, #tpu.memory_space<vmem>>, vector<3x1xf32>
    %186 = vector.broadcast %185 : vector<3x1xf32> to vector<3x672xf32>
    %187 = arith.addf %184, %186 : vector<3x672xf32>
    %c0_85 = arith.constant 0 : index
    %c0_86 = arith.constant 0 : index
    %c0_87 = arith.constant 0 : index
    %188 = vector.load %arg10[%c0_85, %c0_86, %c0_87] : memref<1x3x672xf32, #tpu.memory_space<vmem>>, vector<1x3x672xf32>
    %189 = vector.shape_cast %188 : vector<1x3x672xf32> to vector<3x672xf32>
    %190 = vector.shape_cast %187 : vector<3x672xf32> to vector<1x3x672xf32>
    tpu.vector_store %arg10[%c0_85, %c0_86, %c0_87], %190 {strides = array<i32>} : memref<1x3x672xf32, #tpu.memory_space<vmem>>, vector<1x3x672xf32>,
    return
  }
  func.func @transform_0(%arg0: i32) -> (i32, i32, i32, i32) {
    %c0_i32 = arith.constant 0 : i32
    %c0_i32_0 = arith.constant 0 : i32
    %c0_i32_1 = arith.constant 0 : i32
    %c0_i32_2 = arith.constant 0 : i32
    return %arg0, %c0_i32, %c0_i32_0, %c0_i32_1 : i32, i32, i32, i32
  }
  func.func @transform_1(%arg0: i32) -> (i32, i32) {
    %c0_i32 = arith.constant 0 : i32
    %c0_i32_0 = arith.constant 0 : i32
    %c0_i32_1 = arith.constant 0 : i32
    return %c0_i32, %c0_i32_0 : i32, i32
  }
  func.func @transform_2(%arg0: i32) -> (i32, i32, i32) {
    %c0_i32 = arith.constant 0 : i32
    %c0_i32_0 = arith.constant 0 : i32
    %c0_i32_1 = arith.constant 0 : i32
    %c0_i32_2 = arith.constant 0 : i32
    return %c0_i32, %c0_i32_0, %c0_i32_1 : i32, i32, i32
  }
  func.func @transform_3(%arg0: i32) -> (i32, i32) {
    %c0_i32 = arith.constant 0 : i32
    %c0_i32_0 = arith.constant 0 : i32
    %c0_i32_1 = arith.constant 0 : i32
    return %c0_i32, %c0_i32_0 : i32, i32
  }
  func.func @transform_4(%arg0: i32) -> (i32, i32, i32) {
    %c0_i32 = arith.constant 0 : i32
    %c0_i32_0 = arith.constant 0 : i32
    %c0_i32_1 = arith.constant 0 : i32
    %c0_i32_2 = arith.constant 0 : i32
    return %c0_i32, %c0_i32_0, %c0_i32_1 : i32, i32, i32
  }
  func.func @transform_5(%arg0: i32) -> (i32, i32) {
    %c0_i32 = arith.constant 0 : i32
    %c0_i32_0 = arith.constant 0 : i32
    %c0_i32_1 = arith.constant 0 : i32
    return %c0_i32, %c0_i32_0 : i32, i32
  }
  func.func @transform_6(%arg0: i32) -> (i32, i32) {
    %c0_i32 = arith.constant 0 : i32
    %c0_i32_0 = arith.constant 0 : i32
    %c0_i32_1 = arith.constant 0 : i32
    return %c0_i32, %c0_i32_0 : i32, i32
  }
  func.func @transform_7(%arg0: i32) -> (i32, i32) {
    %c0_i32 = arith.constant 0 : i32
    %c0_i32_0 = arith.constant 0 : i32
    %c0_i32_1 = arith.constant 0 : i32
    return %c0_i32, %c0_i32_0 : i32, i32
  }
  func.func @transform_8(%arg0: i32) -> (i32, i32) {
    %c0_i32 = arith.constant 0 : i32
    %c0_i32_0 = arith.constant 0 : i32
    %c0_i32_1 = arith.constant 0 : i32
    return %c0_i32, %c0_i32_0 : i32, i32
  }
  func.func @transform_9(%arg0: i32) -> (i32, i32, i32) {
    %c0_i32 = arith.constant 0 : i32
    %c0_i32_0 = arith.constant 0 : i32
    %c0_i32_1 = arith.constant 0 : i32
    return %arg0, %c0_i32, %c0_i32_0 : i32, i32, i32
  }
}

</mosaic_0001>

<bundles_post_ra>
// kernel: edsr_forward.1
= control target key start
LH: loop header
LB: loop body
LE: loop exit
PB: predicated region body
PF: predicated region fallthrough
CT: control target
= control target key end

     0   :  { %s10566_s30 = smov 0   ;;  %s15166_s0 = inlined_call_operand.vmem [shape: bf16[2,26,24,27], index: 0, kind: input, shape index: {}]   ;;  %s15167_s1 = inlined_call_operand.vmem [shape: f32[432,1], index: 1, kind: input, shape index: {}]   ;;  %s15168_s2 = inlined_call_operand.vmem [shape: bf16[9,27,64], index: 2, kind: input, shape index: {}]   ;;  %s15169_s3 = inlined_call_operand.vmem [shape: f32[1,64], index: 3, kind: input, shape index: {}]   ;;  %s15170_s4 = inlined_call_operand.vmem [shape: bf16[9,64,64], index: 4, kind: input, shape index: {}]   ;;  %s15171_s5 = inlined_call_operand.vmem [shape: f32[1,64], index: 5, kind: input, shape index: {}]   ;;  %s15172_s6 = inlined_call_operand.vmem [shape: bf16[256,812], index: 6, kind: input, shape index: {}]   ;;  %s15173_s7 = inlined_call_operand.vmem [shape: bf16[64,200], index: 7, kind: input, shape index: {}]   ;;  %s15174_s8 = inlined_call_operand.vmem [shape: f32[3,1], index: 8, kind: input, shape index: {}]   ;;  %s15175_s9 = inlined_call_operand.vmem [shape: f32[2,3,672], index: 9, kind: output, shape index: {}]  }
   0x1 LB: > { %s8360_s10 = sadd.s32 4294967295, %s10485_s30   ;;  %p8364_p0 = scmp.ge.s32.totalorder %s10485_s30, 1  ;;  %s10485_s30 = sphi %s10566_s30, %s19_s30  }
   0x2   : > { %p287_p1 = scmp.lt.s32.totalorder %s10485_s30, 3 }
   0x4   : > { %p288_p2 = pnand %p8364_p0, %p287_p1 }
   0x6   : > { %291 = sbr.rel (%p288_p2) target bundleno = 3121 (0xc31), region = 56 }
   0xb   : > { %v8377_v0 = vld [vmem:[%s15168_s2 + $0x18] sm:$0xf]  ;;  %v9670_v1 = vld [vmem:[%s15168_s2 + $0x18] sm:$0x30]  ;;  %vm649_vm0 = vcmask 1044480   ;;  %vm650_vm1 = vcmask 1045504  }
   0xc   : > { %v8378_v2 = vor.u32 %v9670_v1, %v8377_v0  ;;  %v8416_v3 = vld [vmem:[%s15168_s2 + $0x8] sm:$0xf]  ;;  %v9668_v4 = vld [vmem:[%s15168_s2 + $0x8] sm:$0x30]  ;;  %v10487_v5 = vmov 65535   ;;  %p323_p3 = scmp.lt.s32.totalorder %s8360_s10, 1 }
   0xd   : > { %v651_v6 = vsel %vm649_vm0, 4294967295, %v10487_v5  ;;  %v8417_v7 = vor.u32 %v9668_v4, %v8416_v3  ;;  %v8455_v8 = vld [vmem:[%s15168_s2 + $0x28] sm:$0xf]  ;;  %v9672_v9 = vld [vmem:[%s15168_s2 + $0x28] sm:$0x30]  ;;  %v9669_v18 = vld [vmem:[%s15168_s2 + $0x10] sm:$0xff] }
   0xe   : > { %v10592_v10 = vsel %vm650_vm1, %v651_v6, 0  ;;  %v8456_v11 = vor.u32 %v9672_v9, %v8455_v8  ;;  %v8494_v12 = vld [vmem:[%s15168_s2 + $0x38] sm:$0xf]  ;;  %v9674_v15 = vld [vmem:[%s15168_s2 + $0x38] sm:$0x30]  ;;  %s15680_s10 = smov (!%p323_p3, %s8360_s10), 1 }
   0xf   : > { %v654_v13 = vand.u32 %v8378_v2, %v10592_v10  ;;  %v926_v14 = vand.u32 %v8417_v7, %v10592_v10  ;;  %v8495_v17 = vor.u32 %v9674_v15, %v8494_v12  ;;  %v9667_v19 = vld [vmem:[%s15168_s2] sm:$0xff]  ;;  %s10392_s14 = smul.u32 312, %s15680_s10  ;;  %vm567_vm2 = vcmask 220160   ;;  %v9673_v24 = vld [vmem:[%s15168_s2 + $0x30] sm:$0xff]  ;;  %v8533_v47 = vld [vmem:[%s15168_s2 + $0x48] sm:$0xf] }
  0x10   : > { %v1107_v16 = vand.u32 %v8456_v11, %v10592_v10  ;;  %v9671_v20 = vld [vmem:[%s15168_s2 + $0x20] sm:$0xff]  ;;  %v9676_v48 = vld [vmem:[%s15168_s2 + $0x48] sm:$0x30]  ;;  %vm15240_vm3 = vcmask 1042432   ;;  %vm4133_vm4 = vcmask 1046532   ;;  %vm3737_vm9 = vcmask 523264  }
  0x11   : > { %662 = vmatpush.bf16.msra.mxu0 %v654_v13  ;;  %934 = vmatpush.bf16.msra.mxu1 %v926_v14  ;;  %v1342_v21 = vand.u32 %v8495_v17, %v10592_v10  ;;  %s10619_s17 = scalar_lea.vmem %s15166_s0, %s10392_s14  ;;  %v8534_v49 = vor.u32 %v9676_v48, %v8533_v47  ;;  %vm3269_vm5 = vsmask.f32 3328  ;;  %vm3270_vm6 = vsmask.f32 7440  ;;  %vm11865_vm7 = vmor %vm15240_vm3, %vm4133_vm4  ;;  %s15242_s24 = smov 127  }
  0x12   : > { %1115 = vmatpush.bf16.msra.mxu2 %v1107_v16  ;;  %v10328_v22 = vld [vmem:[%s10619_s17 + $0xc] sm:$0xff]   ;;  %v9665_v23 = vld [vmem:[%s10619_s17] sm:$0xff]  ;;  %v9991_v25 = vld [vmem:[%s10619_s17 + $0x18] sm:$0xff]   ;;  %s10490_s25 = smov 126   ;;  %s10491_s26 = smov 125   ;;  %vm15245_vm10 = vcmask 1039360  }
  0x13   : > { %10212 = vmatpush.bf16.msra.mxu3 %v1342_v21  ;;  %v10338_v26 = vld [vmem:[%s10619_s17 + $0x34] sm:$0xff]   ;;  %v9989_v28 = vld [vmem:[%s10619_s17 + $0x8] sm:$0xff]   ;;  %v9992_v29 = vld [vmem:[%s10619_s17 + $0x20] sm:$0xff]   ;;  %v1577_v50 = vand.u32 %v8534_v49, %v10592_v10  ;;  %s10492_s27 = smov 124   ;;  %s10493_s28 = smov 100   ;;  %vm15246_vm11 = vcmask 1031168  }
  0x14   : > { %v10330_v27 = vld [vmem:[%s10619_s17 + $0x14] sm:$0xff]   ;;  %v10639_v30 = vld [vmem:[%s10619_s17 + $0x3c] sm:$0xff]   ;;  %v9993_v33 = vld [vmem:[%s10619_s17 + $0x28] sm:$0xff]   ;;  %s10494_s29 = smov 99   ;;  %s10495_s11 = smov 98   ;;  %vm7477_vm12 = vcmask 1022976  }
  0x15   : > { %663 = vmatpush.bf16.msra.mxu0 %v9669_v18  ;;  %935 = vmatpush.bf16.msra.mxu1 %v9667_v19  ;;  %v10332_v31 = vld [vmem:[%s10619_s17 + $0x1c] sm:$0xff]   ;;  %v9990_v32 = vld [vmem:[%s10619_s17 + $0x10] sm:$0xff]   ;;  %v10650_v34 = vld [vmem:[%s10619_s17 + $0x44] sm:$0xff]   ;;  %s15228_s12 = smov 97   ;;  %s10497_s13 = smov 96   ;;  %vm7513_vm13 = vcmask 1014784  }
  0x16   : > { %1116 = vmatpush.bf16.msra.mxu2 %v9671_v20  ;;  %v10655_v35 = vld [vmem:[%s10619_s17 + $0x24] sm:$0xff]   ;;  %v10658_v36 = vld [vmem:[%s10619_s17 + $0x30] sm:$0xff]   ;;  %v10674_v39 = vld [vmem:[%s10619_s17 + $0x38] sm:$0xff]   ;;  %s15230_s14 = smov 72   ;;  %s10499_s15 = smov 71   ;;  %vm7549_vm14 = vcmask 818176  }
  0x17   : > { %10213 = vmatpush.bf16.msra.mxu3 %v9673_v24  ;;  %v10666_v37 = vld [vmem:[%s10619_s17 + $0x4c] sm:$0xff]   ;;  %v10682_v40 = vld [vmem:[%s10619_s17 + $0x54] sm:$0xff]   ;;  %v10687_v41 = vld [vmem:[%s10619_s17 + $0x40] sm:$0xff]   ;;  %s10500_s16 = smov 70   ;;  %s15234_s18 = smov 68   ;;  %vm7585_vm15 = vcmask 809984  }
  0x18   : > { %8379 = vmatmul.msk.bf16.vlgmr.msra.gmra.mxu0 %vm567_vm2, %v10328_v22  ;;  %8418 = vmatmul.msk.bf16.vlgmr.msra.gmra.mxu1 %vm567_vm2, %v9665_v23  ;;  %v10671_v38 = vld [vmem:[%s10619_s17 + $0x2c] sm:$0xff]   ;;  %v10694_v42 = vld [vmem:[%s10619_s17 + $0x5c] sm:$0xff]   ;;  %v10708_v44 = vld [vmem:[%s10619_s17 + $0x64] sm:$0xff]   ;;  %s10503_s19 = smov 44   ;;  %s15236_s20 = smov 43   ;;  %vm7621_vm0 = vcmask 801792  }
  0x19   : > { %8457 = vmatmul.msk.bf16.vlgmr.msra.gmra.mxu2 %vm567_vm2, %v9991_v25  ;;  %1350 = vmatpush.bf16.msra.mxu1 %v1342_v21  ;;  %v10699_v43 = vld [vmem:[%s10619_s17 + $0x48] sm:$0xff]   ;;  %v10713_v45 = vld [vmem:[%s10619_s17 + $0x50] sm:$0xff]   ;;  %v10734_v54 = vld [vmem:[%s10619_s17 + $0x58] sm:$0xff]   ;;  %s15232_s21 = smov 15   ;;  %s10506_s22 = smov 42   ;;  %vm7657_vm1 = vcmask 793600  }
  0x1a   : > { %8498 = vmatmul.msk.bf16.vlgmr.msra.gmra.mxu3 %vm567_vm2, %v10338_v26  ;;  %v10722_v46 = vld [vmem:[%s10619_s17 + $0x6c] sm:$0xff]   ;;  %1585 = vmatpush.bf16.msra.mxu0 %v1577_v50  ;;  %v10743_v55 = vld [vmem:[%s10619_s17 + $0x74] sm:$0xff]   ;;  %v10752_v3 = vld [vmem:[%s10619_s17 + $0x60] sm:$0xff]   ;;  %s15226_s23 = smov 14   ;;  %vm7729_vm4 = vcmask 588800   ;;  %vm15243_vm3 = vcmask 359424  }
  0x1b   : > { %v10761_v5 = vld [vmem:[%s10619_s17 + $0x7c] sm:$0xff]   ;;  %v10770_v18 = vld [vmem:[%s10619_s17 + $0x68] sm:$0xff]   ;;  %v10786_v47 = vld [vmem:[%s10619_s17 + $0x70] sm:$0xff]  }
  0x1c   : > { %v10779_v20 = vld [vmem:[%s10619_s17 + $0x84] sm:$0xff]   ;;  %v10797_v50 = vld [vmem:[%s10619_s17 + $0x8c] sm:$0xff]   ;;  %vm11873_vm8 = vmor %vm3269_vm5, %vm3270_vm6  ;;  %vm7765_vm5 = vcmask 580608   ;;  %vm15250_vm6 = vcmask 572416  }
  0x1d   : > { %1351 = vmatpush.bf16.msra.mxu1 %v9673_v24 }
  0x28   : > { %8380 = vmatmul.msk.bf16.gmra.mxu0 %vm567_vm2, %v10330_v27  ;;  %8419 = vmatmul.msk.bf16.gmra.mxu1 %vm567_vm2, %v9989_v28 }
  0x29   : > { %8458 = vmatmul.msk.bf16.gmra.mxu2 %vm567_vm2, %v9992_v29 }
  0x2a   : > { %8499 = vmatmul.msk.bf16.gmra.mxu3 %vm567_vm2, %v10639_v30 }
  0x38   : > { %8381 = vmatmul.msk.bf16.gmra.mxu0 %vm567_vm2, %v10332_v31  ;;  %8420 = vmatmul.msk.bf16.gmra.mxu1 %vm567_vm2, %v9990_v32 }
  0x39   : > { %8459 = vmatmul.msk.bf16.gmra.mxu2 %vm567_vm2, %v9993_v33 }
  0x3a   : > { %8500 = vmatmul.msk.bf16.gmra.mxu3 %vm567_vm2, %v10650_v34 }
  0x48   : > { %8382 = vmatmul.msk.bf16.gmra.mxu0 %vm567_vm2, %v10655_v35  ;;  %8421 = vmatmul.msk.bf16.gmra.mxu1 %vm567_vm2, %v9991_v25 }
  0x49   : > { %8460 = vmatmul.msk.bf16.gmra.mxu2 %vm567_vm2, %v10658_v36 }
  0x4a   : > { %8501 = vmatmul.msk.bf16.gmra.mxu3 %vm567_vm2, %v10666_v37 }
  0x58   : > { %8383 = vmatmul.msk.bf16.gmra.mxu0 %vm567_vm2, %v10671_v38  ;;  %8422 = vmatmul.msk.bf16.gmra.mxu1 %vm567_vm2, %v9992_v29 }
  0x59   : > { %8461 = vmatmul.msk.bf16.gmra.mxu2 %vm567_vm2, %v10674_v39 }
  0x5a   : > { %8502 = vmatmul.msk.bf16.gmra.mxu3 %vm567_vm2, %v10682_v40 }
  0x68   : > { %8384 = vmatmul.msk.bf16.gmra.mxu0 %vm567_vm2, %v10338_v26  ;;  %8423 = vmatmul.msk.bf16.gmra.mxu1 %vm567_vm2, %v9993_v33 }
  0x69   : > { %8462 = vmatmul.msk.bf16.gmra.mxu2 %vm567_vm2, %v10687_v41 }
  0x6a   : > { %8503 = vmatmul.msk.bf16.gmra.mxu3 %vm567_vm2, %v10694_v42 }
  0x78   : > { %8385 = vmatmul.msk.bf16.gmra.mxu0 %vm567_vm2, %v10639_v30  ;;  %8424 = vmatmul.msk.bf16.gmra.mxu1 %vm567_vm2, %v10658_v36 }
  0x79   : > { %8463 = vmatmul.msk.bf16.gmra.mxu2 %vm567_vm2, %v10699_v43 }
  0x7a   : > { %8504 = vmatmul.msk.bf16.gmra.mxu3 %vm567_vm2, %v10708_v44 }
  0x88   : > { %8386 = vmatmul.msk.bf16.gmra.mxu0 %vm567_vm2, %v10650_v34  ;;  %8425 = vmatmul.msk.bf16.gmra.mxu1 %vm567_vm2, %v10674_v39 }
  0x89   : > { %8464 = vmatmul.msk.bf16.gmra.mxu2 %vm567_vm2, %v10713_v45 }
  0x8a   : > { %8505 = vmatmul.msk.bf16.gmra.mxu3 %vm567_vm2, %v10722_v46 }
  0x95   : > { %v665_v51 = vpop.f32.mrf.mxu0  ;;  %v937_v52 = vpop.f32.mrf.mxu1 }
  0x96   : > { %v938_v53 = vadd.f32 %v937_v52, %v665_v51 }
  0x98   : > { %8387 = vmatmul.msk.bf16.gmra.mxu0 %vm567_vm2, %v10666_v37  ;;  %8426 = vmatmul.msk.bf16.gmra.mxu1 %vm567_vm2, %v10687_v41 }
  0x99   : > { %8465 = vmatmul.msk.bf16.gmra.mxu2 %vm567_vm2, %v10734_v54 }
  0x9a   : > { %8506 = vmatmul.msk.bf16.gmra.mxu3 %vm567_vm2, %v10743_v55 }
  0x9c   : > { %v1118_v56 = vpop.f32.mrf.mxu2 }
  0x9d   : > { %v10747_v57 = vadd.f32 %v1118_v56, %v938_v53  ;;  %v667_v58 = vpop.f32.mrf.mxu0  ;;  %v939_v59 = vpop.f32.mrf.mxu1 }
  0x9e   : > { %v940_v60 = vadd.f32 %v939_v59, %v667_v58  ;;  %v1363_v61 = vpop.f32.mrf.mxu3 }
  0xa4   : > { %v1120_v62 = vpop.f32.mrf.mxu2 }
  0xa5   : > { %v10749_v63 = vadd.f32 %v1120_v62, %v940_v60  ;;  %v670_v0 = vpop.f32.mrf.mxu0  ;;  %v942_v1 = vpop.f32.mrf.mxu1 }
  0xa6   : > { %v943_v2 = vadd.f32 %v942_v1, %v670_v0  ;;  %v1365_v4 = vpop.f32.mrf.mxu3 }
  0xa8   : > { %8388 = vmatmul.msk.bf16.gmra.mxu0 %vm567_vm2, %v10682_v40  ;;  %8427 = vmatmul.msk.bf16.gmra.mxu1 %vm567_vm2, %v10699_v43 }
  0xa9   : > { %8466 = vmatmul.msk.bf16.gmra.mxu2 %vm567_vm2, %v10752_v3 }
  0xaa   : > { %8507 = vmatmul.msk.bf16.gmra.mxu3 %vm567_vm2, %v10761_v5 }
  0xac   : > { %v1123_v6 = vpop.f32.mrf.mxu2 }
  0xad   : > { %v10765_v7 = vadd.f32 %v1123_v6, %v943_v2  ;;  %v672_v8 = vpop.f32.mrf.mxu0  ;;  %v944_v9 = vpop.f32.mrf.mxu1 }
  0xae   : > { %v945_v11 = vadd.f32 %v944_v9, %v672_v8  ;;  %v1368_v12 = vpop.f32.mrf.mxu3  ;;  %v10815_v9 = vld [vmem:[%s10619_s17 + $0x94] sm:$0xff]  }
  0xb4   : > { %v1125_v13 = vpop.f32.mrf.mxu2 }
  0xb5   : > { %v10767_v14 = vadd.f32 %v1125_v13, %v945_v11  ;;  %v675_v15 = vpop.f32.mrf.mxu0  ;;  %v947_v16 = vpop.f32.mrf.mxu1 }
  0xb6   : > { %v948_v17 = vadd.f32 %v947_v16, %v675_v15  ;;  %v1370_v19 = vpop.f32.mrf.mxu3 }
  0xb8   : > { %8389 = vmatmul.msk.bf16.gmra.mxu0 %vm567_vm2, %v10694_v42  ;;  %8428 = vmatmul.msk.bf16.gmra.mxu1 %vm567_vm2, %v10713_v45 }
  0xb9   : > { %8467 = vmatmul.msk.bf16.gmra.mxu2 %vm567_vm2, %v10770_v18 }
  0xba   : > { %8508 = vmatmul.msk.bf16.gmra.mxu3 %vm567_vm2, %v10779_v20 }
  0xbc   : > { %v1128_v21 = vpop.f32.mrf.mxu2 }
  0xbd   : > { %v1257_v22 = vadd.f32 %v1128_v21, %v948_v17  ;;  %v677_v23 = vpop.f32.mrf.mxu0  ;;  %v949_v24 = vpop.f32.mrf.mxu1 }
  0xbe   : > { %v950_v25 = vadd.f32 %v949_v24, %v677_v23  ;;  %v1373_v27 = vpop.f32.mrf.mxu3 }
  0xbf   : > { %v10783_v26 = vadd.f32 %v1363_v61, %v1257_v22 }
  0xc4   : > { %v1130_v28 = vpop.f32.mrf.mxu2 }
  0xc5   : > { %v1258_v29 = vadd.f32 %v1130_v28, %v950_v25  ;;  %v680_v31 = vpop.f32.mrf.mxu0  ;;  %v952_v32 = vpop.f32.mrf.mxu1  ;;  %v10822_v28 = vld [vmem:[%s10619_s17 + $0x80] sm:$0xff]  }
  0xc6   : > { %v953_v33 = vadd.f32 %v952_v32, %v680_v31  ;;  %v1375_v49 = vpop.f32.mrf.mxu3 }
  0xc7   : > { %v10788_v48 = vadd.f32 %v1365_v4, %v1258_v29  ;;  %v10804_v4 = vld [vmem:[%s10619_s17 + $0x78] sm:$0xff]  }
  0xc8   : > { %8390 = vmatmul.msk.bf16.gmra.mxu0 %vm567_vm2, %v10708_v44  ;;  %8429 = vmatmul.msk.bf16.gmra.mxu1 %vm567_vm2, %v10734_v54 }
  0xc9   : > { %15252 = vst [vmem:[#allocation2_spill] sm:$0xff] %v10788_v48  ;;  %8468 = vmatmul.msk.bf16.gmra.mxu2 %vm567_vm2, %v10786_v47 }
  0xca   : > { %8509 = vmatmul.msk.bf16.gmra.mxu3 %vm567_vm2, %v10797_v50 }
  0xcc   : > { %v1133_v51 = vpop.f32.mrf.mxu2 }
  0xcd   : > { %v1259_v52 = vadd.f32 %v1133_v51, %v953_v33  ;;  %v682_v53 = vpop.f32.mrf.mxu0  ;;  %v954_v56 = vpop.f32.mrf.mxu1 }
  0xce   : > { %v955_v58 = vadd.f32 %v954_v56, %v682_v53  ;;  %v1378_v60 = vpop.f32.mrf.mxu3 }
  0xcf   : > { %v10801_v59 = vadd.f32 %v1368_v12, %v1259_v52 }
  0xd1   : > { %15253 = vst [vmem:[#allocation3_spill] sm:$0xff] %v10801_v59 }
  0xd4   : > { %v1135_v61 = vpop.f32.mrf.mxu2 }
  0xd5   : > { %v1260_v62 = vadd.f32 %v1135_v61, %v955_v58  ;;  %v685_v0 = vpop.f32.mrf.mxu0  ;;  %v957_v1 = vpop.f32.mrf.mxu1 }
  0xd6   : > { %v958_v2 = vadd.f32 %v957_v1, %v685_v0  ;;  %v1380_v8 = vpop.f32.mrf.mxu3 }
  0xd7   : > { %v10806_v6 = vadd.f32 %v1370_v19, %v1260_v62 }
  0xd8   : > { %8391 = vmatmul.msk.bf16.gmra.mxu0 %vm567_vm2, %v10722_v46  ;;  %8430 = vmatmul.msk.bf16.gmra.mxu1 %vm567_vm2, %v10752_v3 }
  0xd9   : > { %15254 = vst [vmem:[#allocation4_spill] sm:$0xff] %v10806_v6  ;;  %8469 = vmatmul.msk.bf16.gmra.mxu2 %vm567_vm2, %v10804_v4 }
  0xda   : > { %8510 = vmatmul.msk.bf16.gmra.mxu3 %vm567_vm2, %v10815_v9 }
  0xdc   : > { %v1138_v11 = vpop.f32.mrf.mxu2 }
  0xdd   : > { %v1261_v12 = vadd.f32 %v1138_v11, %v958_v2  ;;  %v687_v13 = vpop.f32.mrf.mxu0  ;;  %v959_v15 = vpop.f32.mrf.mxu1  ;;  %v10840_v2 = vld [vmem:[%s10619_s17 + $0x88] sm:$0xff]  }
  0xde   : > { %v960_v16 = vadd.f32 %v959_v15, %v687_v13  ;;  %v1383_v19 = vpop.f32.mrf.mxu3 }
  0xdf   : > { %v10819_v17 = vadd.f32 %v1373_v27, %v1261_v12  ;;  %v10833_v27 = vld [vmem:[%s10619_s17 + $0x9c] sm:$0xff]  }
  0xe1   : > { %15255 = vst [vmem:[#allocation5_spill] sm:$0xff] %v10819_v17 }
  0xe4   : > { %v1140_v21 = vpop.f32.mrf.mxu2 }
  0xe5   : > { %v1262_v22 = vadd.f32 %v1140_v21, %v960_v16  ;;  %v690_v23 = vpop.f32.mrf.mxu0  ;;  %v962_v24 = vpop.f32.mrf.mxu1 }
  0xe6   : > { %v963_v25 = vadd.f32 %v962_v24, %v690_v23  ;;  %v1385_v31 = vpop.f32.mrf.mxu3 }
  0xe7   : > { %v10824_v29 = vadd.f32 %v1375_v49, %v1262_v22 }
  0xe8   : > { %8392 = vmatmul.msk.bf16.gmra.mxu0 %vm567_vm2, %v10743_v55  ;;  %8431 = vmatmul.msk.bf16.gmra.mxu1 %vm567_vm2, %v10770_v18 }
  0xe9   : > { %15256 = vst [vmem:[#allocation6_spill] sm:$0xff] %v10824_v29  ;;  %8470 = vmatmul.msk.bf16.gmra.mxu2 %vm567_vm2, %v10822_v28 }
  0xea   : > { %8511 = vmatmul.msk.bf16.gmra.mxu3 %vm567_vm2, %v10833_v27 }
  0xec   : > { %v1143_v32 = vpop.f32.mrf.mxu2 }
  0xed   : > { %v1263_v33 = vadd.f32 %v1143_v32, %v963_v25  ;;  %v692_v49 = vpop.f32.mrf.mxu0  ;;  %v964_v51 = vpop.f32.mrf.mxu1 }
  0xee   : > { %v965_v52 = vadd.f32 %v964_v51, %v692_v49  ;;  %v1388_v56 = vpop.f32.mrf.mxu3  ;;  %v10858_v51 = vld [vmem:[%s10619_s17 + $0x90] sm:$0xff]  }
  0xef   : > { %v10837_v53 = vadd.f32 %v1378_v60, %v1263_v33  ;;  %v10851_v60 = vld [vmem:[%s10619_s17 + $0xa4] sm:$0xff]  }
  0xf1   : > { %15257 = vst [vmem:[#allocation7_spill] sm:$0xff] %v10837_v53 }
  0xf4   : > { %v1145_v58 = vpop.f32.mrf.mxu2 }
  0xf5   : > { %v1264_v61 = vadd.f32 %v1145_v58, %v965_v52  ;;  %v695_v62 = vpop.f32.mrf.mxu0  ;;  %v967_v0 = vpop.f32.mrf.mxu1 }
  0xf6   : > { %v968_v1 = vadd.f32 %v967_v0, %v695_v62  ;;  %v1390_v12 = vpop.f32.mrf.mxu3 }
  0xf7   : > { %v10842_v11 = vadd.f32 %v1380_v8, %v1264_v61 }
  0xf8   : > { %8393 = vmatmul.msk.bf16.gmra.mxu0 %vm567_vm2, %v10761_v5  ;;  %8432 = vmatmul.msk.bf16.gmra.mxu1 %vm567_vm2, %v10786_v47 }
  0xf9   : > { %15258 = vst [vmem:[#allocation8_spill] sm:$0xff] %v10842_v11  ;;  %8471 = vmatmul.msk.bf16.gmra.mxu2 %vm567_vm2, %v10840_v2 }
  0xfa   : > { %8512 = vmatmul.msk.bf16.gmra.mxu3 %vm567_vm2, %v10851_v60 }
  0xfc   : > { %v1148_v13 = vpop.f32.mrf.mxu2 }
  0xfd   : > { %v1265_v15 = vadd.f32 %v1148_v13, %v968_v1  ;;  %v697_v8 = vpop.f32.mrf.mxu0  ;;  %v969_v16 = vpop.f32.mrf.mxu1 }
  0xfe   : > { %v970_v21 = vadd.f32 %v969_v16, %v697_v8  ;;  %v1393_v23 = vpop.f32.mrf.mxu3 }
  0xff   : > { %v10855_v22 = vadd.f32 %v1383_v19, %v1265_v15  ;;  %v10869_v19 = vld [vmem:[%s10619_s17 + $0xac] sm:$0xff]  }
 0x100   : > { %15261 = vst [vmem:[#allocation11_spill] sm:$0xff] %v10869_v19 }
 0x101   : > { %15259 = vst [vmem:[#allocation9_spill] sm:$0xff] %v10855_v22 }
 0x104   : > { %v1150_v24 = vpop.f32.mrf.mxu2 }
 0x105   : > { %v1266_v25 = vadd.f32 %v1150_v24, %v970_v21  ;;  %v700_v32 = vpop.f32.mrf.mxu0  ;;  %v972_v33 = vpop.f32.mrf.mxu1 }
 0x106   : > { %v973_v49 = vadd.f32 %v972_v33, %v700_v32  ;;  %v1395_v58 = vpop.f32.mrf.mxu3  ;;  %v10876_v32 = vld [vmem:[%s10619_s17 + $0x98] sm:$0xff]  }
 0x107   : > { %v10860_v52 = vadd.f32 %v1385_v31, %v1266_v25 }
 0x108   : > { %8394 = vmatmul.msk.bf16.gmra.mxu0 %vm567_vm2, %v10779_v20  ;;  %8433 = vmatmul.msk.bf16.gmra.mxu1 %vm567_vm2, %v10804_v4 }
 0x109   : > { %15260 = vst [vmem:[#allocation10_spill] sm:$0xff] %v10860_v52  ;;  %8472 = vmatmul.msk.bf16.gmra.mxu2 %vm567_vm2, %v10858_v51 }
 0x10a   : > { %8513 = vmatmul.msk.bf16.gmra.mxu3 %vm567_vm2, %v10869_v19 }
 0x10c   : > { %v1153_v61 = vpop.f32.mrf.mxu2 }
 0x10d   : > { %v1267_v62 = vadd.f32 %v1153_v61, %v973_v49  ;;  %v702_v31 = vpop.f32.mrf.mxu0  ;;  %v974_v0 = vpop.f32.mrf.mxu1 }
 0x10e   : > { %v975_v1 = vadd.f32 %v974_v0, %v702_v31  ;;  %v1398_v15 = vpop.f32.mrf.mxu3 }
 0x10f   : > { %v10873_v13 = vadd.f32 %v1388_v56, %v1267_v62  ;;  %v10887_v56 = vld [vmem:[%s10619_s17 + $0xb4] sm:$0xff]  }
 0x110   : > { %15264 = vst [vmem:[#allocation14_spill] sm:$0xff] %v10887_v56 }
 0x111   : > { %15262 = vst [vmem:[#allocation12_spill] sm:$0xff] %v10873_v13  ;;  %v10894_v13 = vld [vmem:[%s10619_s17 + $0xa0] sm:$0xff]  }
 0x112   : > { %15266 = vst [vmem:[#allocation16_spill] sm:$0xff] %v10894_v13 }
 0x114   : > { %v1155_v8 = vpop.f32.mrf.mxu2 }
 0x115   : > { %v1268_v16 = vadd.f32 %v1155_v8, %v975_v1  ;;  %v705_v21 = vpop.f32.mrf.mxu0  ;;  %v977_v24 = vpop.f32.mrf.mxu1 }
 0x116   : > { %v978_v25 = vadd.f32 %v977_v24, %v705_v21  ;;  %v1400_v52 = vpop.f32.mrf.mxu3 }
 0x117   : > { %v10878_v33 = vadd.f32 %v1390_v12, %v1268_v16 }
 0x118   : > { %8395 = vmatmul.msk.bf16.gmra.mxu0 %vm567_vm2, %v10797_v50  ;;  %8434 = vmatmul.msk.bf16.gmra.mxu1 %vm567_vm2, %v10822_v28 }
 0x119   : > { %15263 = vst [vmem:[#allocation13_spill] sm:$0xff] %v10878_v33  ;;  %8473 = vmatmul.msk.bf16.gmra.mxu2 %vm567_vm2, %v10876_v32 }
 0x11a   : > { %8514 = vmatmul.msk.bf16.gmra.mxu3 %vm567_vm2, %v10887_v56 }
 0x11c   : > { %v1158_v49 = vpop.f32.mrf.mxu2 }
 0x11d   : > { %v1269_v61 = vadd.f32 %v1158_v49, %v978_v25  ;;  %v707_v12 = vpop.f32.mrf.mxu0  ;;  %v979_v62 = vpop.f32.mrf.mxu1 }
 0x11e   : > { %v980_v31 = vadd.f32 %v979_v62, %v707_v12  ;;  %v1403_v1 = vpop.f32.mrf.mxu3 }
 0x11f   : > { %v10891_v0 = vadd.f32 %v1393_v23, %v1269_v61  ;;  %v10905_v23 = vld [vmem:[%s10619_s17 + $0xbc] sm:$0xff]  }
 0x121   : > { %15265 = vst [vmem:[#allocation15_spill] sm:$0xff] %v10891_v0  ;;  %v10912_v0 = vld [vmem:[%s10619_s17 + $0xa8] sm:$0xff]  }
 0x122   : > { %15269 = vst [vmem:[#allocation19_spill] sm:$0xff] %v10912_v0 }
 0x124   : > { %v1160_v8 = vpop.f32.mrf.mxu2 }
 0x125   : > { %v1270_v16 = vadd.f32 %v1160_v8, %v980_v31  ;;  %v710_v21 = vpop.f32.mrf.mxu0  ;;  %v982_v24 = vpop.f32.mrf.mxu1 }
 0x126   : > { %v983_v33 = vadd.f32 %v982_v24, %v710_v21  ;;  %v1405_v11 = vpop.f32.mrf.mxu3 }
 0x127   : > { %v10896_v22 = vadd.f32 %v1395_v58, %v1270_v16 }
 0x128   : > { %8396 = vmatmul.msk.bf16.gmra.mxu0 %vm567_vm2, %v10815_v9  ;;  %8435 = vmatmul.msk.bf16.gmra.mxu1 %vm567_vm2, %v10840_v2 }
 0x129   : > { %15267 = vst [vmem:[#allocation17_spill] sm:$0xff] %v10896_v22  ;;  %8474 = vmatmul.msk.bf16.gmra.mxu2 %vm567_vm2, %v10894_v13 }
 0x12a   : > { %8515 = vmatmul.msk.bf16.gmra.mxu3 %vm567_vm2, %v10905_v23 }
 0x12c   : > { %v1163_v25 = vpop.f32.mrf.mxu2 }
 0x12d   : > { %v1271_v49 = vadd.f32 %v1163_v25, %v983_v33  ;;  %v712_v58 = vpop.f32.mrf.mxu0  ;;  %v984_v61 = vpop.f32.mrf.mxu1 }
 0x12e   : > { %v985_v12 = vadd.f32 %v984_v61, %v712_v58  ;;  %v1408_v31 = vpop.f32.mrf.mxu3 }
 0x12f   : > { %v10909_v62 = vadd.f32 %v1398_v15, %v1271_v49  ;;  %v10923_v15 = vld [vmem:[%s10619_s17 + $0xc4] sm:$0xff]  }
 0x131   : > { %15268 = vst [vmem:[#allocation18_spill] sm:$0xff] %v10909_v62  ;;  %v10930_v62 = vld [vmem:[%s10619_s17 + $0xb0] sm:$0xff]  }
 0x132   : > { %15272 = vst [vmem:[#allocation22_spill] sm:$0xff] %v10930_v62 }
 0x134   : > { %v1165_v8 = vpop.f32.mrf.mxu2 }
 0x135   : > { %v1272_v16 = vadd.f32 %v1165_v8, %v985_v12  ;;  %v715_v21 = vpop.f32.mrf.mxu0  ;;  %v987_v24 = vpop.f32.mrf.mxu1 }
 0x136   : > { %v988_v22 = vadd.f32 %v987_v24, %v715_v21  ;;  %v1410_v29 = vpop.f32.mrf.mxu3 }
 0x137   : > { %v10914_v53 = vadd.f32 %v1400_v52, %v1272_v16 }
 0x138   : > { %8397 = vmatmul.msk.bf16.gmra.mxu0 %vm567_vm2, %v10833_v27  ;;  %8436 = vmatmul.msk.bf16.gmra.mxu1 %vm567_vm2, %v10858_v51 }
 0x139   : > { %15270 = vst [vmem:[#allocation20_spill] sm:$0xff] %v10914_v53  ;;  %8475 = vmatmul.msk.bf16.gmra.mxu2 %vm567_vm2, %v10912_v0 }
 0x13a   : > { %8516 = vmatmul.msk.bf16.gmra.mxu3 %vm567_vm2, %v10923_v15 }
 0x13c   : > { %v1168_v33 = vpop.f32.mrf.mxu2 }
 0x13d   : > { %v1273_v25 = vadd.f32 %v1168_v33, %v988_v22  ;;  %v717_v52 = vpop.f32.mrf.mxu0  ;;  %v989_v49 = vpop.f32.mrf.mxu1  ;;  %v10941_v22 = vld [vmem:[%s10619_s17 + $0xcc] sm:$0xff]  }
 0x13e   : > { %v990_v58 = vadd.f32 %v989_v49, %v717_v52  ;;  %v1413_v12 = vpop.f32.mrf.mxu3 }
 0x13f   : > { %v10927_v61 = vadd.f32 %v1403_v1, %v1273_v25 }
 0x141   : > { %15271 = vst [vmem:[#allocation21_spill] sm:$0xff] %v10927_v61  ;;  %v10948_v61 = vld [vmem:[%s10619_s17 + $0xb8] sm:$0xff]  }
 0x144   : > { %v1170_v8 = vpop.f32.mrf.mxu2 }
 0x145   : > { %v1274_v16 = vadd.f32 %v1170_v8, %v990_v58  ;;  %v720_v21 = vpop.f32.mrf.mxu0  ;;  %v992_v24 = vpop.f32.mrf.mxu1 }
 0x146   : > { %v993_v53 = vadd.f32 %v992_v24, %v720_v21  ;;  %v1415_v6 = vpop.f32.mrf.mxu3 }
 0x147   : > { %v10932_v17 = vadd.f32 %v1405_v11, %v1274_v16 }
 0x148   : > { %8398 = vmatmul.msk.bf16.gmra.mxu0 %vm567_vm2, %v10851_v60  ;;  %8437 = vmatmul.msk.bf16.gmra.mxu1 %vm567_vm2, %v10876_v32 }
 0x149   : > { %15273 = vst [vmem:[#allocation23_spill] sm:$0xff] %v10932_v17  ;;  %8476 = vmatmul.msk.bf16.gmra.mxu2 %vm567_vm2, %v10930_v62 }
 0x14a   : > { %8517 = vmatmul.msk.bf16.gmra.mxu3 %vm567_vm2, %v10941_v22 }
 0x14c   : > { %v1173_v1 = vpop.f32.mrf.mxu2 }
 0x14d   : > { %v1275_v33 = vadd.f32 %v1173_v1, %v993_v53  ;;  %v722_v11 = vpop.f32.mrf.mxu0  ;;  %v994_v25 = vpop.f32.mrf.mxu1  ;;  %v10959_v53 = vld [vmem:[%s10619_s17 + $0xd4] sm:$0xff]  }
 0x14e   : > { %v995_v52 = vadd.f32 %v994_v25, %v722_v11  ;;  %v1418_v58 = vpop.f32.mrf.mxu3 }
 0x14f   : > { %v10945_v49 = vadd.f32 %v1408_v31, %v1275_v33 }
 0x151   : > { %15274 = vst [vmem:[#allocation24_spill] sm:$0xff] %v10945_v49  ;;  %v10966_v49 = vld [vmem:[%s10619_s17 + $0xc0] sm:$0xff]  }
 0x154   : > { %v1175_v8 = vpop.f32.mrf.mxu2 }
 0x155   : > { %v1276_v16 = vadd.f32 %v1175_v8, %v995_v52  ;;  %v725_v21 = vpop.f32.mrf.mxu0  ;;  %v997_v24 = vpop.f32.mrf.mxu1 }
 0x156   : > { %v998_v17 = vadd.f32 %v997_v24, %v725_v21  ;;  %v1420_v48 = vpop.f32.mrf.mxu3 }
 0x157   : > { %v10950_v59 = vadd.f32 %v1410_v29, %v1276_v16 }
 0x158   : > { %8399 = vmatmul.msk.bf16.gmra.mxu0 %vm567_vm2, %v10869_v19  ;;  %8438 = vmatmul.msk.bf16.gmra.mxu1 %vm567_vm2, %v10894_v13 }
 0x159   : > { %15275 = vst [vmem:[#allocation25_spill] sm:$0xff] %v10950_v59  ;;  %8477 = vmatmul.msk.bf16.gmra.mxu2 %vm567_vm2, %v10948_v61 }
 0x15a   : > { %8518 = vmatmul.msk.bf16.gmra.mxu3 %vm567_vm2, %v10959_v53 }
 0x15c   : > { %v1178_v31 = vpop.f32.mrf.mxu2 }
 0x15d   : > { %v1277_v1 = vadd.f32 %v1178_v31, %v998_v17  ;;  %v727_v29 = vpop.f32.mrf.mxu0  ;;  %v999_v33 = vpop.f32.mrf.mxu1  ;;  %v9675_v17 = vld [vmem:[%s15168_s2 + $0x40] sm:$0xff] }
 0x15e   : > { %v1000_v11 = vadd.f32 %v999_v33, %v727_v29  ;;  %v1423_v52 = vpop.f32.mrf.mxu3  ;;  %1586 = vmatpush.bf16.msra.mxu0 %v9675_v17  ;;  %v10987_v17 = vld [vmem:[%s10619_s17 + $0xc8] sm:$0xff]  }
 0x15f   : > { %v10963_v25 = vadd.f32 %v1413_v12, %v1277_v1  ;;  %v10980_v12 = vld [vmem:[%s10619_s17 + $0xdc] sm:$0xff]  }
 0x161   : > { %15276 = vst [vmem:[#allocation26_spill] sm:$0xff] %v10963_v25 }
 0x164   : > { %v1180_v8 = vpop.f32.mrf.mxu2 }
 0x165   : > { %v1278_v16 = vadd.f32 %v1180_v8, %v1000_v11  ;;  %v730_v21 = vpop.f32.mrf.mxu0  ;;  %v1002_v24 = vpop.f32.mrf.mxu1 }
 0x166   : > { %v1003_v59 = vadd.f32 %v1002_v24, %v730_v21  ;;  %v1425_v19 = vpop.f32.mrf.mxu3 }
 0x167   : > { %v10968_v13 = vadd.f32 %v1415_v6, %v1278_v16 }
 0x168   : > { %8400 = vmatmul.msk.bf16.gmra.mxu0 %vm567_vm2, %v10887_v56  ;;  %8439 = vmatmul.msk.bf16.gmra.mxu1 %vm567_vm2, %v10912_v0 }
 0x169   : > { %15277 = vst [vmem:[#allocation27_spill] sm:$0xff] %v10968_v13  ;;  %8478 = vmatmul.msk.bf16.gmra.mxu2 %vm567_vm2, %v10966_v49 }
 0x16a   : > { %8519 = vmatmul.msk.bf16.gmra.mxu3 %vm567_vm2, %v10980_v12 }
 0x16c   : > { %v1183_v6 = vpop.f32.mrf.mxu2 }
 0x16d   : > { %v1279_v31 = vadd.f32 %v1183_v6, %v1003_v59  ;;  %v732_v1 = vpop.f32.mrf.mxu0  ;;  %v1004_v29 = vpop.f32.mrf.mxu1  ;;  %v11000_v59 = vld [vmem:[%s10619_s17 + $0xe4] sm:$0xff]  }
 0x16e   : > { %v1005_v33 = vadd.f32 %v1004_v29, %v732_v1  ;;  %v1428_v8 = vpop.f32.mrf.mxu3  ;;  %15281 = vst [vmem:[#allocation31_spill] sm:$0xff] %v11000_v59 }
 0x16f   : > { %v10984_v11 = vadd.f32 %v1418_v58, %v1279_v31 }
 0x171   : > { %15278 = vst [vmem:[#allocation28_spill] sm:$0xff] %v10984_v11 }
 0x174   : > { %v1185_v16 = vpop.f32.mrf.mxu2 }
 0x175   : > { %v1280_v21 = vadd.f32 %v1185_v16, %v1005_v33  ;;  %v735_v24 = vpop.f32.mrf.mxu0  ;;  %v1007_v13 = vpop.f32.mrf.mxu1 }
 0x176   : > { %v1008_v25 = vadd.f32 %v1007_v13, %v735_v24  ;;  %v10991_v56 = vpop.f32.mrf.mxu3 }
 0x177   : > { %v10989_v0 = vadd.f32 %v1420_v48, %v1280_v21  ;;  %15280 = vst [vmem:[#allocation30_spill] sm:$0xff] %v10991_v56 }
 0x178   : > { %8401 = vmatmul.msk.bf16.gmra.mxu0 %vm567_vm2, %v10905_v23  ;;  %8440 = vmatmul.msk.bf16.gmra.mxu1 %vm567_vm2, %v10930_v62 }
 0x179   : > { %15279 = vst [vmem:[#allocation29_spill] sm:$0xff] %v10989_v0  ;;  %8479 = vmatmul.msk.bf16.gmra.mxu2 %vm567_vm2, %v10987_v17  ;;  %v11007_v0 = vld [vmem:[%s10619_s17 + $0xd0] sm:$0xff]  }
 0x17a   : > { %8520 = vmatmul.msk.bf16.gmra.mxu3 %vm567_vm2, %v11000_v59  ;;  %v11071_v59 = vld [vmem:[%s10619_s17 + $0xe8] sm:$0xff]  }
 0x17c   : > { %v1188_v58 = vpop.f32.mrf.mxu2 }
 0x17d   : > { %v1281_v48 = vadd.f32 %v1188_v58, %v1008_v25  ;;  %v737_v13 = vpop.f32.mrf.mxu0  ;;  %v1009_v6 = vpop.f32.mrf.mxu1  ;;  %v11020_v25 = vld [vmem:[%s10619_s17 + $0xec] sm:$0xff]  }
 0x17e   : > { %v1010_v31 = vadd.f32 %v1009_v6, %v737_v13  ;;  %v1433_v29 = vpop.f32.mrf.mxu3  ;;  %15285 = vst [vmem:[#allocation35_spill] sm:$0xff] %v11020_v25 }
 0x17f   : > { %v11004_v1 = vadd.f32 %v1423_v52, %v1281_v48 }
 0x181   : > { %15282 = vst [vmem:[#allocation32_spill] sm:$0xff] %v11004_v1 }
 0x184   : > { %v1190_v33 = vpop.f32.mrf.mxu2 }
 0x185   : > { %v1282_v16 = vadd.f32 %v1190_v33, %v1010_v31  ;;  %v740_v21 = vpop.f32.mrf.mxu0  ;;  %v1012_v24 = vpop.f32.mrf.mxu1 }
 0x186   : > { %v1013_v56 = vadd.f32 %v1012_v24, %v740_v21  ;;  %v11011_v62 = vpop.f32.mrf.mxu3 }
 0x187   : > { %v11009_v11 = vadd.f32 %v1425_v19, %v1282_v16  ;;  %15284 = vst [vmem:[#allocation34_spill] sm:$0xff] %v11011_v62 }
 0x188   : > { %8402 = vmatmul.msk.bf16.gmra.mxu0 %vm567_vm2, %v10923_v15  ;;  %8441 = vmatmul.msk.bf16.gmra.mxu1 %vm567_vm2, %v10948_v61 }
 0x189   : > { %15283 = vst [vmem:[#allocation33_spill] sm:$0xff] %v11009_v11  ;;  %8480 = vmatmul.msk.bf16.gmra.mxu2 %vm567_vm2, %v11007_v0  ;;  %v11029_v11 = vld [vmem:[%s10619_s17 + $0xd8] sm:$0xff]  }
 0x18a   : > { %8521 = vmatmul.msk.bf16.gmra.mxu3 %vm567_vm2, %v11020_v25  ;;  %15288 = vst [vmem:[#allocation38_spill] sm:$0xff] %v11029_v11 }
 0x18c   : > { %v1193_v52 = vpop.f32.mrf.mxu2 }
 0x18d   : > { %v1283_v19 = vadd.f32 %v1193_v52, %v1013_v56  ;;  %v742_v58 = vpop.f32.mrf.mxu0  ;;  %v1014_v48 = vpop.f32.mrf.mxu1  ;;  %v11040_v56 = vld [vmem:[%s10619_s17 + $0xf4] sm:$0xff]  }
 0x18e   : > { %v1015_v13 = vadd.f32 %v1014_v48, %v742_v58  ;;  %v1438_v31 = vpop.f32.mrf.mxu3  ;;  %15290 = vst [vmem:[#allocation40_spill] sm:$0xff] %v11040_v56 }
 0x18f   : > { %v11024_v6 = vadd.f32 %v1428_v8, %v1283_v19 }
 0x191   : > { %15286 = vst [vmem:[#allocation36_spill] sm:$0xff] %v11024_v6  ;;  %v8611_v6 = vld [vmem:[%s15168_s2 + $0x68] sm:$0xf] }
 0x194   : > { %v1195_v33 = vpop.f32.mrf.mxu2 }
 0x195   : > { %v11026_v16 = vadd.f32 %v1195_v33, %v1015_v13  ;;  %v745_v21 = vpop.f32.mrf.mxu0  ;;  %v1017_v24 = vpop.f32.mrf.mxu1 }
 0x196   : > { %v1018_v62 = vadd.f32 %v1017_v24, %v745_v21  ;;  %v11031_v1 = vpop.f32.mrf.mxu3 }
 0x197   : > { %15287 = vst [vmem:[#allocation37_spill] sm:$0xff] %v11026_v16 }
 0x198   : > { %15289 = vst [vmem:[#allocation39_spill] sm:$0xff] %v11031_v1  ;;  %8403 = vmatmul.msk.bf16.gmra.mxu0 %vm567_vm2, %v10941_v22  ;;  %8442 = vmatmul.msk.bf16.gmra.mxu1 %vm567_vm2, %v10966_v49 }
 0x199   : > { %8481 = vmatmul.msk.bf16.gmra.mxu2 %vm567_vm2, %v11029_v11 }
 0x19a   : > { %8522 = vmatmul.msk.bf16.gmra.mxu3 %vm567_vm2, %v11040_v56  ;;  %v9680_v56 = vld [vmem:[%s15168_s2 + $0x68] sm:$0x30] }
 0x19c   : > { %v1198_v8 = vpop.f32.mrf.mxu2 }
 0x19d   : > { %v1285_v52 = vadd.f32 %v1198_v8, %v1018_v62  ;;  %v747_v19 = vpop.f32.mrf.mxu0  ;;  %v1019_v58 = vpop.f32.mrf.mxu1  ;;  %v11055_v8 = vld [vmem:[%s10619_s17 + $0xe0] sm:$0xff]  }
 0x19e   : > { %v1020_v48 = vadd.f32 %v1019_v58, %v747_v19  ;;  %v1443_v33 = vpop.f32.mrf.mxu3  ;;  %v8612_v19 = vor.u32 %v9680_v56, %v8611_v6 }
 0x19f   : > { %v11044_v13 = vadd.f32 %v1433_v29, %v1285_v52 }
 0x1a0   : > { %v2047_v52 = vand.u32 %v8612_v19, %v10592_v10 }
 0x1a1   : > { %15291 = vst [vmem:[#allocation41_spill] sm:$0xff] %v11044_v13 }
 0x1a2   : > { %2055 = vmatpush.bf16.msrb.mxu2 %v2047_v52 }
 0x1a4   : > { %v1200_v21 = vpop.f32.mrf.mxu2 }
 0x1a5   : > { %v11046_v24 = vadd.f32 %v1200_v21, %v1020_v48  ;;  %v750_v1 = vpop.f32.mrf.mxu0  ;;  %v1022_v16 = vpop.f32.mrf.mxu1 }
 0x1a6   : > { %v1023_v62 = vadd.f32 %v1022_v16, %v750_v1  ;;  %v11057_v29 = vpop.f32.mrf.mxu3 }
 0x1a7   : > { %15292 = vst [vmem:[#allocation42_spill] sm:$0xff] %v11046_v24 }
 0x1a8   : > { %15293 = vst [vmem:[#allocation43_spill] sm:$0xff] %v11057_v29  ;;  %8404 = vmatmul.msk.bf16.gmra.mxu0 %vm567_vm2, %v10959_v53  ;;  %8443 = vmatmul.msk.bf16.gmra.mxu1 %vm567_vm2, %v10987_v17 }
 0x1a9   : > { %8482 = vmatmul.msk.bf16.gmra.mxu2 %vm567_vm2, %v11055_v8 }
 0x1ac   : > { %v1203_v58 = vpop.f32.mrf.mxu2 }
 0x1ad   : > { %v1287_v1 = vadd.f32 %v1203_v58, %v1023_v62  ;;  %v752_v16 = vpop.f32.mrf.mxu0  ;;  %v1024_v48 = vpop.f32.mrf.mxu1 }
 0x1ae   : > { %v1025_v6 = vadd.f32 %v1024_v48, %v752_v16  ;;  %v1448_v21 = vpop.f32.mrf.mxu3  ;;  %v8572_v48 = vld [vmem:[%s15168_s2 + $0x58] sm:$0xf] }
 0x1af   : > { %v11066_v56 = vadd.f32 %v1438_v31, %v1287_v1  ;;  %v8650_v31 = vld [vmem:[%s15168_s2 + $0x78] sm:$0xf] }
 0x1b4   : > { %v1205_v29 = vpop.f32.mrf.mxu2 }
 0x1b5   : > { %v11068_v24 = vadd.f32 %v1205_v29, %v1025_v6  ;;  %v755_v13 = vpop.f32.mrf.mxu0  ;;  %v1027_v25 = vpop.f32.mrf.mxu1  ;;  %v9678_v6 = vld [vmem:[%s15168_s2 + $0x58] sm:$0x30] }
 0x1b6   : > { %v1028_v11 = vadd.f32 %v1027_v25, %v755_v13  ;;  %v11073_v19 = vpop.f32.mrf.mxu3  ;;  %v9682_v25 = vld [vmem:[%s15168_s2 + $0x78] sm:$0x30] }
 0x1b7   : > { %15294 = vst [vmem:[#allocation44_spill] sm:$0xff] %v11068_v24  ;;  %v8651_v62 = vor.u32 %v9682_v25, %v8650_v31  ;;  %v9679_v31 = vld [vmem:[%s15168_s2 + $0x60] sm:$0xff]  ;;  %v8573_v25 = vor.u32 %v9678_v6, %v8572_v48 }
 0x1b8   : > { %15295 = vst [vmem:[#allocation45_spill] sm:$0xff] %v11073_v19  ;;  %8405 = vmatmul.msk.bf16.gmra.mxu0 %vm567_vm2, %v10980_v12  ;;  %8444 = vmatmul.msk.bf16.gmra.mxu1 %vm567_vm2, %v11007_v0 }
 0x1b9   : > { %8483 = vmatmul.msk.bf16.gmra.mxu2 %vm567_vm2, %v11071_v59  ;;  %v2282_v16 = vand.u32 %v8651_v62, %v10592_v10 }
 0x1ba   : > { %2056 = vmatpush.bf16.msrb.mxu2 %v9679_v31 }
 0x1bb   : > { %2290 = vmatpush.bf16.msra.mxu3 %v2282_v16 }
 0x1bc   : > { %v1208_v13 = vpop.f32.mrf.mxu2 }
 0x1bd   : > { %v1289_v29 = vadd.f32 %v1208_v13, %v1028_v11  ;;  %v757_v52 = vpop.f32.mrf.mxu0  ;;  %v1029_v58 = vpop.f32.mrf.mxu1  ;;  %v9681_v13 = vld [vmem:[%s15168_s2 + $0x70] sm:$0xff] }
 0x1be   : > { %v1030_v1 = vadd.f32 %v1029_v58, %v757_v52  ;;  %v1453_v11 = vpop.f32.mrf.mxu3 }
 0x1bf   : > { %v11094_v19 = vadd.f32 %v1443_v33, %v1289_v29  ;;  %2291 = vmatpush.bf16.msra.mxu3 %v9681_v13  ;;  %v1812_v33 = vand.u32 %v8573_v25, %v10592_v10 }
 0x1c2   : > { %8652 = vmatmul.msk.bf16.vlgmr.msra.gmra.mxu3 %vm567_vm2, %v10682_v40 }
 0x1c4   : > { %v1210_v62 = vpop.f32.mrf.mxu2 }
 0x1c5   : > { %v11102_v52 = vadd.f32 %v1210_v62, %v1030_v1  ;;  %v760_v58 = vpop.f32.mrf.mxu0  ;;  %v1032_v24 = vpop.f32.mrf.mxu1  ;;  %v9677_v1 = vld [vmem:[%s15168_s2 + $0x50] sm:$0xff] }
 0x1c6   : > { %v1033_v29 = vadd.f32 %v1032_v24, %v760_v58  ;;  %v11116_v16 = vpop.f32.mrf.mxu3 }
 0x1c7   : > { %15296 = vst [vmem:[#allocation46_spill] sm:$0xff] %v11102_v52 }
 0x1c8   : > { %8496 = vmatmul.msk.bf16.vlgmr.msra.gmra.mxu1 %vm567_vm2, %v10655_v35  ;;  %8535 = vmatmul.msk.bf16.vlgmr.msra.gmra.mxu0 %vm567_vm2, %v10658_v36 }
 0x1c9   : > { %1820 = vmatpush.bf16.msra.mxu1 %v1812_v33  ;;  %8613 = vmatmul.msk.bf16.vlgmr.msrb.gmra.mxu2 %vm567_vm2, %v10699_v43 }
 0x1cc   : > { %v1213_v24 = vpop.f32.mrf.mxu2 }
 0x1cd   : > { %v1291_v48 = vadd.f32 %v1213_v24, %v1033_v29  ;;  %v762_v6 = vpop.f32.mrf.mxu0  ;;  %v1034_v31 = vpop.f32.mrf.mxu1  ;;  %1821 = vmatpush.bf16.msra.mxu1 %v9677_v1 }
 0x1ce   : > { %v1035_v25 = vadd.f32 %v1034_v31, %v762_v6  ;;  %v1458_v36 = vpop.f32.mrf.mxu3 }
 0x1cf   : > { %v11118_v35 = vadd.f32 %v1448_v21, %v1291_v48 }
 0x1d2   : > { %8653 = vmatmul.msk.bf16.gmra.mxu3 %vm567_vm2, %v10694_v42 }
 0x1d4   : > { %v1215_v13 = vpop.f32.mrf.mxu2 }
 0x1d5   : > { %v11120_v62 = vadd.f32 %v1215_v13, %v1035_v25  ;;  %v765_v58 = vpop.f32.mrf.mxu0  ;;  %v1037_v33 = vpop.f32.mrf.mxu1 }
 0x1d6   : > { %v1038_v52 = vadd.f32 %v1037_v33, %v765_v58  ;;  %v11130_v6 = vpop.f32.mrf.mxu3 }
 0x1d8   : > { %8497 = vmatmul.msk.bf16.gmra.mxu1 %vm567_vm2, %v10671_v38  ;;  %8536 = vmatmul.msk.bf16.gmra.mxu0 %vm567_vm2, %v10674_v39 }
 0x1d9   : > { %8614 = vmatmul.msk.bf16.gmra.mxu2 %vm567_vm2, %v10713_v45 }
 0x1dc   : > { %v1218_v21 = vpop.f32.mrf.mxu2 }
 0x1dd   : > { %v1293_v29 = vadd.f32 %v1218_v21, %v1038_v52  ;;  %v767_v1 = vpop.f32.mrf.mxu0  ;;  %v1039_v24 = vpop.f32.mrf.mxu1 }
 0x1de   : > { %v1040_v48 = vadd.f32 %v1039_v24, %v767_v1  ;;  %v1463_v39 = vpop.f32.mrf.mxu3 }
 0x1df   : > { %v11132_v31 = vadd.f32 %v1453_v11, %v1293_v29 }
 0x1e2   : > { %8654 = vmatmul.msk.bf16.gmra.mxu3 %vm567_vm2, %v10708_v44 }
 0x1e4   : > { %v1220_v25 = vpop.f32.mrf.mxu2 }
 0x1e5   : > { %v11134_v42 = vadd.f32 %v1220_v25, %v1040_v48  ;;  %v770_v13 = vpop.f32.mrf.mxu0  ;;  %v1042_v38 = vpop.f32.mrf.mxu1 }
 0x1e6   : > { %v1043_v58 = vadd.f32 %v1042_v38, %v770_v13  ;;  %v11146_v24 = vpop.f32.mrf.mxu3 }
 0x1e8   : > { %8537 = vmatmul.msk.bf16.gmra.mxu0 %vm567_vm2, %v10687_v41  ;;  %8574 = vmatmul.msk.bf16.vlgmr.msra.gmra.mxu1 %vm567_vm2, %v10639_v30 }
 0x1e9   : > { %8615 = vmatmul.msk.bf16.gmra.mxu2 %vm567_vm2, %v10734_v54 }
 0x1ec   : > { %v1223_v11 = vpop.f32.mrf.mxu2 }
 0x1ed   : > { %v1295_v52 = vadd.f32 %v1223_v11, %v1043_v58  ;;  %v772_v33 = vpop.f32.mrf.mxu0  ;;  %v1044_v21 = vpop.f32.mrf.mxu1 }
 0x1ee   : > { %v1045_v29 = vadd.f32 %v1044_v21, %v772_v33 }
 0x1ef   : > { %v11144_v1 = vadd.f32 %v1458_v36, %v1295_v52  ;;  %v1468_v36 = vpop.f32.mrf.mxu3 }
 0x1f2   : > { %8655 = vmatmul.msk.bf16.gmra.mxu3 %vm567_vm2, %v10722_v46 }
 0x1f4   : > { %v1225_v44 = vpop.f32.mrf.mxu2 }
 0x1f5   : > { %v11148_v48 = vadd.f32 %v1225_v44, %v1045_v29  ;;  %v775_v41 = vpop.f32.mrf.mxu0  ;;  %v1047_v25 = vpop.f32.mrf.mxu1 }
 0x1f6   : > { %v1048_v13 = vadd.f32 %v1047_v25, %v775_v41 }
 0x1f7   : > { %v11162_v41 = vpop.f32.mrf.mxu3 }
 0x1f8   : > { %8538 = vmatmul.msk.bf16.gmra.mxu0 %vm567_vm2, %v10699_v43  ;;  %8575 = vmatmul.msk.bf16.gmra.mxu1 %vm567_vm2, %v10650_v34 }
 0x1f9   : > { %8616 = vmatmul.msk.bf16.gmra.mxu2 %vm567_vm2, %v10752_v3 }
 0x1fc   : > { %v1228_v30 = vpop.f32.mrf.mxu2 }
 0x1fd   : > { %v1297_v38 = vadd.f32 %v1228_v30, %v1048_v13  ;;  %v777_v58 = vpop.f32.mrf.mxu0  ;;  %v1049_v11 = vpop.f32.mrf.mxu1 }
 0x1fe   : > { %v1050_v52 = vadd.f32 %v1049_v11, %v777_v58 }
 0x1ff   : > { %v11158_v33 = vadd.f32 %v1463_v39, %v1297_v38  ;;  %v1473_v58 = vpop.f32.mrf.mxu3 }
 0x202   : > { %8656 = vmatmul.msk.bf16.gmra.mxu3 %vm567_vm2, %v10743_v55 }
 0x204   : > { %v1230_v21 = vpop.f32.mrf.mxu2 }
 0x205   : > { %v11160_v29 = vadd.f32 %v1230_v21, %v1050_v52  ;;  %v780_v46 = vpop.f32.mrf.mxu0  ;;  %v1052_v44 = vpop.f32.mrf.mxu1 }
 0x206   : > { %v1053_v43 = vadd.f32 %v1052_v44, %v780_v46 }
 0x208   : > { %8539 = vmatmul.msk.bf16.gmra.mxu0 %vm567_vm2, %v10713_v45  ;;  %8576 = vmatmul.msk.bf16.gmra.mxu1 %vm567_vm2, %v10666_v37  ;;  %v11184_v37 = vpop.f32.mrf.mxu3 }
 0x209   : > { %8617 = vmatmul.msk.bf16.gmra.mxu2 %vm567_vm2, %v10770_v18 }
 0x20c   : > { %v1233_v34 = vpop.f32.mrf.mxu2 }
 0x20d   : > { %v1299_v39 = vadd.f32 %v1233_v34, %v1053_v43  ;;  %v782_v25 = vpop.f32.mrf.mxu0  ;;  %v1054_v13 = vpop.f32.mrf.mxu1 }
 0x20e   : > { %v1055_v30 = vadd.f32 %v1054_v13, %v782_v25 }
 0x20f   : > { %v11172_v38 = vadd.f32 %v1468_v36, %v1299_v39 }
 0x210   : > { %v1478_v25 = vpop.f32.mrf.mxu3 }
 0x212   : > { %8657 = vmatmul.msk.bf16.gmra.mxu3 %vm567_vm2, %v10761_v5 }
 0x214   : > { %v1235_v11 = vpop.f32.mrf.mxu2 }
 0x215   : > { %v11174_v52 = vadd.f32 %v1235_v11, %v1055_v30  ;;  %v785_v55 = vpop.f32.mrf.mxu0  ;;  %v1057_v21 = vpop.f32.mrf.mxu1  ;;  %v10433_v11 = vld [vmem:[%s10619_s17 + $0x5c] sm:$0xff]  }
 0x216   : > { %v1058_v45 = vadd.f32 %v1057_v21, %v785_v55 }
 0x218   : > { %8540 = vmatmul.msk.bf16.gmra.mxu0 %vm567_vm2, %v10734_v54  ;;  %8577 = vmatmul.msk.bf16.gmra.mxu1 %vm567_vm2, %v10682_v40 }
 0x219   : > { %8618 = vmatmul.msk.bf16.gmra.mxu2 %vm567_vm2, %v10786_v47 }
 0x21c   : > { %v1238_v36 = vpop.f32.mrf.mxu2 }
 0x21d   : > { %v1301_v46 = vadd.f32 %v1238_v36, %v1058_v45  ;;  %v787_v44 = vpop.f32.mrf.mxu0  ;;  %v1059_v43 = vpop.f32.mrf.mxu1 }
 0x21e   : > { %v1060_v34 = vadd.f32 %v1059_v43, %v787_v44 }
 0x21f   : > { %v11186_v39 = vadd.f32 %v1473_v58, %v1301_v46  ;;  %v11198_v46 = vpop.f32.mrf.mxu3 }
 0x220   : > { %15297 = vst [vmem:[#allocation47_spill] sm:$0xff] %v11198_v46 }
 0x222   : > { %8658 = vmatmul.msk.bf16.gmra.mxu3 %vm567_vm2, %v10779_v20 }
 0x224   : > { %v1240_v5 = vpop.f32.mrf.mxu2 }
 0x225   : > { %v11188_v13 = vadd.f32 %v1240_v5, %v1060_v34  ;;  %v790_v54 = vpop.f32.mrf.mxu0  ;;  %v1062_v30 = vpop.f32.mrf.mxu1 }
 0x226   : > { %v1063_v40 = vadd.f32 %v1062_v30, %v790_v54  ;;  %v10434_v54 = vld [vmem:[%s10619_s17 + $0x64] sm:$0xff]  }
 0x227   : > { %v1483_v30 = vpop.f32.mrf.mxu3 }
 0x228   : > { %8541 = vmatmul.msk.bf16.gmra.mxu0 %vm567_vm2, %v10752_v3  ;;  %8578 = vmatmul.msk.bf16.gmra.mxu1 %vm567_vm2, %v10433_v11 }
 0x229   : > { %8619 = vmatmul.msk.bf16.gmra.mxu2 %vm567_vm2, %v10804_v4 }
 0x22c   : > { %v1243_v58 = vpop.f32.mrf.mxu2 }
 0x22d   : > { %v1303_v55 = vadd.f32 %v1243_v58, %v1063_v40  ;;  %v792_v21 = vpop.f32.mrf.mxu0  ;;  %v1064_v45 = vpop.f32.mrf.mxu1 }
 0x22e   : > { %v1065_v36 = vadd.f32 %v1064_v45, %v792_v21 }
 0x22f   : > { %v11200_v44 = vadd.f32 %v1478_v25, %v1303_v55 }
 0x232   : > { %8659 = vmatmul.msk.bf16.gmra.mxu3 %vm567_vm2, %v10797_v50  ;;  %v8693_v50 = vld [vmem:[%s15168_s2 + $0x88] sm:$0xf] }
 0x234   : > { %v1245_v20 = vpop.f32.mrf.mxu2 }
 0x235   : > { %v11202_v43 = vadd.f32 %v1245_v20, %v1065_v36  ;;  %v795_v3 = vpop.f32.mrf.mxu0  ;;  %v1067_v34 = vpop.f32.mrf.mxu1 }
 0x236   : > { %v1068_v5 = vadd.f32 %v1067_v34, %v795_v3  ;;  %v1485_v36 = vpop.f32.mrf.mxu3 }
 0x238   : > { %8542 = vmatmul.msk.bf16.gmra.mxu0 %vm567_vm2, %v10770_v18  ;;  %8579 = vmatmul.msk.bf16.gmra.mxu1 %vm567_vm2, %v10434_v54  ;;  %v9684_v18 = vld [vmem:[%s15168_s2 + $0x88] sm:$0x30] }
 0x239   : > { %8620 = vmatmul.msk.bf16.gmra.mxu2 %vm567_vm2, %v10822_v28  ;;  %v8694_v45 = vor.u32 %v9684_v18, %v8693_v50 }
 0x23b   : > { %v2517_v20 = vand.u32 %v8694_v45, %v10592_v10 }
 0x23c   : > { %v1248_v25 = vpop.f32.mrf.mxu2 }
 0x23d   : > { %v1305_v40 = vadd.f32 %v1248_v25, %v1068_v5  ;;  %v797_v11 = vpop.f32.mrf.mxu0  ;;  %v1069_v58 = vpop.f32.mrf.mxu1  ;;  %2525 = vmatpush.bf16.msra.mxu0 %v2517_v20 }
 0x23e   : > { %v1070_v55 = vadd.f32 %v1069_v58, %v797_v11  ;;  %v10435_v11 = vld [vmem:[%s10619_s17 + $0x6c] sm:$0xff]  }
 0x23f   : > { %v11212_v21 = vadd.f32 %v1483_v30, %v1305_v40 }
 0x241   : > { %15298 = vst [vmem:[#allocation48_spill] sm:$0xff] %v11212_v21 }
 0x242   : > { %8660 = vmatmul.msk.bf16.gmra.mxu3 %vm567_vm2, %v10815_v9 }
 0x244   : > { %v1250_v3 = vpop.f32.mrf.mxu2 }
 0x245   : > { %v1306_v34 = vadd.f32 %v1250_v3, %v1070_v55  ;;  %v1353_v5 = vpop.f32.mrf.mxu1  ;;  %v1588_v54 = vpop.f32.mrf.mxu0 }
 0x246   : > { %v1488_v30 = vadd.f32 %v1353_v5, %v10747_v57  ;;  %v2293_v10 = vpop.f32.mrf.mxu3 }
 0x247   : > { %v11222_v25 = vadd.f32 %v1485_v36, %v1306_v34  ;;  %v10436_v34 = vld [vmem:[%s10619_s17 + $0x74] sm:$0xff]  }
 0x248   : > { %v1723_v40 = vadd.f32 %v1588_v54, %v1488_v30  ;;  %8543 = vmatmul.msk.bf16.gmra.mxu0 %vm567_vm2, %v10786_v47  ;;  %8580 = vmatmul.msk.bf16.gmra.mxu1 %vm567_vm2, %v10435_v11 }
 0x249   : > { %15299 = vst [vmem:[#allocation49_spill] sm:$0xff] %v11222_v25  ;;  %8621 = vmatmul.msk.bf16.gmra.mxu2 %vm567_vm2, %v10840_v2  ;;  %v15303_v25 = vld [vmem:[#allocation3_spill] sm:$0xff] }
 0x24c   : > { %v2058_v58 = vpop.f32.mrf.mxu2 }
 0x24d   : > { %v1355_v55 = vpop.f32.mrf.mxu1  ;;  %v1590_v57 = vpop.f32.mrf.mxu0 }
 0x24e   : > { %v1489_v50 = vadd.f32 %v1355_v55, %v10749_v63  ;;  %v2295_v45 = vpop.f32.mrf.mxu3 }
 0x250   : > { %v1724_v18 = vadd.f32 %v1590_v57, %v1489_v50 }
 0x252   : > { %8661 = vmatmul.msk.bf16.gmra.mxu3 %vm567_vm2, %v10833_v27 }
 0x254   : > { %v2060_v9 = vpop.f32.mrf.mxu2 }
 0x255   : > { %v1358_v36 = vpop.f32.mrf.mxu1  ;;  %v1593_v20 = vpop.f32.mrf.mxu0 }
 0x256   : > { %v1490_v47 = vadd.f32 %v1358_v36, %v10765_v7  ;;  %v2298_v63 = vpop.f32.mrf.mxu3 }
 0x258   : > { %v1725_v3 = vadd.f32 %v1593_v20, %v1490_v47  ;;  %8544 = vmatmul.msk.bf16.gmra.mxu0 %vm567_vm2, %v10804_v4  ;;  %8581 = vmatmul.msk.bf16.gmra.mxu1 %vm567_vm2, %v10436_v34  ;;  %v10437_v47 = vld [vmem:[%s10619_s17 + $0x7c] sm:$0xff]  }
 0x259   : > { %8622 = vmatmul.msk.bf16.gmra.mxu2 %vm567_vm2, %v10858_v51 }
 0x25c   : > { %v2063_v5 = vpop.f32.mrf.mxu2 }
 0x25d   : > { %v1360_v54 = vpop.f32.mrf.mxu1  ;;  %v1595_v30 = vpop.f32.mrf.mxu0 }
 0x25e   : > { %v1491_v7 = vadd.f32 %v1360_v54, %v10767_v14  ;;  %v2300_v55 = vpop.f32.mrf.mxu3 }
 0x260   : > { %v1726_v11 = vadd.f32 %v1595_v30, %v1491_v7  ;;  %v15301_v30 = vld [vmem:[#allocation2_spill] sm:$0xff] }
 0x262   : > { %8662 = vmatmul.msk.bf16.gmra.mxu3 %vm567_vm2, %v10851_v60 }
 0x264   : > { %v2065_v27 = vpop.f32.mrf.mxu2 }
 0x265   : > { %v1598_v57 = vpop.f32.mrf.mxu0  ;;  %v1823_v50 = vpop.f32.mrf.mxu1 }
 0x266   : > { %v1727_v4 = vadd.f32 %v1598_v57, %v10783_v26  ;;  %v1958_v36 = vadd.f32 %v1823_v50, %v1723_v40  ;;  %v2303_v34 = vpop.f32.mrf.mxu3 }
 0x268   : > { %v2193_v20 = vadd.f32 %v2058_v58, %v1958_v36  ;;  %8545 = vmatmul.msk.bf16.gmra.mxu0 %vm567_vm2, %v10822_v28  ;;  %8582 = vmatmul.msk.bf16.gmra.mxu1 %vm567_vm2, %v10437_v47 }
 0x269   : > { %8623 = vmatmul.msk.bf16.gmra.mxu2 %vm567_vm2, %v10876_v32 }
 0x26a   : > { %v11252_v14 = vadd.f32 %v2293_v10, %v2193_v20  ;;  %v15304_v10 = vld [vmem:[#allocation11_spill] sm:$0xff] }
 0x26c   : > { %15300 = vst [vmem:[#allocation50_spill] sm:$0xff] %v11252_v14  ;;  %v2068_v54 = vpop.f32.mrf.mxu2  ;;  %v10438_v14 = vld [vmem:[%s10619_s17 + $0x84] sm:$0xff]  }
 0x26d   : > { %v1600_v26 = vpop.f32.mrf.mxu0  ;;  %v1825_v40 = vpop.f32.mrf.mxu1 }
 0x26e   : > { %v1728_v7 = vadd.f32 %v1600_v26, %v15301_v30  ;;  %v1959_v60 = vadd.f32 %v1825_v40, %v1724_v18  ;;  %v2305_v28 = vpop.f32.mrf.mxu3  ;;  %v15305_v18 = vld [vmem:[#allocation16_spill] sm:$0xff] }
 0x26f   : > { %v15307_v40 = vld [vmem:[#allocation4_spill] sm:$0xff] }
 0x270   : > { %v2194_v58 = vadd.f32 %v2060_v9, %v1959_v60 }
 0x272   : > { %v11255_v57 = vadd.f32 %v2295_v45, %v2194_v58  ;;  %8663 = vmatmul.msk.bf16.gmra.mxu3 %vm567_vm2, %v15304_v10 }
 0x274   : > { %15302 = vst [vmem:[#allocation2_spill] sm:$0xff] %v11255_v57  ;;  %v2070_v50 = vpop.f32.mrf.mxu2 }
 0x275   : > { %v1603_v36 = vpop.f32.mrf.mxu0  ;;  %v1828_v47 = vpop.f32.mrf.mxu1 }
 0x276   : > { %v1729_v21 = vadd.f32 %v1603_v36, %v15303_v25  ;;  %v1960_v46 = vadd.f32 %v1828_v47, %v1725_v3  ;;  %v2308_v9 = vpop.f32.mrf.mxu3  ;;  %v15309_v47 = vld [vmem:[#allocation5_spill] sm:$0xff] }
 0x278   : > { %v2195_v20 = vadd.f32 %v2063_v5, %v1960_v46  ;;  %8546 = vmatmul.msk.bf16.gmra.mxu0 %vm567_vm2, %v10840_v2  ;;  %8583 = vmatmul.msk.bf16.gmra.mxu1 %vm567_vm2, %v10438_v14 }
 0x279   : > { %8624 = vmatmul.msk.bf16.gmra.mxu2 %vm567_vm2, %v15305_v18 }
 0x27a   : > { %v11266_v45 = vadd.f32 %v2298_v63, %v2195_v20  ;;  %v15310_v63 = vld [vmem:[#allocation14_spill] sm:$0xff] }
 0x27c   : > { %15306 = vst [vmem:[#allocation3_spill] sm:$0xff] %v11266_v45  ;;  %v2073_v26 = vpop.f32.mrf.mxu2  ;;  %v10439_v45 = vld [vmem:[%s10619_s17 + $0x8c] sm:$0xff]  }
 0x27d   : > { %v1605_v25 = vpop.f32.mrf.mxu0  ;;  %v1830_v3 = vpop.f32.mrf.mxu1 }
 0x27e   : > { %v1730_v30 = vadd.f32 %v1605_v25, %v15307_v40  ;;  %v1961_v60 = vadd.f32 %v1830_v3, %v1726_v11  ;;  %v2310_v2 = vpop.f32.mrf.mxu3  ;;  %v15311_v11 = vld [vmem:[#allocation19_spill] sm:$0xff]  ;;  %v15312_v40 = vld [vmem:[#allocation6_spill] sm:$0xff] }
 0x280   : > { %v2196_v46 = vadd.f32 %v2065_v27, %v1961_v60 }
 0x282   : > { %v11269_v5 = vadd.f32 %v2300_v55, %v2196_v46  ;;  %8664 = vmatmul.msk.bf16.gmra.mxu3 %vm567_vm2, %v15310_v63 }
 0x284   : > { %15308 = vst [vmem:[#allocation11_spill] sm:$0xff] %v11269_v5  ;;  %v2075_v58 = vpop.f32.mrf.mxu2 }
 0x285   : > { %v1608_v36 = vpop.f32.mrf.mxu0  ;;  %v1833_v14 = vpop.f32.mrf.mxu1 }
 0x286   : > { %v1731_v10 = vadd.f32 %v1608_v36, %v15309_v47  ;;  %v1962_v57 = vadd.f32 %v1833_v14, %v1727_v4  ;;  %v2313_v27 = vpop.f32.mrf.mxu3  ;;  %v15314_v47 = vld [vmem:[#allocation7_spill] sm:$0xff] }
 0x288   : > { %v2197_v20 = vadd.f32 %v2068_v54, %v1962_v57  ;;  %8547 = vmatmul.msk.bf16.gmra.mxu0 %vm567_vm2, %v10858_v51  ;;  %8584 = vmatmul.msk.bf16.gmra.mxu1 %vm567_vm2, %v10439_v45 }
 0x289   : > { %8625 = vmatmul.msk.bf16.gmra.mxu2 %vm567_vm2, %v15311_v11 }
 0x28a   : > { %v11280_v55 = vadd.f32 %v2303_v34, %v2197_v20  ;;  %v10440_v20 = vld [vmem:[%s10619_s17 + $0x94] sm:$0xff]  }
 0x28c   : > { %v2078_v25 = vpop.f32.mrf.mxu2 }
 0x28d   : > { %v1610_v3 = vpop.f32.mrf.mxu0  ;;  %v1835_v4 = vpop.f32.mrf.mxu1 }
 0x28e   : > { %v1732_v60 = vadd.f32 %v1610_v3, %v15312_v40  ;;  %v1963_v46 = vadd.f32 %v1835_v4, %v1728_v7  ;;  %v2315_v51 = vpop.f32.mrf.mxu3  ;;  %v15315_v7 = vld [vmem:[#allocation22_spill] sm:$0xff]  ;;  %v15316_v40 = vld [vmem:[#allocation8_spill] sm:$0xff] }
 0x290   : > { %v2198_v54 = vadd.f32 %v2070_v50, %v1963_v46 }
 0x292   : > { %v11283_v57 = vadd.f32 %v2305_v28, %v2198_v54  ;;  %8665 = vmatmul.msk.bf16.gmra.mxu3 %vm567_vm2, %v10905_v23 }
 0x294   : > { %15313 = vst [vmem:[#allocation16_spill] sm:$0xff] %v11283_v57  ;;  %v2080_v36 = vpop.f32.mrf.mxu2 }
 0x295   : > { %v1613_v14 = vpop.f32.mrf.mxu0  ;;  %v1838_v45 = vpop.f32.mrf.mxu1 }
 0x296   : > { %v1733_v63 = vadd.f32 %v1613_v14, %v15314_v47  ;;  %v1964_v5 = vadd.f32 %v1838_v45, %v1729_v21  ;;  %v2318_v50 = vpop.f32.mrf.mxu3  ;;  %v15317_v47 = vld [vmem:[#allocation9_spill] sm:$0xff] }
 0x298   : > { %v2199_v34 = vadd.f32 %v2073_v26, %v1964_v5  ;;  %8548 = vmatmul.msk.bf16.gmra.mxu0 %vm567_vm2, %v10876_v32  ;;  %8585 = vmatmul.msk.bf16.gmra.mxu1 %vm567_vm2, %v10440_v20 }
 0x299   : > { %8626 = vmatmul.msk.bf16.gmra.mxu2 %vm567_vm2, %v15315_v7 }
 0x29a   : > { %v11294_v28 = vadd.f32 %v2308_v9, %v2199_v34  ;;  %v10441_v34 = vld [vmem:[%s10619_s17 + $0x9c] sm:$0xff]  }
 0x29c   : > { %v2083_v3 = vpop.f32.mrf.mxu2 }
 0x29d   : > { %v1615_v4 = vpop.f32.mrf.mxu0  ;;  %v1840_v21 = vpop.f32.mrf.mxu1 }
 0x29e   : > { %v1734_v46 = vadd.f32 %v1615_v4, %v15316_v40  ;;  %v1965_v23 = vadd.f32 %v1840_v21, %v1730_v30  ;;  %v2320_v32 = vpop.f32.mrf.mxu3  ;;  %v15318_v21 = vld [vmem:[#allocation10_spill] sm:$0xff] }
 0x2a0   : > { %v2200_v26 = vadd.f32 %v2075_v58, %v1965_v23 }
 0x2a2   : > { %v11297_v5 = vadd.f32 %v2310_v2, %v2200_v26  ;;  %8666 = vmatmul.msk.bf16.gmra.mxu3 %vm567_vm2, %v10923_v15 }
 0x2a4   : > { %v2085_v54 = vpop.f32.mrf.mxu2 }
 0x2a5   : > { %v1618_v14 = vpop.f32.mrf.mxu0  ;;  %v1843_v45 = vpop.f32.mrf.mxu1 }
 0x2a6   : > { %v1735_v20 = vadd.f32 %v1618_v14, %v15317_v47  ;;  %v1966_v57 = vadd.f32 %v1843_v45, %v1731_v10  ;;  %v2323_v2 = vpop.f32.mrf.mxu3  ;;  %v15319_v45 = vld [vmem:[#allocation12_spill] sm:$0xff] }
 0x2a8   : > { %v2201_v9 = vadd.f32 %v2078_v25, %v1966_v57  ;;  %8549 = vmatmul.msk.bf16.gmra.mxu0 %vm567_vm2, %v15305_v18  ;;  %8586 = vmatmul.msk.bf16.gmra.mxu1 %vm567_vm2, %v10441_v34 }
 0x2a9   : > { %8627 = vmatmul.msk.bf16.gmra.mxu2 %vm567_vm2, %v10948_v61 }
 0x2aa   : > { %v11308_v30 = vadd.f32 %v2313_v27, %v2201_v9  ;;  %v10442_v9 = vld [vmem:[%s10619_s17 + $0xa4] sm:$0xff]  }
 0x2ac   : > { %v2088_v58 = vpop.f32.mrf.mxu2 }
 0x2ad   : > { %v1620_v4 = vpop.f32.mrf.mxu0  ;;  %v1845_v10 = vpop.f32.mrf.mxu1 }
 0x2ae   : > { %v1736_v40 = vadd.f32 %v1620_v4, %v15318_v21  ;;  %v1967_v15 = vadd.f32 %v1845_v10, %v1732_v60  ;;  %v2325_v18 = vpop.f32.mrf.mxu3  ;;  %v15320_v10 = vld [vmem:[#allocation13_spill] sm:$0xff] }
 0x2b0   : > { %v2202_v25 = vadd.f32 %v2080_v36, %v1967_v15 }
 0x2b2   : > { %v11311_v57 = vadd.f32 %v2315_v51, %v2202_v25  ;;  %8667 = vmatmul.msk.bf16.gmra.mxu3 %vm567_vm2, %v10941_v22 }
 0x2b4   : > { %v2090_v23 = vpop.f32.mrf.mxu2 }
 0x2b5   : > { %v1623_v26 = vpop.f32.mrf.mxu0  ;;  %v1848_v14 = vpop.f32.mrf.mxu1 }
 0x2b6   : > { %v1737_v47 = vadd.f32 %v1623_v26, %v15319_v45  ;;  %v1968_v34 = vadd.f32 %v1848_v14, %v1733_v63  ;;  %v2328_v51 = vpop.f32.mrf.mxu3  ;;  %v15321_v45 = vld [vmem:[#allocation15_spill] sm:$0xff] }
 0x2b8   : > { %v2203_v27 = vadd.f32 %v2083_v3, %v1968_v34  ;;  %8550 = vmatmul.msk.bf16.gmra.mxu0 %vm567_vm2, %v15311_v11  ;;  %8587 = vmatmul.msk.bf16.gmra.mxu1 %vm567_vm2, %v10442_v9 }
 0x2b9   : > { %8628 = vmatmul.msk.bf16.gmra.mxu2 %vm567_vm2, %v10966_v49 }
 0x2ba   : > { %v11322_v60 = vadd.f32 %v2318_v50, %v2203_v27  ;;  %v10443_v27 = vld [vmem:[%s10619_s17 + $0xac] sm:$0xff]  }
 0x2bc   : > { %v2093_v36 = vpop.f32.mrf.mxu2 }
 0x2bd   : > { %v1625_v4 = vpop.f32.mrf.mxu0  ;;  %v1850_v63 = vpop.f32.mrf.mxu1 }
 0x2be   : > { %v1738_v21 = vadd.f32 %v1625_v4, %v15320_v10  ;;  %v1969_v22 = vadd.f32 %v1850_v63, %v1734_v46  ;;  %v2330_v11 = vpop.f32.mrf.mxu3  ;;  %v15322_v63 = vld [vmem:[#allocation17_spill] sm:$0xff] }
 0x2c0   : > { %v2204_v3 = vadd.f32 %v2085_v54, %v1969_v22 }
 0x2c2   : > { %v11325_v15 = vadd.f32 %v2320_v32, %v2204_v3  ;;  %8668 = vmatmul.msk.bf16.gmra.mxu3 %vm567_vm2, %v10959_v53 }
 0x2c4   : > { %v2095_v25 = vpop.f32.mrf.mxu2 }
 0x2c5   : > { %v1628_v26 = vpop.f32.mrf.mxu0  ;;  %v1853_v14 = vpop.f32.mrf.mxu1 }
 0x2c6   : > { %v1739_v34 = vadd.f32 %v1628_v26, %v15321_v45  ;;  %v1970_v9 = vadd.f32 %v1853_v14, %v1735_v20  ;;  %v2333_v32 = vpop.f32.mrf.mxu3  ;;  %v15324_v45 = vld [vmem:[#allocation18_spill] sm:$0xff] }
 0x2c8   : > { %v2205_v50 = vadd.f32 %v2088_v58, %v1970_v9  ;;  %8551 = vmatmul.msk.bf16.gmra.mxu0 %vm567_vm2, %v15315_v7  ;;  %8588 = vmatmul.msk.bf16.gmra.mxu1 %vm567_vm2, %v10443_v27 }
 0x2c9   : > { %8629 = vmatmul.msk.bf16.gmra.mxu2 %vm567_vm2, %v10987_v17 }
 0x2ca   : > { %v11336_v46 = vadd.f32 %v2323_v2, %v2205_v50  ;;  %v10444_v50 = vld [vmem:[%s10619_s17 + $0xb4] sm:$0xff]  }
 0x2cc   : > { %v2098_v54 = vpop.f32.mrf.mxu2 }
 0x2cd   : > { %v1630_v4 = vpop.f32.mrf.mxu0  ;;  %v1855_v20 = vpop.f32.mrf.mxu1 }
 0x2ce   : > { %v1740_v10 = vadd.f32 %v1630_v4, %v15322_v63  ;;  %v1971_v53 = vadd.f32 %v1855_v20, %v1736_v40  ;;  %v2335_v7 = vpop.f32.mrf.mxu3  ;;  %v15326_v20 = vld [vmem:[#allocation20_spill] sm:$0xff] }
 0x2d0   : > { %v2206_v58 = vadd.f32 %v2090_v23, %v1971_v53 }
 0x2d2   : > { %v11339_v22 = vadd.f32 %v2325_v18, %v2206_v58  ;;  %8669 = vmatmul.msk.bf16.gmra.mxu3 %vm567_vm2, %v10980_v12 }
 0x2d4   : > { %15323 = vst [vmem:[#allocation4_spill] sm:$0xff] %v11339_v22  ;;  %v2100_v3 = vpop.f32.mrf.mxu2 }
 0x2d5   : > { %v1633_v26 = vpop.f32.mrf.mxu0  ;;  %v1858_v14 = vpop.f32.mrf.mxu1 }
 0x2d6   : > { %v1741_v9 = vadd.f32 %v1633_v26, %v15324_v45  ;;  %v1972_v27 = vadd.f32 %v1858_v14, %v1737_v47  ;;  %v2338_v18 = vpop.f32.mrf.mxu3  ;;  %v15328_v45 = vld [vmem:[#allocation21_spill] sm:$0xff] }
 0x2d8   : > { %v2207_v2 = vadd.f32 %v2093_v36, %v1972_v27  ;;  %8552 = vmatmul.msk.bf16.gmra.mxu0 %vm567_vm2, %v10948_v61  ;;  %8589 = vmatmul.msk.bf16.gmra.mxu1 %vm567_vm2, %v10444_v50 }
 0x2d9   : > { %8630 = vmatmul.msk.bf16.gmra.mxu2 %vm567_vm2, %v11007_v0 }
 0x2da   : > { %v11350_v40 = vadd.f32 %v2328_v51, %v2207_v2  ;;  %v15329_v51 = vld [vmem:[#allocation31_spill] sm:$0xff] }
 0x2dc   : > { %15325 = vst [vmem:[#allocation5_spill] sm:$0xff] %v11350_v40  ;;  %v2103_v23 = vpop.f32.mrf.mxu2  ;;  %v10445_v40 = vld [vmem:[%s10619_s17 + $0xbc] sm:$0xff]  }
 0x2dd   : > { %v1635_v4 = vpop.f32.mrf.mxu0  ;;  %v1860_v47 = vpop.f32.mrf.mxu1 }
 0x2de   : > { %v1742_v63 = vadd.f32 %v1635_v4, %v15326_v20  ;;  %v1973_v12 = vadd.f32 %v1860_v47, %v1738_v21  ;;  %v2340_v61 = vpop.f32.mrf.mxu3  ;;  %v15330_v21 = vld [vmem:[#allocation38_spill] sm:$0xff]  ;;  %v15332_v20 = vld [vmem:[#allocation23_spill] sm:$0xff] }
 0x2e0   : > { %v2208_v36 = vadd.f32 %v2095_v25, %v1973_v12 }
 0x2e2   : > { %v11353_v53 = vadd.f32 %v2330_v11, %v2208_v36  ;;  %8670 = vmatmul.msk.bf16.gmra.mxu3 %vm567_vm2, %v15329_v51 }
 0x2e4   : > { %15327 = vst [vmem:[#allocation14_spill] sm:$0xff] %v11353_v53  ;;  %v2105_v58 = vpop.f32.mrf.mxu2 }
 0x2e5   : > { %v1638_v26 = vpop.f32.mrf.mxu0  ;;  %v1863_v14 = vpop.f32.mrf.mxu1 }
 0x2e6   : > { %v1743_v27 = vadd.f32 %v1638_v26, %v15328_v45  ;;  %v1974_v50 = vadd.f32 %v1863_v14, %v1739_v34  ;;  %v2343_v25 = vpop.f32.mrf.mxu3 }
 0x2e8   : > { %v2209_v2 = vadd.f32 %v2098_v54, %v1974_v50  ;;  %8553 = vmatmul.msk.bf16.gmra.mxu0 %vm567_vm2, %v10966_v49  ;;  %8590 = vmatmul.msk.bf16.gmra.mxu1 %vm567_vm2, %v10445_v40  ;;  %v15334_v50 = vld [vmem:[#allocation24_spill] sm:$0xff] }
 0x2e9   : > { %8631 = vmatmul.msk.bf16.gmra.mxu2 %vm567_vm2, %v15330_v21 }
 0x2ea   : > { %v11364_v11 = vadd.f32 %v2333_v32, %v2209_v2  ;;  %v15335_v32 = vld [vmem:[#allocation35_spill] sm:$0xff] }
 0x2ec   : > { %15331 = vst [vmem:[#allocation19_spill] sm:$0xff] %v11364_v11  ;;  %v2108_v4 = vpop.f32.mrf.mxu2  ;;  %v10446_v11 = vld [vmem:[%s10619_s17 + $0xc4] sm:$0xff]  }
 0x2ed   : > { %v1640_v47 = vpop.f32.mrf.mxu0  ;;  %v1865_v34 = vpop.f32.mrf.mxu1 }
 0x2ee   : > { %v1744_v12 = vadd.f32 %v1640_v47, %v15332_v20  ;;  %v1975_v36 = vadd.f32 %v1865_v34, %v1740_v10  ;;  %v2345_v49 = vpop.f32.mrf.mxu3  ;;  %v15337_v34 = vld [vmem:[#allocation25_spill] sm:$0xff] }
 0x2f0   : > { %v2210_v54 = vadd.f32 %v2100_v3, %v1975_v36 }
 0x2f2   : > { %v11367_v26 = vadd.f32 %v2335_v7, %v2210_v54  ;;  %8671 = vmatmul.msk.bf16.gmra.mxu3 %vm567_vm2, %v15335_v32 }
 0x2f4   : > { %15333 = vst [vmem:[#allocation6_spill] sm:$0xff] %v11367_v26  ;;  %v2110_v14 = vpop.f32.mrf.mxu2 }
 0x2f5   : > { %v1643_v45 = vpop.f32.mrf.mxu0  ;;  %v1868_v40 = vpop.f32.mrf.mxu1 }
 0x2f6   : > { %v1745_v51 = vadd.f32 %v1643_v45, %v15334_v50  ;;  %v1976_v53 = vadd.f32 %v1868_v40, %v1741_v9  ;;  %v2348_v7 = vpop.f32.mrf.mxu3  ;;  %v15339_v40 = vld [vmem:[#allocation26_spill] sm:$0xff] }
 0x2f8   : > { %v2211_v2 = vadd.f32 %v2103_v23, %v1976_v53  ;;  %8554 = vmatmul.msk.bf16.gmra.mxu0 %vm567_vm2, %v10987_v17  ;;  %8591 = vmatmul.msk.bf16.gmra.mxu1 %vm567_vm2, %v10446_v11 }
 0x2f9   : > { %8632 = vmatmul.msk.bf16.gmra.mxu2 %vm567_vm2, %v11055_v8 }
 0x2fa   : > { %v11378_v10 = vadd.f32 %v2338_v18, %v2211_v2  ;;  %v15340_v18 = vld [vmem:[#allocation40_spill] sm:$0xff] }
 0x2fc   : > { %15336 = vst [vmem:[#allocation7_spill] sm:$0xff] %v11378_v10  ;;  %v2113_v3 = vpop.f32.mrf.mxu2  ;;  %v10447_v10 = vld [vmem:[%s10619_s17 + $0xcc] sm:$0xff]  }
 0x2fd   : > { %v1645_v47 = vpop.f32.mrf.mxu0  ;;  %v1870_v9 = vpop.f32.mrf.mxu1 }
 0x2fe   : > { %v1746_v20 = vadd.f32 %v1645_v47, %v15337_v34  ;;  %v1977_v36 = vadd.f32 %v1870_v9, %v1742_v63  ;;  %v2350_v17 = vpop.f32.mrf.mxu3  ;;  %v15342_v9 = vld [vmem:[#allocation27_spill] sm:$0xff] }
 0x300   : > { %v2212_v23 = vadd.f32 %v2105_v58, %v1977_v36 }
 0x302   : > { %v11381_v53 = vadd.f32 %v2340_v61, %v2212_v23  ;;  %8672 = vmatmul.msk.bf16.gmra.mxu3 %vm567_vm2, %v15340_v18 }
 0x304   : > { %15338 = vst [vmem:[#allocation22_spill] sm:$0xff] %v11381_v53  ;;  %v2115_v54 = vpop.f32.mrf.mxu2 }
 0x305   : > { %v1648_v45 = vpop.f32.mrf.mxu0  ;;  %v1873_v11 = vpop.f32.mrf.mxu1 }
 0x306   : > { %v1747_v50 = vadd.f32 %v1648_v45, %v15339_v40  ;;  %v1978_v32 = vadd.f32 %v1873_v11, %v1743_v27  ;;  %v2353_v61 = vpop.f32.mrf.mxu3  ;;  %v11398_v40 = vld [vmem:[%s10619_s17 + $0xfc] sm:$0xff]  }
 0x308   : > { %v2213_v2 = vadd.f32 %v2108_v4, %v1978_v32  ;;  %8555 = vmatmul.msk.bf16.gmra.mxu0 %vm567_vm2, %v11007_v0  ;;  %8592 = vmatmul.msk.bf16.gmra.mxu1 %vm567_vm2, %v10447_v10 }
 0x309   : > { %8633 = vmatmul.msk.bf16.gmra.mxu2 %vm567_vm2, %v11071_v59 }
 0x30a   : > { %v11392_v63 = vadd.f32 %v2343_v25, %v2213_v2  ;;  %v15344_v25 = vld [vmem:[#allocation28_spill] sm:$0xff] }
 0x30b   : > { %v11402_v2 = vld [vmem:[%s10619_s17 + $0xf0] sm:$0xff]  }
 0x30c   : > { %15341 = vst [vmem:[#allocation8_spill] sm:$0xff] %v11392_v63  ;;  %v2118_v58 = vpop.f32.mrf.mxu2  ;;  %v11421_v63 = vld [vmem:[%s10619_s17 + $0x104] sm:$0xff]  }
 0x30d   : > { %v1650_v27 = vpop.f32.mrf.mxu0  ;;  %v1875_v47 = vpop.f32.mrf.mxu1 }
 0x30e   : > { %v1748_v34 = vadd.f32 %v1650_v27, %v15342_v9  ;;  %v1979_v4 = vadd.f32 %v1875_v47, %v1744_v12  ;;  %v2355_v23 = vpop.f32.mrf.mxu3  ;;  %v9683_v27 = vld [vmem:[%s15168_s2 + $0x80] sm:$0xff] }
 0x30f   : > { %2526 = vmatpush.bf16.msra.mxu0 %v9683_v27 }
 0x310   : > { %v2214_v36 = vadd.f32 %v2110_v14, %v1979_v4 }
 0x312   : > { %v11395_v0 = vadd.f32 %v2345_v49, %v2214_v36  ;;  %8673 = vmatmul.msk.bf16.gmra.mxu3 %vm567_vm2, %v11398_v40  ;;  %v10448_v49 = vld [vmem:[%s10619_s17 + $0xd4] sm:$0xff]  }
 0x313   : > { %v15346_v36 = vld [vmem:[#allocation29_spill] sm:$0xff] }
 0x314   : > { %15343 = vst [vmem:[#allocation9_spill] sm:$0xff] %v11395_v0  ;;  %v2120_v45 = vpop.f32.mrf.mxu2 }
 0x315   : > { %v1653_v10 = vpop.f32.mrf.mxu0  ;;  %v1878_v11 = vpop.f32.mrf.mxu1 }
 0x316   : > { %v1749_v32 = vadd.f32 %v1653_v10, %v15344_v25  ;;  %v1980_v18 = vadd.f32 %v1878_v11, %v1745_v51  ;;  %v2358_v51 = vpop.f32.mrf.mxu3 }
 0x318   : > { %v2215_v12 = vadd.f32 %v2113_v3, %v1980_v18  ;;  %8556 = vmatmul.msk.bf16.gmra.mxu0 %vm567_vm2, %v15330_v21  ;;  %8593 = vmatmul.msk.bf16.gmra.mxu1 %vm567_vm2, %v10448_v49 }
 0x319   : > { %8634 = vmatmul.msk.bf16.gmra.mxu2 %vm567_vm2, %v11402_v2 }
 0x31a   : > { %v11415_v14 = vadd.f32 %v2348_v7, %v2215_v12  ;;  %v15348_v7 = vld [vmem:[#allocation32_spill] sm:$0xff] }
 0x31c   : > { %15345 = vst [vmem:[#allocation10_spill] sm:$0xff] %v11415_v14  ;;  %v2123_v47 = vpop.f32.mrf.mxu2  ;;  %v11425_v14 = vld [vmem:[%s10619_s17 + $0xf8] sm:$0xff]  }
 0x31d   : > { %v1655_v9 = vpop.f32.mrf.mxu0  ;;  %v1880_v4 = vpop.f32.mrf.mxu1 }
 0x31e   : > { %v1750_v3 = vadd.f32 %v1655_v9, %v15346_v36  ;;  %v1981_v10 = vadd.f32 %v1880_v4, %v1746_v20  ;;  %v2360_v25 = vpop.f32.mrf.mxu3  ;;  %v10449_v20 = vld [vmem:[%s10619_s17 + $0xdc] sm:$0xff]  }
 0x31f   : > { %v15350_v4 = vld [vmem:[#allocation33_spill] sm:$0xff] }
 0x320   : > { %v2216_v21 = vadd.f32 %v2115_v54, %v1981_v10 }
 0x322   : > { %v11418_v11 = vadd.f32 %v2350_v17, %v2216_v21  ;;  %8674 = vmatmul.msk.bf16.gmra.mxu3 %vm567_vm2, %v11421_v63 }
 0x324   : > { %15347 = vst [vmem:[#allocation12_spill] sm:$0xff] %v11418_v11  ;;  %v2125_v18 = vpop.f32.mrf.mxu2  ;;  %v11445_v11 = vld [vmem:[%s10619_s17 + $0x100] sm:$0xff]  }
 0x325   : > { %v1658_v49 = vpop.f32.mrf.mxu0  ;;  %v1883_v0 = vpop.f32.mrf.mxu1 }
 0x326   : > { %v1751_v27 = vadd.f32 %v1658_v49, %v15348_v7  ;;  %v1982_v12 = vadd.f32 %v1883_v0, %v1747_v50  ;;  %v2363_v54 = vpop.f32.mrf.mxu3 }
 0x328   : > { %v2217_v53 = vadd.f32 %v2118_v58, %v1982_v12  ;;  %8557 = vmatmul.msk.bf16.gmra.mxu0 %vm567_vm2, %v11055_v8  ;;  %8594 = vmatmul.msk.bf16.gmra.mxu1 %vm567_vm2, %v10449_v20  ;;  %v11441_v20 = vld [vmem:[%s10619_s17 + $0x10c] sm:$0xff]  }
 0x329   : > { %8635 = vmatmul.msk.bf16.gmra.mxu2 %vm567_vm2, %v11425_v14 }
 0x32a   : > { %v11435_v17 = vadd.f32 %v2353_v61, %v2217_v53  ;;  %v15352_v53 = vld [vmem:[#allocation36_spill] sm:$0xff] }
 0x32c   : > { %15349 = vst [vmem:[#allocation13_spill] sm:$0xff] %v11435_v17  ;;  %v2128_v50 = vpop.f32.mrf.mxu2 }
 0x32d   : > { %v1660_v0 = vpop.f32.mrf.mxu0  ;;  %v1885_v9 = vpop.f32.mrf.mxu1 }
 0x32e   : > { %v1752_v58 = vadd.f32 %v1660_v0, %v15350_v4  ;;  %v1983_v36 = vadd.f32 %v1885_v9, %v1748_v34  ;;  %v2365_v21 = vpop.f32.mrf.mxu3  ;;  %v10450_v34 = vld [vmem:[%s10619_s17 + $0xe4] sm:$0xff]  }
 0x32f   : > { %v15355_v0 = vld [vmem:[#allocation30_spill] sm:$0xff] }
 0x330   : > { %v2218_v10 = vadd.f32 %v2120_v45, %v1983_v36 }
 0x332   : > { %v11438_v8 = vadd.f32 %v2355_v23, %v2218_v10  ;;  %8675 = vmatmul.msk.bf16.gmra.mxu3 %vm567_vm2, %v11441_v20 }
 0x334   : > { %15351 = vst [vmem:[#allocation15_spill] sm:$0xff] %v11438_v8  ;;  %v2130_v49 = vpop.f32.mrf.mxu2 }
 0x335   : > { %v1663_v7 = vpop.f32.mrf.mxu0  ;;  %v1888_v12 = vpop.f32.mrf.mxu1 }
 0x336   : > { %v1753_v61 = vadd.f32 %v1663_v7, %v15352_v53  ;;  %v1984_v17 = vadd.f32 %v1888_v12, %v1749_v32  ;;  %v2368_v45 = vpop.f32.mrf.mxu3  ;;  %v15354_v32 = vld [vmem:[#allocation37_spill] sm:$0xff] }
 0x337   : > { %v1519_v9 = vadd.f32 %v15355_v0, %v15354_v32  ;;  %v10021_v0 = vld [vmem:[%s10619_s17 + $0x108] sm:$0xff]  }
 0x338   : > { %v2219_v26 = vadd.f32 %v2123_v47, %v1984_v17  ;;  %8558 = vmatmul.msk.bf16.gmra.mxu0 %vm567_vm2, %v11071_v59  ;;  %8595 = vmatmul.msk.bf16.gmra.mxu1 %vm567_vm2, %v10450_v34  ;;  %v10046_v34 = vld [vmem:[%s10619_s17 + $0x114] sm:$0xff]  }
 0x339   : > { %8636 = vmatmul.msk.bf16.gmra.mxu2 %vm567_vm2, %v11445_v11 }
 0x33a   : > { %v11455_v23 = vadd.f32 %v2358_v51, %v2219_v26 }
 0x33c   : > { %15353 = vst [vmem:[#allocation17_spill] sm:$0xff] %v11455_v23  ;;  %v2133_v4 = vpop.f32.mrf.mxu2  ;;  %v15356_v23 = vld [vmem:[#allocation41_spill] sm:$0xff] }
 0x33d   : > { %v1665_v36 = vpop.f32.mrf.mxu0  ;;  %v1890_v47 = vpop.f32.mrf.mxu1 }
 0x33e   : > { %v11459_v17 = vadd.f32 %v1665_v36, %v1519_v9  ;;  %v1985_v59 = vadd.f32 %v1890_v47, %v1750_v3  ;;  %v11463_v12 = vpop.f32.mrf.mxu3  ;;  %v10451_v3 = vld [vmem:[%s10619_s17 + $0xec] sm:$0xff]   ;;  %v15357_v9 = vld [vmem:[#allocation42_spill] sm:$0xff] }
 0x33f   : > { %v15358_v36 = vld [vmem:[#allocation34_spill] sm:$0xff] }
 0x340   : > { %v2220_v10 = vadd.f32 %v2125_v18, %v1985_v59 }
 0x342   : > { %v11461_v7 = vadd.f32 %v2360_v25, %v2220_v10  ;;  %8676 = vmatmul.msk.bf16.gmra.mxu3 %vm567_vm2, %v10046_v34 }
 0x344   : > { %v11465_v53 = vpop.f32.mrf.mxu2 }
 0x345   : > { %v1668_v26 = vpop.f32.mrf.mxu0  ;;  %v1893_v51 = vpop.f32.mrf.mxu1 }
 0x346   : > { %v1755_v8 = vadd.f32 %v1668_v26, %v15356_v23  ;;  %v1986_v32 = vadd.f32 %v1893_v51, %v1751_v27  ;;  %v2373_v18 = vpop.f32.mrf.mxu3  ;;  %v1521_v23 = vadd.f32 %v15358_v36, %v15357_v9  ;;  %v9692_v36 = vld [vmem:[%s15170_s4 + $0x38] sm:$0xff] }
 0x347   : > { %3790 = vmatpush.bf16.msra.mxu1 %v9692_v36 }
 0x348   : > { %v2221_v22 = vadd.f32 %v2128_v50, %v1986_v32  ;;  %8559 = vmatmul.msk.bf16.gmra.mxu0 %vm567_vm2, %v11402_v2  ;;  %8596 = vmatmul.msk.bf16.gmra.mxu1 %vm567_vm2, %v10451_v3 }
 0x349   : > { %8637 = vmatmul.msk.bf16.gmra.mxu2 %vm567_vm2, %v10021_v0  ;;  %v10390_v0 = vld [vmem:[%s10619_s17 + $0x11c] sm:$0xff]  }
 0x34a   : > { %v11476_v25 = vadd.f32 %v2363_v54, %v2221_v22  ;;  %v9688_v22 = vld [vmem:[%s15170_s4 + $0x18] sm:$0xff] }
 0x34b   : > { %4031 = vmatpush.bf16.msra.mxu2 %v9688_v22 }
 0x34c   : > { %v2138_v27 = vpop.f32.mrf.mxu2 }
 0x34d   : > { %v1670_v47 = vpop.f32.mrf.mxu0  ;;  %v1895_v59 = vpop.f32.mrf.mxu1 }
 0x34e   : > { %v11480_v50 = vadd.f32 %v1670_v47, %v1521_v23  ;;  %v1987_v10 = vadd.f32 %v1895_v59, %v1752_v58  ;;  %v11484_v51 = vpop.f32.mrf.mxu3  ;;  %v10022_v58 = vld [vmem:[%s10619_s17 + $0x110] sm:$0xff]   ;;  %v15360_v47 = vld [vmem:[#allocation39_spill] sm:$0xff] }
 0x350   : > { %v2222_v2 = vadd.f32 %v2130_v49, %v1987_v10  ;;  %v10452_v49 = vld [vmem:[%s10619_s17 + $0xf4] sm:$0xff]  }
 0x352   : > { %v11482_v26 = vadd.f32 %v2365_v21, %v2222_v2  ;;  %8677 = vmatmul.msk.bf16.gmra.mxu3 %vm567_vm2, %v10390_v0 }
 0x354   : > { %v11489_v54 = vpop.f32.mrf.mxu2 }
 0x355   : > { %v1673_v34 = vpop.f32.mrf.mxu0  ;;  %v1898_v32 = vpop.f32.mrf.mxu1 }
 0x356   : > { %v1757_v3 = vadd.f32 %v1673_v34, %v11066_v56  ;;  %v1988_v9 = vadd.f32 %v1898_v32, %v1753_v61  ;;  %v2378_v56 = vpop.f32.mrf.mxu3  ;;  %v2829_v61 = vld [vmem:[%s15167_s1] sm:$0xff]  ;;  %v2830_v32 = vld [vmem:[%s15167_s1 + $0x8] sm:$0xff] }
 0x358   : > { %v2223_v21 = vadd.f32 %v2133_v4, %v1988_v9  ;;  %8560 = vmatmul.msk.bf16.gmra.mxu0 %vm567_vm2, %v11425_v14  ;;  %8597 = vmatmul.msk.bf16.gmra.mxu1 %vm567_vm2, %v10452_v49  ;;  %v10488_v4 = vmov 0   ;;  %v15359_v14 = vld [vmem:[#allocation44_spill] sm:$0xff] }
 0x359   : > { %8638 = vmatmul.msk.bf16.gmra.mxu2 %vm567_vm2, %v10022_v58  ;;  %10428 = vset.pattern.permute.xlu0 %v10488_v4  ;;  %v1523_v59 = vadd.f32 %v15360_v47, %v15359_v14  ;;  %v2831_v14 = vld [vmem:[%s15167_s1 + $0x10] sm:$0xff] }
 0x35a   : > { %v11503_v23 = vadd.f32 %v2368_v45, %v2223_v21  ;;  %10429 = vset.pattern.permute.xlu1 %v10488_v4  ;;  %2885 = vperm.xlu0 %10428, %v2829_v61   ;;  %v10391_v21 = vld [vmem:[%s10619_s17 + $0x124] sm:$0xff]   ;;  %v10023_v61 = vld [vmem:[%s10619_s17 + $0x118] sm:$0xff]  }
 0x35b   : > { %10430 = vset.pattern.permute.xlu2 %v10488_v4  ;;  %2895 = vperm.xlu1 %10429, %v2831_v14  }
 0x35c   : > { %v2143_v10 = vpop.f32.mrf.mxu2 }
 0x35d   : > { %v1675_v2 = vpop.f32.mrf.mxu0  ;;  %v11510_v45 = vpop.f32.mrf.mxu1 }
 0x35e   : > { %v11512_v22 = vadd.f32 %v1675_v2, %v1523_v59  ;;  %v11514_v34 = vpop.f32.mrf.mxu3  ;;  %v15362_v59 = vld [vmem:[#allocation43_spill] sm:$0xff] }
 0x362   : > { %2890 = vperm.xlu0 %10428, %v2830_v32   ;;  %8678 = vmatmul.msk.bf16.gmra.mxu3 %vm567_vm2, %v10391_v21  ;;  %v2838_v21 = vld [vmem:[%s15167_s1 + $0x48] sm:$0xff] }
 0x364   : > { %v11519_v0 = vpop.f32.mrf.mxu2 }
 0x365   : > { %v1678_v9 = vpop.f32.mrf.mxu0  ;;  %v1903_v58 = vpop.f32.mrf.mxu1 }
 0x366   : > { %v1759_v49 = vadd.f32 %v1678_v9, %v11094_v19  ;;  %v1990_v36 = vadd.f32 %v1903_v58, %v1755_v8  ;;  %v2383_v19 = vpop.f32.mrf.mxu3  ;;  %v2835_v8 = vld [vmem:[%s15167_s1 + $0x30] sm:$0xff] }
 0x368   : > { %v2225_v4 = vadd.f32 %v2138_v27, %v1990_v36  ;;  %8561 = vmatmul.msk.bf16.gmra.mxu0 %vm567_vm2, %v11445_v11  ;;  %8598 = vmatmul.msk.bf16.gmra.mxu1 %vm567_vm2, %v11398_v40  ;;  %v15361_v27 = vld [vmem:[#allocation46_spill] sm:$0xff] }
 0x369   : > { %8639 = vmatmul.msk.bf16.gmra.mxu2 %vm567_vm2, %v10023_v61  ;;  %v1525_v11 = vadd.f32 %v15362_v59, %v15361_v27  ;;  %v10453_v59 = vld [vmem:[%s10619_s17 + $0x60] sm:$0xff]  }
 0x36a   : > { %v11533_v47 = vadd.f32 %v2373_v18, %v2225_v4  ;;  %2915 = vperm.xlu0 %10428, %v2835_v8   ;;  %v2832_v18 = vld [vmem:[%s15167_s1 + $0x18] sm:$0xff] }
 0x36b   : > { %2900 = vperm.xlu1 %10429, %v2832_v18  }
 0x36c   : > { %v2148_v2 = vpop.f32.mrf.mxu2 }
 0x36d   : > { %v1680_v40 = vpop.f32.mrf.mxu0  ;;  %v11540_v32 = vpop.f32.mrf.mxu1 }
 0x36e   : > { %v11542_v9 = vadd.f32 %v1680_v40, %v1525_v11  ;;  %v11547_v58 = vpop.f32.mrf.mxu3  ;;  %v2836_v11 = vld [vmem:[%s15167_s1 + $0x38] sm:$0xff] }
 0x372   : > { %2930 = vperm.xlu0 %10428, %v2838_v21  }
 0x373   : > { %2920 = vperm.xlu1 %10429, %v2836_v11  }
 0x374   : > { %v11552_v36 = vpop.f32.mrf.mxu2 }
 0x375   : > { %v1683_v61 = vpop.f32.mrf.mxu0  ;;  %v1908_v4 = vpop.f32.mrf.mxu1 }
 0x376   : > { %v1761_v14 = vadd.f32 %v1683_v61, %v11118_v35  ;;  %v1992_v8 = vadd.f32 %v1908_v4, %v1757_v3  ;;  %v2388_v18 = vpop.f32.mrf.mxu3  ;;  %v2841_v35 = vld [vmem:[%s15167_s1 + $0x60] sm:$0xff]  ;;  %v15363_v3 = vld [vmem:[#allocation45_spill] sm:$0xff] }
 0x378   : > { %v2227_v27 = vadd.f32 %v2143_v10, %v1992_v8  ;;  %8599 = vmatmul.msk.bf16.gmra.mxu1 %vm567_vm2, %v11421_v63  ;;  %8695 = vmatmul.msk.bf16.vlgmr.msra.gmra.mxu0 %vm567_vm2, %v10453_v59  ;;  %v1527_v10 = vadd.f32 %v15363_v3, %v11120_v62  ;;  %v2844_v8 = vld [vmem:[%s15167_s1 + $0x78] sm:$0xff] }
 0x37a   : > { %v11562_v40 = vadd.f32 %v2378_v56, %v2227_v27  ;;  %2945 = vperm.xlu0 %10428, %v2841_v35   ;;  %v2839_v56 = vld [vmem:[%s15167_s1 + $0x50] sm:$0xff] }
 0x37b   : > { %2935 = vperm.xlu1 %10429, %v2839_v56   ;;  %v2833_v56 = vld [vmem:[%s15167_s1 + $0x20] sm:$0xff] }
 0x37c   : > { %v2153_v21 = vpop.f32.mrf.mxu2  ;;  %2905 = vperm.xlu2 %10430, %v2833_v56  }
 0x37d   : > { %v1685_v63 = vpop.f32.mrf.mxu0  ;;  %v11569_v61 = vpop.f32.mrf.mxu1 }
 0x37e   : > { %v11571_v4 = vadd.f32 %v1685_v63, %v1527_v10  ;;  %v11581_v62 = vpop.f32.mrf.mxu3  ;;  %v10454_v63 = vld [vmem:[%s10619_s17 + $0x68] sm:$0xff]  }
 0x37f   : > { %15364 = vst [vmem:[#allocation18_spill] sm:$0xff] %v11581_v62 }
 0x382   : > { %2960 = vperm.xlu0 %10428, %v2844_v8   ;;  %v2842_v8 = vld [vmem:[%s15167_s1 + $0x68] sm:$0xff] }
 0x383   : > { %2950 = vperm.xlu1 %10429, %v2842_v8  }
 0x384   : > { %v11579_v27 = vpop.f32.mrf.mxu2 }
 0x385   : > { %v1688_v59 = vpop.f32.mrf.mxu0  ;;  %v1913_v11 = vpop.f32.mrf.mxu1 }
 0x386   : > { %v1763_v35 = vadd.f32 %v1688_v59, %v11132_v31  ;;  %v1994_v3 = vadd.f32 %v1913_v11, %v1759_v49  ;;  %v2847_v31 = vld [vmem:[%s15167_s1 + $0x90] sm:$0xff] }
 0x388   : > { %v2229_v10 = vadd.f32 %v2148_v2, %v1994_v3  ;;  %8600 = vmatmul.msk.bf16.gmra.mxu1 %vm567_vm2, %v11441_v20  ;;  %8696 = vmatmul.msk.bf16.gmra.mxu0 %vm567_vm2, %v10454_v63  ;;  %v1529_v20 = vadd.f32 %v11116_v16, %v11134_v42  ;;  %v2393_v3 = vpop.f32.mrf.mxu3  ;;  %v2850_v16 = vld [vmem:[%s15167_s1 + $0xa8] sm:$0xff] }
 0x38a   : > { %v11594_v62 = vadd.f32 %v2383_v19, %v2229_v10  ;;  %2975 = vperm.xlu0 %10428, %v2847_v31   ;;  %v2834_v19 = vld [vmem:[%s15167_s1 + $0x28] sm:$0xff]  ;;  %v2845_v10 = vld [vmem:[%s15167_s1 + $0x80] sm:$0xff] }
 0x38b   : > { %2910 = vperm.xlu2 %10430, %v2834_v19   ;;  %2965 = vperm.xlu1 %10429, %v2845_v10   ;;  %v2837_v19 = vld [vmem:[%s15167_s1 + $0x40] sm:$0xff]  ;;  %v2848_v10 = vld [vmem:[%s15167_s1 + $0x98] sm:$0xff] }
 0x38c   : > { %v2158_v49 = vpop.f32.mrf.mxu2 }
 0x38d   : > { %v1690_v2 = vpop.f32.mrf.mxu0  ;;  %v11601_v59 = vpop.f32.mrf.mxu1 }
 0x38e   : > { %v11603_v11 = vadd.f32 %v1690_v2, %v1529_v20  ;;  %v10455_v2 = vld [vmem:[%s10619_s17 + $0x70] sm:$0xff]  }
 0x390   : > { %15365 = vst [vmem:[#allocation20_spill] sm:$0xff] %v11603_v11  ;;  %v11619_v11 = vpop.f32.mrf.mxu3 }
 0x391   : > { %15366 = vst [vmem:[#allocation21_spill] sm:$0xff] %v11619_v11 }
 0x392   : > { %2990 = vperm.xlu0 %10428, %v2850_v16  }
 0x393   : > { %2925 = vperm.xlu2 %10430, %v2837_v19   ;;  %2980 = vperm.xlu1 %10429, %v2848_v10  }
 0x394   : > { %v11615_v31 = vpop.f32.mrf.mxu2 }
 0x395   : > { %v1693_v42 = vpop.f32.mrf.mxu0  ;;  %v1918_v63 = vpop.f32.mrf.mxu1 }
 0x396   : > { %v1765_v56 = vadd.f32 %v1693_v42, %v11144_v1  ;;  %v1996_v8 = vadd.f32 %v1918_v63, %v1761_v14  ;;  %v2853_v14 = vld [vmem:[%s15167_s1 + $0xc0] sm:$0xff] }
 0x398   : > { %v2231_v20 = vadd.f32 %v2153_v21, %v1996_v8  ;;  %8697 = vmatmul.msk.bf16.gmra.mxu0 %vm567_vm2, %v10455_v2  ;;  %v1531_v21 = vadd.f32 %v11130_v6, %v11148_v48  ;;  %v2398_v2 = vpop.f32.mrf.mxu3  ;;  %v2856_v6 = vld [vmem:[%s15167_s1 + $0xd8] sm:$0xff] }
 0x39a   : > { %v11627_v1 = vadd.f32 %v2388_v18, %v2231_v20  ;;  %3005 = vperm.xlu0 %10428, %v2853_v14   ;;  %v2840_v18 = vld [vmem:[%s15167_s1 + $0x58] sm:$0xff]  ;;  %v2851_v20 = vld [vmem:[%s15167_s1 + $0xb0] sm:$0xff] }
 0x39b   : > { %2940 = vperm.xlu2 %10430, %v2840_v18   ;;  %2995 = vperm.xlu1 %10429, %v2851_v20   ;;  %v2843_v18 = vld [vmem:[%s15167_s1 + $0x70] sm:$0xff]  ;;  %v2854_v20 = vld [vmem:[%s15167_s1 + $0xc8] sm:$0xff] }
 0x39c   : > { %v2163_v8 = vpop.f32.mrf.mxu2 }
 0x39d   : > { %v1695_v16 = vpop.f32.mrf.mxu0  ;;  %v11634_v42 = vpop.f32.mrf.mxu1 }
 0x39e   : > { %v11636_v63 = vadd.f32 %v1695_v16, %v1531_v21  ;;  %v10456_v16 = vld [vmem:[%s10619_s17 + $0x78] sm:$0xff]  }
 0x3a0   : > { %15367 = vst [vmem:[#allocation31_spill] sm:$0xff] %v11636_v63 }
 0x3a2   : > { %3020 = vperm.xlu0 %10428, %v2856_v6  }
 0x3a3   : > { %2955 = vperm.xlu2 %10430, %v2843_v18   ;;  %3010 = vperm.xlu1 %10429, %v2854_v20  }
 0x3a4   : > { %v11658_v63 = vpop.f32.mrf.mxu2 }
 0x3a5   : > { %v1698_v48 = vpop.f32.mrf.mxu0  ;;  %v1923_v19 = vpop.f32.mrf.mxu1  ;;  %15368 = vst [vmem:[#allocation38_spill] sm:$0xff] %v11658_v63  ;;  %v15404_v63 = vld [vmem:[#allocation11_spill] sm:$0xff] }
 0x3a6   : > { %v1767_v10 = vadd.f32 %v1698_v48, %v11158_v33  ;;  %v1998_v14 = vadd.f32 %v1923_v19, %v1763_v35  ;;  %v2859_v33 = vld [vmem:[%s15167_s1 + $0xf0] sm:$0xff]  ;;  %v1533_v35 = vadd.f32 %v11146_v24, %v11160_v29  ;;  %v2862_v24 = vld [vmem:[%s15167_s1 + $0x108] sm:$0xff] }
 0x3a8   : > { %v2233_v21 = vadd.f32 %v2158_v49, %v1998_v14  ;;  %8698 = vmatmul.msk.bf16.gmra.mxu0 %vm567_vm2, %v10456_v16  ;;  %v11665_v49 = vpop.f32.mrf.mxu3 }
 0x3a9   : > { %15369 = vst [vmem:[#allocation23_spill] sm:$0xff] %v11665_v49 }
 0x3aa   : > { %v11656_v6 = vadd.f32 %v2393_v3, %v2233_v21  ;;  %3035 = vperm.xlu0 %10428, %v2859_v33   ;;  %v2846_v3 = vld [vmem:[%s15167_s1 + $0x88] sm:$0xff]  ;;  %v2857_v21 = vld [vmem:[%s15167_s1 + $0xe0] sm:$0xff] }
 0x3ab   : > { %2970 = vperm.xlu2 %10430, %v2846_v3   ;;  %3025 = vperm.xlu1 %10429, %v2857_v21   ;;  %v2849_v3 = vld [vmem:[%s15167_s1 + $0xa0] sm:$0xff]  ;;  %v2860_v21 = vld [vmem:[%s15167_s1 + $0xf8] sm:$0xff] }
 0x3ac   : > { %v2168_v29 = vpop.f32.mrf.mxu2 }
 0x3ad   : > { %v1700_v48 = vpop.f32.mrf.mxu0  ;;  %v11667_v19 = vpop.f32.mrf.mxu1 }
 0x3ae   : > { %v11669_v14 = vadd.f32 %v1700_v48, %v1533_v35 }
 0x3b0   : > { %15370 = vst [vmem:[#allocation24_spill] sm:$0xff] %v11669_v14  ;;  %v2403_v35 = vpop.f32.mrf.mxu3  ;;  %v10457_v14 = vld [vmem:[%s10619_s17 + $0x80] sm:$0xff]  }
 0x3b2   : > { %3050 = vperm.xlu0 %10428, %v2862_v24  }
 0x3b3   : > { %2985 = vperm.xlu2 %10430, %v2849_v3   ;;  %3040 = vperm.xlu1 %10429, %v2860_v21   ;;  %v2868_v3 = vld [vmem:[%s15167_s1 + $0x138] sm:$0xff] }
 0x3b5   : > { %v1703_v16 = vpop.f32.mrf.mxu0  ;;  %v1928_v18 = vpop.f32.mrf.mxu1 }
 0x3b6   : > { %v1769_v20 = vadd.f32 %v1703_v16, %v11172_v38  ;;  %v2000_v33 = vadd.f32 %v1928_v18, %v1765_v56  ;;  %v2865_v38 = vld [vmem:[%s15167_s1 + $0x120] sm:$0xff]  ;;  %v1535_v56 = vadd.f32 %v11162_v41, %v11174_v52  ;;  %v11700_v18 = vpop.f32.mrf.mxu2  ;;  %v2863_v41 = vld [vmem:[%s15167_s1 + $0x110] sm:$0xff] }
 0x3b7   : > { %15374 = vst [vmem:[#allocation40_spill] sm:$0xff] %v11700_v18  ;;  %v9691_v52 = vld [vmem:[%s15170_s4 + $0x30] sm:$0xff] }
 0x3b8   : > { %v2235_v48 = vadd.f32 %v2163_v8, %v2000_v33  ;;  %8699 = vmatmul.msk.bf16.gmra.mxu0 %vm567_vm2, %v10457_v14  ;;  %v11702_v33 = vpop.f32.mrf.mxu3  ;;  %3791 = vmatpush.bf16.msra.mxu1 %v9691_v52 }
 0x3b9   : > { %15375 = vst [vmem:[#allocation27_spill] sm:$0xff] %v11702_v33  ;;  %v10458_v33 = vld [vmem:[%s10619_s17 + $0x88] sm:$0xff]  }
 0x3ba   : > { %v11689_v24 = vadd.f32 %v2398_v2, %v2235_v48  ;;  %3065 = vperm.xlu0 %10428, %v2865_v38   ;;  %v9687_v2 = vld [vmem:[%s15170_s4 + $0x10] sm:$0xff]  ;;  %v2852_v48 = vld [vmem:[%s15167_s1 + $0xb8] sm:$0xff] }
 0x3bb   : > { %3000 = vperm.xlu2 %10430, %v2852_v48   ;;  %3055 = vperm.xlu1 %10429, %v2863_v41   ;;  %v2855_v48 = vld [vmem:[%s15167_s1 + $0xd0] sm:$0xff]  ;;  %v2866_v41 = vld [vmem:[%s15167_s1 + $0x128] sm:$0xff] }
 0x3bc   : > { %15371 = vst [vmem:[#allocation35_spill] sm:$0xff] %v11689_v24  ;;  %4032 = vmatpush.bf16.msra.mxu2 %v9687_v2 }
 0x3bd   : > { %v1705_v8 = vpop.f32.mrf.mxu0  ;;  %v11696_v14 = vpop.f32.mrf.mxu1 }
 0x3be   : > { %15372 = vst [vmem:[#allocation25_spill] sm:$0xff] %v11696_v14  ;;  %v11698_v16 = vadd.f32 %v1705_v8, %v1535_v56  ;;  %v2173_v2 = vpop.f32.mrf.mxu2 }
 0x3c0   : > { %15373 = vst [vmem:[#allocation26_spill] sm:$0xff] %v11698_v16 }
 0x3c2   : > { %3080 = vperm.xlu0 %10428, %v2868_v3   ;;  %v2408_v3 = vpop.f32.mrf.mxu3 }
 0x3c3   : > { %3015 = vperm.xlu2 %10430, %v2855_v48   ;;  %3070 = vperm.xlu1 %10429, %v2866_v41  }
 0x3c5   : > { %v1708_v21 = vpop.f32.mrf.mxu0  ;;  %v1933_v38 = vpop.f32.mrf.mxu1 }
 0x3c6   : > { %v1771_v56 = vadd.f32 %v1708_v21, %v11186_v39  ;;  %v2002_v8 = vadd.f32 %v1933_v38, %v1767_v10  ;;  %v2871_v39 = vld [vmem:[%s15167_s1 + $0x150] sm:$0xff]  ;;  %v1537_v10 = vadd.f32 %v11184_v37, %v11188_v13  ;;  %v11745_v38 = vpop.f32.mrf.mxu2  ;;  %v2874_v37 = vld [vmem:[%s15167_s1 + $0x168] sm:$0xff] }
 0x3c7   : > { %15379 = vst [vmem:[#allocation33_spill] sm:$0xff] %v11745_v38  ;;  %v9696_v38 = vld [vmem:[%s15170_s4 + $0x58] sm:$0xff] }
 0x3c8   : > { %v2237_v16 = vadd.f32 %v2168_v29, %v2002_v8  ;;  %8700 = vmatmul.msk.bf16.gmra.mxu0 %vm567_vm2, %v10458_v33  ;;  %4380 = vmatpush.bf16.msra.mxu3 %v9696_v38 }
 0x3ca   : > { %v11728_v52 = vadd.f32 %v2403_v35, %v2237_v16  ;;  %3095 = vperm.xlu0 %10428, %v2871_v39   ;;  %v2858_v35 = vld [vmem:[%s15167_s1 + $0xe8] sm:$0xff]  ;;  %v2869_v16 = vld [vmem:[%s15167_s1 + $0x140] sm:$0xff]  ;;  %v11750_v13 = vpop.f32.mrf.mxu3 }
 0x3cb   : > { %3030 = vperm.xlu2 %10430, %v2858_v35   ;;  %3085 = vperm.xlu1 %10429, %v2869_v16   ;;  %15380 = vst [vmem:[#allocation36_spill] sm:$0xff] %v11750_v13  ;;  %v2861_v35 = vld [vmem:[%s15167_s1 + $0x100] sm:$0xff]  ;;  %v2872_v16 = vld [vmem:[%s15167_s1 + $0x158] sm:$0xff] }
 0x3cc   : > { %15376 = vst [vmem:[#allocation28_spill] sm:$0xff] %v11728_v52 }
 0x3cd   : > { %v1710_v29 = vpop.f32.mrf.mxu0  ;;  %v11735_v33 = vpop.f32.mrf.mxu1 }
 0x3ce   : > { %15377 = vst [vmem:[#allocation29_spill] sm:$0xff] %v11735_v33  ;;  %v11737_v21 = vadd.f32 %v1710_v29, %v1537_v10  ;;  %v10459_v29 = vld [vmem:[%s10619_s17 + $0x90] sm:$0xff]   ;;  %v10462_v33 = vld [vmem:[%s10619_s17 + $0xa8] sm:$0xff]  }
 0x3d0   : > { %15378 = vst [vmem:[#allocation32_spill] sm:$0xff] %v11737_v21 }
 0x3d2   : > { %3110 = vperm.xlu0 %10428, %v2874_v37  }
 0x3d3   : > { %3045 = vperm.xlu2 %10430, %v2861_v35   ;;  %3100 = vperm.xlu1 %10429, %v2872_v16   ;;  %v2880_v16 = vld [vmem:[%s15167_s1 + $0x198] sm:$0xff] }
 0x3d5   : > { %v1713_v8 = vpop.f32.mrf.mxu0  ;;  %v1938_v48 = vpop.f32.mrf.mxu1 }
 0x3d6   : > { %v11753_v41 = vadd.f32 %v1713_v8, %v11200_v44  ;;  %v2004_v39 = vadd.f32 %v1938_v48, %v1769_v20  ;;  %v15382_v44 = vld [vmem:[#allocation47_spill] sm:$0xff]  ;;  %v2178_v20 = vpop.f32.mrf.mxu2  ;;  %v2877_v48 = vld [vmem:[%s15167_s1 + $0x180] sm:$0xff] }
 0x3d7   : > { %v1539_v37 = vadd.f32 %v15382_v44, %v11202_v43  ;;  %v2875_v43 = vld [vmem:[%s15167_s1 + $0x170] sm:$0xff]  ;;  %v9686_v44 = vld [vmem:[%s15170_s4 + $0x8] sm:$0xff] }
 0x3d8   : > { %v2239_v10 = vadd.f32 %v2173_v2, %v2004_v39  ;;  %8701 = vmatmul.msk.bf16.gmra.mxu0 %vm567_vm2, %v10459_v29  ;;  %v2413_v29 = vpop.f32.mrf.mxu3  ;;  %4033 = vmatpush.bf16.msra.mxu2 %v9686_v44 }
 0x3da   : > { %v11763_v21 = vadd.f32 %v2408_v3, %v2239_v10  ;;  %3125 = vperm.xlu0 %10428, %v2877_v48   ;;  %v2864_v3 = vld [vmem:[%s15167_s1 + $0x118] sm:$0xff] }
 0x3db   : > { %3060 = vperm.xlu2 %10430, %v2864_v3   ;;  %3115 = vperm.xlu1 %10429, %v2875_v43   ;;  %v10460_v43 = vld [vmem:[%s10619_s17 + $0x98] sm:$0xff]  }
 0x3dc   : > { %15381 = vst [vmem:[#allocation37_spill] sm:$0xff] %v11763_v21 }
 0x3dd   : > { %v1715_v2 = vpop.f32.mrf.mxu0  ;;  %v11767_v8 = vpop.f32.mrf.mxu1 }
 0x3de   : > { %15383 = vst [vmem:[#allocation30_spill] sm:$0xff] %v11767_v8  ;;  %v11772_v39 = vadd.f32 %v1715_v2, %v1539_v37  ;;  %v15385_v37 = vld [vmem:[#allocation48_spill] sm:$0xff] }
 0x3e0   : > { %15384 = vst [vmem:[#allocation41_spill] sm:$0xff] %v11772_v39  ;;  %v11789_v39 = vpop.f32.mrf.mxu2  ;;  %v11793_v13 = vpop.f32.mrf.mxu3 }
 0x3e1   : > { %15386 = vst [vmem:[#allocation42_spill] sm:$0xff] %v11789_v39 }
 0x3e2   : > { %3140 = vperm.xlu0 %10428, %v2880_v16   ;;  %15387 = vst [vmem:[#allocation34_spill] sm:$0xff] %v11793_v13  ;;  %v15392_v13 = vld [vmem:[#allocation50_spill] sm:$0xff] }
 0x3e5   : > { %v1718_v10 = vpop.f32.mrf.mxu0  ;;  %v1943_v35 = vpop.f32.mrf.mxu1 }
 0x3e6   : > { %v11787_v2 = vadd.f32 %v1718_v10, %v15385_v37  ;;  %v2006_v48 = vadd.f32 %v1943_v35, %v1771_v56  ;;  %v9685_v10 = vld [vmem:[%s15170_s4] sm:$0xff]  ;;  %v2867_v56 = vld [vmem:[%s15167_s1 + $0x130] sm:$0xff] }
 0x3e7   : > { %3075 = vperm.xlu2 %10430, %v2867_v56   ;;  %4034 = vmatpush.bf16.msra.mxu2 %v9685_v10  ;;  %v9695_v35 = vld [vmem:[%s15170_s4 + $0x50] sm:$0xff]  ;;  %v2870_v10 = vld [vmem:[%s15167_s1 + $0x148] sm:$0xff]  ;;  %v2881_v56 = vld [vmem:[%s15167_s1 + $0x1a0] sm:$0xff] }
 0x3e8   : > { %v2241_v3 = vadd.f32 %v2178_v20, %v2006_v48  ;;  %8702 = vmatmul.msk.bf16.gmra.mxu0 %vm567_vm2, %v10460_v43  ;;  %v2878_v20 = vld [vmem:[%s15167_s1 + $0x188] sm:$0xff]  ;;  %4381 = vmatpush.bf16.msra.mxu3 %v9695_v35  ;;  %v2183_v48 = vpop.f32.mrf.mxu2  ;;  %v2418_v43 = vpop.f32.mrf.mxu3  ;;  %v11832_v35 = vld [vmem:[%s15169_s3] ss:$0 sm:$0xff] }
 0x3e9   : > { %3130 = vperm.xlu1 %10429, %v2878_v20   ;;  %v9690_v20 = vld [vmem:[%s15170_s4 + $0x28] sm:$0xff] }
 0x3ea   : > { %v11801_v37 = vadd.f32 %v2413_v29, %v2241_v3  ;;  %v15390_v29 = vld [vmem:[#allocation49_spill] sm:$0xff]  ;;  %v9694_v3 = vld [vmem:[%s15170_s4 + $0x48] sm:$0xff]  ;;  %3792 = vmatpush.bf16.msra.mxu1 %v9690_v20  ;;  %v2886_v20 = vpop.permute.xlu0 %2885 }
 0x3ec   : > { %15388 = vst [vmem:[#allocation44_spill] sm:$0xff] %v11801_v37  ;;  %4382 = vmatpush.bf16.msra.mxu3 %v9694_v3 }
 0x3ed   : > { %v1720_v16 = vpop.f32.mrf.mxu0  ;;  %v11812_v44 = vpop.f32.mrf.mxu1 }
 0x3ee   : > { %15389 = vst [vmem:[#allocation39_spill] sm:$0xff] %v11812_v44  ;;  %v11815_v38 = vadd.f32 %v1720_v16, %v15390_v29  ;;  %v9693_v16 = vld [vmem:[%s15170_s4 + $0x40] sm:$0xff] }
 0x3ef   : > { %3090 = vperm.xlu2 %10430, %v2870_v10   ;;  %v9689_v10 = vld [vmem:[%s15170_s4 + $0x20] sm:$0xff] }
 0x3f0   : > { %15391 = vst [vmem:[#allocation46_spill] sm:$0xff] %v11815_v38  ;;  %4383 = vmatpush.bf16.msra.mxu3 %v9693_v16  ;;  %v10461_v44 = vld [vmem:[%s10619_s17 + $0xa0] sm:$0xff]   ;;  %3793 = vmatpush.bf16.msra.mxu1 %v9689_v10  ;;  %v11847_v52 = vpop.f32.mrf.mxu2  ;;  %v11852_v16 = vpop.f32.mrf.mxu3 }
 0x3f1   : > { %3145 = vperm.xlu1 %10429, %v2881_v56   ;;  %15394 = vst [vmem:[#allocation45_spill] sm:$0xff] %v11847_v52  ;;  %v2876_v52 = vld [vmem:[%s15167_s1 + $0x178] sm:$0xff] }
 0x3f2   : > { %15395 = vst [vmem:[#allocation47_spill] sm:$0xff] %v11852_v16 }
 0x3f5   : > { %v1948_v29 = vpop.f32.mrf.mxu1  ;;  %v2528_v3 = vpop.f32.mrf.mxu0 }
 0x3f6   : > { %v2008_v38 = vadd.f32 %v1948_v29, %v11753_v41  ;;  %v2663_v39 = vadd.f32 %v2528_v3, %v15392_v13  ;;  %v2873_v13 = vld [vmem:[%s15167_s1 + $0x160] sm:$0xff] }
 0x3f7   : > { %3105 = vperm.xlu2 %10430, %v2873_v13  }
 0x3f8   : > { %v2721_v56 = vadd.f32 %v11832_v35, %v2663_v39  ;;  %v2243_v37 = vadd.f32 %v2183_v48, %v2008_v38  ;;  %8703 = vmatmul.msk.bf16.gmra.mxu0 %vm567_vm2, %v10461_v44  ;;  %v15397_v44 = vld [vmem:[#allocation2_spill] sm:$0xff] }
 0x3fa   : > { %v2775_v21 = vmax.f32 %v2721_v56, 0.0  ;;  %v11845_v8 = vadd.f32 %v2418_v43, %v2243_v37 }
 0x3fc   : > { %15393 = vst [vmem:[#allocation43_spill] sm:$0xff] %v11845_v8  ;;  %v3153_v41 = vmul.f32 %v2886_v20, %v2775_v21  ;;  %v2891_v21 = vpop.permute.xlu0 %2890  ;;  %v2188_v20 = vpop.f32.mrf.mxu2 }
 0x3fd   : > { %v11854_v39 = vpop.f32.mrf.mxu1  ;;  %v2530_v38 = vpop.f32.mrf.mxu0 }
 0x3fe   : > { %15396 = vst [vmem:[#allocation48_spill] sm:$0xff] %v11854_v39  ;;  %v3207_v48 = vpack.c.bf16 %v3153_v41, %v3153_v41  ;;  %v2664_v29 = vadd.f32 %v2530_v38, %v15397_v44  ;;  %v2423_v39 = vpop.f32.mrf.mxu3 }
 0x3ff   : > { %3120 = vperm.xlu2 %10430, %v2876_v52  }
 0x400   : > { %v3273_v3 = vshrl.u32 %v3207_v48, 16  ;;  %v3276_v10 = vshll.u32 %v3207_v48, 16  ;;  %v2722_v37 = vadd.f32 %v11832_v35, %v2664_v29  ;;  %v15398_v29 = vld [vmem:[#allocation3_spill] sm:$0xff]  ;;  %v3907_v18 = vunpack.c.l.b16 %v3207_v48 }
 0x402   : > { %v3275_v43 = vrot.slane %v3273_v3, 4  ;;  %v3278_v56 = vrot.slane %v3276_v10, 5  ;;  %v2776_v13 = vmax.f32 %v2722_v37, 0.0  ;;  %v8794_v37 = vrot.slane %v3207_v48, 9 }
 0x404   : > { %v3154_v16 = vmul.f32 %v2891_v21, %v2776_v13  ;;  %v3279_v38 = vor.u32 %v3278_v56, %v3275_v43 }
 0x405   : > { %v1953_v8 = vpop.f32.mrf.mxu1  ;;  %v2533_v41 = vpop.f32.mrf.mxu0 }
 0x406   : > { %v2010_v44 = vadd.f32 %v1953_v8, %v11787_v2  ;;  %v2665_v3 = vadd.f32 %v2533_v41, %v15398_v29  ;;  %v3208_v10 = vpack.c.bf16 %v3154_v16, %v3154_v16  ;;  %v2896_v8 = vpop.permute.xlu1 %2895  ;;  %v3280_v41 = vrot.slane %v3279_v38, 4 }
 0x408   : > { %v2723_v52 = vadd.f32 %v11832_v35, %v2665_v3  ;;  %v2245_v21 = vadd.f32 %v2188_v20, %v2010_v44  ;;  %8704 = vmatmul.msk.bf16.gmra.mxu0 %vm567_vm2, %v10462_v33  ;;  %v3282_v2 = vshll.u32 %v3208_v10, 16  ;;  %v3286_v43 = vshrl.u32 %v3208_v10, 16  ;;  %v2879_v33 = vld [vmem:[%s15167_s1 + $0x190] sm:$0xff] }
 0x409   : > { %v3908_v16 = vunpack.c.l.b16 %v3208_v10  ;;  %v4137_v56 = vrot.slane %v3208_v10, 5  ;;  %3135 = vperm.xlu2 %10430, %v2879_v33  }
 0x40a   : > { %v2777_v29 = vmax.f32 %v2723_v52, 0.0  ;;  %v11877_v3 = vadd.f32 %v2423_v39, %v2245_v21  ;;  %v3284_v20 = vrot.slane %v3282_v2, 5  ;;  %v3288_v44 = vrot.slane %v3286_v43, 4 }
 0x40b   : > { %v3939_v49 = vpack.c.b16 %v3908_v16, %v3907_v18  ;;  %v4138_v38 = vsel %vm11865_vm7, %v8794_v37, %v4137_v56  ;;  %v4139_v11 = vrot.slane %v4137_v56, 4 }
 0x40c   : > { %15403 = vst [vmem:[#allocation49_spill] sm:$0xff] %v11877_v3  ;;  %v3155_v10 = vmul.f32 %v2896_v8, %v2777_v29  ;;  %v3285_v52 = vsel %vm11873_vm8, %v3280_v41, %v3284_v20  ;;  %v3289_v21 = vor.u32 %v3288_v44, %v3284_v20  ;;  %v4256_v29 = vunpack.c.l.b16 %v4138_v38 }
 0x40d   : > { %8778 = vmatmul.msk.bf16.vlgmr.msra.gmra.mxu2 %vm3737_vm9, %v3939_v49  ;;  %v2535_v39 = vpop.f32.mrf.mxu0  ;;  %v2882_v49 = vld [vmem:[%s15167_s1 + $0x1a8] sm:$0xff] }
 0x40e   : > { %v3209_v3 = vpack.c.bf16 %v3155_v10, %v3155_v10  ;;  %v2666_v24 = vadd.f32 %v2535_v39, %v15404_v63  ;;  %v3290_v43 = vrot.slane %v3289_v21, 4  ;;  %v2901_v41 = vpop.permute.xlu1 %2900 }
 0x410   : > { %v3292_v14 = vshll.u32 %v3209_v3, 16  ;;  %v4140_v2 = vrot.slane %v3209_v3, 5  ;;  %v2724_v18 = vadd.f32 %v11832_v35, %v2666_v24  ;;  %v3665_v24 = vunpack.c.l.b16 %v3285_v52 }
 0x411   : > { %3150 = vperm.xlu2 %10430, %v2882_v49  }
 0x412   : > { %v3294_v16 = vrot.slane %v3292_v14, 5  ;;  %v4141_v37 = vsel %vm11865_vm7, %v4139_v11, %v4140_v2  ;;  %v2778_v8 = vmax.f32 %v2724_v18, 0.0  ;;  %v10463_v2 = vld [vmem:[%s10619_s17 + $0xb0] sm:$0xff]   ;;  %v2906_v18 = vpop.permute.xlu2 %2905 }
 0x413   : > { %v4257_v33 = vunpack.c.l.b16 %v4141_v37 }
 0x414   : > { %v3295_v63 = vsel %vm11873_vm8, %v3290_v43, %v3294_v16  ;;  %v3156_v56 = vmul.f32 %v2901_v41, %v2778_v8  ;;  %v15405_v41 = vld [vmem:[#allocation16_spill] sm:$0xff] }
 0x415   : > { %v3666_v3 = vunpack.c.l.b16 %v3295_v63  ;;  %v4288_v14 = vpack.c.b16 %v4257_v33, %v4256_v29  ;;  %v2538_v20 = vpop.f32.mrf.mxu0 }
 0x416   : > { %v3210_v44 = vpack.c.bf16 %v3156_v56, %v3156_v56  ;;  %v2667_v11 = vadd.f32 %v2538_v20, %v11280_v55 }
 0x417   : > { %v3697_v10 = vpack.c.b16 %v3666_v3, %v3665_v24  ;;  %8834 = vmatmul.msk.bf16.vlgmr.msra.gmra.mxu3 %vm3737_vm9, %v4288_v14 }
 0x418   : > { %v3297_v39 = vshrl.u32 %v3210_v44, 16  ;;  %v3300_v21 = vshll.u32 %v3210_v44, 16  ;;  %v2725_v38 = vadd.f32 %v11832_v35, %v2667_v11  ;;  %8705 = vmatmul.msk.bf16.gmra.mxu0 %vm567_vm2, %v10463_v2  ;;  %v8795_v33 = vrot.slane %v3210_v44, 9 }
 0x419   : > { %8746 = vmatmul.msk.bf16.vlgmr.msra.gmra.mxu1 %vm3737_vm9, %v3697_v10  ;;  %v3909_v14 = vunpack.c.l.b16 %v3210_v44 }
 0x41a   : > { %v3299_v52 = vrot.slane %v3297_v39, 4  ;;  %v3302_v43 = vrot.slane %v3300_v21, 5  ;;  %v2779_v16 = vmax.f32 %v2725_v38, 0.0  ;;  %v2911_v38 = vpop.permute.xlu2 %2910 }
 0x41c   : > { %v3157_v37 = vmul.f32 %v2906_v18, %v2779_v16  ;;  %v3303_v49 = vor.u32 %v3302_v43, %v3299_v52 }
 0x41d   : > { %v2540_v8 = vpop.f32.mrf.mxu0 }
 0x41e   : > { %v3211_v55 = vpack.c.bf16 %v3157_v37, %v3157_v37  ;;  %v2668_v29 = vadd.f32 %v2540_v8, %v15405_v41  ;;  %v3304_v11 = vrot.slane %v3303_v49, 4 }
 0x420   : > { %v3306_v63 = vshll.u32 %v3211_v55, 16  ;;  %v3310_v56 = vshrl.u32 %v3211_v55, 16  ;;  %v4144_v24 = vrot.slane %v3211_v55, 5  ;;  %v2726_v3 = vadd.f32 %v11832_v35, %v2668_v29  ;;  %v10464_v29 = vld [vmem:[%s10619_s17 + $0xb8] sm:$0xff]  }
 0x421   : > { %v3910_v20 = vunpack.c.l.b16 %v3211_v55 }
 0x422   : > { %v3308_v2 = vrot.slane %v3306_v63, 5  ;;  %v3312_v10 = vrot.slane %v3310_v56, 4  ;;  %v2780_v39 = vmax.f32 %v2726_v3, 0.0  ;;  %v4145_v21 = vsel %vm11865_vm7, %v8795_v33, %v4144_v24 }
 0x423   : > { %v11906_v18 = vpack.c.b16 %v3910_v20, %v3909_v14  ;;  %v4146_v33 = vrot.slane %v4144_v24, 4  ;;  %v2916_v20 = vpop.permute.xlu0 %2915 }
 0x424   : > { %v3158_v52 = vmul.f32 %v2911_v38, %v2780_v39  ;;  %v3309_v43 = vsel %vm11873_vm8, %v3304_v11, %v3308_v2  ;;  %v3313_v8 = vor.u32 %v3312_v10, %v3308_v2  ;;  %v4258_v11 = vunpack.c.l.b16 %v4145_v21 }
 0x425   : > { %15406 = vst [vmem:[#allocation50_spill] sm:$0xff] %v11906_v18  ;;  %8779 = vmatmul.msk.bf16.gmra.mxu2 %vm3737_vm9, %v11906_v18  ;;  %v2543_v44 = vpop.f32.mrf.mxu0 }
 0x426   : > { %v3212_v16 = vpack.c.bf16 %v3158_v52, %v3158_v52  ;;  %v2669_v37 = vadd.f32 %v2543_v44, %v11294_v28  ;;  %v3314_v14 = vrot.slane %v3313_v8, 4  ;;  %v3667_v52 = vunpack.c.l.b16 %v3309_v43 }
 0x428   : > { %v3316_v49 = vshll.u32 %v3212_v16, 16  ;;  %v4147_v55 = vrot.slane %v3212_v16, 5  ;;  %v2727_v41 = vadd.f32 %v11832_v35, %v2669_v37  ;;  %8706 = vmatmul.msk.bf16.gmra.mxu0 %vm567_vm2, %v10464_v29 }
 0x42a   : > { %v3318_v63 = vrot.slane %v3316_v49, 5  ;;  %v2781_v56 = vmax.f32 %v2727_v41, 0.0  ;;  %v4148_v3 = vsel %vm11865_vm7, %v4146_v33, %v4147_v55  ;;  %v2921_v41 = vpop.permute.xlu1 %2920 }
 0x42b   : > { %v4259_v39 = vunpack.c.l.b16 %v4148_v3 }
 0x42c   : > { %v3159_v38 = vmul.f32 %v2916_v20, %v2781_v56  ;;  %v3319_v28 = vsel %vm11873_vm8, %v3314_v14, %v3318_v63 }
 0x42d   : > { %v2545_v2 = vpop.f32.mrf.mxu0  ;;  %v11920_v10 = vpack.c.b16 %v4259_v39, %v4258_v11  ;;  %v3668_v44 = vunpack.c.l.b16 %v3319_v28 }
 0x42e   : > { %v3213_v16 = vpack.c.bf16 %v3159_v38, %v3159_v38  ;;  %v2670_v24 = vadd.f32 %v2545_v2, %v11297_v5  ;;  %v10465_v38 = vld [vmem:[%s10619_s17 + $0xc0] sm:$0xff]  }
 0x42f   : > { %8835 = vmatmul.msk.bf16.gmra.mxu3 %vm3737_vm9, %v11920_v10  ;;  %v11925_v37 = vpack.c.b16 %v3668_v44, %v3667_v52 }
 0x430   : > { %v3321_v8 = vshrl.u32 %v3213_v16, 16  ;;  %v3324_v21 = vshll.u32 %v3213_v16, 16  ;;  %v2728_v49 = vadd.f32 %v11832_v35, %v2670_v24  ;;  %v8796_v3 = vrot.slane %v3213_v16, 9 }
 0x431   : > { %8747 = vmatmul.msk.bf16.gmra.mxu1 %vm3737_vm9, %v11925_v37  ;;  %v3911_v14 = vunpack.c.l.b16 %v3213_v16 }
 0x432   : > { %v2782_v55 = vmax.f32 %v2728_v49, 0.0  ;;  %v3323_v43 = vrot.slane %v3321_v8, 4  ;;  %v3326_v29 = vrot.slane %v3324_v21, 5 }
 0x434   : > { %v3160_v33 = vmul.f32 %v2921_v41, %v2782_v55  ;;  %v3327_v20 = vor.u32 %v3326_v29, %v3323_v43 }
 0x435   : > { %v2548_v63 = vpop.f32.mrf.mxu0 }
 0x436   : > { %v3214_v5 = vpack.c.bf16 %v3160_v33, %v3160_v33  ;;  %v2671_v56 = vadd.f32 %v2548_v63, %v11308_v30  ;;  %v2926_v30 = vpop.permute.xlu2 %2925  ;;  %v3328_v49 = vrot.slane %v3327_v20, 4 }
 0x438   : > { %v3334_v11 = vshrl.u32 %v3214_v5, 16  ;;  %v2729_v39 = vadd.f32 %v11832_v35, %v2671_v56  ;;  %8707 = vmatmul.msk.bf16.gmra.mxu0 %vm567_vm2, %v10465_v38  ;;  %v3912_v28 = vunpack.c.l.b16 %v3214_v5  ;;  %v4151_v2 = vrot.slane %v3214_v5, 5 }
 0x439   : > { %v3330_v52 = vshll.u32 %v3214_v5, 16 }
 0x43a   : > { %v3336_v44 = vrot.slane %v3334_v11, 4  ;;  %v2783_v24 = vmax.f32 %v2729_v39, 0.0  ;;  %v11934_v8 = vpack.c.b16 %v3912_v28, %v3911_v14  ;;  %v4152_v21 = vsel %vm11865_vm7, %v8796_v3, %v4151_v2  ;;  %v2931_v28 = vpop.permute.xlu0 %2930 }
 0x43b   : > { %v3332_v16 = vrot.slane %v3330_v52, 5  ;;  %v4153_v3 = vrot.slane %v4151_v2, 4  ;;  %v4260_v52 = vunpack.c.l.b16 %v4152_v21 }
 0x43c   : > { %v3161_v55 = vmul.f32 %v2926_v30, %v2783_v24  ;;  %8780 = vmatmul.msk.bf16.gmra.mxu2 %vm3737_vm9, %v11934_v8 }
 0x43d   : > { %v2550_v41 = vpop.f32.mrf.mxu0  ;;  %v3333_v43 = vsel %vm11873_vm8, %v3328_v49, %v3332_v16  ;;  %v3337_v63 = vor.u32 %v3336_v44, %v3332_v16 }
 0x43e   : > { %v3215_v29 = vpack.c.bf16 %v3161_v55, %v3161_v55  ;;  %v2672_v33 = vadd.f32 %v2550_v41, %v11311_v57  ;;  %v3669_v16 = vunpack.c.l.b16 %v3333_v43 }
 0x43f   : > { %v3338_v38 = vrot.slane %v3337_v63, 4 }
 0x440   : > { %v3340_v5 = vshll.u32 %v3215_v29, 16  ;;  %v4154_v56 = vrot.slane %v3215_v29, 5  ;;  %v2730_v14 = vadd.f32 %v11832_v35, %v2672_v33 }
 0x442   : > { %v3342_v11 = vrot.slane %v3340_v5, 5  ;;  %v2784_v20 = vmax.f32 %v2730_v14, 0.0  ;;  %v4155_v39 = vsel %vm11865_vm7, %v4153_v3, %v4154_v56  ;;  %v10466_v5 = vld [vmem:[%s10619_s17 + $0xc8] sm:$0xff]   ;;  %v2936_v3 = vpop.permute.xlu1 %2935 }
 0x443   : > { %v4261_v24 = vunpack.c.l.b16 %v4155_v39 }
 0x444   : > { %v3162_v30 = vmul.f32 %v2931_v28, %v2784_v20  ;;  %v3343_v57 = vsel %vm11873_vm8, %v3338_v38, %v3342_v11 }
 0x445   : > { %v2553_v44 = vpop.f32.mrf.mxu0  ;;  %v11948_v49 = vpack.c.b16 %v4261_v24, %v4260_v52  ;;  %v3670_v55 = vunpack.c.l.b16 %v3343_v57 }
 0x446   : > { %v3216_v2 = vpack.c.bf16 %v3162_v30, %v3162_v30  ;;  %v2673_v41 = vadd.f32 %v2553_v44, %v11322_v60 }
 0x447   : > { %15407 = vst [vmem:[#allocation2_spill] sm:$0xff] %v11948_v49  ;;  %8836 = vmatmul.msk.bf16.gmra.mxu3 %vm3737_vm9, %v11948_v49  ;;  %v11953_v29 = vpack.c.b16 %v3670_v55, %v3669_v16 }
 0x448   : > { %v3345_v33 = vshrl.u32 %v3216_v2, 16  ;;  %v3348_v21 = vshll.u32 %v3216_v2, 16  ;;  %v2731_v63 = vadd.f32 %v11832_v35, %v2673_v41  ;;  %8708 = vmatmul.msk.bf16.gmra.mxu0 %vm567_vm2, %v10466_v5  ;;  %v8797_v28 = vrot.slane %v3216_v2, 9  ;;  %v2941_v5 = vpop.permute.xlu2 %2940 }
 0x449   : > { %15408 = vst [vmem:[#allocation3_spill] sm:$0xff] %v11953_v29  ;;  %8748 = vmatmul.msk.bf16.gmra.mxu1 %vm3737_vm9, %v11953_v29  ;;  %v3913_v44 = vunpack.c.l.b16 %v3216_v2 }
 0x44a   : > { %v3347_v43 = vrot.slane %v3345_v33, 4  ;;  %v3350_v56 = vrot.slane %v3348_v21, 5  ;;  %v2785_v14 = vmax.f32 %v2731_v63, 0.0 }
 0x44c   : > { %v3163_v60 = vmul.f32 %v2936_v3, %v2785_v14  ;;  %v3351_v20 = vor.u32 %v3350_v56, %v3347_v43 }
 0x44d   : > { %v2555_v11 = vpop.f32.mrf.mxu0 }
 0x44e   : > { %v3217_v39 = vpack.c.bf16 %v3163_v60, %v3163_v60  ;;  %v2674_v38 = vadd.f32 %v2555_v11, %v11325_v15  ;;  %v3352_v55 = vrot.slane %v3351_v20, 4 }
 0x450   : > { %v3354_v52 = vshll.u32 %v3217_v39, 16  ;;  %v3358_v24 = vshrl.u32 %v3217_v39, 16  ;;  %v4158_v30 = vrot.slane %v3217_v39, 5  ;;  %v2732_v57 = vadd.f32 %v11832_v35, %v2674_v38  ;;  %v10467_v38 = vld [vmem:[%s10619_s17 + $0xd0] sm:$0xff]  }
 0x451   : > { %v3914_v16 = vunpack.c.l.b16 %v3217_v39 }
 0x452   : > { %v3356_v41 = vrot.slane %v3354_v52, 5  ;;  %v3360_v33 = vrot.slane %v3358_v24, 4  ;;  %v2786_v21 = vmax.f32 %v2732_v57, 0.0  ;;  %v4159_v63 = vsel %vm11865_vm7, %v8797_v28, %v4158_v30 }
 0x453   : > { %v11964_v43 = vpack.c.b16 %v3914_v16, %v3913_v44  ;;  %v4160_v28 = vrot.slane %v4158_v30, 4  ;;  %v2946_v16 = vpop.permute.xlu0 %2945  ;;  %v15410_v30 = vld [vmem:[#allocation4_spill] sm:$0xff] }
 0x454   : > { %v3164_v15 = vmul.f32 %v2941_v5, %v2786_v21  ;;  %v3357_v56 = vsel %vm11873_vm8, %v3352_v55, %v3356_v41  ;;  %v3361_v60 = vor.u32 %v3360_v33, %v3356_v41  ;;  %v4262_v55 = vunpack.c.l.b16 %v4159_v63 }
 0x455   : > { %8781 = vmatmul.msk.bf16.gmra.mxu2 %vm3737_vm9, %v11964_v43  ;;  %v2558_v2 = vpop.f32.mrf.mxu0 }
 0x456   : > { %v3218_v14 = vpack.c.bf16 %v3164_v15, %v3164_v15  ;;  %v2675_v3 = vadd.f32 %v2558_v2, %v11336_v46  ;;  %v3362_v44 = vrot.slane %v3361_v60, 4  ;;  %v3671_v15 = vunpack.c.l.b16 %v3357_v56 }
 0x458   : > { %v3364_v11 = vshll.u32 %v3218_v14, 16  ;;  %v4161_v20 = vrot.slane %v3218_v14, 5  ;;  %v2733_v39 = vadd.f32 %v11832_v35, %v2675_v3  ;;  %8709 = vmatmul.msk.bf16.gmra.mxu0 %vm567_vm2, %v10467_v38  ;;  %v2951_v38 = vpop.permute.xlu1 %2950 }
 0x45a   : > { %v3366_v52 = vrot.slane %v3364_v11, 5  ;;  %v2787_v24 = vmax.f32 %v2733_v39, 0.0  ;;  %v4162_v57 = vsel %vm11865_vm7, %v4160_v28, %v4161_v20 }
 0x45b   : > { %v4263_v21 = vunpack.c.l.b16 %v4162_v57 }
 0x45c   : > { %v3165_v5 = vmul.f32 %v2946_v16, %v2787_v24  ;;  %v3367_v46 = vsel %vm11873_vm8, %v3362_v44, %v3366_v52  ;;  %v15412_v44 = vld [vmem:[#allocation5_spill] sm:$0xff] }
 0x45d   : > { %v2560_v41 = vpop.f32.mrf.mxu0  ;;  %v11978_v33 = vpack.c.b16 %v4263_v21, %v4262_v55  ;;  %v3672_v2 = vunpack.c.l.b16 %v3367_v46 }
 0x45e   : > { %v3219_v14 = vpack.c.bf16 %v3165_v5, %v3165_v5  ;;  %v2676_v3 = vadd.f32 %v2560_v41, %v15410_v30 }
 0x45f   : > { %15409 = vst [vmem:[#allocation11_spill] sm:$0xff] %v11978_v33  ;;  %8837 = vmatmul.msk.bf16.gmra.mxu3 %vm3737_vm9, %v11978_v33  ;;  %v11983_v11 = vpack.c.b16 %v3672_v2, %v3671_v15  ;;  %v10468_v15 = vld [vmem:[%s10619_s17 + $0xd8] sm:$0xff]  }
 0x460   : > { %v3369_v60 = vshrl.u32 %v3219_v14, 16  ;;  %v3372_v63 = vshll.u32 %v3219_v14, 16  ;;  %v2734_v20 = vadd.f32 %v11832_v35, %v2676_v3  ;;  %v8798_v55 = vrot.slane %v3219_v14, 9 }
 0x461   : > { %15411 = vst [vmem:[#allocation16_spill] sm:$0xff] %v11983_v11  ;;  %8749 = vmatmul.msk.bf16.gmra.mxu1 %vm3737_vm9, %v11983_v11  ;;  %v3915_v21 = vunpack.c.l.b16 %v3219_v14 }
 0x462   : > { %v2788_v39 = vmax.f32 %v2734_v20, 0.0  ;;  %v3371_v56 = vrot.slane %v3369_v60, 4  ;;  %v3374_v28 = vrot.slane %v3372_v63, 5 }
 0x464   : > { %v3166_v52 = vmul.f32 %v2951_v38, %v2788_v39  ;;  %v3375_v5 = vor.u32 %v3374_v28, %v3371_v56  ;;  %v2956_v38 = vpop.permute.xlu2 %2955 }
 0x465   : > { %v2563_v24 = vpop.f32.mrf.mxu0 }
 0x466   : > { %v3220_v57 = vpack.c.bf16 %v3166_v52, %v3166_v52  ;;  %v2677_v16 = vadd.f32 %v2563_v24, %v15412_v44  ;;  %v3376_v52 = vrot.slane %v3375_v5, 4 }
 0x468   : > { %v3382_v46 = vshrl.u32 %v3220_v57, 16  ;;  %v2735_v41 = vadd.f32 %v11832_v35, %v2677_v16  ;;  %8710 = vmatmul.msk.bf16.gmra.mxu0 %vm567_vm2, %v10468_v15  ;;  %v3916_v2 = vunpack.c.l.b16 %v3220_v57  ;;  %v4165_v30 = vrot.slane %v3220_v57, 5 }
 0x469   : > { %v3378_v3 = vshll.u32 %v3220_v57, 16  ;;  %v15413_v57 = vld [vmem:[#allocation14_spill] sm:$0xff] }
 0x46a   : > { %v3384_v20 = vrot.slane %v3382_v46, 4  ;;  %v2789_v60 = vmax.f32 %v2735_v41, 0.0  ;;  %v11992_v63 = vpack.c.b16 %v3916_v2, %v3915_v21  ;;  %v4166_v39 = vsel %vm11865_vm7, %v8798_v55, %v4165_v30 }
 0x46b   : > { %v3380_v14 = vrot.slane %v3378_v3, 5  ;;  %v4167_v55 = vrot.slane %v4165_v30, 4  ;;  %v4264_v33 = vunpack.c.l.b16 %v4166_v39 }
 0x46c   : > { %v3167_v56 = vmul.f32 %v2956_v38, %v2789_v60  ;;  %8782 = vmatmul.msk.bf16.gmra.mxu2 %vm3737_vm9, %v11992_v63  ;;  %v2961_v38 = vpop.permute.xlu0 %2960 }
 0x46d   : > { %v2565_v28 = vpop.f32.mrf.mxu0  ;;  %v3381_v24 = vsel %vm11873_vm8, %v3376_v52, %v3380_v14  ;;  %v3385_v46 = vor.u32 %v3384_v20, %v3380_v14 }
 0x46e   : > { %v3221_v44 = vpack.c.bf16 %v3167_v56, %v3167_v56  ;;  %v2678_v16 = vadd.f32 %v2565_v28, %v15413_v57  ;;  %v3673_v28 = vunpack.c.l.b16 %v3381_v24  ;;  %v15415_v57 = vld [vmem:[#allocation19_spill] sm:$0xff] }
 0x46f   : > { %v3386_v60 = vrot.slane %v3385_v46, 4 }
 0x470   : > { %v3388_v21 = vshll.u32 %v3221_v44, 16  ;;  %v4168_v41 = vrot.slane %v3221_v44, 5  ;;  %v2736_v15 = vadd.f32 %v11832_v35, %v2678_v16 }
 0x472   : > { %v3390_v2 = vrot.slane %v3388_v21, 5  ;;  %v2790_v5 = vmax.f32 %v2736_v15, 0.0  ;;  %v4169_v3 = vsel %vm11865_vm7, %v4167_v55, %v4168_v41  ;;  %v10469_v15 = vld [vmem:[%s10619_s17 + $0xe0] sm:$0xff]   ;;  %v2966_v55 = vpop.permute.xlu1 %2965 }
 0x473   : > { %v4265_v11 = vunpack.c.l.b16 %v4169_v3 }
 0x474   : > { %v3168_v52 = vmul.f32 %v2961_v38, %v2790_v5  ;;  %v3391_v56 = vsel %vm11873_vm8, %v3386_v60, %v3390_v2  ;;  %v15417_v38 = vld [vmem:[#allocation6_spill] sm:$0xff] }
 0x475   : > { %v2568_v20 = vpop.f32.mrf.mxu0  ;;  %v12006_v14 = vpack.c.b16 %v4265_v11, %v4264_v33  ;;  %v3674_v44 = vunpack.c.l.b16 %v3391_v56 }
 0x476   : > { %v3222_v30 = vpack.c.bf16 %v3168_v52, %v3168_v52  ;;  %v2679_v16 = vadd.f32 %v2568_v20, %v15415_v57 }
 0x477   : > { %15414 = vst [vmem:[#allocation4_spill] sm:$0xff] %v12006_v14  ;;  %8838 = vmatmul.msk.bf16.gmra.mxu3 %vm3737_vm9, %v12006_v14  ;;  %v12011_v46 = vpack.c.b16 %v3674_v44, %v3673_v28 }
 0x478   : > { %v3393_v21 = vshrl.u32 %v3222_v30, 16  ;;  %v3396_v39 = vshll.u32 %v3222_v30, 16  ;;  %v2737_v41 = vadd.f32 %v11832_v35, %v2679_v16  ;;  %8711 = vmatmul.msk.bf16.gmra.mxu0 %vm567_vm2, %v10469_v15  ;;  %v8799_v56 = vrot.slane %v3222_v30, 9 }
 0x479   : > { %15416 = vst [vmem:[#allocation5_spill] sm:$0xff] %v12011_v46  ;;  %8750 = vmatmul.msk.bf16.gmra.mxu1 %vm3737_vm9, %v12011_v46  ;;  %v3917_v16 = vunpack.c.l.b16 %v3222_v30 }
 0x47a   : > { %v3395_v33 = vrot.slane %v3393_v21, 4  ;;  %v3398_v11 = vrot.slane %v3396_v39, 5  ;;  %v2791_v24 = vmax.f32 %v2737_v41, 0.0 }
 0x47c   : > { %v3169_v2 = vmul.f32 %v2966_v55, %v2791_v24  ;;  %v3399_v3 = vor.u32 %v3398_v11, %v3395_v33  ;;  %v2971_v33 = vpop.permute.xlu2 %2970 }
 0x47d   : > { %v2570_v5 = vpop.f32.mrf.mxu0 }
 0x47e   : > { %v3223_v60 = vpack.c.bf16 %v3169_v2, %v3169_v2  ;;  %v2680_v52 = vadd.f32 %v2570_v5, %v15417_v38  ;;  %v3400_v14 = vrot.slane %v3399_v3, 4  ;;  %v15418_v5 = vld [vmem:[#allocation7_spill] sm:$0xff] }
 0x480   : > { %v3402_v20 = vshll.u32 %v3223_v60, 16  ;;  %v3406_v28 = vshrl.u32 %v3223_v60, 16  ;;  %v4172_v44 = vrot.slane %v3223_v60, 5  ;;  %v2738_v57 = vadd.f32 %v11832_v35, %v2680_v52 }
 0x481   : > { %v3918_v15 = vunpack.c.l.b16 %v3223_v60 }
 0x482   : > { %v3404_v46 = vrot.slane %v3402_v20, 5  ;;  %v3408_v21 = vrot.slane %v3406_v28, 4  ;;  %v2792_v39 = vmax.f32 %v2738_v57, 0.0  ;;  %v4173_v41 = vsel %vm11865_vm7, %v8799_v56, %v4172_v44  ;;  %v10470_v56 = vld [vmem:[%s10619_s17 + $0xe8] sm:$0xff]  }
 0x483   : > { %v12022_v11 = vpack.c.b16 %v3918_v15, %v3917_v16  ;;  %v4174_v28 = vrot.slane %v4172_v44, 4  ;;  %v12040_v44 = vpop.f32.mrf.mxu2 }
 0x484   : > { %v3170_v24 = vmul.f32 %v2971_v33, %v2792_v39  ;;  %v3405_v55 = vsel %vm11873_vm8, %v3400_v14, %v3404_v46  ;;  %v3409_v60 = vor.u32 %v3408_v21, %v3404_v46  ;;  %v2976_v39 = vpop.permute.xlu0 %2975  ;;  %v4266_v33 = vunpack.c.l.b16 %v4173_v41  ;;  %15421 = vst [vmem:[#allocation6_spill] sm:$0xff] %v12040_v44 }
 0x485   : > { %8783 = vmatmul.msk.bf16.gmra.mxu2 %vm3737_vm9, %v12022_v11  ;;  %v2573_v30 = vpop.f32.mrf.mxu0 }
 0x486   : > { %v3224_v2 = vpack.c.bf16 %v3170_v24, %v3170_v24  ;;  %v2681_v3 = vadd.f32 %v2573_v30, %v15418_v5  ;;  %v3410_v15 = vrot.slane %v3409_v60, 4 }
 0x488   : > { %v3412_v38 = vshll.u32 %v3224_v2, 16  ;;  %v4175_v52 = vrot.slane %v3224_v2, 5  ;;  %v2739_v20 = vadd.f32 %v11832_v35, %v2681_v3  ;;  %8712 = vmatmul.msk.bf16.gmra.mxu0 %vm567_vm2, %v10470_v56  ;;  %v3675_v2 = vunpack.c.l.b16 %v3405_v55  ;;  %v12038_v3 = vpop.f32.mrf.mxu1  ;;  %v12050_v55 = vpop.f32.mrf.mxu3 }
 0x489   : > { %15420 = vst [vmem:[#allocation19_spill] sm:$0xff] %v12038_v3 }
 0x48a   : > { %v3414_v57 = vrot.slane %v3412_v38, 5  ;;  %v2793_v16 = vmax.f32 %v2739_v20, 0.0  ;;  %v4176_v14 = vsel %vm11865_vm7, %v4174_v28, %v4175_v52  ;;  %v15422_v20 = vld [vmem:[#allocation22_spill] sm:$0xff] }
 0x48b   : > { %v4267_v24 = vunpack.c.l.b16 %v4176_v14  ;;  %15424 = vst [vmem:[#allocation22_spill] sm:$0xff] %v12050_v55  ;;  %v10471_v55 = vld [vmem:[%s10619_s17 + $0xf0] sm:$0xff]  }
 0x48c   : > { %v3171_v49 = vmul.f32 %v2976_v39, %v2793_v16  ;;  %v3415_v46 = vsel %vm11873_vm8, %v3410_v15, %v3414_v57  ;;  %v2981_v16 = vpop.permute.xlu1 %2980 }
 0x48d   : > { %v2575_v21 = vpop.f32.mrf.mxu0  ;;  %v12036_v30 = vpack.c.b16 %v4267_v24, %v4266_v33  ;;  %v3676_v5 = vunpack.c.l.b16 %v3415_v46  ;;  %v15425_v46 = vld [vmem:[#allocation8_spill] sm:$0xff] }
 0x48e   : > { %v3225_v38 = vpack.c.bf16 %v3171_v49, %v3171_v49  ;;  %v2682_v52 = vadd.f32 %v2575_v21, %v15422_v20 }
 0x48f   : > { %15419 = vst [vmem:[#allocation14_spill] sm:$0xff] %v12036_v30  ;;  %8839 = vmatmul.msk.bf16.gmra.mxu3 %vm3737_vm9, %v12036_v30  ;;  %v12045_v41 = vpack.c.b16 %v3676_v5, %v3675_v2 }
 0x490   : > { %v3417_v60 = vshrl.u32 %v3225_v38, 16  ;;  %v3420_v56 = vshll.u32 %v3225_v38, 16  ;;  %v2740_v28 = vadd.f32 %v11832_v35, %v2682_v52  ;;  %v4036_v24 = vpop.f32.mrf.mxu2  ;;  %v8800_v5 = vrot.slane %v3225_v38, 9 }
 0x491   : > { %15423 = vst [vmem:[#allocation7_spill] sm:$0xff] %v12045_v41  ;;  %8751 = vmatmul.msk.bf16.gmra.mxu1 %vm3737_vm9, %v12045_v41  ;;  %v3919_v52 = vunpack.c.l.b16 %v3225_v38 }
 0x492   : > { %v2794_v57 = vmax.f32 %v2740_v28, 0.0  ;;  %v3419_v49 = vrot.slane %v3417_v60, 4  ;;  %v3422_v14 = vrot.slane %v3420_v56, 5 }
 0x494   : > { %v3172_v15 = vmul.f32 %v2981_v16, %v2794_v57  ;;  %v3423_v30 = vor.u32 %v3422_v14, %v3419_v49 }
 0x495   : > { %v2578_v39 = vpop.f32.mrf.mxu0 }
 0x496   : > { %v3226_v33 = vpack.c.bf16 %v3172_v15, %v3172_v15  ;;  %v2683_v21 = vadd.f32 %v2578_v39, %v15425_v46  ;;  %v3795_v2 = vpop.f32.mrf.mxu1  ;;  %v3424_v49 = vrot.slane %v3423_v30, 4 }
 0x497   : > { %v4037_v20 = vadd.f32 %v4036_v24, %v3795_v2  ;;  %v2986_v24 = vpop.permute.xlu2 %2985 }
 0x498   : > { %v3430_v44 = vshrl.u32 %v3226_v33, 16  ;;  %v2741_v41 = vadd.f32 %v11832_v35, %v2683_v21  ;;  %8713 = vmatmul.msk.bf16.gmra.mxu0 %vm567_vm2, %v10471_v55  ;;  %v3920_v28 = vunpack.c.l.b16 %v3226_v33  ;;  %v4179_v60 = vrot.slane %v3226_v33, 5 }
 0x499   : > { %v3426_v56 = vshll.u32 %v3226_v33, 16  ;;  %v15427_v33 = vld [vmem:[#allocation9_spill] sm:$0xff] }
 0x49a   : > { %v3432_v57 = vrot.slane %v3430_v44, 4  ;;  %v2795_v16 = vmax.f32 %v2741_v41, 0.0  ;;  %v4385_v15 = vpop.f32.mrf.mxu3  ;;  %v12056_v29 = vpack.c.b16 %v3920_v28, %v3919_v52  ;;  %v4180_v39 = vsel %vm11865_vm7, %v8800_v5, %v4179_v60 }
 0x49b   : > { %v12060_v38 = vadd.f32 %v4385_v15, %v4037_v20  ;;  %v3428_v14 = vrot.slane %v3426_v56, 5  ;;  %v4181_v20 = vrot.slane %v4179_v60, 4  ;;  %v12074_v60 = vpop.f32.mrf.mxu2 }
 0x49c   : > { %v3173_v46 = vmul.f32 %v2986_v24, %v2795_v16  ;;  %8784 = vmatmul.msk.bf16.gmra.mxu2 %vm3737_vm9, %v12056_v29  ;;  %v2991_v24 = vpop.permute.xlu0 %2990  ;;  %15429 = vst [vmem:[#allocation51_spill] sm:$0xff] %v12074_v60 }
 0x49d   : > { %15426 = vst [vmem:[#allocation8_spill] sm:$0xff] %v12060_v38  ;;  %v2580_v55 = vpop.f32.mrf.mxu0  ;;  %v3429_v44 = vsel %vm11873_vm8, %v3424_v49, %v3428_v14  ;;  %v3433_v2 = vor.u32 %v3432_v57, %v3428_v14  ;;  %v4268_v38 = vunpack.c.l.b16 %v4180_v39 }
 0x49e   : > { %v3227_v41 = vpack.c.bf16 %v3173_v46, %v3173_v46  ;;  %v2684_v21 = vadd.f32 %v2580_v55, %v15427_v33  ;;  %v3677_v55 = vunpack.c.l.b16 %v3429_v44 }
 0x49f   : > { %v3434_v16 = vrot.slane %v3433_v2, 4 }
 0x4a0   : > { %v3436_v52 = vshll.u32 %v3227_v41, 16  ;;  %v4182_v28 = vrot.slane %v3227_v41, 5  ;;  %v2742_v5 = vadd.f32 %v11832_v35, %v2684_v21  ;;  %v12076_v21 = vpop.f32.mrf.mxu1 }
 0x4a1   : > { %15430 = vst [vmem:[#allocation52_spill] sm:$0xff] %v12076_v21 }
 0x4a2   : > { %v3438_v15 = vrot.slane %v3436_v52, 5  ;;  %v2796_v30 = vmax.f32 %v2742_v5, 0.0  ;;  %v4183_v56 = vsel %vm11865_vm7, %v4181_v20, %v4182_v28  ;;  %v15431_v52 = vld [vmem:[#allocation10_spill] sm:$0xff] }
 0x4a3   : > { %v4269_v3 = vunpack.c.l.b16 %v4183_v56  ;;  %v2996_v56 = vpop.permute.xlu1 %2995 }
 0x4a4   : > { %v3174_v49 = vmul.f32 %v2991_v24, %v2796_v30  ;;  %v3439_v46 = vsel %vm11873_vm8, %v3434_v16, %v3438_v15  ;;  %v12088_v15 = vpop.f32.mrf.mxu3 }
 0x4a5   : > { %v2583_v57 = vpop.f32.mrf.mxu0  ;;  %v12072_v14 = vpack.c.b16 %v4269_v3, %v4268_v38  ;;  %v3678_v41 = vunpack.c.l.b16 %v3439_v46  ;;  %v10472_v3 = vld [vmem:[%s10619_s17 + $0xf8] sm:$0xff]   ;;  %15433 = vst [vmem:[#allocation53_spill] sm:$0xff] %v12088_v15 }
 0x4a6   : > { %v3228_v33 = vpack.c.bf16 %v3174_v49, %v3174_v49  ;;  %v2685_v2 = vadd.f32 %v2583_v57, %v15431_v52 }
 0x4a7   : > { %15428 = vst [vmem:[#allocation9_spill] sm:$0xff] %v12072_v14  ;;  %8840 = vmatmul.msk.bf16.gmra.mxu3 %vm3737_vm9, %v12072_v14  ;;  %v12081_v39 = vpack.c.b16 %v3678_v41, %v3677_v55  ;;  %v15434_v55 = vld [vmem:[#allocation12_spill] sm:$0xff] }
 0x4a8   : > { %v3441_v28 = vshrl.u32 %v3228_v33, 16  ;;  %v3444_v5 = vshll.u32 %v3228_v33, 16  ;;  %v2743_v20 = vadd.f32 %v11832_v35, %v2685_v2  ;;  %8714 = vmatmul.msk.bf16.gmra.mxu0 %vm567_vm2, %v10472_v3  ;;  %v4041_v57 = vpop.f32.mrf.mxu2  ;;  %v8801_v60 = vrot.slane %v3228_v33, 9 }
 0x4a9   : > { %15432 = vst [vmem:[#allocation10_spill] sm:$0xff] %v12081_v39  ;;  %8752 = vmatmul.msk.bf16.gmra.mxu1 %vm3737_vm9, %v12081_v39 }
 0x4aa   : > { %v3443_v38 = vrot.slane %v3441_v28, 4  ;;  %v3446_v44 = vrot.slane %v3444_v5, 5  ;;  %v2797_v30 = vmax.f32 %v2743_v20, 0.0  ;;  %v3921_v5 = vunpack.c.l.b16 %v3228_v33 }
 0x4ac   : > { %v3175_v16 = vmul.f32 %v2996_v56, %v2797_v30  ;;  %v3447_v49 = vor.u32 %v3446_v44, %v3443_v38  ;;  %v3001_v56 = vpop.permute.xlu2 %3000 }
 0x4ad   : > { %v2585_v24 = vpop.f32.mrf.mxu0 }
 0x4ae   : > { %v3229_v46 = vpack.c.bf16 %v3175_v16, %v3175_v16  ;;  %v2686_v41 = vadd.f32 %v2585_v24, %v15434_v55  ;;  %v3800_v52 = vpop.f32.mrf.mxu1  ;;  %v3448_v15 = vrot.slane %v3447_v49, 4  ;;  %v15436_v49 = vld [vmem:[#allocation13_spill] sm:$0xff] }
 0x4af   : > { %v4042_v2 = vadd.f32 %v4041_v57, %v3800_v52 }
 0x4b0   : > { %v3450_v3 = vshll.u32 %v3229_v46, 16  ;;  %v3454_v21 = vshrl.u32 %v3229_v46, 16  ;;  %v4186_v14 = vrot.slane %v3229_v46, 5  ;;  %v2744_v28 = vadd.f32 %v11832_v35, %v2686_v41 }
 0x4b1   : > { %v3922_v39 = vunpack.c.l.b16 %v3229_v46 }
 0x4b2   : > { %v3452_v20 = vrot.slane %v3450_v3, 5  ;;  %v3456_v18 = vrot.slane %v3454_v21, 4  ;;  %v2798_v30 = vmax.f32 %v2744_v28, 0.0  ;;  %v4390_v38 = vpop.f32.mrf.mxu3  ;;  %v4187_v44 = vsel %vm11865_vm7, %v8801_v60, %v4186_v14 }
 0x4b3   : > { %v12094_v16 = vadd.f32 %v4390_v38, %v4042_v2  ;;  %v12096_v24 = vpack.c.b16 %v3922_v39, %v3921_v5  ;;  %v10473_v2 = vld [vmem:[%s10619_s17 + $0x100] sm:$0xff]   ;;  %v4188_v39 = vrot.slane %v4186_v14, 4  ;;  %v3006_v38 = vpop.permute.xlu0 %3005 }
 0x4b4   : > { %v3176_v57 = vmul.f32 %v3001_v56, %v2798_v30  ;;  %v3453_v55 = vsel %vm11873_vm8, %v3448_v15, %v3452_v20  ;;  %v3457_v41 = vor.u32 %v3456_v18, %v3452_v20  ;;  %v4270_v56 = vunpack.c.l.b16 %v4187_v44 }
 0x4b5   : > { %15435 = vst [vmem:[#allocation12_spill] sm:$0xff] %v12094_v16  ;;  %8785 = vmatmul.msk.bf16.gmra.mxu2 %vm3737_vm9, %v12096_v24  ;;  %v2588_v33 = vpop.f32.mrf.mxu0 }
 0x4b6   : > { %v3230_v21 = vpack.c.bf16 %v3176_v57, %v3176_v57  ;;  %v2687_v46 = vadd.f32 %v2588_v33, %v15436_v49  ;;  %v3458_v30 = vrot.slane %v3457_v41, 4  ;;  %v12112_v49 = vpop.f32.mrf.mxu2 }
 0x4b7   : > { %15438 = vst [vmem:[#allocation54_spill] sm:$0xff] %v12112_v49 }
 0x4b8   : > { %v3460_v52 = vshll.u32 %v3230_v21, 16  ;;  %v4189_v3 = vrot.slane %v3230_v21, 5  ;;  %v2745_v60 = vadd.f32 %v11832_v35, %v2687_v46  ;;  %8715 = vmatmul.msk.bf16.gmra.mxu0 %vm567_vm2, %v10473_v2  ;;  %v3679_v35 = vunpack.c.l.b16 %v3453_v55  ;;  %v12114_v46 = vpop.f32.mrf.mxu1  ;;  %v12124_v2 = vld [vmem:[%s15169_s3] ss:$0 sm:$0xff] }
 0x4b9   : > { %15439 = vst [vmem:[#allocation55_spill] sm:$0xff] %v12114_v46 }
 0x4ba   : > { %v3462_v28 = vrot.slane %v3460_v52, 5  ;;  %v2799_v5 = vmax.f32 %v2745_v60, 0.0  ;;  %v4190_v15 = vsel %vm11865_vm7, %v4188_v39, %v4189_v3  ;;  %v15440_v52 = vld [vmem:[#allocation15_spill] sm:$0xff] }
 0x4bb   : > { %v4271_v57 = vunpack.c.l.b16 %v4190_v15 }
 0x4bc   : > { %v3177_v16 = vmul.f32 %v3006_v38, %v2799_v5  ;;  %v3463_v18 = vsel %vm11873_vm8, %v3458_v30, %v3462_v28  ;;  %v3011_v28 = vpop.permute.xlu1 %3010 }
 0x4bd   : > { %v2590_v20 = vpop.f32.mrf.mxu0  ;;  %v12110_v33 = vpack.c.b16 %v4271_v57, %v4270_v56  ;;  %v3680_v21 = vunpack.c.l.b16 %v3463_v18  ;;  %v15443_v18 = vld [vmem:[#allocation17_spill] sm:$0xff] }
 0x4be   : > { %v3231_v14 = vpack.c.bf16 %v3177_v16, %v3177_v16  ;;  %v2688_v3 = vadd.f32 %v2590_v20, %v15440_v52  ;;  %v12129_v16 = vpop.f32.mrf.mxu3 }
 0x4bf   : > { %15437 = vst [vmem:[#allocation13_spill] sm:$0xff] %v12110_v33  ;;  %8841 = vmatmul.msk.bf16.gmra.mxu3 %vm3737_vm9, %v12110_v33  ;;  %v12119_v44 = vpack.c.b16 %v3680_v21, %v3679_v35  ;;  %v4046_v57 = vpop.f32.mrf.mxu2 }
 0x4c0   : > { %v3465_v41 = vshrl.u32 %v3231_v14, 16  ;;  %v3468_v60 = vshll.u32 %v3231_v14, 16  ;;  %v2746_v55 = vadd.f32 %v12124_v2, %v2688_v3  ;;  %15442 = vst [vmem:[#allocation56_spill] sm:$0xff] %v12129_v16  ;;  %v8802_v21 = vrot.slane %v3231_v14, 9  ;;  %v10475_v16 = vld [vmem:[%s10619_s17 + $0x108] sm:$0xff]  }
 0x4c1   : > { %15441 = vst [vmem:[#allocation15_spill] sm:$0xff] %v12119_v44  ;;  %8753 = vmatmul.msk.bf16.gmra.mxu1 %vm3737_vm9, %v12119_v44  ;;  %v3923_v3 = vunpack.c.l.b16 %v3231_v14 }
 0x4c2   : > { %v2800_v39 = vmax.f32 %v2746_v55, 0.0  ;;  %v3467_v5 = vrot.slane %v3465_v41, 4  ;;  %v3470_v15 = vrot.slane %v3468_v60, 5 }
 0x4c4   : > { %v3178_v30 = vmul.f32 %v3011_v28, %v2800_v39  ;;  %v3471_v49 = vor.u32 %v3470_v15, %v3467_v5 }
 0x4c5   : > { %v2593_v38 = vpop.f32.mrf.mxu0 }
 0x4c6   : > { %v3232_v56 = vpack.c.bf16 %v3178_v30, %v3178_v30  ;;  %v2689_v20 = vadd.f32 %v2593_v38, %v15443_v18  ;;  %v3805_v35 = vpop.f32.mrf.mxu1  ;;  %v3472_v5 = vrot.slane %v3471_v49, 4 }
 0x4c7   : > { %v4047_v52 = vadd.f32 %v4046_v57, %v3805_v35  ;;  %v3016_v57 = vpop.permute.xlu2 %3015 }
 0x4c8   : > { %v3478_v46 = vshrl.u32 %v3232_v56, 16  ;;  %v2747_v33 = vadd.f32 %v12124_v2, %v2689_v20  ;;  %8716 = vmatmul.msk.bf16.gmra.mxu0 %vm567_vm2, %v10475_v16  ;;  %v3924_v55 = vunpack.c.l.b16 %v3232_v56  ;;  %v4193_v41 = vrot.slane %v3232_v56, 5 }
 0x4c9   : > { %v3474_v60 = vshll.u32 %v3232_v56, 16 }
 0x4ca   : > { %v3480_v39 = vrot.slane %v3478_v46, 4  ;;  %v2801_v28 = vmax.f32 %v2747_v33, 0.0  ;;  %v4395_v30 = vpop.f32.mrf.mxu3  ;;  %v12135_v44 = vpack.c.b16 %v3924_v55, %v3923_v3  ;;  %v4194_v38 = vsel %vm11865_vm7, %v8802_v21, %v4193_v41 }
 0x4cb   : > { %v12139_v14 = vadd.f32 %v4395_v30, %v4047_v52  ;;  %v3476_v15 = vrot.slane %v3474_v60, 5  ;;  %v4195_v52 = vrot.slane %v4193_v41, 4  ;;  %v3021_v30 = vpop.permute.xlu0 %3020  ;;  %v12153_v41 = vpop.f32.mrf.mxu2 }
 0x4cc   : > { %v3179_v18 = vmul.f32 %v3016_v57, %v2801_v28  ;;  %8786 = vmatmul.msk.bf16.gmra.mxu2 %vm3737_vm9, %v12135_v44  ;;  %v4272_v57 = vunpack.c.l.b16 %v4194_v38  ;;  %15446 = vst [vmem:[#allocation58_spill] sm:$0xff] %v12153_v41 }
 0x4cd   : > { %15444 = vst [vmem:[#allocation17_spill] sm:$0xff] %v12139_v14  ;;  %v2595_v16 = vpop.f32.mrf.mxu0  ;;  %v3477_v46 = vsel %vm11873_vm8, %v3472_v5, %v3476_v15  ;;  %v3481_v20 = vor.u32 %v3480_v39, %v3476_v15 }
 0x4ce   : > { %v3233_v33 = vpack.c.bf16 %v3179_v18, %v3179_v18  ;;  %v2690_v56 = vadd.f32 %v2595_v16, %v11461_v7  ;;  %v3681_v18 = vunpack.c.l.b16 %v3477_v46 }
 0x4cf   : > { %v3482_v28 = vrot.slane %v3481_v20, 4 }
 0x4d0   : > { %v3484_v35 = vshll.u32 %v3233_v33, 16  ;;  %v4196_v3 = vrot.slane %v3233_v33, 5  ;;  %v2748_v21 = vadd.f32 %v12124_v2, %v2690_v56  ;;  %v12155_v56 = vpop.f32.mrf.mxu1 }
 0x4d1   : > { %15447 = vst [vmem:[#allocation59_spill] sm:$0xff] %v12155_v56 }
 0x4d2   : > { %v3486_v55 = vrot.slane %v3484_v35, 5  ;;  %v2802_v49 = vmax.f32 %v2748_v21, 0.0  ;;  %v4197_v60 = vsel %vm11865_vm7, %v4195_v52, %v4196_v3 }
 0x4d3   : > { %v4273_v14 = vunpack.c.l.b16 %v4197_v60 }
 0x4d4   : > { %v3180_v5 = vmul.f32 %v3021_v30, %v2802_v49  ;;  %v3487_v7 = vsel %vm11873_vm8, %v3482_v28, %v3486_v55  ;;  %v12167_v55 = vpop.f32.mrf.mxu3  ;;  %v3026_v49 = vpop.permute.xlu1 %3025 }
 0x4d5   : > { %v2598_v39 = vpop.f32.mrf.mxu0  ;;  %v12151_v15 = vpack.c.b16 %v4273_v14, %v4272_v57  ;;  %v3682_v16 = vunpack.c.l.b16 %v3487_v7  ;;  %v10476_v14 = vld [vmem:[%s10619_s17 + $0x110] sm:$0xff]   ;;  %15449 = vst [vmem:[#allocation61_spill] sm:$0xff] %v12167_v55 }
 0x4d6   : > { %v3234_v33 = vpack.c.bf16 %v3180_v5, %v3180_v5  ;;  %v2691_v20 = vadd.f32 %v2598_v39, %v11476_v25 }
 0x4d7   : > { %15445 = vst [vmem:[#allocation57_spill] sm:$0xff] %v12151_v15  ;;  %8842 = vmatmul.msk.bf16.gmra.mxu3 %vm3737_vm9, %v12151_v15  ;;  %v12160_v38 = vpack.c.b16 %v3682_v16, %v3681_v18 }
 0x4d8   : > { %v3489_v35 = vshrl.u32 %v3234_v33, 16  ;;  %v3492_v3 = vshll.u32 %v3234_v33, 16  ;;  %v2749_v21 = vadd.f32 %v12124_v2, %v2691_v20  ;;  %8717 = vmatmul.msk.bf16.gmra.mxu0 %vm567_vm2, %v10476_v14  ;;  %v4051_v5 = vpop.f32.mrf.mxu2  ;;  %v8803_v16 = vrot.slane %v3234_v33, 9 }
 0x4d9   : > { %15448 = vst [vmem:[#allocation60_spill] sm:$0xff] %v12160_v38  ;;  %8754 = vmatmul.msk.bf16.gmra.mxu1 %vm3737_vm9, %v12160_v38 }
 0x4da   : > { %v3491_v46 = vrot.slane %v3489_v35, 4  ;;  %v3494_v52 = vrot.slane %v3492_v3, 5  ;;  %v2803_v25 = vmax.f32 %v2749_v21, 0.0  ;;  %v3925_v3 = vunpack.c.l.b16 %v3234_v33 }
 0x4dc   : > { %v3181_v60 = vmul.f32 %v3026_v49, %v2803_v25  ;;  %v3495_v30 = vor.u32 %v3494_v52, %v3491_v46  ;;  %v3031_v52 = vpop.permute.xlu2 %3030 }
 0x4dd   : > { %v2600_v28 = vpop.f32.mrf.mxu0 }
 0x4de   : > { %v3235_v57 = vpack.c.bf16 %v3181_v60, %v3181_v60  ;;  %v2692_v7 = vadd.f32 %v2600_v28, %v11482_v26  ;;  %v3810_v39 = vpop.f32.mrf.mxu1  ;;  %v3496_v55 = vrot.slane %v3495_v30, 4  ;;  %v1989_v26 = vadd.f32 %v11510_v45, %v11459_v17 }
 0x4df   : > { %v4052_v18 = vadd.f32 %v4051_v5, %v3810_v39 }
 0x4e0   : > { %v3498_v20 = vshll.u32 %v3235_v57, 16  ;;  %v3502_v14 = vshrl.u32 %v3235_v57, 16  ;;  %v4200_v41 = vrot.slane %v3235_v57, 5  ;;  %v2750_v35 = vadd.f32 %v12124_v2, %v2692_v7 }
 0x4e1   : > { %v3926_v56 = vunpack.c.l.b16 %v3235_v57 }
 0x4e2   : > { %v3500_v21 = vrot.slane %v3498_v20, 5  ;;  %v3504_v15 = vrot.slane %v3502_v14, 4  ;;  %v2804_v25 = vmax.f32 %v2750_v35, 0.0  ;;  %v4400_v49 = vpop.f32.mrf.mxu3  ;;  %v4201_v46 = vsel %vm11865_vm7, %v8803_v16, %v4200_v41 }
 0x4e3   : > { %v12175_v60 = vadd.f32 %v4400_v49, %v4052_v18  ;;  %v12177_v28 = vpack.c.b16 %v3926_v56, %v3925_v3  ;;  %v2224_v16 = vadd.f32 %v11465_v53, %v1989_v26  ;;  %v10477_v56 = vld [vmem:[%s10619_s17 + $0x118] sm:$0xff]   ;;  %v4202_v20 = vrot.slane %v4200_v41, 4 }
 0x4e4   : > { %v3182_v5 = vmul.f32 %v3031_v52, %v2804_v25  ;;  %v3501_v33 = vsel %vm11873_vm8, %v3496_v55, %v3500_v21  ;;  %v3505_v39 = vor.u32 %v3504_v15, %v3500_v21  ;;  %v3036_v25 = vpop.permute.xlu0 %3035  ;;  %v4274_v49 = vunpack.c.l.b16 %v4201_v46 }
 0x4e5   : > { %8787 = vmatmul.msk.bf16.gmra.mxu2 %vm3737_vm9, %v12177_v28  ;;  %v2603_v30 = vpop.f32.mrf.mxu0  ;;  %v2459_v15 = vadd.f32 %v11463_v12, %v2224_v16 }
 0x4e6   : > { %v3236_v57 = vpack.c.bf16 %v3182_v5, %v3182_v5  ;;  %v2693_v7 = vadd.f32 %v2603_v30, %v11503_v23  ;;  %v3506_v3 = vrot.slane %v3505_v39, 4  ;;  %v3683_v5 = vunpack.c.l.b16 %v3501_v33  ;;  %v12195_v30 = vpop.f32.mrf.mxu2 }
 0x4e7   : > { %v1991_v33 = vadd.f32 %v11540_v32, %v11480_v50 }
 0x4e8   : > { %v3508_v17 = vshll.u32 %v3236_v57, 16  ;;  %v4203_v45 = vrot.slane %v3236_v57, 5  ;;  %v2751_v18 = vadd.f32 %v12124_v2, %v2693_v7  ;;  %8718 = vmatmul.msk.bf16.gmra.mxu0 %vm567_vm2, %v10477_v56  ;;  %v12197_v7 = vpop.f32.mrf.mxu1  ;;  %v3041_v56 = vpop.permute.xlu1 %3040 }
 0x4ea   : > { %v3510_v14 = vrot.slane %v3508_v17, 5  ;;  %v2805_v55 = vmax.f32 %v2751_v18, 0.0  ;;  %v4204_v35 = vsel %vm11865_vm7, %v4202_v20, %v4203_v45  ;;  %v12208_v45 = vpop.f32.mrf.mxu3 }
 0x4eb   : > { %v4275_v23 = vunpack.c.l.b16 %v4204_v35 }
 0x4ec   : > { %v3183_v53 = vmul.f32 %v3036_v25, %v2805_v55  ;;  %v3511_v21 = vsel %vm11873_vm8, %v3506_v3, %v3510_v14  ;;  %v10024_v3 = vld [vmem:[%s10619_s17 + $0x120] sm:$0xff]   ;;  %v2226_v25 = vadd.f32 %v11489_v54, %v1991_v33  ;;  %v9712_v54 = vld [vmem:[%s15170_s4 + $0xd8] sm:$0xff] }
 0x4ed   : > { %v2605_v26 = vpop.f32.mrf.mxu0  ;;  %v12193_v52 = vpack.c.b16 %v4275_v23, %v4274_v49  ;;  %v3684_v41 = vunpack.c.l.b16 %v3511_v21  ;;  %5056 = vmatpush.bf16.msra.mxu0 %v9712_v54 }
 0x4ee   : > { %v3237_v57 = vpack.c.bf16 %v3183_v53, %v3183_v53  ;;  %v2694_v39 = vadd.f32 %v2605_v26, %v2459_v15 }
 0x4ef   : > { %8843 = vmatmul.msk.bf16.gmra.mxu3 %vm3737_vm9, %v12193_v52  ;;  %v12201_v12 = vpack.c.b16 %v3684_v41, %v3683_v5  ;;  %v4056_v23 = vpop.f32.mrf.mxu2 }
 0x4f0   : > { %v3513_v46 = vshrl.u32 %v3237_v57, 16  ;;  %v3516_v16 = vshll.u32 %v3237_v57, 16  ;;  %v2752_v17 = vadd.f32 %v12124_v2, %v2694_v39  ;;  %v8804_v21 = vrot.slane %v3237_v57, 9 }
 0x4f1   : > { %15450 = vst [vmem:[#allocation62_spill] sm:$0xff] %v12201_v12  ;;  %8755 = vmatmul.msk.bf16.gmra.mxu1 %vm3737_vm9, %v12201_v12  ;;  %v3927_v5 = vunpack.c.l.b16 %v3237_v57 }
 0x4f2   : > { %v2806_v18 = vmax.f32 %v2752_v17, 0.0  ;;  %v3515_v20 = vrot.slane %v3513_v46, 4  ;;  %v3518_v14 = vrot.slane %v3516_v16, 5 }
 0x4f4   : > { %v3184_v55 = vmul.f32 %v3041_v56, %v2806_v18  ;;  %v3519_v50 = vor.u32 %v3518_v14, %v3515_v20  ;;  %v3046_v56 = vpop.permute.xlu2 %3045 }
 0x4f5   : > { %v2608_v35 = vpop.f32.mrf.mxu0 }
 0x4f6   : > { %v3238_v49 = vpack.c.bf16 %v3184_v55, %v3184_v55  ;;  %v2695_v15 = vadd.f32 %v2608_v35, %v11533_v47  ;;  %v3815_v53 = vpop.f32.mrf.mxu1  ;;  %v3520_v14 = vrot.slane %v3519_v50, 4  ;;  %v2461_v35 = vadd.f32 %v11484_v51, %v2226_v25 }
 0x4f7   : > { %v4057_v26 = vadd.f32 %v4056_v23, %v3815_v53 }
 0x4f8   : > { %v3526_v32 = vshrl.u32 %v3238_v49, 16  ;;  %v2753_v41 = vadd.f32 %v12124_v2, %v2695_v15  ;;  %8719 = vmatmul.msk.bf16.gmra.mxu0 %vm567_vm2, %v10024_v3  ;;  %v3928_v39 = vunpack.c.l.b16 %v3238_v49  ;;  %v4207_v46 = vrot.slane %v3238_v49, 5  ;;  %v9711_v15 = vld [vmem:[%s15170_s4 + $0xd0] sm:$0xff] }
 0x4f9   : > { %v3522_v16 = vshll.u32 %v3238_v49, 16  ;;  %5057 = vmatpush.bf16.msra.mxu0 %v9711_v15 }
 0x4fa   : > { %v3528_v17 = vrot.slane %v3526_v32, 4  ;;  %v2807_v33 = vmax.f32 %v2753_v41, 0.0  ;;  %v4405_v47 = vpop.f32.mrf.mxu3  ;;  %v12218_v18 = vpack.c.b16 %v3928_v39, %v3927_v5  ;;  %v4208_v57 = vsel %vm11865_vm7, %v8804_v21, %v4207_v46  ;;  %v9710_v32 = vld [vmem:[%s15170_s4 + $0xc8] sm:$0xff] }
 0x4fb   : > { %v12222_v20 = vadd.f32 %v4405_v47, %v4057_v26  ;;  %v3524_v55 = vrot.slane %v3522_v16, 5  ;;  %v4209_v25 = vrot.slane %v4207_v46, 4  ;;  %v4276_v47 = vunpack.c.l.b16 %v4208_v57  ;;  %v12248_v57 = vpop.f32.mrf.mxu2 }
 0x4fc   : > { %v3185_v3 = vmul.f32 %v3046_v56, %v2807_v33  ;;  %8788 = vmatmul.msk.bf16.gmra.mxu2 %vm3737_vm9, %v12218_v18  ;;  %v3051_v33 = vpop.permute.xlu0 %3050  ;;  %v1993_v56 = vadd.f32 %v11569_v61, %v11512_v22 }
 0x4fd   : > { %v2610_v49 = vpop.f32.mrf.mxu0  ;;  %v3525_v23 = vsel %vm11873_vm8, %v3520_v14, %v3524_v55  ;;  %v3529_v26 = vor.u32 %v3528_v17, %v3524_v55  ;;  %5058 = vmatpush.bf16.msra.mxu0 %v9710_v32 }
 0x4fe   : > { %v3239_v53 = vpack.c.bf16 %v3185_v3, %v3185_v3  ;;  %v2696_v21 = vadd.f32 %v2610_v49, %v2461_v35  ;;  %v10025_v3 = vld [vmem:[%s10619_s17 + $0x128] sm:$0xff]   ;;  %v3685_v49 = vunpack.c.l.b16 %v3525_v23  ;;  %v2228_v23 = vadd.f32 %v11519_v0, %v1993_v56 }
 0x4ff   : > { %v3530_v54 = vrot.slane %v3529_v26, 4  ;;  %v12250_v26 = vpop.f32.mrf.mxu1 }
 0x500   : > { %v3532_v5 = vshll.u32 %v3239_v53, 16  ;;  %v4210_v50 = vrot.slane %v3239_v53, 5  ;;  %v2754_v51 = vadd.f32 %v12124_v2, %v2696_v21  ;;  %v9709_v53 = vld [vmem:[%s15170_s4 + $0xc0] sm:$0xff]  ;;  %v2463_v0 = vadd.f32 %v11514_v34, %v2228_v23 }
 0x501   : > { %5059 = vmatpush.bf16.msra.mxu0 %v9709_v53 }
 0x502   : > { %v3534_v41 = vrot.slane %v3532_v5, 5  ;;  %v2808_v39 = vmax.f32 %v2754_v51, 0.0  ;;  %v4211_v16 = vsel %vm11865_vm7, %v4209_v25, %v4210_v50 }
 0x503   : > { %v4277_v17 = vunpack.c.l.b16 %v4211_v16  ;;  %v3056_v16 = vpop.permute.xlu1 %3055 }
 0x504   : > { %v3186_v14 = vmul.f32 %v3051_v33, %v2808_v39  ;;  %v3535_v46 = vsel %vm11873_vm8, %v3530_v54, %v3534_v41  ;;  %v9704_v39 = vld [vmem:[%s15170_s4 + $0x98] sm:$0xff] }
 0x505   : > { %v2613_v55 = vpop.f32.mrf.mxu0  ;;  %v12242_v35 = vpack.c.b16 %v4277_v17, %v4276_v47  ;;  %v3686_v15 = vunpack.c.l.b16 %v3535_v46  ;;  %4726 = vmatpush.bf16.msrb.mxu2 %v9704_v39 }
 0x506   : > { %v3240_v21 = vpack.c.bf16 %v3186_v14, %v3186_v14  ;;  %v2697_v22 = vadd.f32 %v2613_v55, %v11562_v40  ;;  %v12262_v40 = vpop.f32.mrf.mxu3 }
 0x507   : > { %8844 = vmatmul.msk.bf16.gmra.mxu3 %vm3737_vm9, %v12242_v35  ;;  %v12255_v61 = vpack.c.b16 %v3686_v15, %v3685_v49 }
 0x508   : > { %v3537_v5 = vshrl.u32 %v3240_v21, 16  ;;  %v3540_v50 = vshll.u32 %v3240_v21, 16  ;;  %v2755_v51 = vadd.f32 %v12124_v2, %v2697_v22  ;;  %8720 = vmatmul.msk.bf16.gmra.mxu0 %vm567_vm2, %v10025_v3  ;;  %v4061_v56 = vpop.f32.mrf.mxu2  ;;  %v8805_v3 = vrot.slane %v3240_v21, 9 }
 0x509   : > { %15451 = vst [vmem:[#allocation63_spill] sm:$0xff] %v12255_v61  ;;  %8756 = vmatmul.msk.bf16.gmra.mxu1 %vm3737_vm9, %v12255_v61 }
 0x50a   : > { %v3539_v25 = vrot.slane %v3537_v5, 4  ;;  %v3542_v32 = vrot.slane %v3540_v50, 5  ;;  %v2809_v41 = vmax.f32 %v2755_v51, 0.0  ;;  %v3929_v5 = vunpack.c.l.b16 %v3240_v21 }
 0x50c   : > { %v3187_v54 = vmul.f32 %v3056_v16, %v2809_v41  ;;  %v3543_v47 = vor.u32 %v3542_v32, %v3539_v25  ;;  %v9700_v32 = vld [vmem:[%s15170_s4 + $0x78] sm:$0xff]  ;;  %v1995_v16 = vadd.f32 %v11601_v59, %v11542_v9 }
 0x50d   : > { %v2615_v33 = vpop.f32.mrf.mxu0  ;;  %4542 = vmatpush.bf16.msra.mxu1 %v9700_v32 }
 0x50e   : > { %v3241_v17 = vpack.c.bf16 %v3187_v54, %v3187_v54  ;;  %v2698_v14 = vadd.f32 %v2615_v33, %v2463_v0  ;;  %v3820_v46 = vpop.f32.mrf.mxu1  ;;  %v3544_v51 = vrot.slane %v3543_v47, 4  ;;  %v3061_v0 = vpop.permute.xlu2 %3060  ;;  %v9666_v47 = vld [vmem:[%s10619_s17 + $0x130] sm:$0xff]  ;;  %v2230_v9 = vadd.f32 %v11552_v36, %v1995_v16  ;;  %s10501_s17 = smov 69  }
 0x50f   : > { %v4062_v55 = vadd.f32 %v4061_v56, %v3820_v46 }
 0x510   : > { %v3546_v49 = vshll.u32 %v3241_v17, 16  ;;  %v3550_v15 = vshrl.u32 %v3241_v17, 16  ;;  %v4214_v53 = vrot.slane %v3241_v17, 5  ;;  %v2756_v22 = vadd.f32 %v12124_v2, %v2698_v14 }
 0x511   : > { %v3930_v50 = vunpack.c.l.b16 %v3241_v17 }
 0x512   : > { %v3548_v34 = vrot.slane %v3546_v49, 5  ;;  %v3552_v23 = vrot.slane %v3550_v15, 4  ;;  %v2810_v41 = vmax.f32 %v2756_v22, 0.0  ;;  %v4410_v39 = vpop.f32.mrf.mxu3  ;;  %v4215_v25 = vsel %vm11865_vm7, %v8805_v3, %v4214_v53 }
 0x513   : > { %v12276_v54 = vadd.f32 %v4410_v39, %v4062_v55  ;;  %v12278_v21 = vpack.c.b16 %v3930_v50, %v3929_v5  ;;  %v4216_v15 = vrot.slane %v4214_v53, 4  ;;  %v4278_v39 = vunpack.c.l.b16 %v4215_v25 }
 0x514   : > { %v3188_v33 = vmul.f32 %v3061_v0, %v2810_v41  ;;  %v3549_v17 = vsel %vm11873_vm8, %v3544_v51, %v3548_v34  ;;  %v3553_v3 = vor.u32 %v3552_v23, %v3548_v34  ;;  %v3066_v41 = vpop.permute.xlu0 %3065 }
 0x515   : > { %8789 = vmatmul.msk.bf16.gmra.mxu2 %vm3737_vm9, %v12278_v21  ;;  %v2618_v56 = vpop.f32.mrf.mxu0  ;;  %v3687_v0 = vunpack.c.l.b16 %v3549_v17  ;;  %v1997_v17 = vadd.f32 %v11634_v42, %v11571_v4 }
 0x516   : > { %v3242_v14 = vpack.c.bf16 %v3188_v33, %v3188_v33  ;;  %v2699_v46 = vadd.f32 %v2618_v56, %v11594_v62  ;;  %v3554_v51 = vrot.slane %v3553_v3, 4  ;;  %v2465_v62 = vadd.f32 %v11547_v58, %v2230_v9  ;;  %v12296_v33 = vpop.f32.mrf.mxu2  ;;  %v12298_v56 = vpop.f32.mrf.mxu1 }
 0x517   : > { %15452 = vst [vmem:[#allocation64_spill] sm:$0xff] %v12296_v33 }
 0x518   : > { %v3556_v59 = vshll.u32 %v3242_v14, 16  ;;  %v4217_v55 = vrot.slane %v3242_v14, 5  ;;  %v2757_v49 = vadd.f32 %v12124_v2, %v2699_v46  ;;  %8721 = vmatmul.msk.bf16.gmra.mxu0 %vm567_vm2, %v9666_v47  ;;  %15453 = vst [vmem:[#allocation65_spill] sm:$0xff] %v12298_v56  ;;  %vm15247_vm2 = vcmask 785408  }
 0x51a   : > { %v3558_v22 = vrot.slane %v3556_v59, 5  ;;  %v2811_v5 = vmax.f32 %v2757_v49, 0.0  ;;  %v4218_v50 = vsel %vm11865_vm7, %v4216_v15, %v4217_v55  ;;  %v12309_v9 = vpop.f32.mrf.mxu3  ;;  %v3071_v55 = vpop.permute.xlu1 %3070 }
 0x51b   : > { %v4279_v32 = vunpack.c.l.b16 %v4218_v50  ;;  %15454 = vst [vmem:[#allocation66_spill] sm:$0xff] %v12309_v9  ;;  %v2232_v50 = vadd.f32 %v11579_v27, %v1997_v17  ;;  %v3076_v17 = vpop.permute.xlu2 %3075 }
 0x51c   : > { %v3189_v34 = vmul.f32 %v3066_v41, %v2811_v5  ;;  %v3559_v36 = vsel %vm11873_vm8, %v3554_v51, %v3558_v22 }
 0x51d   : > { %v2620_v23 = vpop.f32.mrf.mxu0  ;;  %v12294_v16 = vpack.c.b16 %v4279_v32, %v4278_v39  ;;  %v3688_v53 = vunpack.c.l.b16 %v3559_v36 }
 0x51e   : > { %v3243_v47 = vpack.c.bf16 %v3189_v34, %v3189_v34  ;;  %v2700_v14 = vadd.f32 %v2620_v23, %v2465_v62 }
 0x51f   : > { %8845 = vmatmul.msk.bf16.gmra.mxu3 %vm3737_vm9, %v12294_v16  ;;  %v12302_v25 = vpack.c.b16 %v3688_v53, %v3687_v0  ;;  %v4066_v41 = vpop.f32.mrf.mxu2 }
 0x520   : > { %v3561_v58 = vshrl.u32 %v3243_v47, 16  ;;  %v3564_v46 = vshll.u32 %v3243_v47, 16  ;;  %v2758_v3 = vadd.f32 %v12124_v2, %v2700_v14  ;;  %v8806_v62 = vrot.slane %v3243_v47, 9 }
 0x521   : > { %8757 = vmatmul.msk.bf16.gmra.mxu1 %vm3737_vm9, %v12302_v25  ;;  %v3931_v36 = vunpack.c.l.b16 %v3243_v47 }
 0x522   : > { %v2812_v59 = vmax.f32 %v2758_v3, 0.0  ;;  %v3563_v49 = vrot.slane %v3561_v58, 4  ;;  %v3566_v15 = vrot.slane %v3564_v46, 5 }
 0x524   : > { %v3190_v22 = vmul.f32 %v3071_v55, %v2812_v59  ;;  %v3567_v23 = vor.u32 %v3566_v15, %v3563_v49  ;;  %v15456_v49 = vld [vmem:[#allocation18_spill] sm:$0xff] }
 0x525   : > { %v2623_v5 = vpop.f32.mrf.mxu0  ;;  %v2467_v15 = vadd.f32 %v15456_v49, %v2232_v50 }
 0x526   : > { %v3244_v51 = vpack.c.bf16 %v3190_v22, %v3190_v22  ;;  %v2701_v39 = vadd.f32 %v2623_v5, %v11627_v1  ;;  %v3825_v32 = vpop.f32.mrf.mxu1  ;;  %v3568_v59 = vrot.slane %v3567_v23, 4 }
 0x527   : > { %v4067_v34 = vadd.f32 %v4066_v41, %v3825_v32 }
 0x528   : > { %v3574_v4 = vshrl.u32 %v3244_v51, 16  ;;  %v2759_v42 = vadd.f32 %v12124_v2, %v2701_v39  ;;  %8995 = vmatmul.msk.bf16.vlgmr.msra.gmra.mxu0 %vm3737_vm9, %v11934_v8  ;;  %v3932_v0 = vunpack.c.l.b16 %v3244_v51  ;;  %v4221_v53 = vrot.slane %v3244_v51, 5 }
 0x529   : > { %v3570_v14 = vshll.u32 %v3244_v51, 16 }
 0x52a   : > { %v3576_v58 = vrot.slane %v3574_v4, 4  ;;  %v2813_v27 = vmax.f32 %v2759_v42, 0.0  ;;  %v4415_v46 = vpop.f32.mrf.mxu3  ;;  %v12316_v3 = vpack.c.b16 %v3932_v0, %v3931_v36  ;;  %v4222_v1 = vsel %vm11865_vm7, %v8806_v62, %v4221_v53 }
 0x52b   : > { %v12320_v47 = vadd.f32 %v4415_v46, %v4067_v34  ;;  %v3572_v55 = vrot.slane %v3570_v14, 5  ;;  %v4223_v4 = vrot.slane %v4221_v53, 4  ;;  %v3081_v14 = vpop.permute.xlu0 %3080 }
 0x52c   : > { %v3191_v22 = vmul.f32 %v3076_v17, %v2813_v27  ;;  %8790 = vmatmul.msk.bf16.gmra.mxu2 %vm3737_vm9, %v12316_v3  ;;  %v4280_v27 = vunpack.c.l.b16 %v4222_v1  ;;  %v15457_v17 = vld [vmem:[#allocation20_spill] sm:$0xff] }
 0x52d   : > { %15455 = vst [vmem:[#allocation67_spill] sm:$0xff] %v12320_v47  ;;  %v2625_v5 = vpop.f32.mrf.mxu0  ;;  %v3573_v51 = vsel %vm11873_vm8, %v3568_v59, %v3572_v55  ;;  %v3577_v32 = vor.u32 %v3576_v58, %v3572_v55  ;;  %v1999_v59 = vadd.f32 %v11667_v19, %v15457_v17 }
 0x52e   : > { %v3245_v41 = vpack.c.bf16 %v3191_v22, %v3191_v22  ;;  %v2702_v39 = vadd.f32 %v2625_v5, %v2467_v15  ;;  %v3689_v53 = vunpack.c.l.b16 %v3573_v51  ;;  %v12336_v5 = vpop.f32.mrf.mxu2 }
 0x52f   : > { %v3578_v0 = vrot.slane %v3577_v32, 4  ;;  %15458 = vst [vmem:[#allocation18_spill] sm:$0xff] %v12336_v5  ;;  %v2234_v32 = vadd.f32 %v11615_v31, %v1999_v59 }
 0x530   : > { %v3580_v36 = vshll.u32 %v3245_v41, 16  ;;  %v4224_v62 = vrot.slane %v3245_v41, 5  ;;  %v2760_v34 = vadd.f32 %v12124_v2, %v2702_v39  ;;  %v12338_v39 = vpop.f32.mrf.mxu1 }
 0x531   : > { %15459 = vst [vmem:[#allocation20_spill] sm:$0xff] %v12338_v39 }
 0x532   : > { %v3582_v23 = vrot.slane %v3580_v36, 5  ;;  %v2814_v42 = vmax.f32 %v2760_v34, 0.0  ;;  %v4225_v50 = vsel %vm11865_vm7, %v4223_v4, %v4224_v62 }
 0x533   : > { %v4281_v46 = vunpack.c.l.b16 %v4225_v50  ;;  %v15461_v50 = vld [vmem:[#allocation21_spill] sm:$0xff] }
 0x534   : > { %v3192_v49 = vmul.f32 %v3081_v14, %v2814_v42  ;;  %v3583_v58 = vsel %vm11873_vm8, %v3578_v0, %v3582_v23  ;;  %v3086_v42 = vpop.permute.xlu1 %3085  ;;  %v2469_v0 = vadd.f32 %v15461_v50, %v2234_v32 }
 0x535   : > { %v2628_v55 = vpop.f32.mrf.mxu0  ;;  %v12334_v15 = vpack.c.b16 %v4281_v46, %v4280_v27  ;;  %v3690_v22 = vunpack.c.l.b16 %v3583_v58 }
 0x536   : > { %v3246_v41 = vpack.c.bf16 %v3192_v49, %v3192_v49  ;;  %v2703_v1 = vadd.f32 %v2628_v55, %v11656_v6  ;;  %v12351_v6 = vpop.f32.mrf.mxu3 }
 0x537   : > { %8846 = vmatmul.msk.bf16.gmra.mxu3 %vm3737_vm9, %v12334_v15  ;;  %v12343_v19 = vpack.c.b16 %v3690_v22, %v3689_v53  ;;  %15460 = vst [vmem:[#allocation68_spill] sm:$0xff] %v12351_v6 }
 0x538   : > { %v3585_v36 = vshrl.u32 %v3246_v41, 16  ;;  %v3588_v62 = vshll.u32 %v3246_v41, 16  ;;  %v2761_v34 = vadd.f32 %v12124_v2, %v2703_v1  ;;  %8996 = vmatmul.msk.bf16.gmra.mxu0 %vm3737_vm9, %v11964_v43  ;;  %v4071_v17 = vpop.f32.mrf.mxu2  ;;  %v8807_v55 = vrot.slane %v3246_v41, 9 }
 0x539   : > { %8758 = vmatmul.msk.bf16.gmra.mxu1 %vm3737_vm9, %v12343_v19 }
 0x53a   : > { %v3587_v51 = vrot.slane %v3585_v36, 4  ;;  %v3590_v4 = vrot.slane %v3588_v62, 5  ;;  %v2815_v23 = vmax.f32 %v2761_v34, 0.0  ;;  %v3933_v62 = vunpack.c.l.b16 %v3246_v41 }
 0x53c   : > { %v3193_v14 = vmul.f32 %v3086_v42, %v2815_v23  ;;  %v3591_v27 = vor.u32 %v3590_v4, %v3587_v51  ;;  %v15462_v4 = vld [vmem:[#allocation31_spill] sm:$0xff]  ;;  %v15463_v42 = vld [vmem:[#allocation25_spill] sm:$0xff] }
 0x53d   : > { %v2630_v31 = vpop.f32.mrf.mxu0  ;;  %v2001_v50 = vadd.f32 %v15463_v42, %v15462_v4 }
 0x53e   : > { %v3247_v46 = vpack.c.bf16 %v3193_v14, %v3193_v14  ;;  %v2704_v59 = vadd.f32 %v2630_v31, %v2469_v0  ;;  %v3830_v49 = vpop.f32.mrf.mxu1  ;;  %v3592_v34 = vrot.slane %v3591_v27, 4  ;;  %v3091_v0 = vpop.permute.xlu2 %3090 }
 0x53f   : > { %v4072_v58 = vadd.f32 %v4071_v17, %v3830_v49 }
 0x540   : > { %v3594_v53 = vshll.u32 %v3247_v46, 16  ;;  %v3598_v22 = vshrl.u32 %v3247_v46, 16  ;;  %v4228_v1 = vrot.slane %v3247_v46, 5  ;;  %v2762_v36 = vadd.f32 %v12124_v2, %v2704_v59  ;;  %v15465_v59 = vld [vmem:[#allocation35_spill] sm:$0xff] }
 0x541   : > { %v3934_v6 = vunpack.c.l.b16 %v3247_v46 }
 0x542   : > { %v3596_v5 = vrot.slane %v3594_v53, 5  ;;  %v3600_v39 = vrot.slane %v3598_v22, 4  ;;  %v2816_v32 = vmax.f32 %v2762_v36, 0.0  ;;  %v4420_v23 = vpop.f32.mrf.mxu3  ;;  %v4229_v51 = vsel %vm11865_vm7, %v8807_v55, %v4228_v1  ;;  %v15466_v53 = vld [vmem:[#allocation38_spill] sm:$0xff] }
 0x543   : > { %v12359_v14 = vadd.f32 %v4420_v23, %v4072_v58  ;;  %v12361_v31 = vpack.c.b16 %v3934_v6, %v3933_v62  ;;  %v2236_v22 = vadd.f32 %v15466_v53, %v2001_v50  ;;  %v4230_v6 = vrot.slane %v4228_v1, 4 }
 0x544   : > { %v3194_v17 = vmul.f32 %v3091_v0, %v2816_v32  ;;  %v3597_v41 = vsel %vm11873_vm8, %v3592_v34, %v3596_v5  ;;  %v3601_v55 = vor.u32 %v3600_v39, %v3596_v5  ;;  %v9703_v5 = vld [vmem:[%s15170_s4 + $0x90] sm:$0xff]  ;;  %v3096_v39 = vpop.permute.xlu0 %3095  ;;  %v4282_v42 = vunpack.c.l.b16 %v4229_v51  ;;  %v15467_v0 = vld [vmem:[#allocation23_spill] sm:$0xff] }
 0x545   : > { %15464 = vst [vmem:[#allocation21_spill] sm:$0xff] %v12359_v14  ;;  %8791 = vmatmul.msk.bf16.gmra.mxu2 %vm3737_vm9, %v12361_v31  ;;  %v2633_v27 = vpop.f32.mrf.mxu0 }
 0x546   : > { %v3248_v46 = vpack.c.bf16 %v3194_v17, %v3194_v17  ;;  %v2705_v49 = vadd.f32 %v2633_v27, %v15465_v59  ;;  %v3602_v23 = vrot.slane %v3601_v55, 4  ;;  %v2471_v17 = vadd.f32 %v15467_v0, %v2236_v22  ;;  %4727 = vmatpush.bf16.msrb.mxu2 %v9703_v5  ;;  %v12382_v55 = vpop.f32.mrf.mxu2 }
 0x547   : > { %15468 = vst [vmem:[#allocation31_spill] sm:$0xff] %v12382_v55 }
 0x548   : > { %v3604_v36 = vshll.u32 %v3248_v46, 16  ;;  %v4231_v4 = vrot.slane %v3248_v46, 5  ;;  %v2763_v58 = vadd.f32 %v12124_v2, %v2705_v49  ;;  %8997 = vmatmul.msk.bf16.gmra.mxu0 %vm3737_vm9, %v11992_v63  ;;  %v3691_v49 = vunpack.c.l.b16 %v3597_v41  ;;  %v15470_v41 = vld [vmem:[#allocation24_spill] sm:$0xff] }
 0x54a   : > { %v3606_v62 = vrot.slane %v3604_v36, 5  ;;  %v2817_v34 = vmax.f32 %v2763_v58, 0.0  ;;  %v4232_v32 = vsel %vm11865_vm7, %v4230_v6, %v4231_v4  ;;  %v12384_v4 = vpop.f32.mrf.mxu1 }
 0x54b   : > { %v4283_v50 = vunpack.c.l.b16 %v4232_v32  ;;  %15469 = vst [vmem:[#allocation25_spill] sm:$0xff] %v12384_v4 }
 0x54c   : > { %v3195_v27 = vmul.f32 %v3096_v39, %v2817_v34  ;;  %v3607_v46 = vsel %vm11873_vm8, %v3602_v23, %v3606_v62  ;;  %v15471_v34 = vld [vmem:[#allocation29_spill] sm:$0xff]  ;;  %v12395_v23 = vpop.f32.mrf.mxu3  ;;  %v9699_v39 = vld [vmem:[%s15170_s4 + $0x70] sm:$0xff] }
 0x54d   : > { %v2635_v1 = vpop.f32.mrf.mxu0  ;;  %v12380_v59 = vpack.c.b16 %v4283_v50, %v4282_v42  ;;  %v3692_v53 = vunpack.c.l.b16 %v3607_v46  ;;  %v2003_v32 = vadd.f32 %v15471_v34, %v15470_v41  ;;  %15472 = vst [vmem:[#allocation35_spill] sm:$0xff] %v12395_v23  ;;  %v3101_v42 = vpop.permute.xlu1 %3100  ;;  %4543 = vmatpush.bf16.msra.mxu1 %v9699_v39  ;;  %v15473_v46 = vld [vmem:[#allocation40_spill] sm:$0xff] }
 0x54e   : > { %v3249_v36 = vpack.c.bf16 %v3195_v27, %v3195_v27  ;;  %v2706_v58 = vadd.f32 %v2635_v1, %v2471_v17 }
 0x54f   : > { %8847 = vmatmul.msk.bf16.gmra.mxu3 %vm3737_vm9, %v12380_v59  ;;  %v12388_v51 = vpack.c.b16 %v3692_v53, %v3691_v49  ;;  %v2238_v1 = vadd.f32 %v15473_v46, %v2003_v32  ;;  %v4076_v53 = vpop.f32.mrf.mxu2  ;;  %v3106_v46 = vpop.permute.xlu2 %3105 }
 0x550   : > { %v3609_v22 = vshrl.u32 %v3249_v36, 16  ;;  %v3612_v6 = vshll.u32 %v3249_v36, 16  ;;  %v2764_v62 = vadd.f32 %v12124_v2, %v2706_v58  ;;  %v15474_v58 = vld [vmem:[#allocation28_spill] sm:$0xff]  ;;  %v8808_v34 = vrot.slane %v3249_v36, 9 }
 0x551   : > { %8759 = vmatmul.msk.bf16.gmra.mxu1 %vm3737_vm9, %v12388_v51 }
 0x552   : > { %v2818_v5 = vmax.f32 %v2764_v62, 0.0  ;;  %v3611_v50 = vrot.slane %v3609_v22, 4  ;;  %v3614_v0 = vrot.slane %v3612_v6, 5  ;;  %v3935_v62 = vunpack.c.l.b16 %v3249_v36 }
 0x554   : > { %v3196_v17 = vmul.f32 %v3101_v42, %v2818_v5  ;;  %v3615_v4 = vor.u32 %v3614_v0, %v3611_v50 }
 0x555   : > { %v2638_v27 = vpop.f32.mrf.mxu0 }
 0x556   : > { %v3250_v49 = vpack.c.bf16 %v3196_v17, %v3196_v17  ;;  %v2707_v55 = vadd.f32 %v2638_v27, %v15474_v58  ;;  %v3835_v41 = vpop.f32.mrf.mxu1  ;;  %v3616_v50 = vrot.slane %v3615_v4, 4 }
 0x557   : > { %v4077_v23 = vadd.f32 %v4076_v53, %v3835_v41  ;;  %v3121_v33 = vpop.permute.xlu2 %3120 }
 0x558   : > { %v3622_v14 = vshrl.u32 %v3250_v49, 16  ;;  %v2765_v47 = vadd.f32 %v12124_v2, %v2707_v55  ;;  %8998 = vmatmul.msk.bf16.gmra.mxu0 %vm3737_vm9, %v12022_v11  ;;  %v3936_v22 = vunpack.c.l.b16 %v3250_v49  ;;  %v4235_v6 = vrot.slane %v3250_v49, 5  ;;  %v15476_v55 = vld [vmem:[#allocation27_spill] sm:$0xff] }
 0x559   : > { %v3618_v5 = vshll.u32 %v3250_v49, 16  ;;  %v2473_v53 = vadd.f32 %v15476_v55, %v2238_v1 }
 0x55a   : > { %v3624_v39 = vrot.slane %v3622_v14, 4  ;;  %v2819_v32 = vmax.f32 %v2765_v47, 0.0  ;;  %v4425_v42 = vpop.f32.mrf.mxu3  ;;  %v12405_v17 = vpack.c.b16 %v3936_v22, %v3935_v62  ;;  %v4236_v27 = vsel %vm11865_vm7, %v8808_v34, %v4235_v6  ;;  %v9702_v14 = vld [vmem:[%s15170_s4 + $0x88] sm:$0xff] }
 0x55b   : > { %v12409_v36 = vadd.f32 %v4425_v42, %v4077_v23  ;;  %v3620_v0 = vrot.slane %v3618_v5, 5  ;;  %4728 = vmatpush.bf16.msrb.mxu2 %v9702_v14  ;;  %v4237_v22 = vrot.slane %v4235_v6, 4  ;;  %v9708_v5 = vld [vmem:[%s15170_s4 + $0xb8] sm:$0xff]  ;;  %v4284_v55 = vunpack.c.l.b16 %v4236_v27  ;;  %v15477_v6 = vld [vmem:[#allocation26_spill] sm:$0xff] }
 0x55c   : > { %v3197_v58 = vmul.f32 %v3106_v46, %v2819_v32  ;;  %8792 = vmatmul.msk.bf16.gmra.mxu2 %vm3737_vm9, %v12405_v17  ;;  %v9701_v32 = vld [vmem:[%s15170_s4 + $0x80] sm:$0xff]  ;;  %4894 = vmatpush.bf16.msra.mxu3 %v9708_v5 }
 0x55d   : > { %15475 = vst [vmem:[#allocation38_spill] sm:$0xff] %v12409_v36  ;;  %v2640_v49 = vpop.f32.mrf.mxu0  ;;  %v3621_v47 = vsel %vm11873_vm8, %v3616_v50, %v3620_v0  ;;  %v3625_v23 = vor.u32 %v3624_v39, %v3620_v0  ;;  %v3111_v0 = vpop.permute.xlu0 %3110  ;;  %v15487_v36 = vld [vmem:[#allocation39_spill] sm:$0xff] }
 0x55e   : > { %v3251_v41 = vpack.c.bf16 %v3197_v58, %v3197_v58  ;;  %v2708_v34 = vadd.f32 %v2640_v49, %v2473_v53  ;;  %v15478_v58 = vld [vmem:[#allocation30_spill] sm:$0xff]  ;;  %v12439_v5 = vpop.f32.mrf.mxu1 }
 0x55f   : > { %v3626_v39 = vrot.slane %v3625_v23, 4  ;;  %4729 = vmatpush.bf16.msrb.mxu2 %v9701_v32  ;;  %v2005_v49 = vadd.f32 %v15478_v58, %v15477_v6  ;;  %v3693_v23 = vunpack.c.l.b16 %v3621_v47  ;;  %15481 = vst [vmem:[#allocation29_spill] sm:$0xff] %v12439_v5  ;;  %v15482_v32 = vld [vmem:[#allocation37_spill] sm:$0xff] }
 0x560   : > { %v3628_v4 = vshll.u32 %v3251_v41, 16  ;;  %v4238_v62 = vrot.slane %v3251_v41, 5  ;;  %v2766_v1 = vadd.f32 %v12124_v2, %v2708_v34  ;;  %v9707_v34 = vld [vmem:[%s15170_s4 + $0xb0] sm:$0xff] }
 0x561   : > { %4895 = vmatpush.bf16.msra.mxu3 %v9707_v34  ;;  %v15485_v34 = vld [vmem:[#allocation36_spill] sm:$0xff] }
 0x562   : > { %v3630_v42 = vrot.slane %v3628_v4, 5  ;;  %v2820_v46 = vmax.f32 %v2766_v1, 0.0  ;;  %v4239_v50 = vsel %vm11865_vm7, %v4237_v22, %v4238_v62  ;;  %v12437_v22 = vpop.f32.mrf.mxu2 }
 0x563   : > { %v4285_v53 = vunpack.c.l.b16 %v4239_v50  ;;  %15480 = vst [vmem:[#allocation24_spill] sm:$0xff] %v12437_v22 }
 0x564   : > { %v3198_v14 = vmul.f32 %v3111_v0, %v2820_v46  ;;  %v3631_v41 = vsel %vm11873_vm8, %v3626_v39, %v3630_v42  ;;  %v15483_v46 = vld [vmem:[#allocation33_spill] sm:$0xff] }
 0x565   : > { %v2643_v4 = vpop.f32.mrf.mxu0  ;;  %v12435_v1 = vpack.c.b16 %v4285_v53, %v4284_v55  ;;  %v3694_v62 = vunpack.c.l.b16 %v3631_v41  ;;  %v2240_v39 = vadd.f32 %v15483_v46, %v2005_v49  ;;  %v9706_v53 = vld [vmem:[%s15170_s4 + $0xa8] sm:$0xff]  ;;  %v3116_v49 = vpop.permute.xlu1 %3115 }
 0x566   : > { %v3252_v27 = vpack.c.bf16 %v3198_v14, %v3198_v14  ;;  %v2709_v50 = vadd.f32 %v2643_v4, %v15482_v32  ;;  %v12455_v14 = vpop.f32.mrf.mxu3  ;;  %4896 = vmatpush.bf16.msra.mxu3 %v9706_v53  ;;  %v9697_v53 = vld [vmem:[%s15170_s4 + $0x60] sm:$0xff] }
 0x567   : > { %15479 = vst [vmem:[#allocation23_spill] sm:$0xff] %v12435_v1  ;;  %8848 = vmatmul.msk.bf16.gmra.mxu3 %vm3737_vm9, %v12435_v1  ;;  %v12444_v42 = vpack.c.b16 %v3694_v62, %v3693_v23  ;;  %v2475_v4 = vadd.f32 %v15485_v34, %v2240_v39  ;;  %v9705_v62 = vld [vmem:[%s15170_s4 + $0xa0] sm:$0xff] }
 0x568   : > { %v3633_v0 = vshrl.u32 %v3252_v27, 16  ;;  %v3636_v55 = vshll.u32 %v3252_v27, 16  ;;  %v2767_v47 = vadd.f32 %v12124_v2, %v2709_v50  ;;  %8999 = vmatmul.msk.bf16.gmra.mxu0 %vm3737_vm9, %v12056_v29  ;;  %15484 = vst [vmem:[#allocation40_spill] sm:$0xff] %v12455_v14  ;;  %v9698_v2 = vld [vmem:[%s15170_s4 + $0x68] sm:$0xff]  ;;  %v8809_v22 = vrot.slane %v3252_v27, 9 }
 0x569   : > { %8760 = vmatmul.msk.bf16.gmra.mxu1 %vm3737_vm9, %v12444_v42 }
 0x56a   : > { %v3635_v6 = vrot.slane %v3633_v0, 4  ;;  %v3638_v58 = vrot.slane %v3636_v55, 5  ;;  %v2821_v41 = vmax.f32 %v2767_v47, 0.0  ;;  %4544 = vmatpush.bf16.msra.mxu1 %v9698_v2  ;;  %v4081_v0 = vpop.f32.mrf.mxu2  ;;  %4897 = vmatpush.bf16.msra.mxu3 %v9705_v62 }
 0x56c   : > { %v3199_v23 = vmul.f32 %v3116_v49, %v2821_v41  ;;  %v3639_v50 = vor.u32 %v3638_v58, %v3635_v6  ;;  %v12470_v49 = vld [vmem:[%s15169_s3] ss:$0 sm:$0xff]  ;;  %v3937_v58 = vunpack.c.l.b16 %v3252_v27 }
 0x56d   : > { %v2645_v32 = vpop.f32.mrf.mxu0 }
 0x56e   : > { %v3253_v46 = vpack.c.bf16 %v3199_v23, %v3199_v23  ;;  %v2710_v55 = vadd.f32 %v2645_v32, %v2475_v4  ;;  %v3840_v47 = vpop.f32.mrf.mxu1  ;;  %4545 = vmatpush.bf16.msra.mxu1 %v9697_v53  ;;  %v3640_v4 = vrot.slane %v3639_v50, 4  ;;  %v15489_v53 = vld [vmem:[#allocation44_spill] sm:$0xff] }
 0x56f   : > { %v4082_v14 = vadd.f32 %v4081_v0, %v3840_v47  ;;  %v15486_v47 = vld [vmem:[#allocation32_spill] sm:$0xff] }
 0x570   : > { %v3642_v39 = vshll.u32 %v3253_v46, 16  ;;  %v3646_v41 = vshrl.u32 %v3253_v46, 16  ;;  %v4242_v2 = vrot.slane %v3253_v46, 5  ;;  %v2768_v6 = vadd.f32 %v12470_v49, %v2710_v55 }
 0x571   : > { %v3938_v34 = vunpack.c.l.b16 %v3253_v46  ;;  %v2007_v9 = vadd.f32 %v15487_v36, %v15486_v47 }
 0x572   : > { %v3644_v23 = vrot.slane %v3642_v39, 5  ;;  %v3648_v62 = vrot.slane %v3646_v41, 4  ;;  %v2822_v32 = vmax.f32 %v2768_v6, 0.0  ;;  %v4430_v5 = vpop.f32.mrf.mxu3  ;;  %v4243_v0 = vsel %vm11865_vm7, %v8809_v22, %v4242_v2  ;;  %v15490_v41 = vld [vmem:[#allocation42_spill] sm:$0xff] }
 0x573   : > { %v12477_v56 = vadd.f32 %v4430_v5, %v4082_v14  ;;  %v12479_v1 = vpack.c.b16 %v3938_v34, %v3937_v58  ;;  %v2242_v6 = vadd.f32 %v15490_v41, %v2007_v9 }
 0x574   : > { %v3200_v55 = vmul.f32 %v3121_v33, %v2822_v32  ;;  %v3645_v27 = vsel %vm11873_vm8, %v3640_v4, %v3644_v23  ;;  %v3649_v22 = vor.u32 %v3648_v62, %v3644_v23  ;;  %v4244_v33 = vrot.slane %v4242_v2, 4  ;;  %v3126_v32 = vpop.permute.xlu0 %3125  ;;  %v15491_v23 = vld [vmem:[#allocation34_spill] sm:$0xff] }
 0x575   : > { %15488 = vst [vmem:[#allocation28_spill] sm:$0xff] %v12477_v56  ;;  %8793 = vmatmul.msk.bf16.gmra.mxu2 %vm3737_vm9, %v12479_v1  ;;  %v2648_v50 = vpop.f32.mrf.mxu0  ;;  %v2477_v62 = vadd.f32 %v15491_v23, %v2242_v6  ;;  %v3695_v41 = vunpack.c.l.b16 %v3645_v27 }
 0x576   : > { %v3254_v46 = vpack.c.bf16 %v3200_v55, %v3200_v55  ;;  %v2711_v39 = vadd.f32 %v2648_v50, %v15489_v53  ;;  %v3650_v4 = vrot.slane %v3649_v22, 4  ;;  %v4286_v55 = vunpack.c.l.b16 %v4243_v0  ;;  %v12499_v56 = vpop.f32.mrf.mxu1 }
 0x577   : > { %15494 = vst [vmem:[#allocation30_spill] sm:$0xff] %v12499_v56 }
 0x578   : > { %v3652_v36 = vshll.u32 %v3254_v46, 16  ;;  %v4245_v47 = vrot.slane %v3254_v46, 5  ;;  %v2769_v5 = vadd.f32 %v12470_v49, %v2711_v39  ;;  %9000 = vmatmul.msk.bf16.gmra.mxu0 %vm3737_vm9, %v12096_v24 }
 0x57a   : > { %v3654_v14 = vrot.slane %v3652_v36, 5  ;;  %v2823_v58 = vmax.f32 %v2769_v5, 0.0  ;;  %v4246_v34 = vsel %vm11865_vm7, %v4244_v33, %v4245_v47  ;;  %v12497_v36 = vpop.f32.mrf.mxu2 }
 0x57b   : > { %v4287_v50 = vunpack.c.l.b16 %v4246_v34  ;;  %15493 = vst [vmem:[#allocation26_spill] sm:$0xff] %v12497_v36 }
 0x57c   : > { %v3201_v9 = vmul.f32 %v3126_v32, %v2823_v58  ;;  %v3655_v46 = vsel %vm11873_vm8, %v3650_v4, %v3654_v14  ;;  %v12508_v58 = vpop.f32.mrf.mxu3  ;;  %v15496_v4 = vld [vmem:[#allocation41_spill] sm:$0xff]  ;;  %v15497_v32 = vld [vmem:[#allocation48_spill] sm:$0xff] }
 0x57d   : > { %v2650_v53 = vpop.f32.mrf.mxu0  ;;  %v12495_v39 = vpack.c.b16 %v4287_v50, %v4286_v55  ;;  %v3696_v2 = vunpack.c.l.b16 %v3655_v46  ;;  %15495 = vst [vmem:[#allocation37_spill] sm:$0xff] %v12508_v58  ;;  %v2009_v55 = vadd.f32 %v15497_v32, %v15496_v4  ;;  %v3131_v50 = vpop.permute.xlu1 %3130 }
 0x57e   : > { %v3255_v5 = vpack.c.bf16 %v3201_v9, %v3201_v9  ;;  %v2712_v22 = vadd.f32 %v2650_v53, %v2477_v62 }
 0x57f   : > { %15492 = vst [vmem:[#allocation27_spill] sm:$0xff] %v12495_v39  ;;  %8849 = vmatmul.msk.bf16.gmra.mxu3 %vm3737_vm9, %v12495_v39  ;;  %v12503_v0 = vpack.c.b16 %v3696_v2, %v3695_v41  ;;  %v15498_v41 = vld [vmem:[#allocation43_spill] sm:$0xff] }
 0x580   : > { %v4660_v6 = vshrl.u32 %v3255_v5, 16  ;;  %v4663_v47 = vshll.u32 %v3255_v5, 16  ;;  %v2770_v33 = vadd.f32 %v12470_v49, %v2712_v22  ;;  %v4508_v58 = vunpack.c.l.b16 %v3255_v5 }
 0x581   : > { %8761 = vmatmul.msk.bf16.gmra.mxu1 %vm3737_vm9, %v12503_v0 }
 0x582   : > { %v4662_v27 = vrot.slane %v4660_v6, 4  ;;  %v4665_v14 = vrot.slane %v4663_v47, 5  ;;  %v2824_v34 = vmax.f32 %v2770_v33, 0.0  ;;  %v4086_v53 = vpop.f32.mrf.mxu2  ;;  %v15499_v6 = vld [vmem:[#allocation45_spill] sm:$0xff] }
 0x583   : > { %v2244_v47 = vadd.f32 %v15499_v6, %v2009_v55  ;;  %v3136_v55 = vpop.permute.xlu2 %3135 }
 0x584   : > { %v3202_v23 = vmul.f32 %v3131_v50, %v2824_v34  ;;  %v4666_v9 = vor.u32 %v4665_v14, %v4662_v27 }
 0x585   : > { %8914 = vmatmul.msk.bf16.vlgmr.msrb.gmra.mxu2 %vm3737_vm9, %v11925_v37  ;;  %v2653_v62 = vpop.f32.mrf.mxu0  ;;  %v8930_v37 = vrot.slane %v3255_v5, 9 }
 0x586   : > { %v3256_v46 = vpack.c.bf16 %v3202_v23, %v3202_v23  ;;  %v2713_v2 = vadd.f32 %v2653_v62, %v15498_v41  ;;  %v3845_v22 = vpop.f32.mrf.mxu1  ;;  %v4667_v32 = vrot.slane %v4666_v9, 4 }
 0x587   : > { %v4087_v36 = vadd.f32 %v4086_v53, %v3845_v22  ;;  %v15501_v22 = vld [vmem:[#allocation47_spill] sm:$0xff] }
 0x588   : > { %v4673_v33 = vshrl.u32 %v3256_v46, 16  ;;  %v2771_v56 = vadd.f32 %v12470_v49, %v2713_v2  ;;  %9001 = vmatmul.msk.bf16.gmra.mxu0 %vm3737_vm9, %v12135_v44  ;;  %v4509_v34 = vunpack.c.l.b16 %v3256_v46  ;;  %v4669_v4 = vshll.u32 %v3256_v46, 16 }
 0x589   : > { %v4846_v27 = vrot.slane %v3256_v46, 5  ;;  %v2479_v6 = vadd.f32 %v15501_v22, %v2244_v47  ;;  %v15504_v22 = vld [vmem:[#allocation19_spill] sm:$0xff] }
 0x58a   : > { %v4675_v14 = vrot.slane %v4673_v33, 4  ;;  %v2825_v50 = vmax.f32 %v2771_v56, 0.0  ;;  %v4435_v23 = vpop.f32.mrf.mxu3  ;;  %v12519_v62 = vpack.c.b16 %v4509_v34, %v4508_v58  ;;  %v4671_v41 = vrot.slane %v4669_v4, 5 }
 0x58b   : > { %v12521_v53 = vadd.f32 %v4435_v23, %v4087_v36  ;;  %v4847_v2 = vsel %vm11865_vm7, %v8930_v37, %v4846_v27  ;;  %v4848_v4 = vrot.slane %v4846_v27, 4  ;;  %v15502_v23 = vld [vmem:[#allocation50_spill] sm:$0xff]  ;;  %v15505_v27 = vld [vmem:[#allocation3_spill] sm:$0xff] }
 0x58c   : > { %v3203_v39 = vmul.f32 %v3136_v55, %v2825_v50  ;;  %v4672_v5 = vsel %vm11873_vm8, %v4667_v32, %v4671_v41  ;;  %v4676_v56 = vor.u32 %v4675_v14, %v4671_v41  ;;  %v4860_v55 = vunpack.c.l.b16 %v4847_v2  ;;  %v15503_v41 = vld [vmem:[#allocation46_spill] sm:$0xff] }
 0x58d   : > { %15500 = vst [vmem:[#allocation33_spill] sm:$0xff] %v12521_v53  ;;  %v2655_v9 = vpop.f32.mrf.mxu0 }
 0x58e   : > { %v3257_v46 = vpack.c.bf16 %v3203_v39, %v3203_v39  ;;  %v2714_v33 = vadd.f32 %v2655_v9, %v2479_v6  ;;  %v4677_v50 = vrot.slane %v4676_v56, 4  ;;  %v3141_v39 = vpop.permute.xlu0 %3140  ;;  %v12545_v2 = vpop.f32.mrf.mxu1 }
 0x58f   : > { %8955 = vmatmul.msk.bf16.vlgmr.msra.gmra.mxu3 %vm3737_vm9, %v11920_v10  ;;  %v2011_v10 = vadd.f32 %v15504_v22, %v15503_v41  ;;  %15508 = vst [vmem:[#allocation39_spill] sm:$0xff] %v12545_v2 }
 0x590   : > { %v4679_v58 = vshll.u32 %v3257_v46, 16  ;;  %v4849_v34 = vrot.slane %v3257_v46, 5  ;;  %v2772_v36 = vadd.f32 %v12470_v49, %v2714_v33  ;;  %v4692_v33 = vunpack.c.l.b16 %v4672_v5 }
 0x591   : > { %8874 = vmatmul.msk.bf16.vlgmr.msra.gmra.mxu1 %vm3737_vm9, %v15502_v23 }
 0x592   : > { %v4681_v47 = vrot.slane %v4679_v58, 5  ;;  %v2826_v37 = vmax.f32 %v2772_v36, 0.0  ;;  %v4850_v32 = vsel %vm11865_vm7, %v4848_v4, %v4849_v34  ;;  %v12543_v36 = vpop.f32.mrf.mxu2  ;;  %v15509_v4 = vld [vmem:[#allocation49_spill] sm:$0xff] }
 0x593   : > { %v4861_v14 = vunpack.c.l.b16 %v4850_v32  ;;  %15507 = vst [vmem:[#allocation32_spill] sm:$0xff] %v12543_v36 }
 0x594   : > { %v3204_v6 = vmul.f32 %v3141_v39, %v2826_v37  ;;  %v4682_v9 = vsel %vm11873_vm8, %v4677_v50, %v4681_v47  ;;  %v15510_v37 = vld [vmem:[#allocation6_spill] sm:$0xff] }
 0x595   : > { %8915 = vmatmul.msk.bf16.gmra.mxu2 %vm3737_vm9, %v15505_v27  ;;  %v2658_v46 = vpop.f32.mrf.mxu0  ;;  %v4693_v58 = vunpack.c.l.b16 %v4682_v9  ;;  %v12541_v56 = vpack.c.b16 %v4861_v14, %v4860_v55  ;;  %v2246_v39 = vadd.f32 %v15510_v37, %v2011_v10  ;;  %v12554_v14 = vpop.f32.mrf.mxu3  ;;  %v15512_v9 = vld [vmem:[#allocation22_spill] sm:$0xff] }
 0x596   : > { %v3258_v34 = vpack.c.bf16 %v3204_v6, %v3204_v6  ;;  %v2715_v23 = vadd.f32 %v2658_v46, %v15509_v4  ;;  %15511 = vst [vmem:[#allocation44_spill] sm:$0xff] %v12554_v14  ;;  %v3146_v6 = vpop.permute.xlu1 %3145 }
 0x597   : > { %15506 = vst [vmem:[#allocation36_spill] sm:$0xff] %v12541_v56  ;;  %v12548_v32 = vpack.c.b16 %v4693_v58, %v4692_v33  ;;  %v2481_v36 = vadd.f32 %v15512_v9, %v2246_v39 }
 0x598   : > { %v5174_v47 = vshrl.u32 %v3258_v34, 16  ;;  %v5177_v50 = vshll.u32 %v3258_v34, 16  ;;  %v2773_v41 = vadd.f32 %v12470_v49, %v2715_v23  ;;  %9002 = vmatmul.msk.bf16.gmra.mxu0 %vm3737_vm9, %v12177_v28  ;;  %v15513_v23 = vld [vmem:[#allocation2_spill] sm:$0xff]  ;;  %v9051_v27 = vrot.slane %v3258_v34, 9 }
 0x599   : > { %v5022_v39 = vunpack.c.l.b16 %v3258_v34 }
 0x59a   : > { %v5176_v5 = vrot.slane %v5174_v47, 4  ;;  %v5179_v55 = vrot.slane %v5177_v50, 5  ;;  %v2827_v22 = vmax.f32 %v2773_v41, 0.0  ;;  %v4091_v10 = vpop.f32.mrf.mxu2 }
 0x59c   : > { %v3205_v46 = vmul.f32 %v3146_v6, %v2827_v22  ;;  %v5180_v58 = vor.u32 %v5179_v55, %v5176_v5 }
 0x59d   : > { %v2660_v33 = vpop.f32.mrf.mxu0 }
 0x59e   : > { %v3259_v4 = vpack.c.bf16 %v3205_v46, %v3205_v46  ;;  %v2716_v37 = vadd.f32 %v2660_v33, %v2481_v36  ;;  %v3850_v2 = vpop.f32.mrf.mxu1  ;;  %v5181_v5 = vrot.slane %v5180_v58, 4  ;;  %v3151_v46 = vpop.permute.xlu2 %3150 }
 0x59f   : > { %v4092_v53 = vadd.f32 %v4091_v10, %v3850_v2  ;;  %8956 = vmatmul.msk.bf16.gmra.mxu3 %vm3737_vm9, %v15513_v23 }
 0x5a0   : > { %v5183_v47 = vshll.u32 %v3259_v4, 16  ;;  %v5187_v50 = vshrl.u32 %v3259_v4, 16  ;;  %v5360_v56 = vrot.slane %v3259_v4, 5  ;;  %v2774_v41 = vadd.f32 %v12470_v49, %v2716_v37 }
 0x5a1   : > { %8875 = vmatmul.msk.bf16.gmra.mxu1 %vm3737_vm9, %v11934_v8  ;;  %v5023_v22 = vunpack.c.l.b16 %v3259_v4  ;;  %v15514_v8 = vld [vmem:[#allocation16_spill] sm:$0xff] }
 0x5a2   : > { %v5185_v55 = vrot.slane %v5183_v47, 5  ;;  %v5189_v6 = vrot.slane %v5187_v50, 4  ;;  %v2828_v36 = vmax.f32 %v2774_v41, 0.0  ;;  %v4440_v9 = vpop.f32.mrf.mxu3  ;;  %v5361_v2 = vsel %vm11865_vm7, %v9051_v27, %v5360_v56 }
 0x5a3   : > { %v12564_v33 = vadd.f32 %v4440_v9, %v4092_v53  ;;  %v12566_v10 = vpack.c.b16 %v5023_v22, %v5022_v39  ;;  %v5362_v27 = vrot.slane %v5360_v56, 4  ;;  %v5374_v41 = vunpack.c.l.b16 %v5361_v2  ;;  %v15518_v56 = vld [vmem:[#allocation11_spill] sm:$0xff]  ;;  %v15519_v9 = vld [vmem:[#allocation5_spill] sm:$0xff] }
 0x5a4   : > { %v3206_v14 = vmul.f32 %v3151_v46, %v2828_v36  ;;  %v5186_v49 = vsel %vm11873_vm8, %v5181_v5, %v5185_v55  ;;  %v5190_v58 = vor.u32 %v5189_v6, %v5185_v55  ;;  %v12584_v6 = vpop.f32.mrf.mxu2 }
 0x5a5   : > { %8916 = vmatmul.msk.bf16.gmra.mxu2 %vm3737_vm9, %v15514_v8 }
 0x5a6   : > { %v3260_v34 = vpack.c.bf16 %v3206_v14, %v3206_v14  ;;  %v5191_v50 = vrot.slane %v5190_v58, 4  ;;  %v12580_v14 = vunpack.c.l.b16 %v5186_v49  ;;  %v12586_v36 = vpop.f32.mrf.mxu1 }
 0x5a8   : > { %v5193_v4 = vshll.u32 %v3260_v34, 16  ;;  %v5363_v37 = vrot.slane %v3260_v34, 5  ;;  %9003 = vmatmul.msk.bf16.gmra.mxu0 %vm3737_vm9, %v12218_v18  ;;  %15516 = vst [vmem:[#allocation34_spill] sm:$0xff] %v12580_v14 }
 0x5aa   : > { %v5195_v47 = vrot.slane %v5193_v4, 5  ;;  %v5364_v53 = vsel %vm11865_vm7, %v5362_v27, %v5363_v37  ;;  %v12594_v48 = vpop.f32.mrf.mxu3  ;;  %v15520_v4 = vld [vmem:[#allocation4_spill] sm:$0xff]  ;;  %vm15251_vm7 = vcmask 564224  }
 0x5ab   : > { %v5375_v39 = vunpack.c.l.b16 %v5364_v53 }
 0x5ac   : > { %v5196_v22 = vsel %vm11873_vm8, %v5191_v50, %v5195_v47  ;;  %vm15241_vm8 = vcmask 556032  }
 0x5ad   : > { %v12578_v5 = vpack.c.b16 %v5375_v39, %v5374_v41  ;;  %v12582_v55 = vunpack.c.l.b16 %v5196_v22  ;;  %v15522_v39 = vld [vmem:[#allocation14_spill] sm:$0xff]  ;;  %v12618_v22 = vpop.f32.mrf.mxu0 }
 0x5ae   : > { %15523 = vst [vmem:[#allocation48_spill] sm:$0xff] %v12618_v22 }
 0x5af   : > { %15515 = vst [vmem:[#allocation42_spill] sm:$0xff] %v12578_v5  ;;  %8957 = vmatmul.msk.bf16.gmra.mxu3 %vm3737_vm9, %v15518_v56  ;;  %v4096_v2 = vpop.f32.mrf.mxu2 }
 0x5b0   : > { %15517 = vst [vmem:[#allocation41_spill] sm:$0xff] %v12582_v55 }
 0x5b1   : > { %8876 = vmatmul.msk.bf16.gmra.mxu1 %vm3737_vm9, %v11964_v43  ;;  %v15521_v43 = vld [vmem:[#allocation7_spill] sm:$0xff] }
 0x5b5   : > { %8917 = vmatmul.msk.bf16.gmra.mxu2 %vm3737_vm9, %v15519_v9 }
 0x5b6   : > { %v3855_v46 = vpop.f32.mrf.mxu1 }
 0x5b7   : > { %v4097_v49 = vadd.f32 %v4096_v2, %v3855_v46  ;;  %v12608_v37 = vpop.f32.mrf.mxu2  ;;  %v15524_v46 = vld [vmem:[#allocation10_spill] sm:$0xff] }
 0x5b8   : > { %9004 = vmatmul.msk.bf16.gmra.mxu0 %vm3737_vm9, %v12278_v21 }
 0x5ba   : > { %v4445_v34 = vpop.f32.mrf.mxu3 }
 0x5bb   : > { %v12600_v58 = vadd.f32 %v4445_v34, %v4097_v49  ;;  %v12628_v49 = vpop.f32.mrf.mxu0 }
 0x5bc   : > { %15525 = vst [vmem:[#allocation43_spill] sm:$0xff] %v12628_v49 }
 0x5be   : > { %v12610_v27 = vpop.f32.mrf.mxu1 }
 0x5bf   : > { %8958 = vmatmul.msk.bf16.gmra.mxu3 %vm3737_vm9, %v15520_v4 }
 0x5c1   : > { %8877 = vmatmul.msk.bf16.gmra.mxu1 %vm3737_vm9, %v11992_v63 }
 0x5c2   : > { %v12614_v47 = vpop.f32.mrf.mxu3 }
 0x5c5   : > { %8918 = vmatmul.msk.bf16.gmra.mxu2 %vm3737_vm9, %v15521_v43 }
 0x5c8   : > { %9005 = vmatmul.msk.bf16.gmra.mxu0 %vm3737_vm9, %v12316_v3  ;;  %v4101_v53 = vpop.f32.mrf.mxu2 }
 0x5ce   : > { %v3860_v50 = vpop.f32.mrf.mxu1 }
 0x5cf   : > { %v4102_v41 = vadd.f32 %v4101_v53, %v3860_v50  ;;  %8959 = vmatmul.msk.bf16.gmra.mxu3 %vm3737_vm9, %v15522_v39  ;;  %v15528_v50 = vld [vmem:[#allocation9_spill] sm:$0xff] }
 0x5d0   : > { %v12630_v34 = vpop.f32.mrf.mxu2 }
 0x5d1   : > { %8878 = vmatmul.msk.bf16.gmra.mxu1 %vm3737_vm9, %v12022_v11  ;;  %15526 = vst [vmem:[#allocation45_spill] sm:$0xff] %v12630_v34  ;;  %v15533_v34 = vld [vmem:[#allocation13_spill] sm:$0xff] }
 0x5d2   : > { %v4450_v63 = vpop.f32.mrf.mxu3 }
 0x5d3   : > { %v12622_v2 = vadd.f32 %v4450_v63, %v4102_v41  ;;  %v12640_v41 = vpop.f32.mrf.mxu0  ;;  %v15531_v63 = vld [vmem:[#allocation15_spill] sm:$0xff] }
 0x5d4   : > { %15530 = vst [vmem:[#allocation46_spill] sm:$0xff] %v12640_v41 }
 0x5d5   : > { %8919 = vmatmul.msk.bf16.gmra.mxu2 %vm3737_vm9, %v15524_v46 }
 0x5d6   : > { %v12632_v53 = vpop.f32.mrf.mxu1 }
 0x5d7   : > { %15527 = vst [vmem:[#allocation47_spill] sm:$0xff] %v12632_v53 }
 0x5d8   : > { %9006 = vmatmul.msk.bf16.gmra.mxu0 %vm3737_vm9, %v12361_v31 }
 0x5da   : > { %v12638_v11 = vpop.f32.mrf.mxu3 }
 0x5db   : > { %15529 = vst [vmem:[#allocation50_spill] sm:$0xff] %v12638_v11 }
 0x5df   : > { %8960 = vmatmul.msk.bf16.gmra.mxu3 %vm3737_vm9, %v15528_v50  ;;  %v4106_v13 = vpop.f32.mrf.mxu2 }
 0x5e1   : > { %8879 = vmatmul.msk.bf16.gmra.mxu1 %vm3737_vm9, %v12056_v29  ;;  %v12650_v29 = vpop.f32.mrf.mxu0 }
 0x5e2   : > { %15534 = vst [vmem:[#allocation49_spill] sm:$0xff] %v12650_v29  ;;  %v15537_v29 = vld [vmem:[#allocation57_spill] sm:$0xff] }
 0x5e5   : > { %8920 = vmatmul.msk.bf16.gmra.mxu2 %vm3737_vm9, %v15531_v63 }
 0x5e6   : > { %v3865_v14 = vpop.f32.mrf.mxu1 }
 0x5e7   : > { %v4107_v55 = vadd.f32 %v4106_v13, %v3865_v14  ;;  %v4108_v11 = vpop.f32.mrf.mxu2 }
 0x5e8   : > { %9007 = vmatmul.msk.bf16.gmra.mxu0 %vm3737_vm9, %v12405_v17 }
 0x5ea   : > { %v4455_v5 = vpop.f32.mrf.mxu3 }
 0x5eb   : > { %v12646_v49 = vadd.f32 %v4455_v5, %v4107_v55  ;;  %v12660_v5 = vpop.f32.mrf.mxu0 }
 0x5ec   : > { %15536 = vst [vmem:[#allocation22_spill] sm:$0xff] %v12660_v5 }
 0x5ed   : > { %15532 = vst [vmem:[#allocation19_spill] sm:$0xff] %v12646_v49  ;;  %v15544_v49 = vld [vmem:[#allocation51_spill] sm:$0xff] }
 0x5ee   : > { %v3867_v22 = vpop.f32.mrf.mxu1 }
 0x5ef   : > { %8961 = vmatmul.msk.bf16.gmra.mxu3 %vm3737_vm9, %v15533_v34  ;;  %v4109_v41 = vadd.f32 %v4108_v11, %v3867_v22  ;;  %v9720_v11 = vld [vmem:[%s15170_s4 + $0x118] sm:$0xff] }
 0x5f0   : > { %5408 = vmatpush.bf16.msra.mxu2 %v9720_v11 }
 0x5f1   : > { %8880 = vmatmul.msk.bf16.gmra.mxu1 %vm3737_vm9, %v12096_v24 }
 0x5f2   : > { %v4457_v53 = vpop.f32.mrf.mxu3 }
 0x5f3   : > { %v12654_v63 = vadd.f32 %v4457_v53, %v4109_v41  ;;  %v12671_v41 = vpop.f32.mrf.mxu0 }
 0x5f4   : > { %15539 = vst [vmem:[#allocation16_spill] sm:$0xff] %v12671_v41 }
 0x5f5   : > { %15535 = vst [vmem:[#allocation6_spill] sm:$0xff] %v12654_v63  ;;  %8921 = vmatmul.msk.bf16.gmra.mxu2 %vm3737_vm9, %v12160_v38  ;;  %v15542_v63 = vld [vmem:[#allocation8_spill] sm:$0xff] }
 0x5f6   : > { %v15543_v38 = vld [vmem:[#allocation52_spill] sm:$0xff] }
 0x5f8   : > { %v4111_v14 = vpop.f32.mrf.mxu2  ;;  %9008 = vmatmul.msk.bf16.gmra.mxu0 %vm3737_vm9, %v12479_v1 }
 0x5fe   : > { %v3870_v55 = vpop.f32.mrf.mxu1 }
 0x5ff   : > { %v4112_v13 = vadd.f32 %v4111_v14, %v3870_v55  ;;  %8962 = vmatmul.msk.bf16.gmra.mxu3 %vm3737_vm9, %v15537_v29  ;;  %v4039_v29 = vadd.f32 %v15544_v49, %v15543_v38  ;;  %v15548_v49 = vld [vmem:[#allocation12_spill] sm:$0xff] }
 0x600   : > { %v4113_v22 = vpop.f32.mrf.mxu2 }
 0x601   : > { %8881 = vmatmul.msk.bf16.gmra.mxu1 %vm3737_vm9, %v12135_v44  ;;  %v9716_v44 = vld [vmem:[%s15170_s4 + $0xf8] sm:$0xff] }
 0x602   : > { %v4460_v24 = vpop.f32.mrf.mxu3  ;;  %5240 = vmatpush.bf16.msra.mxu1 %v9716_v44 }
 0x603   : > { %v12666_v53 = vadd.f32 %v4460_v24, %v4112_v13 }
 0x605   : > { %15538 = vst [vmem:[#allocation2_spill] sm:$0xff] %v12666_v53  ;;  %8922 = vmatmul.msk.bf16.gmra.mxu2 %vm3737_vm9, %v12201_v12  ;;  %v12682_v53 = vpop.f32.mrf.mxu0 }
 0x606   : > { %v3872_v14 = vpop.f32.mrf.mxu1  ;;  %15541 = vst [vmem:[#allocation5_spill] sm:$0xff] %v12682_v53 }
 0x607   : > { %v4114_v55 = vadd.f32 %v4113_v22, %v3872_v14 }
 0x608   : > { %v4731_v5 = vpop.f32.mrf.mxu2  ;;  %9009 = vmatmul.msk.bf16.gmra.mxu0 %vm3737_vm9, %v12519_v62 }
 0x60a   : > { %v4462_v13 = vpop.f32.mrf.mxu3 }
 0x60b   : > { %v12680_v24 = vadd.f32 %v4462_v13, %v4114_v55  ;;  %v15545_v55 = vld [vmem:[#allocation53_spill] sm:$0xff] }
 0x60c   : > { %v4466_v13 = vadd.f32 %v15545_v55, %v4039_v29 }
 0x60d   : > { %15540 = vst [vmem:[#allocation11_spill] sm:$0xff] %v12680_v24  ;;  %v12696_v53 = vpop.f32.mrf.mxu0 }
 0x60e   : > { %v4547_v41 = vpop.f32.mrf.mxu1  ;;  %15546 = vst [vmem:[#allocation4_spill] sm:$0xff] %v12696_v53 }
 0x60f   : > { %v4627_v12 = vadd.f32 %v4547_v41, %v15542_v63  ;;  %8963 = vmatmul.msk.bf16.gmra.mxu3 %vm3737_vm9, %v12193_v52 }
 0x610   : > { %v4733_v22 = vpop.f32.mrf.mxu2 }
 0x611   : > { %8882 = vmatmul.msk.bf16.gmra.mxu1 %vm3737_vm9, %v12177_v28  ;;  %v4811_v11 = vadd.f32 %v4731_v5, %v4627_v12 }
 0x612   : > { %v4899_v14 = vpop.f32.mrf.mxu3 }
 0x613   : > { %v12691_v44 = vadd.f32 %v4899_v14, %v4811_v11 }
 0x615   : > { %8923 = vmatmul.msk.bf16.gmra.mxu2 %vm3737_vm9, %v12255_v61 }
 0x616   : > { %v4549_v63 = vpop.f32.mrf.mxu1 }
 0x617   : > { %v4628_v41 = vadd.f32 %v4549_v63, %v4466_v13  ;;  %v15549_v13 = vld [vmem:[#allocation55_spill] sm:$0xff]  ;;  %v15550_v63 = vld [vmem:[#allocation54_spill] sm:$0xff] }
 0x618   : > { %v4736_v24 = vpop.f32.mrf.mxu2  ;;  %9010 = vmatmul.msk.bf16.gmra.mxu0 %vm3737_vm9, %v12566_v10  ;;  %v4044_v53 = vadd.f32 %v15550_v63, %v15549_v13  ;;  %v15554_v13 = vld [vmem:[#allocation59_spill] sm:$0xff]  ;;  %v15555_v63 = vld [vmem:[#allocation58_spill] sm:$0xff] }
 0x619   : > { %v4812_v28 = vadd.f32 %v4733_v22, %v4628_v41  ;;  %v15551_v22 = vld [vmem:[#allocation56_spill] sm:$0xff] }
 0x61a   : > { %v4901_v12 = vpop.f32.mrf.mxu3  ;;  %v4468_v41 = vadd.f32 %v15551_v22, %v4044_v53  ;;  %v4049_v22 = vadd.f32 %v15555_v63, %v15554_v13  ;;  %v4054_v13 = vadd.f32 %v12195_v30, %v12197_v7 }
 0x61b   : > { %v12700_v5 = vadd.f32 %v4901_v12, %v4812_v28 }
 0x61d   : > { %15547 = vst [vmem:[#allocation7_spill] sm:$0xff] %v12700_v5 }
 0x61e   : > { %v4552_v38 = vpop.f32.mrf.mxu1 }
 0x61f   : > { %v4629_v11 = vadd.f32 %v4552_v38, %v15548_v49  ;;  %8964 = vmatmul.msk.bf16.gmra.mxu3 %vm3737_vm9, %v12242_v35 }
 0x620   : > { %v4738_v29 = vpop.f32.mrf.mxu2 }
 0x621   : > { %8883 = vmatmul.msk.bf16.gmra.mxu1 %vm3737_vm9, %v12218_v18  ;;  %v4813_v14 = vadd.f32 %v4736_v24, %v4629_v11  ;;  %v15553_v24 = vld [vmem:[#allocation17_spill] sm:$0xff] }
 0x622   : > { %v4904_v55 = vpop.f32.mrf.mxu3 }
 0x623   : > { %v12709_v10 = vadd.f32 %v4904_v55, %v4813_v14 }
 0x625   : > { %8924 = vmatmul.msk.bf16.gmra.mxu2 %vm3737_vm9, %v12302_v25 }
 0x626   : > { %v4554_v28 = vpop.f32.mrf.mxu1 }
 0x627   : > { %v4630_v12 = vadd.f32 %v4554_v28, %v4468_v41 }
 0x628   : > { %v4741_v38 = vpop.f32.mrf.mxu2 }
 0x629   : > { %v4814_v49 = vadd.f32 %v4738_v29, %v4630_v12  ;;  %v15556_v29 = vld [vmem:[#allocation61_spill] sm:$0xff] }
 0x62a   : > { %v4906_v5 = vpop.f32.mrf.mxu3 }
 0x62b   : > { %v12714_v61 = vadd.f32 %v4906_v5, %v4814_v49  ;;  %v4470_v5 = vadd.f32 %v15556_v29, %v4049_v22 }
 0x62d   : > { %15552 = vst [vmem:[#allocation14_spill] sm:$0xff] %v12714_v61 }
 0x62e   : > { %v4557_v18 = vpop.f32.mrf.mxu1 }
 0x62f   : > { %v4631_v11 = vadd.f32 %v4557_v18, %v15553_v24  ;;  %8965 = vmatmul.msk.bf16.gmra.mxu3 %vm3737_vm9, %v12294_v16 }
 0x630   : > { %v4743_v14 = vpop.f32.mrf.mxu2 }
 0x631   : > { %8884 = vmatmul.msk.bf16.gmra.mxu1 %vm3737_vm9, %v12278_v21  ;;  %v4815_v53 = vadd.f32 %v4741_v38, %v4631_v11 }
 0x632   : > { %v4909_v55 = vpop.f32.mrf.mxu3 }
 0x633   : > { %v12723_v41 = vadd.f32 %v4909_v55, %v4815_v53 }
 0x635   : > { %8925 = vmatmul.msk.bf16.gmra.mxu2 %vm3737_vm9, %v12343_v19 }
 0x636   : > { %v4559_v28 = vpop.f32.mrf.mxu1 }
 0x637   : > { %v4632_v12 = vadd.f32 %v4559_v28, %v4470_v5  ;;  %v9715_v5 = vld [vmem:[%s15170_s4 + $0xf0] sm:$0xff] }
 0x638   : > { %v4746_v49 = vpop.f32.mrf.mxu2  ;;  %5241 = vmatpush.bf16.msra.mxu1 %v9715_v5  ;;  %v15558_v5 = vld [vmem:[#allocation65_spill] sm:$0xff] }
 0x639   : > { %v4816_v18 = vadd.f32 %v4743_v14, %v4632_v12  ;;  %v9719_v14 = vld [vmem:[%s15170_s4 + $0x110] sm:$0xff] }
 0x63a   : > { %v4911_v24 = vpop.f32.mrf.mxu3  ;;  %5409 = vmatpush.bf16.msra.mxu2 %v9719_v14 }
 0x63b   : > { %v12728_v61 = vadd.f32 %v4911_v24, %v4816_v18 }
 0x63e   : > { %v4562_v21 = vpop.f32.mrf.mxu1 }
 0x63f   : > { %v4633_v38 = vadd.f32 %v4562_v21, %v12175_v60  ;;  %8966 = vmatmul.msk.bf16.gmra.mxu3 %vm3737_vm9, %v12334_v15  ;;  %v4472_v60 = vadd.f32 %v12208_v45, %v4054_v13  ;;  %v4059_v21 = vadd.f32 %v12248_v57, %v12250_v26  ;;  %v15557_v26 = vld [vmem:[#allocation23_spill] sm:$0xff] }
 0x640   : > { %v4748_v11 = vpop.f32.mrf.mxu2 }
 0x641   : > { %8885 = vmatmul.msk.bf16.gmra.mxu1 %vm3737_vm9, %v12316_v3  ;;  %v4817_v53 = vadd.f32 %v4746_v49, %v4633_v38 }
 0x642   : > { %v4914_v55 = vpop.f32.mrf.mxu3 }
 0x643   : > { %v12737_v63 = vadd.f32 %v4914_v55, %v4817_v53  ;;  %v4474_v53 = vadd.f32 %v12262_v40, %v4059_v21 }
 0x645   : > { %8926 = vmatmul.msk.bf16.gmra.mxu2 %vm3737_vm9, %v12388_v51 }
 0x646   : > { %v4564_v22 = vpop.f32.mrf.mxu1 }
 0x647   : > { %v4634_v29 = vadd.f32 %v4564_v22, %v4472_v60 }
 0x648   : > { %v4751_v3 = vpop.f32.mrf.mxu2 }
 0x649   : > { %v4818_v30 = vadd.f32 %v4748_v11, %v4634_v29  ;;  %v5081_v11 = vpop.f32.mrf.mxu0 }
 0x64a   : > { %v4916_v7 = vpop.f32.mrf.mxu3 }
 0x64b   : > { %v12748_v28 = vadd.f32 %v4916_v7, %v4818_v30  ;;  %v15559_v30 = vld [vmem:[#allocation64_spill] sm:$0xff] }
 0x64c   : > { %v4064_v7 = vadd.f32 %v15559_v30, %v15558_v5 }
 0x64e   : > { %v4567_v12 = vpop.f32.mrf.mxu1 }
 0x64f   : > { %v4635_v49 = vadd.f32 %v4567_v12, %v12222_v20  ;;  %8967 = vmatmul.msk.bf16.gmra.mxu3 %vm3737_vm9, %v12380_v59  ;;  %v15560_v12 = vld [vmem:[#allocation66_spill] sm:$0xff] }
 0x650   : > { %v4753_v45 = vpop.f32.mrf.mxu2 }
 0x651   : > { %v4819_v18 = vadd.f32 %v4751_v3, %v4635_v49  ;;  %8886 = vmatmul.msk.bf16.gmra.mxu1 %vm3737_vm9, %v12361_v31  ;;  %v9718_v31 = vld [vmem:[%s15170_s4 + $0x108] sm:$0xff]  ;;  %v9717_v3 = vld [vmem:[%s15170_s4 + $0x100] sm:$0xff] }
 0x652   : > { %v4919_v24 = vpop.f32.mrf.mxu3  ;;  %5410 = vmatpush.bf16.msra.mxu2 %v9718_v31  ;;  %v15563_v31 = vld [vmem:[#allocation20_spill] sm:$0xff] }
 0x653   : > { %v4987_v38 = vadd.f32 %v4919_v24, %v4819_v18 }
 0x655   : > { %8927 = vmatmul.msk.bf16.gmra.mxu2 %vm3737_vm9, %v12444_v42  ;;  %v12760_v20 = vadd.f32 %v5081_v11, %v4987_v38  ;;  %v9713_v38 = vld [vmem:[%s15170_s4 + $0xe0] sm:$0xff]  ;;  %v15561_v11 = vld [vmem:[#allocation67_spill] sm:$0xff] }
 0x656   : > { %v4569_v55 = vpop.f32.mrf.mxu1  ;;  %5411 = vmatpush.bf16.msra.mxu2 %v9717_v3 }
 0x657   : > { %v4636_v13 = vadd.f32 %v4569_v55, %v4474_v53  ;;  %v15562_v55 = vld [vmem:[#allocation27_spill] sm:$0xff] }
 0x658   : > { %v4756_v14 = vpop.f32.mrf.mxu2 }
 0x659   : > { %v12762_v60 = vadd.f32 %v4753_v45, %v4636_v13 }
 0x65e   : > { %v4572_v22 = vpop.f32.mrf.mxu1 }
 0x65f   : > { %v4637_v57 = vadd.f32 %v4572_v22, %v12276_v54  ;;  %8968 = vmatmul.msk.bf16.gmra.mxu3 %vm3737_vm9, %v15557_v26  ;;  %v4476_v54 = vadd.f32 %v15560_v12, %v4064_v7  ;;  %v15564_v22 = vld [vmem:[#allocation18_spill] sm:$0xff] }
 0x660   : > { %v4758_v40 = vpop.f32.mrf.mxu2 }
 0x661   : > { %v12770_v29 = vadd.f32 %v4756_v14, %v4637_v57  ;;  %8887 = vmatmul.msk.bf16.gmra.mxu1 %vm3737_vm9, %v12405_v17  ;;  %v9714_v17 = vld [vmem:[%s15170_s4 + $0xe8] sm:$0xff]  ;;  %v4069_v57 = vadd.f32 %v15564_v22, %v15563_v31 }
 0x662   : > { %5242 = vmatpush.bf16.msra.mxu1 %v9714_v17 }
 0x665   : > { %8928 = vmatmul.msk.bf16.gmra.mxu2 %vm3737_vm9, %v12503_v0 }
 0x666   : > { %v4574_v49 = vpop.f32.mrf.mxu1  ;;  %5243 = vmatpush.bf16.msra.mxu1 %v9713_v38  ;;  %v15569_v38 = vld [vmem:[#allocation31_spill] sm:$0xff] }
 0x667   : > { %v4638_v45 = vadd.f32 %v4574_v49, %v4476_v54  ;;  %v15566_v49 = vld [vmem:[#allocation21_spill] sm:$0xff] }
 0x668   : > { %v4761_v18 = vpop.f32.mrf.mxu2 }
 0x669   : > { %v12782_v24 = vadd.f32 %v4758_v40, %v4638_v45  ;;  %v15565_v40 = vld [vmem:[#allocation68_spill] sm:$0xff] }
 0x66a   : > { %v4478_v3 = vadd.f32 %v15565_v40, %v4069_v57 }
 0x66e   : > { %v4577_v21 = vpop.f32.mrf.mxu1 }
 0x66f   : > { %v4639_v53 = vadd.f32 %v4577_v21, %v15561_v11  ;;  %8969 = vmatmul.msk.bf16.gmra.mxu3 %vm3737_vm9, %v15562_v55  ;;  %v15568_v21 = vld [vmem:[#allocation25_spill] sm:$0xff] }
 0x670   : > { %v4763_v13 = vpop.f32.mrf.mxu2  ;;  %v4074_v11 = vadd.f32 %v15569_v38, %v15568_v21  ;;  %v15575_v38 = vld [vmem:[#allocation40_spill] sm:$0xff] }
 0x671   : > { %v12793_v14 = vadd.f32 %v4761_v18, %v4639_v53  ;;  %8888 = vmatmul.msk.bf16.gmra.mxu1 %vm3737_vm9, %v12479_v1  ;;  %v15567_v18 = vld [vmem:[#allocation36_spill] sm:$0xff]  ;;  %v15570_v53 = vld [vmem:[#allocation35_spill] sm:$0xff] }
 0x672   : > { %v4480_v31 = vadd.f32 %v15570_v53, %v4074_v11 }
 0x675   : > { %8929 = vmatmul.msk.bf16.gmra.mxu2 %vm3737_vm9, %v12548_v32 }
 0x676   : > { %v4579_v5 = vpop.f32.mrf.mxu1 }
 0x677   : > { %v4640_v30 = vadd.f32 %v4579_v5, %v4478_v3  ;;  %v15571_v5 = vld [vmem:[#allocation38_spill] sm:$0xff] }
 0x678   : > { %v4766_v7 = vpop.f32.mrf.mxu2 }
 0x679   : > { %v12802_v12 = vadd.f32 %v4763_v13, %v4640_v30 }
 0x67e   : > { %v4582_v54 = vpop.f32.mrf.mxu1 }
 0x67f   : > { %v4641_v45 = vadd.f32 %v4582_v54, %v15566_v49  ;;  %8970 = vmatmul.msk.bf16.gmra.mxu3 %vm3737_vm9, %v15567_v18  ;;  %v15572_v54 = vld [vmem:[#allocation3_spill] sm:$0xff]  ;;  %v15573_v49 = vld [vmem:[#allocation29_spill] sm:$0xff] }
 0x680   : > { %v4768_v1 = vpop.f32.mrf.mxu2 }
 0x681   : > { %v12807_v17 = vadd.f32 %v4766_v7, %v4641_v45  ;;  %8889 = vmatmul.msk.bf16.gmra.mxu1 %vm3737_vm9, %v12519_v62  ;;  %v15574_v45 = vld [vmem:[#allocation24_spill] sm:$0xff] }
 0x682   : > { %v4079_v21 = vadd.f32 %v15574_v45, %v15573_v49  ;;  %v15579_v45 = vld [vmem:[#allocation37_spill] sm:$0xff] }
 0x684   : > { %v4482_v11 = vadd.f32 %v15575_v38, %v4079_v21 }
 0x685   : > { %9076 = vmatmul.msk.bf16.vlgmr.msra.gmra.mxu2 %vm3737_vm9, %v15513_v23 }
 0x686   : > { %v4584_v13 = vpop.f32.mrf.mxu1 }
 0x687   : > { %v4642_v22 = vadd.f32 %v4584_v13, %v4480_v31 }
 0x688   : > { %v4771_v57 = vpop.f32.mrf.mxu2 }
 0x689   : > { %v12816_v40 = vadd.f32 %v4768_v1, %v4642_v22  ;;  %v15576_v22 = vld [vmem:[#allocation28_spill] sm:$0xff] }
 0x68e   : > { %v4587_v3 = vpop.f32.mrf.mxu1 }
 0x68f   : > { %v4643_v30 = vadd.f32 %v4587_v3, %v15571_v5 }
 0x690   : > { %v4773_v7 = vpop.f32.mrf.mxu2 }
 0x691   : > { %9035 = vmatmul.msk.bf16.vlgmr.msra.gmra.mxu1 %vm3737_vm9, %v15572_v54  ;;  %v12821_v62 = vadd.f32 %v4771_v57, %v4643_v30  ;;  %v15577_v30 = vld [vmem:[#allocation30_spill] sm:$0xff] }
 0x692   : > { %v15578_v54 = vld [vmem:[#allocation26_spill] sm:$0xff] }
 0x693   : > { %v4084_v49 = vadd.f32 %v15578_v54, %v15577_v30  ;;  %v15583_v54 = vld [vmem:[#allocation44_spill] sm:$0xff] }
 0x695   : > { %9077 = vmatmul.msk.bf16.gmra.mxu2 %vm3737_vm9, %v15518_v56  ;;  %v4484_v21 = vadd.f32 %v15579_v45, %v4084_v49 }
 0x696   : > { %v4589_v23 = vpop.f32.mrf.mxu1 }
 0x697   : > { %v4644_v1 = vadd.f32 %v4589_v23, %v4482_v11 }
 0x698   : > { %v4776_v53 = vpop.f32.mrf.mxu2 }
 0x699   : > { %v12828_v31 = vadd.f32 %v4773_v7, %v4644_v1  ;;  %v15580_v1 = vld [vmem:[#allocation33_spill] sm:$0xff] }
 0x69e   : > { %v4592_v13 = vpop.f32.mrf.mxu1 }
 0x69f   : > { %v4645_v3 = vadd.f32 %v4592_v13, %v15576_v22 }
 0x6a0   : > { %v4778_v5 = vpop.f32.mrf.mxu2 }
 0x6a1   : > { %9036 = vmatmul.msk.bf16.gmra.mxu1 %vm3737_vm9, %v15514_v8  ;;  %v12833_v57 = vadd.f32 %v4776_v53, %v4645_v3  ;;  %v15581_v53 = vld [vmem:[#allocation39_spill] sm:$0xff]  ;;  %v15582_v3 = vld [vmem:[#allocation32_spill] sm:$0xff] }
 0x6a2   : > { %v4089_v30 = vadd.f32 %v15582_v3, %v15581_v53 }
 0x6a4   : > { %v4486_v49 = vadd.f32 %v15583_v54, %v4089_v30 }
 0x6a5   : > { %9078 = vmatmul.msk.bf16.gmra.mxu2 %vm3737_vm9, %v15520_v4 }
 0x6a6   : > { %v4594_v56 = vpop.f32.mrf.mxu1 }
 0x6a7   : > { %v4646_v7 = vadd.f32 %v4594_v56, %v4484_v21 }
 0x6a8   : > { %v4781_v38 = vpop.f32.mrf.mxu2 }
 0x6a9   : > { %v12840_v11 = vadd.f32 %v4778_v5, %v4646_v7 }
 0x6ae   : > { %v4597_v23 = vpop.f32.mrf.mxu1 }
 0x6af   : > { %v4647_v13 = vadd.f32 %v4597_v23, %v15580_v1 }
 0x6b0   : > { %v4783_v22 = vpop.f32.mrf.mxu2 }
 0x6b1   : > { %9037 = vmatmul.msk.bf16.gmra.mxu1 %vm3737_vm9, %v15519_v9  ;;  %v12845_v8 = vadd.f32 %v4781_v38, %v4647_v13  ;;  %v4094_v38 = vadd.f32 %v12584_v6, %v12586_v36  ;;  %v4099_v6 = vadd.f32 %v12608_v37, %v12610_v27  ;;  %v15585_v37 = vld [vmem:[#allocation47_spill] sm:$0xff]  ;;  %v15586_v27 = vld [vmem:[#allocation45_spill] sm:$0xff] }
 0x6b3   : > { %v4488_v1 = vadd.f32 %v12594_v48, %v4094_v38  ;;  %v4490_v36 = vadd.f32 %v12614_v47, %v4099_v6  ;;  %v4104_v47 = vadd.f32 %v15586_v27, %v15585_v37  ;;  %v15593_v27 = vld [vmem:[#allocation62_spill] sm:$0xff] }
 0x6b5   : > { %9079 = vmatmul.msk.bf16.gmra.mxu2 %vm3737_vm9, %v15522_v39 }
 0x6b6   : > { %v4599_v4 = vpop.f32.mrf.mxu1 }
 0x6b7   : > { %v4648_v5 = vadd.f32 %v4599_v4, %v4486_v49 }
 0x6b8   : > { %v4786_v45 = vpop.f32.mrf.mxu2 }
 0x6b9   : > { %v12852_v21 = vadd.f32 %v4783_v22, %v4648_v5 }
 0x6be   : > { %v4602_v56 = vpop.f32.mrf.mxu1 }
 0x6bf   : > { %v4649_v7 = vadd.f32 %v4602_v56, %v12564_v33  ;;  %v15587_v56 = vld [vmem:[#allocation50_spill] sm:$0xff] }
 0x6c0   : > { %v4788_v23 = vpop.f32.mrf.mxu2 }
 0x6c1   : > { %9038 = vmatmul.msk.bf16.gmra.mxu1 %vm3737_vm9, %v15521_v43  ;;  %v12857_v9 = vadd.f32 %v4786_v45, %v4649_v7  ;;  %v4492_v7 = vadd.f32 %v15587_v56, %v4104_v47 }
 0x6c5   : > { %9080 = vmatmul.msk.bf16.gmra.mxu2 %vm3737_vm9, %v15528_v50 }
 0x6c6   : > { %v4604_v39 = vpop.f32.mrf.mxu1 }
 0x6c7   : > { %v4650_v13 = vadd.f32 %v4604_v39, %v4488_v1 }
 0x6c8   : > { %v4791_v22 = vpop.f32.mrf.mxu2 }
 0x6c9   : > { %v12864_v53 = vadd.f32 %v4788_v23, %v4650_v13  ;;  %v15589_v13 = vld [vmem:[#allocation19_spill] sm:$0xff] }
 0x6ce   : > { %v4607_v33 = vpop.f32.mrf.mxu1 }
 0x6cf   : > { %v4651_v3 = vadd.f32 %v4607_v33, %v12600_v58 }
 0x6d0   : > { %v4793_v30 = vpop.f32.mrf.mxu2 }
 0x6d1   : > { %v12867_v43 = vadd.f32 %v4791_v22, %v4651_v3  ;;  %9039 = vmatmul.msk.bf16.gmra.mxu1 %vm3737_vm9, %v15524_v46  ;;  %v15584_v46 = vld [vmem:[#allocation15_spill] sm:$0xff] }
 0x6d5   : > { %9081 = vmatmul.msk.bf16.gmra.mxu2 %vm3737_vm9, %v15533_v34  ;;  %v15588_v34 = vld [vmem:[#allocation57_spill] sm:$0xff] }
 0x6d6   : > { %v4609_v48 = vpop.f32.mrf.mxu1 }
 0x6d7   : > { %v4652_v50 = vadd.f32 %v4609_v48, %v4490_v36  ;;  %v15591_v36 = vld [vmem:[#allocation6_spill] sm:$0xff] }
 0x6d8   : > { %v4796_v54 = vpop.f32.mrf.mxu2 }
 0x6d9   : > { %v12876_v49 = vadd.f32 %v4793_v30, %v4652_v50  ;;  %v15590_v30 = vld [vmem:[#allocation60_spill] sm:$0xff] }
 0x6de   : > { %v4612_v58 = vpop.f32.mrf.mxu1 }
 0x6df   : > { %v4653_v4 = vadd.f32 %v4612_v58, %v12622_v2 }
 0x6e0   : > { %v4798_v5 = vpop.f32.mrf.mxu2 }
 0x6e1   : > { %v12879_v45 = vadd.f32 %v4796_v54, %v4653_v4  ;;  %9040 = vmatmul.msk.bf16.gmra.mxu1 %vm3737_vm9, %v15584_v46  ;;  %v15592_v4 = vld [vmem:[#allocation2_spill] sm:$0xff] }
 0x6e5   : > { %9082 = vmatmul.msk.bf16.gmra.mxu2 %vm3737_vm9, %v15588_v34 }
 0x6e6   : > { %v4614_v23 = vpop.f32.mrf.mxu1 }
 0x6e7   : > { %v4654_v38 = vadd.f32 %v4614_v23, %v4492_v7  ;;  %v15595_v23 = vld [vmem:[#allocation48_spill] sm:$0xff] }
 0x6e8   : > { %v4801_v1 = vpop.f32.mrf.mxu2 }
 0x6e9   : > { %v12888_v39 = vadd.f32 %v4798_v5, %v4654_v38  ;;  %v5141_v38 = vadd.f32 %v15595_v23, %v12691_v44 }
 0x6ee   : > { %v4617_v2 = vpop.f32.mrf.mxu1 }
 0x6ef   : > { %v4655_v22 = vadd.f32 %v4617_v2, %v15589_v13 }
 0x6f0   : > { %v4803_v33 = vpop.f32.mrf.mxu2 }
 0x6f1   : > { %v12891_v3 = vadd.f32 %v4801_v1, %v4655_v22  ;;  %9041 = vmatmul.msk.bf16.gmra.mxu1 %vm3737_vm9, %v15590_v30  ;;  %v15597_v30 = vld [vmem:[#allocation7_spill] sm:$0xff] }
 0x6f5   : > { %9083 = vmatmul.msk.bf16.gmra.mxu2 %vm3737_vm9, %v12193_v52  ;;  %v15594_v52 = vld [vmem:[#allocation11_spill] sm:$0xff] }
 0x6f6   : > { %v4619_v6 = vpop.f32.mrf.mxu1 }
 0x6f7   : > { %v4656_v48 = vadd.f32 %v4619_v6, %v15591_v36  ;;  %v15598_v6 = vld [vmem:[#allocation43_spill] sm:$0xff] }
 0x6f8   : > { %v4806_v50 = vpop.f32.mrf.mxu2  ;;  %v5142_v36 = vadd.f32 %v15598_v6, %v15597_v30 }
 0x6f9   : > { %v12898_v54 = vadd.f32 %v4803_v33, %v4656_v48  ;;  %v15596_v33 = vld [vmem:[#allocation63_spill] sm:$0xff] }
 0x6fe   : > { %v4622_v58 = vpop.f32.mrf.mxu1 }
 0x6ff   : > { %v4657_v5 = vadd.f32 %v4622_v58, %v15592_v4 }
 0x700   : > { %v4808_v46 = vpop.f32.mrf.mxu2 }
 0x701   : > { %v12901_v37 = vadd.f32 %v4806_v50, %v4657_v5  ;;  %9042 = vmatmul.msk.bf16.gmra.mxu1 %vm3737_vm9, %v15593_v27  ;;  %v15599_v27 = vld [vmem:[#allocation46_spill] sm:$0xff] }
 0x705   : > { %9084 = vmatmul.msk.bf16.gmra.mxu2 %vm3737_vm9, %v12242_v35  ;;  %v12917_v35 = vld [vmem:[%s15171_s5] ss:$0 sm:$0xff] }
 0x706   : > { %v4624_v47 = vpop.f32.mrf.mxu1 }
 0x707   : > { %v4658_v56 = vadd.f32 %v4624_v47, %v15594_v52  ;;  %v5143_v47 = vadd.f32 %v15599_v27, %v12709_v10  ;;  %v5083_v10 = vpop.f32.mrf.mxu0 }
 0x708   : > { %v5413_v7 = vpop.f32.mrf.mxu2 }
 0x709   : > { %v12908_v34 = vadd.f32 %v4808_v46, %v4658_v56 }
 0x70e   : > { %v5245_v1 = vpop.f32.mrf.mxu1 }
 0x70f   : > { %v5325_v2 = vadd.f32 %v5245_v1, %v5141_v38  ;;  %v4921_v38 = vpop.f32.mrf.mxu3 }
 0x710   : > { %v5415_v13 = vpop.f32.mrf.mxu2 }
 0x711   : > { %v5493_v22 = vadd.f32 %v5413_v7, %v5325_v2  ;;  %9043 = vmatmul.msk.bf16.gmra.mxu1 %vm3737_vm9, %v15596_v33  ;;  %v15600_v2 = vld [vmem:[#allocation14_spill] sm:$0xff] }
 0x713   : > { %v5529_v58 = vadd.f32 %v12917_v35, %v5493_v22 }
 0x715   : > { %9085 = vmatmul.msk.bf16.gmra.mxu2 %vm3737_vm9, %v12294_v16  ;;  %v5561_v46 = vmax.f32 %v5529_v58, 0.0 }
 0x716   : > { %v5247_v48 = vpop.f32.mrf.mxu1 }
 0x717   : > { %v5326_v44 = vadd.f32 %v5247_v48, %v5142_v36 }
 0x718   : > { %v5418_v50 = vpop.f32.mrf.mxu2 }
 0x719   : > { %v5494_v4 = vadd.f32 %v5415_v13, %v5326_v44  ;;  %v15601_v13 = vld [vmem:[#allocation49_spill] sm:$0xff]  ;;  %v4924_v44 = vpop.f32.mrf.mxu3 }
 0x71a   : > { %v5144_v22 = vadd.f32 %v15601_v13, %v15600_v2 }
 0x71b   : > { %v5530_v5 = vadd.f32 %v12917_v35, %v5494_v4  ;;  %v15602_v4 = vld [vmem:[#allocation22_spill] sm:$0xff] }
 0x71d   : > { %v5562_v52 = vmax.f32 %v5530_v5, 0.0 }
 0x71e   : > { %v5250_v56 = vpop.f32.mrf.mxu1 }
 0x71f   : > { %v5327_v7 = vadd.f32 %v5250_v56, %v5143_v47  ;;  %v12927_v23 = vpack.c.bf16 %v5562_v52, %v5561_v46  ;;  %v5086_v56 = vpop.f32.mrf.mxu0 }
 0x720   : > { %v5420_v16 = vpop.f32.mrf.mxu2 }
 0x721   : > { %v5495_v1 = vadd.f32 %v5418_v50, %v5327_v7  ;;  %9044 = vmatmul.msk.bf16.gmra.mxu1 %vm3737_vm9, %v12302_v25  ;;  %v5145_v25 = vadd.f32 %v15602_v4, %v12723_v41  ;;  %v4926_v7 = vpop.f32.mrf.mxu3 }
 0x723   : > { %v5531_v36 = vadd.f32 %v12917_v35, %v5495_v1 }
 0x725   : > { %9086 = vmatmul.msk.bf16.gmra.mxu2 %vm3737_vm9, %v12334_v15  ;;  %v5563_v50 = vmax.f32 %v5531_v36, 0.0 }
 0x726   : > { %v5252_v33 = vpop.f32.mrf.mxu1 }
 0x727   : > { %v5328_v30 = vadd.f32 %v5252_v33, %v5144_v22 }
 0x728   : > { %v5423_v6 = vpop.f32.mrf.mxu2 }
 0x729   : > { %v5496_v48 = vadd.f32 %v5420_v16, %v5328_v30  ;;  %v15603_v16 = vld [vmem:[#allocation16_spill] sm:$0xff]  ;;  %v4929_v4 = vpop.f32.mrf.mxu3 }
 0x72a   : > { %v5146_v1 = vadd.f32 %v15603_v16, %v12728_v61 }
 0x72b   : > { %v5532_v58 = vadd.f32 %v12917_v35, %v5496_v48 }
 0x72d   : > { %v5564_v5 = vmax.f32 %v5532_v58, 0.0 }
 0x72e   : > { %v5255_v46 = vpop.f32.mrf.mxu1 }
 0x72f   : > { %v5329_v15 = vadd.f32 %v5255_v46, %v5145_v25  ;;  %v12939_v27 = vpack.c.bf16 %v5564_v5, %v5563_v50  ;;  %v15605_v46 = vld [vmem:[#allocation4_spill] sm:$0xff] }
 0x730   : > { %v5425_v47 = vpop.f32.mrf.mxu2 }
 0x731   : > { %v5497_v52 = vadd.f32 %v5423_v6, %v5329_v15  ;;  %9045 = vmatmul.msk.bf16.gmra.mxu1 %vm3737_vm9, %v12343_v19  ;;  %v5088_v6 = vpop.f32.mrf.mxu0  ;;  %v15604_v19 = vld [vmem:[#allocation5_spill] sm:$0xff]  ;;  %v5148_v15 = vadd.f32 %v15605_v46, %v12748_v28  ;;  %v4988_v28 = vadd.f32 %v4921_v38, %v12762_v60 }
 0x732   : > { %v5147_v48 = vadd.f32 %v15604_v19, %v12737_v63 }
 0x733   : > { %v5533_v22 = vadd.f32 %v12917_v35, %v5497_v52 }
 0x735   : > { %9087 = vmatmul.msk.bf16.gmra.mxu2 %vm3737_vm9, %v12380_v59  ;;  %v5565_v36 = vmax.f32 %v5533_v22, 0.0 }
 0x736   : > { %v5257_v2 = vpop.f32.mrf.mxu1 }
 0x737   : > { %v5330_v41 = vadd.f32 %v5257_v2, %v5146_v1  ;;  %v4931_v1 = vpop.f32.mrf.mxu3 }
 0x738   : > { %v5428_v13 = vpop.f32.mrf.mxu2 }
 0x739   : > { %v5498_v33 = vadd.f32 %v5425_v47, %v5330_v41  ;;  %v5091_v47 = vpop.f32.mrf.mxu0 }
 0x73b   : > { %v5534_v30 = vadd.f32 %v12917_v35, %v5498_v33 }
 0x73d   : > { %v5566_v58 = vmax.f32 %v5534_v30, 0.0 }
 0x73e   : > { %v5260_v50 = vpop.f32.mrf.mxu1 }
 0x73f   : > { %v5331_v59 = vadd.f32 %v5260_v50, %v5147_v48  ;;  %v12951_v25 = vpack.c.bf16 %v5566_v58, %v5565_v36  ;;  %v4934_v58 = vpop.f32.mrf.mxu3  ;;  %v5150_v50 = vadd.f32 %v5083_v10, %v4988_v28  ;;  %v4990_v10 = vadd.f32 %v4926_v7, %v12782_v24 }
 0x740   : > { %v5430_v61 = vpop.f32.mrf.mxu2 }
 0x741   : > { %v5499_v5 = vadd.f32 %v5428_v13, %v5331_v59  ;;  %9046 = vmatmul.msk.bf16.gmra.mxu1 %vm3737_vm9, %v12388_v51 }
 0x743   : > { %v5535_v2 = vadd.f32 %v12917_v35, %v5499_v5 }
 0x745   : > { %9088 = vmatmul.msk.bf16.gmra.mxu2 %vm3737_vm9, %v15557_v26  ;;  %v5567_v13 = vmax.f32 %v5535_v2, 0.0  ;;  %v5093_v26 = vpop.f32.mrf.mxu0 }
 0x746   : > { %v5262_v52 = vpop.f32.mrf.mxu1 }
 0x747   : > { %v5332_v63 = vadd.f32 %v5262_v52, %v5148_v15  ;;  %v4989_v52 = vadd.f32 %v4924_v44, %v12770_v29  ;;  %v4936_v38 = vpop.f32.mrf.mxu3  ;;  %v5152_v29 = vadd.f32 %v5088_v6, %v4990_v10  ;;  %v4992_v6 = vadd.f32 %v4931_v1, %v12802_v12 }
 0x748   : > { %v5433_v16 = vpop.f32.mrf.mxu2 }
 0x749   : > { %v5500_v41 = vadd.f32 %v5430_v61, %v5332_v63  ;;  %v5151_v2 = vadd.f32 %v5086_v56, %v4989_v52 }
 0x74b   : > { %v5536_v22 = vadd.f32 %v12917_v35, %v5500_v41 }
 0x74d   : > { %v5568_v33 = vmax.f32 %v5536_v22, 0.0  ;;  %v5096_v15 = vpop.f32.mrf.mxu0 }
 0x74e   : > { %v5265_v30 = vpop.f32.mrf.mxu1 }
 0x74f   : > { %v5333_v51 = vadd.f32 %v5265_v30, %v12760_v20  ;;  %v12962_v36 = vpack.c.bf16 %v5568_v33, %v5567_v13  ;;  %v4939_v30 = vpop.f32.mrf.mxu3 }
 0x750   : > { %v5435_v19 = vpop.f32.mrf.mxu2 }
 0x751   : > { %v5501_v48 = vadd.f32 %v5433_v16, %v5333_v51  ;;  %9047 = vmatmul.msk.bf16.gmra.mxu1 %vm3737_vm9, %v12444_v42 }
 0x753   : > { %v5537_v20 = vadd.f32 %v12917_v35, %v5501_v48  ;;  %v4991_v48 = vadd.f32 %v4929_v4, %v12793_v14  ;;  %v5154_v14 = vadd.f32 %v5093_v26, %v4992_v6  ;;  %v4994_v26 = vadd.f32 %v4936_v38, %v12816_v40 }
 0x754   : > { %v4995_v6 = vadd.f32 %v4939_v30, %v12821_v62 }
 0x755   : > { %9089 = vmatmul.msk.bf16.gmra.mxu2 %vm3737_vm9, %v15562_v55  ;;  %v5569_v63 = vmax.f32 %v5537_v20, 0.0  ;;  %v5098_v13 = vpop.f32.mrf.mxu0 }
 0x756   : > { %v5267_v59 = vpop.f32.mrf.mxu1 }
 0x757   : > { %v5334_v61 = vadd.f32 %v5267_v59, %v5150_v50  ;;  %v4941_v20 = vpop.f32.mrf.mxu3 }
 0x758   : > { %v5438_v5 = vpop.f32.mrf.mxu2 }
 0x759   : > { %v5502_v46 = vadd.f32 %v5435_v19, %v5334_v61  ;;  %v5153_v61 = vadd.f32 %v5091_v47, %v4991_v48 }
 0x75b   : > { %v5538_v60 = vadd.f32 %v12917_v35, %v5502_v46 }
 0x75d   : > { %v5570_v16 = vmax.f32 %v5538_v60, 0.0  ;;  %v15606_v60 = vld [vmem:[#allocation42_spill] sm:$0xff] }
 0x75e   : > { %v5270_v42 = vpop.f32.mrf.mxu1 }
 0x75f   : > { %v12972_v41 = vpack.c.bf16 %v5570_v16, %v5569_v63  ;;  %v5335_v22 = vadd.f32 %v5270_v42, %v5151_v2  ;;  %v4944_v12 = vpop.f32.mrf.mxu3 }
 0x760   : > { %v5440_v55 = vpop.f32.mrf.mxu2 }
 0x761   : > { %9048 = vmatmul.msk.bf16.gmra.mxu1 %vm3737_vm9, %v12503_v0  ;;  %v5503_v33 = vadd.f32 %v5438_v5, %v5335_v22  ;;  %v5101_v0 = vpop.f32.mrf.mxu0 }
 0x763   : > { %v5539_v56 = vadd.f32 %v12917_v35, %v5503_v33 }
 0x765   : > { %9090 = vmatmul.msk.bf16.gmra.mxu2 %vm3737_vm9, %v15567_v18  ;;  %v5571_v7 = vmax.f32 %v5539_v56, 0.0  ;;  %v15608_v56 = vld [vmem:[#allocation34_spill] sm:$0xff] }
 0x766   : > { %v5272_v44 = vpop.f32.mrf.mxu1 }
 0x767   : > { %v5336_v51 = vadd.f32 %v5272_v44, %v5152_v29 }
 0x768   : > { %v5443_v19 = vpop.f32.mrf.mxu2 }
 0x769   : > { %v5504_v28 = vadd.f32 %v5440_v55, %v5336_v51  ;;  %v5103_v16 = vpop.f32.mrf.mxu0  ;;  %v4993_v55 = vadd.f32 %v4934_v58, %v12807_v17  ;;  %v5156_v58 = vadd.f32 %v5098_v13, %v4994_v26 }
 0x76b   : > { %v5540_v24 = vadd.f32 %v12917_v35, %v5504_v28  ;;  %v5155_v33 = vadd.f32 %v5096_v15, %v4993_v55  ;;  %v9773_v15 = vld [vmem:[%s15172_s6 + $0x1a0] sm:$0xf0] }
 0x76d   : > { %v5572_v50 = vmax.f32 %v5540_v24, 0.0  ;;  %v4946_v24 = vpop.f32.mrf.mxu3 }
 0x76e   : > { %v5275_v59 = vpop.f32.mrf.mxu1 }
 0x76f   : > { %v12982_v5 = vpack.c.bf16 %v5572_v50, %v5571_v7  ;;  %v5337_v46 = vadd.f32 %v5275_v59, %v5153_v61  ;;  %v9290_v7 = vld [vmem:[%s15172_s6 + $0x188] sm:$0xf] }
 0x770   : > { %v5445_v18 = vpop.f32.mrf.mxu2  ;;  %v9291_v40 = vor.u32 %v9773_v15, %v9290_v7 }
 0x771   : > { %9049 = vmatmul.msk.bf16.gmra.mxu1 %vm3737_vm9, %v12548_v32  ;;  %v5505_v52 = vadd.f32 %v5443_v19, %v5337_v46  ;;  %v15607_v19 = vld [vmem:[#allocation41_spill] sm:$0xff]  ;;  %v5106_v48 = vpop.f32.mrf.mxu0 }
 0x772   : > { %v15609_v28 = vpack.c.b16 %v15607_v19, %v15608_v56  ;;  %6345 = vmatpush.bf16.msra.mxu3 %v9291_v40 }
 0x773   : > { %v5541_v47 = vadd.f32 %v12917_v35, %v5505_v52 }
 0x775   : > { %9091 = vmatmul.msk.bf16.gmra.mxu2 %vm3737_vm9, %v15606_v60  ;;  %v5573_v10 = vmax.f32 %v5541_v47, 0.0 }
 0x776   : > { %v5277_v4 = vpop.f32.mrf.mxu1 }
 0x777   : > { %v5338_v63 = vadd.f32 %v5277_v4, %v5154_v14  ;;  %v4949_v4 = vpop.f32.mrf.mxu3 }
 0x778   : > { %v5448_v42 = vpop.f32.mrf.mxu2 }
 0x779   : > { %v5506_v2 = vadd.f32 %v5445_v18, %v5338_v63  ;;  %v5108_v46 = vpop.f32.mrf.mxu0  ;;  %v5157_v63 = vadd.f32 %v5101_v0, %v4995_v6 }
 0x77b   : > { %v5542_v1 = vadd.f32 %v12917_v35, %v5506_v2  ;;  %v4996_v2 = vadd.f32 %v4941_v20, %v12828_v31  ;;  %v4997_v31 = vadd.f32 %v4944_v12, %v12833_v57 }
 0x77d   : > { %v5574_v22 = vmax.f32 %v5542_v1, 0.0  ;;  %v5158_v62 = vadd.f32 %v5103_v16, %v4996_v2 }
 0x77e   : > { %v5280_v32 = vpop.f32.mrf.mxu1 }
 0x77f   : > { %v5599_v29 = vpack.c.bf16 %v5574_v22, %v5573_v10  ;;  %v5339_v51 = vadd.f32 %v5280_v32, %v5155_v33  ;;  %v4951_v33 = vpop.f32.mrf.mxu3 }
 0x780   : > { %v5450_v44 = vpop.f32.mrf.mxu2 }
 0x781   : > { %9050 = vmatmul.msk.bf16.gmra.mxu1 %vm3737_vm9, %v15609_v28  ;;  %v5507_v17 = vadd.f32 %v5448_v42, %v5339_v51  ;;  %v5111_v30 = vpop.f32.mrf.mxu0  ;;  %v5159_v51 = vadd.f32 %v5106_v48, %v4997_v31  ;;  %v9262_v48 = vld [vmem:[%s15172_s6 + $0x150] sm:$0xf] }
 0x783   : > { %v5543_v61 = vadd.f32 %v12917_v35, %v5507_v17  ;;  %v4998_v17 = vadd.f32 %v4946_v24, %v12840_v11  ;;  %v9766_v11 = vld [vmem:[%s15172_s6 + $0x168] sm:$0xf0] }
 0x785   : > { %v5575_v52 = vmax.f32 %v5543_v61, 0.0 }
 0x786   : > { %v5282_v50 = vpop.f32.mrf.mxu1 }
 0x787   : > { %v5340_v38 = vadd.f32 %v5282_v50, %v5156_v58  ;;  %v4954_v57 = vpop.f32.mrf.mxu3 }
 0x788   : > { %v5453_v59 = vpop.f32.mrf.mxu2 }
 0x789   : > { %v5508_v18 = vadd.f32 %v5450_v44, %v5340_v38  ;;  %v5113_v56 = vpop.f32.mrf.mxu0  ;;  %v4999_v38 = vadd.f32 %v4949_v4, %v12845_v8  ;;  %v5000_v8 = vadd.f32 %v4951_v33, %v12852_v21 }
 0x78b   : > { %v5544_v13 = vadd.f32 %v12917_v35, %v5508_v18  ;;  %v5162_v4 = vadd.f32 %v5113_v56, %v5000_v8 }
 0x78d   : > { %v5576_v60 = vmax.f32 %v5544_v13, 0.0  ;;  %v5161_v13 = vadd.f32 %v5111_v30, %v4999_v38 }
 0x78e   : > { %v5285_v14 = vpop.f32.mrf.mxu1 }
 0x78f   : > { %v5600_v42 = vpack.c.bf16 %v5576_v60, %v5575_v52  ;;  %v5341_v55 = vadd.f32 %v5285_v14, %v5157_v63 }
 0x790   : > { %v5455_v47 = vpop.f32.mrf.mxu2 }
 0x791   : > { %10277 = vmatpush.lsf.bf16.msrb.mxu3 %v5600_v42  ;;  %10225 = vmatpush.lsf.bf16.msrb.mxu0 %v5600_v42  ;;  %v5509_v1 = vadd.f32 %v5453_v59, %v5341_v55  ;;  %v5116_v40 = vpop.f32.mrf.mxu0 }
 0x792   : > { %10245 = vmatpush.lsf.bf16.msrb.mxu1 %v5600_v42 }
 0x793   : > { %v5545_v0 = vadd.f32 %v12917_v35, %v5509_v1  ;;  %v5001_v1 = vadd.f32 %v4954_v57, %v12857_v9  ;;  %v9234_v9 = vld [vmem:[%s15172_s6 + $0x118] sm:$0xf] }
 0x795   : > { %10278 = vmatpush.lsf.bf16.msrb.mxu3 %v5599_v29  ;;  %10226 = vmatpush.lsf.bf16.msrb.mxu0 %v5599_v29  ;;  %v5577_v16 = vmax.f32 %v5545_v0, 0.0 }
 0x796   : > { %10246 = vmatpush.lsf.bf16.msrb.mxu1 %v5599_v29  ;;  %v5287_v10 = vpop.f32.mrf.mxu1 }
 0x797   : > { %v5342_v22 = vadd.f32 %v5287_v10, %v5158_v62 }
 0x798   : > { %v5458_v32 = vpop.f32.mrf.mxu2 }
 0x799   : > { %v5510_v44 = vadd.f32 %v5455_v47, %v5342_v22  ;;  %10279 = vmatpush.lsf.bf16.msrb.mxu3 %v12982_v5  ;;  %10227 = vmatpush.lsf.bf16.msrb.mxu0 %v12982_v5  ;;  %v5118_v60 = vpop.f32.mrf.mxu0 }
 0x79a   : > { %10247 = vmatpush.lsf.bf16.msrb.mxu1 %v12982_v5 }
 0x79b   : > { %v5546_v20 = vadd.f32 %v12917_v35, %v5510_v44 }
 0x79d   : > { %10280 = vmatpush.lsf.bf16.msrb.mxu3 %v12972_v41  ;;  %10228 = vmatpush.lsf.bf16.msrb.mxu0 %v12972_v41  ;;  %v5578_v29 = vmax.f32 %v5546_v20, 0.0 }
 0x79e   : > { %10248 = vmatpush.lsf.bf16.msrb.mxu1 %v12972_v41  ;;  %v5290_v26 = vpop.f32.mrf.mxu1  ;;  %v5160_v41 = vadd.f32 %v5108_v46, %v4998_v17 }
 0x79f   : > { %v5601_v19 = vpack.c.bf16 %v5578_v29, %v5577_v16  ;;  %v5343_v5 = vadd.f32 %v5290_v26, %v5159_v51  ;;  %v9759_v26 = vld [vmem:[%s15172_s6 + $0x130] sm:$0xf0] }
 0x7a0   : > { %v5460_v28 = vpop.f32.mrf.mxu2 }
 0x7a1   : > { %10281 = vmatpush.lsf.bf16.msrb.mxu3 %v12962_v36  ;;  %10229 = vmatpush.lsf.bf16.msrb.mxu0 %v12962_v36  ;;  %v5511_v12 = vadd.f32 %v5458_v32, %v5343_v5  ;;  %v5121_v22 = vpop.f32.mrf.mxu0  ;;  %v5163_v32 = vadd.f32 %v5116_v40, %v5001_v1 }
 0x7a2   : > { %10249 = vmatpush.lsf.bf16.msrb.mxu1 %v12962_v36  ;;  %5753 = vxpose.xlu0.c.b16.start [1/8] (narrow) %v5601_v19, 64  ;;  %v9263_v36 = vor.u32 %v9766_v11, %v9262_v48  ;;  %v9235_v19 = vor.u32 %v9759_v26, %v9234_v9 }
 0x7a3   : > { %v5547_v15 = vadd.f32 %v12917_v35, %v5511_v12 }
 0x7a5   : > { %10282 = vmatpush.lsf.bf16.msrb.mxu3 %v12951_v25  ;;  %10230 = vmatpush.lsf.bf16.msrb.mxu0 %v12951_v25  ;;  %v5579_v61 = vmax.f32 %v5547_v15, 0.0 }
 0x7a6   : > { %10250 = vmatpush.lsf.bf16.msrb.mxu1 %v12951_v25  ;;  %v5292_v24 = vpop.f32.mrf.mxu1  ;;  %v4956_v25 = vpop.f32.mrf.mxu3 }
 0x7a7   : > { %v5344_v58 = vadd.f32 %v5292_v24, %v5160_v41  ;;  %v5002_v44 = vadd.f32 %v4956_v25, %v12864_v53 }
 0x7a8   : > { %v5463_v7 = vpop.f32.mrf.mxu2 }
 0x7a9   : > { %6346 = vmatpush.bf16.msra.mxu3 %v9263_v36  ;;  %v5512_v50 = vadd.f32 %v5460_v28, %v5344_v58  ;;  %10231 = vmatpush.lsf.bf16.msrb.mxu0 %v12939_v27  ;;  %v5164_v29 = vadd.f32 %v5118_v60, %v5002_v44  ;;  %v5123_v28 = vpop.f32.mrf.mxu0 }
 0x7aa   : > { %10251 = vmatpush.lsf.bf16.msrb.mxu1 %v12939_v27 }
 0x7ab   : > { %v5548_v59 = vadd.f32 %v12917_v35, %v5512_v50 }
 0x7ad   : > { %10283 = vmatpush.lsf.bf16.msrb.mxu3 %v12939_v27  ;;  %v5580_v18 = vmax.f32 %v5548_v59, 0.0  ;;  %10232 = vmatpush.lsf.bf16.msrb.mxu0 %v12927_v23 }
 0x7ae   : > { %10252 = vmatpush.lsf.bf16.msrb.mxu1 %v12927_v23  ;;  %v5295_v6 = vpop.f32.mrf.mxu1  ;;  %v4959_v42 = vpop.f32.mrf.mxu3 }
 0x7af   : > { %v5602_v46 = vpack.c.bf16 %v5580_v18, %v5579_v61  ;;  %10233 = vllmr.8.mxu0  ;;  %v5345_v27 = vadd.f32 %v5295_v6, %v5161_v13  ;;  %v5003_v57 = vadd.f32 %v4959_v42, %v12867_v43  ;;  %v9178_v42 = vld [vmem:[%s15172_s6 + $0xa8] sm:$0xf] }
 0x7b0   : > { %v5465_v52 = vpop.f32.mrf.mxu2  ;;  %10253 = vllmr.8.mxu1 }
 0x7b1   : > { %10284 = vmatpush.lsf.bf16.msrb.mxu3 %v12927_v23  ;;  %v5513_v14 = vadd.f32 %v5463_v7, %v5345_v27  ;;  %v5165_v36 = vadd.f32 %v5121_v22, %v5003_v57  ;;  %v5126_v40 = vpop.f32.mrf.mxu0  ;;  %v9738_v22 = vld [vmem:[%s15172_s6 + $0x88] sm:$0xf0] }
 0x7b2   : > { %5754 = vxpose.xlu0.c.b16.cont [2/8] (narrow) %v5602_v46, 64  ;;  %v9206_v46 = vld [vmem:[%s15172_s6 + $0xe0] sm:$0xf] }
 0x7b3   : > { %10285 = vllmr.8.mxu3  ;;  %v5549_v23 = vadd.f32 %v12917_v35, %v5513_v14 }
 0x7b5   : > { %v5581_v30 = vmax.f32 %v5549_v23, 0.0  ;;  %6347 = vmatpush.bf16.msra.mxu3 %v9235_v19  ;;  %v9094_v19 = vld [vmem:[%s15172_s6] sm:$0xf] }
 0x7b6   : > { %v5297_v63 = vpop.f32.mrf.mxu1  ;;  %v4961_v31 = vpop.f32.mrf.mxu3 }
 0x7b7   : > { %v5346_v47 = vadd.f32 %v5297_v63, %v5162_v4  ;;  %v5004_v15 = vadd.f32 %v4961_v31, %v12876_v49  ;;  %v9752_v49 = vld [vmem:[%s15172_s6 + $0xf8] sm:$0xf0]  ;;  %v9731_v31 = vld [vmem:[%s15172_s6 + $0x50] sm:$0xf0] }
 0x7b8   : > { %v5468_v2 = vpop.f32.mrf.mxu2  ;;  %v9207_v27 = vor.u32 %v9752_v49, %v9206_v46 }
 0x7b9   : > { %v5514_v55 = vadd.f32 %v5465_v52, %v5346_v47  ;;  %v5166_v25 = vadd.f32 %v5123_v28, %v5004_v15  ;;  %v5128_v60 = vpop.f32.mrf.mxu0  ;;  %v9745_v47 = vld [vmem:[%s15172_s6 + $0xc0] sm:$0xf0]  ;;  %v9514_v15 = vld [vmem:[%s15172_s6 + $0x348] sm:$0xf] }
 0x7ba   : > { %6348 = vmatpush.bf16.msra.mxu3 %v9207_v27  ;;  %v9820_v27 = vld [vmem:[%s15172_s6 + $0x31c] sm:$0xf] }
 0x7bb   : > { %v5550_v62 = vadd.f32 %v12917_v35, %v5514_v55 }
 0x7bd   : > { %v5582_v10 = vmax.f32 %v5550_v62, 0.0 }
 0x7be   : > { %v5300_v21 = vpop.f32.mrf.mxu1  ;;  %v4964_v12 = vpop.f32.mrf.mxu3 }
 0x7bf   : > { %v5603_v33 = vpack.c.bf16 %v5582_v10, %v5581_v30  ;;  %v5347_v20 = vadd.f32 %v5300_v21, %v5163_v32  ;;  %v5005_v52 = vadd.f32 %v4964_v12, %v12879_v45  ;;  %v9179_v45 = vor.u32 %v9745_v47, %v9178_v42  ;;  %v9150_v10 = vld [vmem:[%s15172_s6 + $0x70] sm:$0xf]  ;;  %v9826_v12 = vld [vmem:[%s15172_s6 + $0x34c] sm:$0xf]  ;;  %v9458_v42 = vld [vmem:[%s15172_s6 + $0x2d8] sm:$0xf] }
 0x7c0   : > { %v5470_v0 = vpop.f32.mrf.mxu2  ;;  %v9151_v21 = vor.u32 %v9738_v22, %v9150_v10  ;;  %v9815_v47 = vld [vmem:[%s15172_s6 + $0x2f0] sm:$0xf0] }
 0x7c1   : > { %v5515_v16 = vadd.f32 %v5468_v2, %v5347_v20  ;;  %v5167_v23 = vadd.f32 %v5126_v40, %v5005_v52  ;;  %6349 = vmatpush.bf16.msra.mxu3 %v9179_v45  ;;  %v9459_v45 = vor.u32 %v9815_v47, %v9458_v42 }
 0x7c2   : > { %5755 = vxpose.xlu0.c.b16.cont [3/8] (narrow) %v5603_v33, 64 }
 0x7c3   : > { %v5551_v53 = vadd.f32 %v12917_v35, %v5515_v16 }
 0x7c5   : > { %v5583_v48 = vmax.f32 %v5551_v53, 0.0  ;;  %6350 = vmatpush.bf16.msra.mxu3 %v9151_v21  ;;  %v9430_v21 = vld [vmem:[%s15172_s6 + $0x2a0] sm:$0xf] }
 0x7c6   : > { %v5302_v51 = vpop.f32.mrf.mxu1  ;;  %v4966_v38 = vpop.f32.mrf.mxu3 }
 0x7c7   : > { %v5348_v56 = vadd.f32 %v5302_v51, %v5164_v29  ;;  %v5006_v62 = vadd.f32 %v4966_v38, %v12888_v39  ;;  %v9122_v39 = vld [vmem:[%s15172_s6 + $0x38] sm:$0xf] }
 0x7c8   : > { %v5473_v17 = vpop.f32.mrf.mxu2  ;;  %v9123_v16 = vor.u32 %v9731_v31, %v9122_v39  ;;  %v9432_v31 = vld [vmem:[%s15172_s6 + $0x2bc] sm:$0xf0] }
 0x7c9   : > { %v5516_v5 = vadd.f32 %v5470_v0, %v5348_v56  ;;  %v5168_v33 = vadd.f32 %v5128_v60, %v5006_v62  ;;  %v5131_v0 = vpop.f32.mrf.mxu0  ;;  %v9724_v56 = vld [vmem:[%s15172_s6 + $0x18] sm:$0xf0]  ;;  %v9496_v60 = vld [vmem:[%s15172_s6 + $0x334] sm:$0xf0]  ;;  %v9813_v62 = vld [vmem:[%s15172_s6 + $0x2e4] sm:$0xf] }
 0x7ca   : > { %6351 = vmatpush.bf16.msra.mxu3 %v9123_v16  ;;  %v9095_v53 = vor.u32 %v9724_v56, %v9094_v19  ;;  %v9806_v16 = vld [vmem:[%s15172_s6 + $0x2ac] sm:$0xf] }
 0x7cb   : > { %v5552_v41 = vadd.f32 %v12917_v35, %v5516_v5 }
 0x7cd   : > { %v5584_v11 = vmax.f32 %v5552_v41, 0.0  ;;  %v9516_v41 = vld [vmem:[%s15172_s6 + $0x364] sm:$0xf0] }
 0x7ce   : > { %v5305_v24 = vpop.f32.mrf.mxu1  ;;  %v4969_v2 = vpop.f32.mrf.mxu3  ;;  %6352 = vmatpush.bf16.msra.mxu3 %v9095_v53 }
 0x7cf   : > { %v5604_v58 = vpack.c.bf16 %v5584_v11, %v5583_v48  ;;  %v5349_v50 = vadd.f32 %v5305_v24, %v5165_v36  ;;  %v5007_v28 = vadd.f32 %v4969_v2, %v12891_v3  ;;  %v9519_v11 = vor.u32 %v9826_v12, %v9516_v41  ;;  %v9812_v2 = vld [vmem:[%s15172_s6 + $0x2dc] sm:$0xf]  ;;  %v9798_v12 = vld [vmem:[%s15172_s6 + $0x26c] sm:$0xf] }
 0x7d0   : > { %v5475_v7 = vpop.f32.mrf.mxu2 }
 0x7d1   : > { %v5517_v59 = vadd.f32 %v5473_v17, %v5349_v50  ;;  %v5169_v24 = vadd.f32 %v5131_v0, %v5007_v28  ;;  %6432 = vmatpush.bf16.msra.mxu0 %v9519_v11  ;;  %v9829_v50 = vld [vmem:[%s15172_s6 + $0x360] sm:$0xf0] }
 0x7d2   : > { %5756 = vxpose.xlu0.c.b16.cont [4/8] (narrow) %v5604_v58, 64  ;;  %v5133_v58 = vpop.f32.mrf.mxu0  ;;  %v9515_v38 = vor.u32 %v9829_v50, %v9514_v15  ;;  %v9791_v50 = vld [vmem:[%s15172_s6 + $0x234] sm:$0xf] }
 0x7d3   : > { %v5553_v6 = vadd.f32 %v12917_v35, %v5517_v59  ;;  %v9819_v59 = vld [vmem:[%s15172_s6 + $0x314] sm:$0xf] }
 0x7d4   : > { %10286 = vmatmul.lmr.bf16.vlgmr.msra.gmra.8.mxu3 }
 0x7d5   : > { %v5585_v14 = vmax.f32 %v5553_v6, 0.0  ;;  %v9486_v6 = vld [vmem:[%s15172_s6 + $0x310] sm:$0xf]  ;;  %6374 = vmatpush.bf16.msra.mxu3 %v9515_v38  ;;  %v9792_v38 = vld [vmem:[%s15172_s6 + $0x23c] sm:$0xf] }
 0x7d6   : > { %v5307_v61 = vpop.f32.mrf.mxu1  ;;  %v4971_v29 = vpop.f32.mrf.mxu3 }
 0x7d7   : > { %v5350_v18 = vadd.f32 %v5307_v61, %v5166_v25  ;;  %v5008_v3 = vadd.f32 %v4971_v29, %v12898_v54  ;;  %v9488_v54 = vld [vmem:[%s15172_s6 + $0x32c] sm:$0xf0]  ;;  %v9827_v25 = vld [vmem:[%s15172_s6 + $0x354] sm:$0xf]  ;;  %v9440_v29 = vld [vmem:[%s15172_s6 + $0x2c4] sm:$0xf0] }
 0x7d8   : > { %v5478_v43 = vpop.f32.mrf.mxu2  ;;  %v9443_v53 = vor.u32 %v9806_v16, %v9440_v29 }
 0x7d9   : > { %v5518_v13 = vadd.f32 %v5475_v7, %v5350_v18  ;;  %v9491_v18 = vor.u32 %v9819_v59, %v9488_v54  ;;  %v5170_v49 = vadd.f32 %v5133_v58, %v5008_v3  ;;  %v9412_v58 = vld [vmem:[%s15172_s6 + $0x28c] sm:$0xf0] }
 0x7da   : > { %v5136_v10 = vpop.f32.mrf.mxu0 }
 0x7db   : > { %v5554_v8 = vadd.f32 %v12917_v35, %v5518_v13  ;;  %v9822_v13 = vld [vmem:[%s15172_s6 + $0x328] sm:$0xf0]  ;;  %6433 = vmatpush.bf16.msra.mxu0 %v9491_v18  ;;  %v9308_v18 = vld [vmem:[%s15172_s6 + $0x1b4] sm:$0xf0] }
 0x7dc   : > { %10287 = vmatmul.lmr.bf16.gmra.8.mxu3 }
 0x7dd   : > { %v5586_v4 = vmax.f32 %v5554_v8, 0.0  ;;  %v9487_v8 = vor.u32 %v9822_v13, %v9486_v6 }
 0x7de   : > { %v5310_v63 = vpop.f32.mrf.mxu1  ;;  %v4974_v40 = vpop.f32.mrf.mxu3 }
 0x7df   : > { %v5605_v55 = vpack.c.bf16 %v5586_v4, %v5585_v14  ;;  %v5351_v30 = vadd.f32 %v5310_v63, %v5167_v23  ;;  %v9499_v63 = vor.u32 %v9820_v27, %v9496_v60  ;;  %6375 = vmatpush.bf16.msra.mxu3 %v9487_v8  ;;  %v5009_v0 = vadd.f32 %v4974_v40, %v12901_v37  ;;  %v9376_v40 = vld [vmem:[%s15172_s6 + $0x24c] sm:$0xf0]  ;;  %v9346_v60 = vld [vmem:[%s15172_s6 + $0x1f8] sm:$0xf] }
 0x7e0   : > { %v5480_v1 = vpop.f32.mrf.mxu2  ;;  %v9379_v54 = vor.u32 %v9791_v50, %v9376_v40  ;;  %v9522_v50 = vld [vmem:[%s15172_s6 + $0x350] sm:$0xf] }
 0x7e1   : > { %v5519_v32 = vadd.f32 %v5478_v43, %v5351_v30  ;;  %v9524_v43 = vld [vmem:[%s15172_s6 + $0x36c] sm:$0xf0]  ;;  %v9468_v30 = vld [vmem:[%s15172_s6 + $0x2fc] sm:$0xf0]  ;;  %v5171_v28 = vadd.f32 %v5136_v10, %v5009_v0 }
 0x7e2   : > { %5757 = vxpose.xlu0.c.b16.cont [5/8] (narrow) %v5605_v55, 64  ;;  %v9527_v52 = vor.u32 %v9827_v25, %v9524_v43  ;;  %v9471_v39 = vor.u32 %v9813_v62, %v9468_v30  ;;  %v5138_v59 = vpop.f32.mrf.mxu0  ;;  %v9384_v25 = vld [vmem:[%s15172_s6 + $0x254] sm:$0xf0]  ;;  %v9280_v62 = vld [vmem:[%s15172_s6 + $0x17c] sm:$0xf0] }
 0x7e3   : > { %v5555_v9 = vadd.f32 %v12917_v35, %v5519_v32  ;;  %v9808_v32 = vld [vmem:[%s15172_s6 + $0x2b8] sm:$0xf0]  ;;  %6376 = vmatpush.bf16.msra.mxu3 %v9459_v45  ;;  %v9387_v8 = vor.u32 %v9792_v38, %v9384_v25  ;;  %v9318_v30 = vld [vmem:[%s15172_s6 + $0x1c0] sm:$0xf]  ;;  %v9830_v38 = vld [vmem:[%s15172_s6 + $0x368] sm:$0xf0] }
 0x7e4   : > { %6548 = vmatpush.bf16.msrb.mxu2 %v9527_v52  ;;  %10288 = vmatmul.lmr.bf16.gmra.8.mxu3  ;;  %v9320_v0 = vld [vmem:[%s15172_s6 + $0x1dc] sm:$0xf0]  ;;  %v9523_v25 = vor.u32 %v9830_v38, %v9522_v50  ;;  %v9124_v38 = vld [vmem:[%s15172_s6 + $0x54] sm:$0xf0] }
 0x7e5   : > { %v5587_v5 = vmax.f32 %v5555_v9, 0.0  ;;  %v9392_v50 = vld [vmem:[%s15172_s6 + $0x25c] sm:$0xf0] }
 0x7e6   : > { %v5312_v44 = vpop.f32.mrf.mxu1  ;;  %v4976_v9 = vpop.f32.mrf.mxu3 }
 0x7e7   : > { %v5352_v20 = vadd.f32 %v5312_v44, %v5168_v33  ;;  %v9805_v33 = vld [vmem:[%s15172_s6 + $0x2a4] sm:$0xf]  ;;  %v5010_v41 = vadd.f32 %v4976_v9, %v12908_v34  ;;  %v9374_v34 = vld [vmem:[%s15172_s6 + $0x230] sm:$0xf]  ;;  %v9252_v9 = vld [vmem:[%s15172_s6 + $0x144] sm:$0xf0] }
 0x7e8   : > { %v5483_v51 = vpop.f32.mrf.mxu2  ;;  %6549 = vmatpush.bf16.msrb.mxu2 %v9499_v63 }
 0x7e9   : > { %v5520_v26 = vadd.f32 %v5480_v1, %v5352_v20  ;;  %v9460_v1 = vld [vmem:[%s15172_s6 + $0x2f4] sm:$0xf0]  ;;  %v9435_v20 = vor.u32 %v9805_v33, %v9432_v31  ;;  %v5172_v6 = vadd.f32 %v5138_v59, %v5010_v41  ;;  %v9777_v33 = vld [vmem:[%s15172_s6 + $0x1c4] sm:$0xf]  ;;  %v9758_v31 = vld [vmem:[%s15172_s6 + $0x12c] sm:$0xf] }
 0x7ea   : > { %v9463_v22 = vor.u32 %v9812_v2, %v9460_v1  ;;  %v9348_v2 = vld [vmem:[%s15172_s6 + $0x214] sm:$0xf0]  ;;  %v9765_v1 = vld [vmem:[%s15172_s6 + $0x164] sm:$0xf]  ;;  %v9828_v59 = vld [vmem:[%s15172_s6 + $0x35c] sm:$0xf] }
 0x7eb   : > { %v5556_v17 = vadd.f32 %v12917_v35, %v5520_v26 }
 0x7ec   : > { %6434 = vmatpush.bf16.msra.mxu0 %v9463_v22  ;;  %6550 = vmatpush.bf16.msrb.mxu2 %v9471_v39  ;;  %v9328_v39 = vld [vmem:[%s15172_s6 + $0x1e4] sm:$0xf0] }
 0x7ed   : > { %v5588_v57 = vmax.f32 %v5556_v17, 0.0  ;;  %10289 = vmatmul.lmr.bf16.gmra.8.mxu3 }
 0x7ee   : > { %v5315_v48 = vpop.f32.mrf.mxu1 }
 0x7ef   : > { %v5606_v36 = vpack.c.bf16 %v5588_v57, %v5587_v5  ;;  %v5353_v7 = vadd.f32 %v5315_v48, %v5169_v24  ;;  %v9402_v5 = vld [vmem:[%s15172_s6 + $0x268] sm:$0xf]  ;;  %v9801_v57 = vld [vmem:[%s15172_s6 + $0x280] sm:$0xf0] }
 0x7f0   : > { %v5485_v61 = vpop.f32.mrf.mxu2  ;;  %6435 = vmatpush.bf16.msra.mxu0 %v9435_v20  ;;  %v9403_v11 = vor.u32 %v9801_v57, %v9402_v5  ;;  %v9404_v24 = vld [vmem:[%s15172_s6 + $0x284] sm:$0xf0]  ;;  %6551 = vmatpush.bf16.msrb.mxu2 %v9443_v53  ;;  %v9196_v53 = vld [vmem:[%s15172_s6 + $0xd4] sm:$0xf0]  ;;  %v9737_v57 = vld [vmem:[%s15172_s6 + $0x84] sm:$0xf] }
 0x7f1   : > { %v5521_v46 = vadd.f32 %v5483_v51, %v5353_v7  ;;  %v9431_v51 = vor.u32 %v9808_v32, %v9430_v21  ;;  %v9407_v3 = vor.u32 %v9798_v12, %v9404_v24  ;;  %v9794_v7 = vld [vmem:[%s15172_s6 + $0x248] sm:$0xf0]  ;;  %v9283_v21 = vor.u32 %v9765_v1, %v9280_v62  ;;  %v9780_v32 = vld [vmem:[%s15172_s6 + $0x1d8] sm:$0xf0]  ;;  %v9168_v12 = vld [vmem:[%s15172_s6 + $0x9c] sm:$0xf0] }
 0x7f2   : > { %5758 = vxpose.xlu0.c.b16.cont [6/8] (narrow) %v5606_v36, 64  ;;  %v9799_v36 = vld [vmem:[%s15172_s6 + $0x274] sm:$0xf]  ;;  %v9375_v13 = vor.u32 %v9794_v7, %v9374_v34  ;;  %v9319_v29 = vor.u32 %v9780_v32, %v9318_v30  ;;  %v9171_v41 = vor.u32 %v9737_v57, %v9168_v12  ;;  %v9770_v7 = vld [vmem:[%s15172_s6 + $0x18c] sm:$0xf] }
 0x7f3   : > { %v5557_v23 = vadd.f32 %v12917_v35, %v5521_v46  ;;  %6377 = vmatpush.bf16.msra.mxu3 %v9431_v51  ;;  %v9415_v15 = vor.u32 %v9799_v36, %v9412_v58  ;;  %v9723_v36 = vld [vmem:[%s15172_s6 + $0x14] sm:$0xf]  ;;  %v9112_v58 = vld [vmem:[%s15172_s6 + $0x2c] sm:$0xf0]  ;;  %v9814_v1 = vld [vmem:[%s15172_s6 + $0x2ec] sm:$0xf] }
 0x7f4   : > { %6436 = vmatpush.bf16.msra.mxu0 %v9407_v3  ;;  %v9115_v3 = vor.u32 %v9723_v36, %v9112_v58  ;;  %v9476_v30 = vld [vmem:[%s15172_s6 + $0x304] sm:$0xf0]  ;;  %v9208_v32 = vld [vmem:[%s15172_s6 + $0xfc] sm:$0xf0]  ;;  %v9552_v57 = vld [vmem:[%s15173_s7 + $0x18] sm:$0xf0] }
 0x7f5   : > { %v5589_v37 = vmax.f32 %v5557_v23, 0.0  ;;  %6552 = vmatpush.bf16.msrb.mxu2 %v9415_v15  ;;  %v9785_v23 = vld [vmem:[%s15172_s6 + $0x204] sm:$0xf]  ;;  %10290 = vmatmul.lmr.bf16.gmra.8.mxu3  ;;  %v9292_v15 = vld [vmem:[%s15172_s6 + $0x1a4] sm:$0xf0] }
 0x7f6   : > { %v5317_v14 = vpop.f32.mrf.mxu1  ;;  %v9295_v40 = vor.u32 %v9770_v7, %v9292_v15  ;;  %v9836_v12 = vld [vmem:[%s15173_s7 + $0x14] sm:$0xf0]  ;;  %v9793_v7 = vld [vmem:[%s15172_s6 + $0x244] sm:$0xf] }
 0x7f7   : > { %v5354_v4 = vadd.f32 %v5317_v14, %v5170_v49  ;;  %6378 = vmatpush.bf16.msra.mxu3 %v9403_v11  ;;  %v9787_v14 = vld [vmem:[%s15172_s6 + $0x210] sm:$0xf0]  ;;  %v9140_v11 = vld [vmem:[%s15172_s6 + $0x64] sm:$0xf0]  ;;  %v9382_v58 = vld [vmem:[%s15172_s6 + $0x238] sm:$0xf] }
 0x7f8   : > { %v5488_v19 = vpop.f32.mrf.mxu2  ;;  %6437 = vmatpush.bf16.msra.mxu0 %v9379_v54  ;;  %v9347_v47 = vor.u32 %v9787_v14, %v9346_v60  ;;  %v9532_v54 = vld [vmem:[%s15172_s6 + $0x374] sm:$0xf0]  ;;  %v9823_v14 = vld [vmem:[%s15172_s6 + $0x330] sm:$0xf0] }
 0x7f9   : > { %v5522_v55 = vadd.f32 %v5485_v61, %v5354_v4  ;;  %v9772_v61 = vld [vmem:[%s15172_s6 + $0x19c] sm:$0xf]  ;;  %6553 = vmatpush.bf16.msrb.mxu2 %v9387_v8  ;;  %v9494_v60 = vld [vmem:[%s15172_s6 + $0x318] sm:$0xf] }
 0x7fa   : > { %v9311_v46 = vor.u32 %v9772_v61, %v9308_v18  ;;  %v9784_v4 = vld [vmem:[%s15172_s6 + $0x1fc] sm:$0xf]  ;;  %v13312_v61 = vor.u32 %v9828_v59, %v9532_v54  ;;  %v9833_v18 = vld [vmem:[%s15173_s7 + $0x4] sm:$0xf]  ;;  %v13452_v59 = vor.u32 %v9793_v7, %v9392_v50  ;;  %v9354_v54 = vld [vmem:[%s15172_s6 + $0x200] sm:$0xf] }
 0x7fb   : > { %v5558_v44 = vadd.f32 %v12917_v35, %v5522_v55  ;;  %6379 = vmatpush.bf16.msra.mxu3 %v9375_v13  ;;  %v9356_v55 = vld [vmem:[%s15172_s6 + $0x21c] sm:$0xf0]  ;;  %v9351_v45 = vor.u32 %v9784_v4, %v9348_v2  ;;  %v9834_v13 = vld [vmem:[%s15173_s7 + $0x4] sm:$0xf0]  ;;  %v9821_v4 = vld [vmem:[%s15172_s6 + $0x324] sm:$0xf] }
 0x7fc   : > { %6635 = vmatpush.bf16.msra.mxu1 %v9311_v46  ;;  %v9359_v22 = vor.u32 %v9785_v23, %v9356_v55  ;;  %v9236_v2 = vld [vmem:[%s15172_s6 + $0x134] sm:$0xf0]  ;;  %v9466_v55 = vld [vmem:[%s15172_s6 + $0x2e0] sm:$0xf]  ;;  %v9753_v7 = vld [vmem:[%s15172_s6 + $0x100] sm:$0xf0] }
 0x7fd   : > { %v5590_v26 = vmax.f32 %v5558_v44, 0.0  ;;  %6438 = vmatpush.bf16.msra.mxu0 %v9351_v45  ;;  %v9323_v44 = vor.u32 %v9777_v33, %v9320_v0  ;;  %10291 = vmatmul.lmr.bf16.gmra.8.mxu3  ;;  %v9816_v45 = vld [vmem:[%s15172_s6 + $0x2f8] sm:$0xf0]  ;;  %v9438_v33 = vld [vmem:[%s15172_s6 + $0x2a8] sm:$0xf] }
 0x7fe   : > { %v5320_v56 = vpop.f32.mrf.mxu1  ;;  %6554 = vmatpush.bf16.msrb.mxu2 %v9359_v22  ;;  %v13366_v22 = vor.u32 %v9814_v1, %v9476_v30  ;;  %v9809_v0 = vld [vmem:[%s15172_s6 + $0x2c0] sm:$0xf0]  ;;  %v9838_v1 = vld [vmem:[%s15173_s7 + $0x24] sm:$0xf0]  ;;  %v9750_v50 = vld [vmem:[%s15172_s6 + $0xec] sm:$0xf] }
 0x7ff   : > { %v5607_v17 = vpack.c.bf16 %v5590_v26, %v5589_v37  ;;  %v5355_v48 = vadd.f32 %v5320_v56, %v5171_v28  ;;  %6380 = vmatpush.bf16.msra.mxu3 %v9347_v47  ;;  %v9255_v37 = vor.u32 %v9758_v31, %v9252_v9  ;;  %v9224_v56 = vld [vmem:[%s15172_s6 + $0x10c] sm:$0xf0]  ;;  %v9744_v28 = vld [vmem:[%s15172_s6 + $0xbc] sm:$0xf]  ;;  %v9439_v31 = vor.u32 %v9809_v0, %v9438_v33  ;;  %v9180_v9 = vld [vmem:[%s15172_s6 + $0xc4] sm:$0xf0] }
 0x800   : > { %v5490_v27 = vpop.f32.mrf.mxu2  ;;  %6636 = vmatpush.bf16.msra.mxu1 %v9283_v21  ;;  %v9199_v5 = vor.u32 %v9744_v28, %v9196_v53  ;;  %v9756_v47 = vld [vmem:[%s15172_s6 + $0x11c] sm:$0xf]  ;;  %v9749_v21 = vld [vmem:[%s15172_s6 + $0xe4] sm:$0xf]  ;;  %v9835_v53 = vld [vmem:[%s15173_s7 + $0x14] sm:$0xf] }
 0x801   : > { %v5523_v43 = vadd.f32 %v5488_v19, %v5355_v48  ;;  %6439 = vmatpush.bf16.msra.mxu0 %v9323_v44  ;;  %v9751_v19 = vld [vmem:[%s15172_s6 + $0xf4] sm:$0xf]  ;;  %v9730_v48 = vld [vmem:[%s15172_s6 + $0x4c] sm:$0xf]  ;;  %v9239_v62 = vor.u32 %v9756_v47, %v9236_v2  ;;  %v9837_v2 = vld [vmem:[%s15173_s7 + $0x24] sm:$0xf] }
 0x802   : > { %5759 = vxpose.xlu0.c.b16.cont [7/8] (narrow) %v5607_v17, 64  ;;  %v9227_v17 = vor.u32 %v9751_v19, %v9224_v56  ;;  %v9143_v24 = vor.u32 %v9730_v48, %v9140_v11  ;;  %v9807_v44 = vld [vmem:[%s15172_s6 + $0x2b4] sm:$0xf]  ;;  %v9800_v19 = vld [vmem:[%s15172_s6 + $0x27c] sm:$0xf] }
 0x803   : > { %v5559_v63 = vadd.f32 %v12917_v35, %v5523_v43  ;;  %6381 = vmatpush.bf16.msra.mxu3 %v9319_v29  ;;  %v9542_v43 = vld [vmem:[%s15173_s7] sm:$0xf]  ;;  %v9742_v29 = vld [vmem:[%s15172_s6 + $0xac] sm:$0xf]  ;;  %v9420_v56 = vld [vmem:[%s15172_s6 + $0x294] sm:$0xf0] }
 0x804   : > { %6637 = vmatpush.bf16.msra.mxu1 %v9255_v37  ;;  %v9543_v8 = vor.u32 %v9834_v13, %v9542_v43  ;;  %v9410_v37 = vld [vmem:[%s15172_s6 + $0x270] sm:$0xf]  ;;  %v9735_v48 = vld [vmem:[%s15172_s6 + $0x74] sm:$0xf]  ;;  %v9568_v33 = vld [vmem:[%s15173_s7 + $0x38] sm:$0xf0] }
 0x805   : > { %v5591_v20 = vmax.f32 %v5559_v63, 0.0  ;;  %10292 = vmatmul.lmr.bf16.gmra.8.mxu3  ;;  %v9495_v63 = vor.u32 %v9823_v14, %v9494_v60  ;;  %v9152_v11 = vld [vmem:[%s15172_s6 + $0x8c] sm:$0xf0]  ;;  %v9779_v60 = vld [vmem:[%s15172_s6 + $0x1d4] sm:$0xf] }
 0x806   : > { %v5322_v49 = vpop.f32.mrf.mxu1  ;;  %v9155_v36 = vor.u32 %v9735_v48, %v9152_v11  ;;  %v9336_v14 = vld [vmem:[%s15172_s6 + $0x1ec] sm:$0xf0]  ;;  %v9840_v0 = vld [vmem:[%s15173_s7 + $0x34] sm:$0xf0]  ;;  %v9242_v48 = vld [vmem:[%s15172_s6 + $0x120] sm:$0xf] }
 0x807   : > { %v5356_v52 = vadd.f32 %v5322_v49, %v5172_v6  ;;  %v9544_v6 = vld [vmem:[%s15173_s7 + $0x8] sm:$0xf0]  ;;  %v9763_v49 = vld [vmem:[%s15172_s6 + $0x154] sm:$0xf]  ;;  %v9760_v11 = vld [vmem:[%s15172_s6 + $0x138] sm:$0xf0] }
 0x808   : > { %6638 = vmatpush.bf16.msra.mxu1 %v9227_v17  ;;  %v9547_v46 = vor.u32 %v9833_v18, %v9544_v6  ;;  %v13413_v17 = vor.u32 %v9800_v19, %v9420_v56  ;;  %v9786_v18 = vld [vmem:[%s15172_s6 + $0x20c] sm:$0xf]  ;;  %v9364_v6 = vld [vmem:[%s15172_s6 + $0x224] sm:$0xf0]  ;;  %v9270_v19 = vld [vmem:[%s15172_s6 + $0x158] sm:$0xf] }
 0x809   : > { %v5524_v42 = vadd.f32 %v5490_v27, %v5356_v52  ;;  %v9264_v52 = vld [vmem:[%s15172_s6 + $0x16c] sm:$0xf0]  ;;  %v9767_v56 = vld [vmem:[%s15172_s6 + $0x170] sm:$0xf0] }
 0x80a   : > { %v9267_v27 = vor.u32 %v9763_v49, %v9264_v52  ;;  %6827 = vxpose.binary.xlu1.c.b16.start [1/8] (short) %v9547_v46, %v9543_v8, 128  ;;  %v13467_v46 = vor.u32 %v9786_v18, %v9364_v6  ;;  %v9721_v49 = vld [vmem:[%s15172_s6 + $0x4] sm:$0xf]  ;;  %v9096_v52 = vld [vmem:[%s15172_s6 + $0x1c] sm:$0xf0]  ;;  %v9326_v8 = vld [vmem:[%s15172_s6 + $0x1c8] sm:$0xf] }
 0x80b   : > { %v5560_v10 = vadd.f32 %v12917_v35, %v5524_v42  ;;  %v9778_v35 = vld [vmem:[%s15172_s6 + $0x1cc] sm:$0xf]  ;;  %v9504_v42 = vld [vmem:[%s15172_s6 + $0x33c] sm:$0xf0] }
 0x80c   : > { %v9331_v51 = vor.u32 %v9778_v35, %v9328_v39  ;;  %6639 = vmatpush.bf16.msra.mxu1 %v9199_v5  ;;  %v13351_v23 = vor.u32 %v9821_v4, %v9504_v42  ;;  %v9448_v35 = vld [vmem:[%s15172_s6 + $0x2cc] sm:$0xf0]  ;;  %v9211_v39 = vor.u32 %v9749_v21, %v9208_v32  ;;  %v9099_v4 = vor.u32 %v9721_v49, %v9096_v52  ;;  %v9839_v21 = vld [vmem:[%s15173_s7 + $0x34] sm:$0xf]  ;;  %v9746_v18 = vld [vmem:[%s15172_s6 + $0xc8] sm:$0xf0] }
 0x80d   : > { %v5592_v16 = vmax.f32 %v5560_v10, 0.0  ;;  %10293 = vmatmul.lmr.bf16.gmra.8.mxu3  ;;  %v9467_v10 = vor.u32 %v9816_v45, %v9466_v55  ;;  %v9550_v5 = vld [vmem:[%s15173_s7 + $0x10] sm:$0xf]  ;;  %v13488_v42 = vor.u32 %v9779_v60, %v9336_v14  ;;  %v9558_v55 = vld [vmem:[%s15173_s7 + $0x20] sm:$0xf] }
 0x80e   : > { %6555 = vmatpush.bf16.msrb.mxu2 %v9331_v51  ;;  %v9802_v51 = vld [vmem:[%s15172_s6 + $0x288] sm:$0xf0]  ;;  %v9559_v30 = vor.u32 %v9838_v1, %v9558_v55  ;;  %v9566_v32 = vld [vmem:[%s15173_s7 + $0x30] sm:$0xf]  ;;  %v9158_v49 = vld [vmem:[%s15172_s6 + $0x78] sm:$0xf] }
 0x80f   : > { %v5608_v26 = vpack.c.bf16 %v5592_v16, %v5591_v20  ;;  %v13387_v20 = vor.u32 %v9807_v44, %v9448_v35  ;;  %v9411_v28 = vor.u32 %v9802_v51, %v9410_v37  ;;  %v9560_v45 = vld [vmem:[%s15173_s7 + $0x28] sm:$0xf0]  ;;  %v9571_v44 = vor.u32 %v9839_v21, %v9568_v33  ;;  %v9771_v37 = vld [vmem:[%s15172_s6 + $0x194] sm:$0xf]  ;;  %v9300_v51 = vld [vmem:[%s15172_s6 + $0x1ac] sm:$0xf0] }
 0x810   : > { %6640 = vmatpush.bf16.msra.mxu1 %v9171_v41  ;;  %v9555_v41 = vor.u32 %v9835_v53, %v9552_v57  ;;  %v9567_v35 = vor.u32 %v9840_v0, %v9566_v32  ;;  %v9764_v53 = vld [vmem:[%s15172_s6 + $0x15c] sm:$0xf]  ;;  %v9271_v57 = vor.u32 %v9767_v56, %v9270_v19  ;;  %v9739_v52 = vld [vmem:[%s15172_s6 + $0x90] sm:$0xf0]  ;;  %v9160_v14 = vld [vmem:[%s15172_s6 + $0x94] sm:$0xf0] }
 0x811   : > { %v9736_v60 = vld [vmem:[%s15172_s6 + $0x7c] sm:$0xf]  ;;  %v9102_v32 = vld [vmem:[%s15172_s6 + $0x8] sm:$0xf]  ;;  %v9725_v33 = vld [vmem:[%s15172_s6 + $0x20] sm:$0xf0] }
 0x812   : > { %5760 = vxpose.xlu0.c.b16.end [8/8] (narrow) %v5608_v26, 64  ;;  %10214 = vmatpush.bf16.msra.mxu2 %v13312_v61  ;;  %v9183_v26 = vor.u32 %v9742_v29, %v9180_v9  ;;  %v9298_v29 = vld [vmem:[%s15172_s6 + $0x190] sm:$0xf]  ;;  %v9774_v9 = vld [vmem:[%s15172_s6 + $0x1a8] sm:$0xf0] }
 0x813   : > { %v9732_v55 = vld [vmem:[%s15172_s6 + $0x58] sm:$0xf0]  ;;  %v9722_v0 = vld [vmem:[%s15172_s6 + $0xc] sm:$0xf]  ;;  %v9306_v19 = vld [vmem:[%s15172_s6 + $0x198] sm:$0xf] }
 0x814   : > { %6641 = vmatpush.bf16.msra.mxu1 %v9143_v24  ;;  %v9551_v24 = vor.u32 %v9836_v12, %v9550_v5  ;;  %v9272_v5 = vld [vmem:[%s15172_s6 + $0x174] sm:$0xf0]  ;;  %v9775_v56 = vld [vmem:[%s15172_s6 + $0x1b0] sm:$0xf0] }
 0x815   : > { %v9275_v12 = vor.u32 %v9764_v53, %v9272_v5  ;;  %v9307_v53 = vor.u32 %v9775_v56, %v9306_v19  ;;  %v9831_v5 = vld [vmem:[%s15172_s6 + $0x370] sm:$0xf0]  ;;  %v9733_v19 = vld [vmem:[%s15172_s6 + $0x60] sm:$0xf0]  ;;  %v9362_v56 = vld [vmem:[%s15172_s6 + $0x208] sm:$0xf] }
 0x816   : > { %10215 = vmatpush.bf16.msra.mxu2 %v13351_v23 }
 0x818   : > { %6642 = vmatpush.bf16.msra.mxu1 %v9115_v3  ;;  %v9795_v3 = vld [vmem:[%s15172_s6 + $0x250] sm:$0xf0] }
 0x819   : > { %v9383_v15 = vor.u32 %v9795_v3, %v9382_v58  ;;  %v9244_v58 = vld [vmem:[%s15172_s6 + $0x13c] sm:$0xf0]  ;;  %v9214_v3 = vld [vmem:[%s15172_s6 + $0xe8] sm:$0xf] }
 0x81a   : > { %10216 = vmatpush.bf16.msra.mxu2 %v13366_v22 }
 0x81b   : > { %10254 = vmatmul.lmr.bf16.vlgmr.msra.gmra.8.mxu1 }
 0x81c   : > { %6828 = vxpose.binary.xlu1.c.b16.cont [2/8] (short) %v9555_v41, %v9551_v24, 128  ;;  %v9757_v24 = vld [vmem:[%s15172_s6 + $0x124] sm:$0xf] }
 0x81e   : > { %10217 = vmatpush.bf16.msra.mxu2 %v13387_v20 }
 0x822   : > { %10218 = vmatpush.bf16.msra.mxu2 %v13413_v17 }
 0x823   : > { %10255 = vmatmul.lmr.bf16.gmra.8.mxu1 }
 0x826   : > { %10219 = vmatpush.bf16.msra.mxu2 %v13452_v59 }
 0x82a   : > { %10220 = vmatpush.bf16.msra.mxu2 %v13467_v46 }
 0x82b   : > { %10256 = vmatmul.lmr.bf16.gmra.8.mxu1 }
 0x82e   : > { %10221 = vmatpush.bf16.msra.mxu2 %v13488_v42 }
 0x833   : > { %10257 = vmatmul.lmr.bf16.gmra.8.mxu1 }
 0x83b   : > { %10258 = vmatmul.lmr.bf16.gmra.8.mxu1 }
 0x843   : > { %10259 = vmatmul.lmr.bf16.gmra.8.mxu1 }
 0x84b   : > { %10260 = vmatmul.lmr.bf16.gmra.8.mxu1 }
 0x84e   : > { %v13289_v34 = vpop.trf.xlu0 }
 0x84f   : > { %6382 = vmatmul.bf16.vlgmr.msra.gmra.mxu3 %v13289_v34  ;;  %6440 = vmatmul.bf16.vlgmr.msra.gmra.mxu0 %v13289_v34 }
 0x850   : > { %6556 = vmatmul.bf16.vlgmr.msrb.gmra.mxu2 %v13289_v34  ;;  %6403 = vmatpush.bf16.msra.mxu3 %v9295_v40  ;;  %v9728_v40 = vld [vmem:[%s15172_s6 + $0x3c] sm:$0xf] }
 0x851   : > { %6490 = vmatpush.bf16.msra.mxu0 %v9523_v25  ;;  %v9788_v25 = vld [vmem:[%s15172_s6 + $0x218] sm:$0xf0]  ;;  %v9127_v43 = vor.u32 %v9728_v40, %v9124_v38  ;;  %v9216_v40 = vld [vmem:[%s15172_s6 + $0x104] sm:$0xf0]  ;;  %v9215_v38 = vor.u32 %v9753_v7, %v9214_v3 }
 0x852   : > { %v9355_v13 = vor.u32 %v9788_v25, %v9354_v54  ;;  %v9219_v54 = vor.u32 %v9750_v50, %v9216_v40  ;;  %v9186_v25 = vld [vmem:[%s15172_s6 + $0xb0] sm:$0xf]  ;;  %v9761_v50 = vld [vmem:[%s15172_s6 + $0x140] sm:$0xf0]  ;;  %v9474_v40 = vld [vmem:[%s15172_s6 + $0x2e8] sm:$0xf] }
 0x853   : > { %10261 = vmatmul.lmr.bf16.gmra.8.mxu1  ;;  %v9187_v6 = vor.u32 %v9746_v18, %v9186_v25 }
 0x854   : > { %6404 = vmatpush.bf16.msra.mxu3 %v9267_v27  ;;  %v9781_v27 = vld [vmem:[%s15172_s6 + $0x1e0] sm:$0xf0] }
 0x855   : > { %6491 = vmatpush.bf16.msra.mxu0 %v9495_v63  ;;  %v9327_v63 = vor.u32 %v9781_v27, %v9326_v8 }
 0x858   : > { %6405 = vmatpush.bf16.msra.mxu3 %v9239_v62  ;;  %v9563_v62 = vor.u32 %v9837_v2, %v9560_v45  ;;  %v9130_v2 = vld [vmem:[%s15172_s6 + $0x40] sm:$0xf]  ;;  %v9729_v45 = vld [vmem:[%s15172_s6 + $0x44] sm:$0xf] }
 0x859   : > { %6492 = vmatpush.bf16.msra.mxu0 %v9467_v10  ;;  %v9131_v1 = vor.u32 %v9732_v55, %v9130_v2  ;;  %v9803_v55 = vld [vmem:[%s15172_s6 + $0x290] sm:$0xf0] }
 0x85a   : > { %6829 = vxpose.binary.xlu1.c.b16.cont [3/8] (short) %v9563_v62, %v9559_v30, 128  ;;  %v9132_v62 = vld [vmem:[%s15172_s6 + $0x5c] sm:$0xf0] }
 0x85b   : > { %v9135_v30 = vor.u32 %v9729_v45, %v9132_v62  ;;  %v9166_v62 = vld [vmem:[%s15172_s6 + $0x80] sm:$0xf] }
 0x85c   : > { %6406 = vmatpush.bf16.msra.mxu3 %v9211_v39  ;;  %v13525_v39 = vpop.f32.mrf.mxu3 }
 0x85d   : > { %6493 = vmatpush.bf16.msra.mxu0 %v9439_v31 }
 0x85e   : > { %v13389_v16 = vpop.trf.xlu0 }
 0x85f   : > { %6387 = vmatmul.bf16.gmra.mxu3 %v13389_v16  ;;  %6445 = vmatmul.bf16.gmra.mxu0 %v13389_v16 }
 0x860   : > { %6561 = vmatmul.bf16.gmra.mxu2 %v13389_v16  ;;  %6407 = vmatpush.bf16.msra.mxu3 %v9183_v26  ;;  %v9299_v26 = vor.u32 %v9774_v9, %v9298_v29 }
 0x861   : > { %6494 = vmatpush.bf16.msra.mxu0 %v9411_v28  ;;  %v9303_v28 = vor.u32 %v9771_v37, %v9300_v51 }
 0x864   : > { %6408 = vmatpush.bf16.msra.mxu3 %v9155_v36  ;;  %v13527_v31 = vpop.f32.mrf.mxu3  ;;  %v9243_v36 = vor.u32 %v9760_v11, %v9242_v48  ;;  %v9278_v48 = vld [vmem:[%s15172_s6 + $0x160] sm:$0xf]  ;;  %v9768_v11 = vld [vmem:[%s15172_s6 + $0x178] sm:$0xf0] }
 0x865   : > { %6495 = vmatpush.bf16.msra.mxu0 %v9383_v15  ;;  %v9247_v15 = vor.u32 %v9757_v24, %v9244_v58  ;;  %v9502_v24 = vld [vmem:[%s15172_s6 + $0x320] sm:$0xf]  ;;  %v9824_v58 = vld [vmem:[%s15172_s6 + $0x338] sm:$0xf0] }
 0x866   : > { %v9503_v7 = vor.u32 %v9824_v58, %v9502_v24  ;;  %v9334_v24 = vld [vmem:[%s15172_s6 + $0x1d0] sm:$0xf]  ;;  %v9782_v58 = vld [vmem:[%s15172_s6 + $0x1e8] sm:$0xf0] }
 0x868   : > { %6409 = vmatpush.bf16.msra.mxu3 %v9127_v43  ;;  %v9743_v43 = vld [vmem:[%s15172_s6 + $0xb4] sm:$0xf] }
 0x869   : > { %6496 = vmatpush.bf16.msra.mxu0 %v9355_v13  ;;  %v9188_v13 = vld [vmem:[%s15172_s6 + $0xcc] sm:$0xf0] }
 0x86a   : > { %6830 = vxpose.binary.xlu1.c.b16.end [4/8] (short) %v9571_v44, %v9567_v35, 128  ;;  %v9191_v27 = vor.u32 %v9743_v43, %v9188_v13  ;;  %v9103_v44 = vor.u32 %v9725_v33, %v9102_v32  ;;  %v9104_v35 = vld [vmem:[%s15172_s6 + $0x24] sm:$0xf0]  ;;  %v9222_v43 = vld [vmem:[%s15172_s6 + $0xf0] sm:$0xf]  ;;  %v9390_v32 = vld [vmem:[%s15172_s6 + $0x240] sm:$0xf] }
 0x86b   : > { %v9107_v29 = vor.u32 %v9722_v0, %v9104_v35  ;;  %v9446_v13 = vld [vmem:[%s15172_s6 + $0x2b0] sm:$0xf]  ;;  %v9796_v0 = vld [vmem:[%s15172_s6 + $0x258] sm:$0xf0] }
 0x86c   : > { %6410 = vmatpush.bf16.msra.mxu3 %v9099_v4  ;;  %v13555_v41 = vpop.f32.mrf.mxu3  ;;  %v9159_v4 = vor.u32 %v9739_v52, %v9158_v49  ;;  %v9810_v52 = vld [vmem:[%s15172_s6 + $0x2c8] sm:$0xf0]  ;;  %v9391_v35 = vor.u32 %v9796_v0, %v9390_v32 }
 0x86d   : > { %6497 = vmatpush.bf16.msra.mxu0 %v9327_v63  ;;  %v9163_v63 = vor.u32 %v9736_v60, %v9160_v14  ;;  %v9447_v60 = vor.u32 %v9810_v52, %v9446_v13  ;;  %v9194_v14 = vld [vmem:[%s15172_s6 + $0xb8] sm:$0xf] }
 0x86e   : > { %v13490_v47 = vpop.trf.xlu0 }
 0x86f   : > { %6392 = vmatmul.bf16.gmra.mxu3 %v13490_v47  ;;  %6450 = vmatmul.bf16.gmra.mxu0 %v13490_v47 }
 0x870   : > { %6566 = vmatmul.bf16.gmra.mxu2 %v13490_v47 }
 0x874   : > { %v13600_v8 = vpop.f32.mrf.mxu3 }
 0x87c   : > { %v13620_v21 = vpop.f32.mrf.mxu3 }
 0x87e   : > { %v13508_v10 = vpop.trf.xlu0 }
 0x87f   : > { %6397 = vmatmul.bf16.gmra.mxu3 %v13508_v10  ;;  %6455 = vmatmul.bf16.gmra.mxu0 %v13508_v10 }
 0x880   : > { %6571 = vmatmul.bf16.gmra.mxu2 %v13508_v10 }
 0x884   : > { %v13635_v9 = vpop.f32.mrf.mxu3 }
 0x88c   : > { %v13637_v37 = vpop.f32.mrf.mxu3 }
 0x88f   : > { %10294 = vmatmul.lmr.bf16.vlgmr.msra.gmra.8.mxu3  ;;  %6498 = vmatmul.bf16.vlgmr.msra.gmra.mxu0 %v13289_v34 }
 0x890   : > { %6687 = vmatmul.bf16.vlgmr.msra.gmra.mxu2 %v13508_v10  ;;  %6461 = vmatpush.bf16.msra.mxu3 %v9299_v26 }
 0x891   : > { %6519 = vmatpush.bf16.msra.mxu0 %v9303_v28  ;;  %v9530_v28 = vld [vmem:[%s15172_s6 + $0x358] sm:$0xf] }
 0x894   : > { %6462 = vmatpush.bf16.msra.mxu3 %v9271_v57  ;;  %v13640_v26 = vpop.f32.mrf.mxu3  ;;  %v9531_v57 = vor.u32 %v9831_v5, %v9530_v28 }
 0x895   : > { %6520 = vmatpush.bf16.msra.mxu0 %v9275_v12 }
 0x897   : > { %10295 = vmatmul.lmr.bf16.gmra.8.mxu3 }
 0x898   : > { %6463 = vmatpush.bf16.msra.mxu3 %v9243_v36  ;;  %v9279_v36 = vor.u32 %v9768_v11, %v9278_v48  ;;  %v9110_v48 = vld [vmem:[%s15172_s6 + $0x10] sm:$0xf]  ;;  %v9726_v11 = vld [vmem:[%s15172_s6 + $0x28] sm:$0xf0] }
 0x899   : > { %6521 = vmatpush.bf16.msra.mxu0 %v9247_v15  ;;  %v9250_v15 = vld [vmem:[%s15172_s6 + $0x128] sm:$0xf] }
 0x89c   : > { %6464 = vmatpush.bf16.msra.mxu3 %v9215_v38  ;;  %v9251_v38 = vor.u32 %v9761_v50, %v9250_v15  ;;  %v9335_v15 = vor.u32 %v9782_v58, %v9334_v24  ;;  %v9230_v58 = vld [vmem:[%s15172_s6 + $0xf8] sm:$0xf] }
 0x89d   : > { %6522 = vmatpush.bf16.msra.mxu0 %v9219_v54  ;;  %v9817_v54 = vld [vmem:[%s15172_s6 + $0x300] sm:$0xf0] }
 0x89e   : > { %v9475_v25 = vor.u32 %v9817_v54, %v9474_v40 }
 0x89f   : > { %10296 = vmatmul.lmr.bf16.gmra.8.mxu3  ;;  %6503 = vmatmul.bf16.gmra.mxu0 %v13389_v16 }
 0x8a0   : > { %6465 = vmatpush.bf16.msra.mxu3 %v9187_v6  ;;  %v9754_v6 = vld [vmem:[%s15172_s6 + $0x108] sm:$0xf0] }
 0x8a1   : > { %6523 = vmatpush.bf16.msra.mxu0 %v9191_v27  ;;  %v9223_v49 = vor.u32 %v9754_v6, %v9222_v43 }
 0x8a4   : > { %6466 = vmatpush.bf16.msra.mxu3 %v9159_v4  ;;  %v9747_v4 = vld [vmem:[%s15172_s6 + $0xd0] sm:$0xf0] }
 0x8a5   : > { %6524 = vmatpush.bf16.msra.mxu0 %v9163_v63  ;;  %v9418_v63 = vld [vmem:[%s15172_s6 + $0x278] sm:$0xf]  ;;  %v9195_v2 = vor.u32 %v9747_v4, %v9194_v14 }
 0x8a6   : > { %v9419_v45 = vor.u32 %v9803_v55, %v9418_v63  ;;  %v13774_v55 = vpop.f32.mrf.mxu1 }
 0x8a7   : > { %10297 = vmatmul.lmr.bf16.gmra.8.mxu3 }
 0x8a8   : > { %6467 = vmatpush.bf16.msra.mxu3 %v9131_v1 }
 0x8a9   : > { %6525 = vmatpush.bf16.msra.mxu0 %v9135_v30  ;;  %v9740_v30 = vld [vmem:[%s15172_s6 + $0x98] sm:$0xf0] }
 0x8aa   : > { %v9167_v33 = vor.u32 %v9740_v30, %v9166_v62 }
 0x8ac   : > { %6468 = vmatpush.bf16.msra.mxu3 %v9103_v44 }
 0x8ad   : > { %6526 = vmatpush.bf16.msra.mxu0 %v9107_v29  ;;  %v9138_v29 = vld [vmem:[%s15172_s6 + $0x48] sm:$0xf] }
 0x8ae   : > { %v9139_v28 = vor.u32 %v9733_v19, %v9138_v29 }
 0x8af   : > { %10298 = vmatmul.lmr.bf16.gmra.8.mxu3  ;;  %6508 = vmatmul.bf16.gmra.mxu0 %v13490_v47 }
 0x8b7   : > { %10299 = vmatmul.lmr.bf16.gmra.8.mxu3 }
 0x8bf   : > { %10300 = vmatmul.lmr.bf16.gmra.8.mxu3  ;;  %6513 = vmatmul.bf16.gmra.mxu0 %v13508_v10 }
 0x8c7   : > { %10301 = vmatmul.lmr.bf16.gmra.8.mxu3 }
 0x8cc   : > { %v13642_v51 = vpop.f32.mrf.mxu0 }
 0x8cf   : > { %10302 = vmatmul.lmr.bf16.vlgmr.msra.gmra.8.mxu3  ;;  %10234 = vmatmul.lmr.bf16.vlgmr.msra.gmra.8.mxu0 }
 0x8d0   : > { %6577 = vmatpush.bf16.msra.mxu3 %v9307_v53  ;;  %6606 = vmatpush.bf16.msra.mxu0 %v9531_v57  ;;  %v9789_v53 = vld [vmem:[%s15172_s6 + $0x220] sm:$0xf0] }
 0x8d1   : > { %v9363_v5 = vor.u32 %v9789_v53, %v9362_v56  ;;  %v9769_v53 = vld [vmem:[%s15172_s6 + $0x180] sm:$0xf0] }
 0x8d2   : > { %v13656_v12 = vpop.f32.mrf.mxu3 }
 0x8d4   : > { %v13670_v3 = vpop.f32.mrf.mxu0  ;;  %6578 = vmatpush.bf16.msra.mxu3 %v9279_v36  ;;  %6607 = vmatpush.bf16.msra.mxu0 %v9503_v7  ;;  %v9111_v36 = vor.u32 %v9726_v11, %v9110_v48  ;;  %v9258_v11 = vld [vmem:[%s15172_s6 + $0x130] sm:$0xf] }
 0x8d7   : > { %10303 = vmatmul.lmr.bf16.gmra.8.mxu3  ;;  %10235 = vmatmul.lmr.bf16.gmra.8.mxu0 }
 0x8d8   : > { %6579 = vmatpush.bf16.msra.mxu3 %v9251_v38  ;;  %6608 = vmatpush.bf16.msra.mxu0 %v9475_v25  ;;  %v13756_v38 = vpop.f32.mrf.mxu2 }
 0x8da   : > { %v13684_v18 = vpop.f32.mrf.mxu3 }
 0x8dc   : > { %v13698_v27 = vpop.f32.mrf.mxu0  ;;  %6580 = vmatpush.bf16.msra.mxu3 %v9223_v49  ;;  %6609 = vmatpush.bf16.msra.mxu0 %v9447_v60 }
 0x8df   : > { %10304 = vmatmul.lmr.bf16.gmra.8.mxu3  ;;  %10236 = vmatmul.lmr.bf16.gmra.8.mxu0 }
 0x8e0   : > { %6581 = vmatpush.bf16.msra.mxu3 %v9195_v2  ;;  %6610 = vmatpush.bf16.msra.mxu0 %v9419_v45  ;;  %v13762_v13 = vpop.f32.mrf.mxu2 }
 0x8e2   : > { %v13712_v1 = vpop.f32.mrf.mxu3 }
 0x8e4   : > { %v13726_v44 = vpop.f32.mrf.mxu0  ;;  %6582 = vmatpush.bf16.msra.mxu3 %v9167_v33  ;;  %6611 = vmatpush.bf16.msra.mxu0 %v9391_v35 }
 0x8e6   : > { %v13760_v43 = vpop.trf.xlu1 }
 0x8e7   : > { %10305 = vmatmul.lmr.bf16.gmra.8.mxu3  ;;  %10237 = vmatmul.lmr.bf16.gmra.8.mxu0 }
 0x8e8   : > { %6583 = vmatpush.bf16.msra.mxu3 %v9139_v28  ;;  %6612 = vmatpush.bf16.msra.mxu0 %v9363_v5  ;;  %v13772_v2 = vpop.f32.mrf.mxu2  ;;  %v9286_v28 = vld [vmem:[%s15172_s6 + $0x168] sm:$0xf] }
 0x8ea   : > { %v6390_v57 = vpop.f32.mrf.mxu3 }
 0x8ec   : > { %v13752_v7 = vpop.f32.mrf.mxu0  ;;  %6584 = vmatpush.bf16.msra.mxu3 %v9111_v36  ;;  %6613 = vmatpush.bf16.msra.mxu0 %v9335_v15 }
 0x8ee   : > { %v13766_v52 = vpop.trf.xlu1 }
 0x8ef   : > { %10306 = vmatmul.lmr.bf16.gmra.8.mxu3  ;;  %10238 = vmatmul.lmr.bf16.gmra.8.mxu0 }
 0x8f2   : > { %v6393_v50 = vpop.f32.mrf.mxu3 }
 0x8f3   : > { %v6394_v30 = vadd.f32 %v6393_v50, %v13620_v21  ;;  %v6386_v21 = vadd.f32 %v13684_v18, %v13527_v31 }
 0x8f4   : > { %v13754_v40 = vpop.f32.mrf.mxu0 }
 0x8f6   : > { %v13779_v32 = vpop.trf.xlu1 }
 0x8f7   : > { %10307 = vmatmul.lmr.bf16.gmra.8.mxu3  ;;  %10239 = vmatmul.lmr.bf16.gmra.8.mxu0 }
 0x8fa   : > { %v6395_v54 = vpop.f32.mrf.mxu3 }
 0x8fb   : > { %v6396_v62 = vadd.f32 %v6395_v54, %v13635_v9  ;;  %v6389_v9 = vadd.f32 %v13712_v1, %v13555_v41 }
 0x8fc   : > { %v13758_v25 = vpop.f32.mrf.mxu0 }
 0x8fe   : > { %v13799_v19 = vpop.trf.xlu1 }
 0x8ff   : > { %10308 = vmatmul.lmr.bf16.gmra.8.mxu3  ;;  %10240 = vmatmul.lmr.bf16.gmra.8.mxu0 }
 0x902   : > { %v6398_v6 = vpop.f32.mrf.mxu3 }
 0x903   : > { %v6399_v14 = vadd.f32 %v6398_v6, %v13637_v37  ;;  %v6391_v37 = vadd.f32 %v6390_v57, %v13600_v8  ;;  %v13795_v8 = vpop.f32.mrf.mxu1  ;;  %v9287_v57 = vor.u32 %v9769_v53, %v9286_v28 }
 0x904   : > { %v13764_v49 = vpop.f32.mrf.mxu0 }
 0x905   : > { %v6758_v29 = vpack.c.bf16 %v6391_v37, %v6389_v9 }
 0x907   : > { %10309 = vmatmul.lmr.bf16.gmra.8.mxu3  ;;  %10241 = vmatmul.lmr.bf16.gmra.8.mxu0 }
 0x90a   : > { %v6400_v60 = vpop.f32.mrf.mxu3 }
 0x90b   : > { %v6401_v4 = vadd.f32 %v6400_v60, %v13640_v26  ;;  %v6765_v26 = vpack.c.bf16 %v6396_v62, %v6394_v30  ;;  %v13823_v56 = vpop.f32.mrf.mxu1  ;;  %v9741_v30 = vld [vmem:[%s15172_s6 + $0xa0] sm:$0xf0] }
 0x90c   : > { %v13770_v63 = vpop.f32.mrf.mxu0 }
 0x90d   : > { %v6772_v45 = vpack.c.bf16 %v6401_v4, %v6399_v14 }
 0x90f   : > { %10310 = vmatmul.lmr.bf16.vlgmr.msra.gmra.8.mxu3  ;;  %6614 = vmatmul.bf16.vlgmr.msra.gmra.mxu0 %v13289_v34 }
 0x910   : > { %6894 = vmatpush.bf16.msra.mxu1 %v6772_v45  ;;  %6664 = vmatpush.bf16.msra.mxu0 %v13312_v61  ;;  %v13793_v61 = vpop.f32.mrf.mxu2  ;;  %v9202_v45 = vld [vmem:[%s15172_s6 + $0xc0] sm:$0xf] }
 0x912   : > { %v6412_v33 = vpop.f32.mrf.mxu3 }
 0x913   : > { %v13784_v0 = vadd.f32 %v13642_v51, %v6412_v33  ;;  %v6384_v51 = vadd.f32 %v13656_v12, %v13525_v39  ;;  %v9314_v39 = vld [vmem:[%s15172_s6 + $0x1a0] sm:$0xf]  ;;  %v13852_v6 = vpop.f32.mrf.mxu1 }
 0x914   : > { %6895 = vmatpush.bf16.msra.mxu1 %v6765_v26  ;;  %v13788_v35 = vpop.f32.mrf.mxu0  ;;  %6665 = vmatpush.bf16.msra.mxu0 %v13351_v23 }
 0x915   : > { %v6751_v41 = vpack.c.bf16 %v6386_v21, %v6384_v51  ;;  %v9734_v51 = vld [vmem:[%s15172_s6 + $0x68] sm:$0xf0] }
 0x917   : > { %10311 = vmatmul.lmr.bf16.gmra.8.mxu3 }
 0x918   : > { %6896 = vmatpush.bf16.msra.mxu1 %v6758_v29  ;;  %6666 = vmatpush.bf16.msra.mxu0 %v13366_v22  ;;  %v9776_v22 = vld [vmem:[%s15172_s6 + $0x1b8] sm:$0xf0]  ;;  %v9146_v29 = vld [vmem:[%s15172_s6 + $0x50] sm:$0xf] }
 0x919   : > { %v9315_v12 = vor.u32 %v9776_v22, %v9314_v39  ;;  %v9118_v39 = vld [vmem:[%s15172_s6 + $0x18] sm:$0xf]  ;;  %v9727_v22 = vld [vmem:[%s15172_s6 + $0x30] sm:$0xf0] }
 0x91a   : > { %v6414_v1 = vpop.f32.mrf.mxu3  ;;  %v9119_v28 = vor.u32 %v9727_v22, %v9118_v39  ;;  %v9482_v22 = vld [vmem:[%s15172_s6 + $0x2f0] sm:$0xf] }
 0x91b   : > { %v13803_v23 = vadd.f32 %v13670_v3, %v6414_v1  ;;  %v13819_v3 = vpop.trf.xlu1  ;;  %6693 = vmatpush.bf16.msra.mxu3 %v9315_v12  ;;  %v13886_v21 = vpop.f32.mrf.mxu1 }
 0x91c   : > { %6897 = vmatpush.bf16.msra.mxu1 %v6751_v41  ;;  %v13805_v31 = vpop.f32.mrf.mxu0  ;;  %6667 = vmatpush.bf16.msra.mxu0 %v13387_v20  ;;  %v13821_v20 = vpop.f32.mrf.mxu2  ;;  %v9147_v41 = vor.u32 %v9734_v51, %v9146_v29  ;;  %v9510_v51 = vld [vmem:[%s15172_s6 + $0x328] sm:$0xf] }
 0x91d   : > { %v6752_v18 = vpack.c.bf16 %v13803_v23, %v13784_v0  ;;  %v9797_v0 = vld [vmem:[%s15172_s6 + $0x260] sm:$0xf0] }
 0x91f   : > { %9572 = vmatmul.msk.bf16.vlgmr.msra.gmra.mxu1 %vm3737_vm9, %v13760_v43  ;;  %10312 = vmatmul.lmr.bf16.gmra.8.mxu3 }
 0x920   : > { %6619 = vmatmul.bf16.gmra.mxu0 %v13389_v16  ;;  %6694 = vmatpush.bf16.msra.mxu3 %v9287_v57 }
 0x921   : > { %6668 = vmatpush.bf16.msra.mxu0 %v13413_v17  ;;  %v9762_v17 = vld [vmem:[%s15172_s6 + $0x148] sm:$0xf0] }
 0x922   : > { %v6417_v5 = vpop.f32.mrf.mxu3  ;;  %v9259_v24 = vor.u32 %v9762_v17, %v9258_v11 }
 0x923   : > { %v13841_v36 = vpop.trf.xlu1  ;;  %v13855_v60 = vadd.f32 %v13698_v27, %v6417_v5  ;;  %v9748_v27 = vld [vmem:[%s15172_s6 + $0xd8] sm:$0xf0] }
 0x924   : > { %v13832_v48 = vpop.f32.mrf.mxu0  ;;  %6695 = vmatpush.bf16.msra.mxu3 %v9259_v24  ;;  %v13850_v54 = vpop.f32.mrf.mxu2  ;;  %v9203_v62 = vor.u32 %v9748_v27, %v9202_v45  ;;  %v9538_v27 = vld [vmem:[%s15172_s6 + $0x360] sm:$0xf] }
 0x925   : > { %6669 = vmatpush.bf16.msra.mxu0 %v13452_v59  ;;  %v9755_v59 = vld [vmem:[%s15172_s6 + $0x110] sm:$0xf0]  ;;  %v13908_v24 = vpop.f32.mrf.mxu1 }
 0x926   : > { %v9231_v50 = vor.u32 %v9755_v59, %v9230_v58 }
 0x927   : > { %10313 = vmatmul.lmr.bf16.gmra.8.mxu3 }
 0x928   : > { %6696 = vmatpush.bf16.msra.mxu3 %v9231_v50 }
 0x929   : > { %6670 = vmatpush.bf16.msra.mxu0 %v13467_v46 }
 0x92a   : > { %v6419_v15 = vpop.f32.mrf.mxu3 }
 0x92b   : > { %v13858_v14 = vadd.f32 %v13726_v44, %v6419_v15  ;;  %v13874_v44 = vpop.trf.xlu1 }
 0x92c   : > { %v13860_v46 = vpop.f32.mrf.mxu0  ;;  %6697 = vmatpush.bf16.msra.mxu3 %v9203_v62  ;;  %v13884_v9 = vpop.f32.mrf.mxu2  ;;  %v9832_v62 = vld [vmem:[%s15172_s6 + $0x378] sm:$0xf0] }
 0x92d   : > { %v6759_v4 = vpack.c.bf16 %v13858_v14, %v13855_v60  ;;  %6671 = vmatpush.bf16.msra.mxu0 %v13488_v42  ;;  %v9174_v42 = vld [vmem:[%s15172_s6 + $0x88] sm:$0xf]  ;;  %v6659_v15 = vpop.f32.mrf.mxu1  ;;  %v9539_v29 = vor.u32 %v9832_v62, %v9538_v27  ;;  %v9454_v62 = vld [vmem:[%s15172_s6 + $0x2b8] sm:$0xf] }
 0x92e   : > { %v9175_v26 = vor.u32 %v9741_v30, %v9174_v42 }
 0x92f   : > { %9573 = vmatmul.msk.bf16.gmra.mxu1 %vm3737_vm9, %v13779_v32  ;;  %10314 = vmatmul.lmr.bf16.gmra.8.mxu3 }
 0x930   : > { %6624 = vmatmul.bf16.gmra.mxu0 %v13490_v47  ;;  %6698 = vmatpush.bf16.msra.mxu3 %v9175_v26 }
 0x932   : > { %v6422_v37 = vpop.f32.mrf.mxu3 }
 0x933   : > { %v13894_v1 = vpop.trf.xlu1  ;;  %v6452_v53 = vadd.f32 %v13752_v7, %v6422_v37 }
 0x934   : > { %v13882_v33 = vpop.f32.mrf.mxu0  ;;  %6699 = vmatpush.bf16.msra.mxu3 %v9147_v41  ;;  %v13906_v17 = vpop.f32.mrf.mxu2  ;;  %v9825_v41 = vld [vmem:[%s15172_s6 + $0x340] sm:$0xf0] }
 0x937   : > { %10315 = vmatmul.lmr.bf16.gmra.8.mxu3 }
 0x938   : > { %6700 = vmatpush.bf16.msra.mxu3 %v9119_v28  ;;  %v6661_v28 = vpop.f32.mrf.mxu1 }
 0x93a   : > { %v6424_v12 = vpop.f32.mrf.mxu3 }
 0x93b   : > { %v6454_v5 = vadd.f32 %v13754_v40, %v6424_v12  ;;  %v13913_v58 = vpop.trf.xlu1  ;;  %v9818_v12 = vld [vmem:[%s15172_s6 + $0x308] sm:$0xf0] }
 0x93c   : > { %v13904_v57 = vpop.f32.mrf.mxu0  ;;  %v6688_v50 = vpop.f32.mrf.mxu2 }
 0x93d   : > { %v6766_v11 = vpack.c.bf16 %v6454_v5, %v6452_v53 }
 0x93f   : > { %9574 = vmatmul.msk.bf16.gmra.mxu1 %vm3737_vm9, %v13819_v3  ;;  %10316 = vmatmul.lmr.bf16.gmra.8.mxu3 }
 0x940   : > { %6629 = vmatmul.bf16.gmra.mxu0 %v13508_v10 }
 0x942   : > { %v6427_v59 = vpop.f32.mrf.mxu3 }
 0x943   : > { %v13917_v40 = vpop.trf.xlu1  ;;  %v6457_v42 = vadd.f32 %v13758_v25, %v6427_v59 }
 0x944   : > { %v13915_v7 = vpop.f32.mrf.mxu0  ;;  %v6690_v53 = vpop.f32.mrf.mxu2 }
 0x945   : > { %v6691_v27 = vadd.f32 %v6690_v53, %v6661_v28  ;;  %v9342_v28 = vld [vmem:[%s15172_s6 + $0x1d8] sm:$0xf]  ;;  %v9783_v53 = vld [vmem:[%s15172_s6 + $0x1f0] sm:$0xf0] }
 0x947   : > { %10317 = vmatmul.lmr.bf16.gmra.8.mxu3 }
 0x94a   : > { %v6429_v45 = vpop.f32.mrf.mxu3 }
 0x94b   : > { %v6459_v30 = vadd.f32 %v13764_v49, %v6429_v45  ;;  %v13938_v25 = vpop.trf.xlu1  ;;  %v9511_v49 = vor.u32 %v9825_v41, %v9510_v51  ;;  %v9483_v45 = vor.u32 %v9818_v12, %v9482_v22  ;;  %v9426_v51 = vld [vmem:[%s15172_s6 + $0x280] sm:$0xf]  ;;  %v9804_v41 = vld [vmem:[%s15172_s6 + $0x298] sm:$0xf0] }
 0x94c   : > { %v13927_v37 = vpop.f32.mrf.mxu0 }
 0x94d   : > { %v6773_v26 = vpack.c.bf16 %v6459_v30, %v6457_v42  ;;  %v9811_v42 = vld [vmem:[%s15172_s6 + $0x2d0] sm:$0xf0] }
 0x94e   : > { %v9455_v30 = vor.u32 %v9811_v42, %v9454_v62 }
 0x94f   : > { %9575 = vmatmul.msk.bf16.gmra.mxu1 %vm3737_vm9, %v13874_v44  ;;  %6967 = vmatpush.bf16.msrb.mxu2 %v6773_v26 }
 0x950   : > { %6672 = vmatmul.bf16.vlgmr.msra.gmra.mxu0 %v13289_v34  ;;  %10318 = vmatmul.lmr.bf16.vlgmr.msra.gmra.8.mxu3 }
 0x951   : > { %6722 = vmatpush.bf16.msra.mxu0 %v9539_v29 }
 0x952   : > { %v6470_v39 = vpop.f32.mrf.mxu3 }
 0x953   : > { %v13947_v5 = vadd.f32 %v13770_v63, %v6470_v39  ;;  %6968 = vmatpush.bf16.msrb.mxu2 %v6766_v11  ;;  %v6689_v63 = vadd.f32 %v6688_v50, %v6659_v15  ;;  %v6846_v11 = vpop.trf.xlu1  ;;  %v9370_v50 = vld [vmem:[%s15172_s6 + $0x210] sm:$0xf]  ;;  %v9790_v39 = vld [vmem:[%s15172_s6 + $0x228] sm:$0xf0] }
 0x954   : > { %v13949_v59 = vpop.f32.mrf.mxu0  ;;  %v9371_v12 = vor.u32 %v9790_v39, %v9370_v50 }
 0x955   : > { %6723 = vmatpush.bf16.msra.mxu0 %v9511_v49  ;;  %v6777_v26 = vpack.c.bf16 %v6691_v27, %v6689_v63  ;;  %v9343_v27 = vor.u32 %v9783_v53, %v9342_v28 }
 0x957   : > { %6969 = vmatpush.bf16.msrb.mxu2 %v6759_v4  ;;  %v9427_v4 = vor.u32 %v9804_v41, %v9426_v51 }
 0x958   : > { %10319 = vmatmul.lmr.bf16.gmra.8.mxu3 }
 0x959   : > { %6724 = vmatpush.bf16.msra.mxu0 %v9483_v45 }
 0x95a   : > { %v6472_v29 = vpop.f32.mrf.mxu3 }
 0x95b   : > { %v13967_v49 = vadd.f32 %v13788_v35, %v6472_v29  ;;  %6970 = vmatpush.bf16.msrb.mxu2 %v6752_v18  ;;  %v9398_v35 = vld [vmem:[%s15172_s6 + $0x248] sm:$0xf]  ;;  %v13987_v23 = vpop.trf.xlu1 }
 0x95c   : > { %v13972_v60 = vpop.f32.mrf.mxu0  ;;  %v9399_v18 = vor.u32 %v9797_v0, %v9398_v35 }
 0x95d   : > { %v6753_v14 = vpack.c.bf16 %v13967_v49, %v13947_v5  ;;  %6725 = vmatpush.bf16.msra.mxu0 %v9455_v30 }
 0x95e   : > { %9585 = vmatmul.msk.bf16.vlgmr.msrb.gmra.mxu2 %vm3737_vm9, %v13760_v43 }
 0x95f   : > { %7259 = vmatpush.bf16.msra.mxu2 %v6777_v26  ;;  %9576 = vmatmul.msk.bf16.gmra.mxu1 %vm3737_vm9, %v13913_v58 }
 0x960   : > { %6677 = vmatmul.bf16.gmra.mxu0 %v13389_v16  ;;  %10320 = vmatmul.lmr.bf16.gmra.8.mxu3 }
 0x961   : > { %6726 = vmatpush.bf16.msra.mxu0 %v9427_v4 }
 0x962   : > { %v6475_v15 = vpop.f32.mrf.mxu3 }
 0x963   : > { %v6848_v45 = vpop.trf.xlu1  ;;  %v6505_v42 = vadd.f32 %v13805_v31, %v6475_v15 }
 0x964   : > { %v6535_v22 = vpop.f32.mrf.mxu0 }
 0x965   : > { %6727 = vmatpush.bf16.msra.mxu0 %v9399_v18  ;;  %v6565_v53 = vadd.f32 %v13793_v61, %v6535_v22  ;;  %v6558_v61 = vadd.f32 %v13756_v38, %v13927_v37 }
 0x968   : > { %10321 = vmatmul.lmr.bf16.gmra.8.mxu3 }
 0x969   : > { %6728 = vmatpush.bf16.msra.mxu0 %v9371_v12 }
 0x96a   : > { %v6477_v62 = vpop.f32.mrf.mxu3 }
 0x96b   : > { %v6507_v63 = vadd.f32 %v13832_v48, %v6477_v62  ;;  %v14008_v26 = vpop.trf.xlu1 }
 0x96c   : > { %v6538_v11 = vpop.f32.mrf.mxu0 }
 0x96d   : > { %v6760_v30 = vpack.c.bf16 %v6507_v63, %v6505_v42  ;;  %6729 = vmatpush.bf16.msra.mxu0 %v9343_v27  ;;  %v6568_v12 = vadd.f32 %v13821_v20, %v6538_v11  ;;  %v6560_v20 = vadd.f32 %v13762_v13, %v13949_v59 }
 0x96e   : > { %9586 = vmatmul.msk.bf16.gmra.mxu2 %vm3737_vm9, %v13779_v32 }
 0x96f   : > { %9577 = vmatmul.msk.bf16.gmra.mxu1 %vm3737_vm9, %v13938_v25 }
 0x970   : > { %6682 = vmatmul.bf16.gmra.mxu0 %v13490_v47  ;;  %10322 = vmatmul.lmr.bf16.gmra.8.mxu3 }
 0x972   : > { %v6480_v29 = vpop.f32.mrf.mxu3 }
 0x973   : > { %v6850_v31 = vpop.trf.xlu1  ;;  %v6510_v48 = vadd.f32 %v13860_v46, %v6480_v29 }
 0x974   : > { %v6540_v51 = vpop.f32.mrf.mxu0 }
 0x975   : > { %v6570_v46 = vadd.f32 %v13850_v54, %v6540_v51 }
 0x977   : > { %v6768_v45 = vpack.c.bf16 %v6570_v46, %v6568_v12 }
 0x978   : > { %10323 = vmatmul.lmr.bf16.gmra.8.mxu3 }
 0x97a   : > { %v6482_v41 = vpop.f32.mrf.mxu3 }
 0x97b   : > { %v6512_v4 = vadd.f32 %v13882_v33, %v6482_v41 }
 0x97c   : > { %v6543_v35 = vpop.f32.mrf.mxu0 }
 0x97d   : > { %v6767_v0 = vpack.c.bf16 %v6512_v4, %v6510_v48  ;;  %v6573_v50 = vadd.f32 %v13884_v9, %v6543_v35  ;;  %v6563_v9 = vadd.f32 %v13772_v2, %v13972_v60 }
 0x97e   : > { %9587 = vmatmul.msk.bf16.gmra.mxu2 %vm3737_vm9, %v13819_v3 }
 0x97f   : > { %9578 = vmatmul.msk.bf16.gmra.mxu1 %vm3737_vm9, %v13987_v23  ;;  %v6761_v54 = vpack.c.bf16 %v6565_v53, %v6563_v9 }
 0x980   : > { %6730 = vmatmul.bf16.vlgmr.msra.gmra.mxu0 %v13289_v34  ;;  %10324 = vmatmul.lmr.bf16.gmra.8.mxu3 }
 0x982   : > { %v6485_v18 = vpop.f32.mrf.mxu3 }
 0x983   : > { %v6515_v34 = vadd.f32 %v13904_v57, %v6485_v18  ;;  %v6754_v57 = vpack.c.bf16 %v6560_v20, %v6558_v61 }
 0x984   : > { %v6545_v15 = vpop.f32.mrf.mxu0 }
 0x985   : > { %v6575_v39 = vadd.f32 %v13906_v17, %v6545_v15 }
 0x987   : > { %v6775_v33 = vpack.c.bf16 %v6575_v39, %v6573_v50 }
 0x988   : > { %10325 = vmatmul.lmr.bf16.gmra.8.mxu3 }
 0x989   : > { %7113 = vmatpush.bf16.msra.mxu0 %v6775_v33 }
 0x98a   : > { %v6487_v28 = vpop.f32.mrf.mxu3 }
 0x98b   : > { %v6517_v27 = vadd.f32 %v13915_v7, %v6487_v28 }
 0x98c   : > { %v6615_v62 = vpop.f32.mrf.mxu0 }
 0x98d   : > { %v6774_v17 = vpack.c.bf16 %v6517_v27, %v6515_v34  ;;  %7114 = vmatpush.bf16.msra.mxu0 %v6768_v45 }
 0x98e   : > { %9588 = vmatmul.msk.bf16.gmra.mxu2 %vm3737_vm9, %v13874_v44 }
 0x98f   : > { %9579 = vmatmul.msk.bf16.gmra.mxu1 %vm3737_vm9, %v14008_v26  ;;  %7040 = vmatpush.bf16.msra.mxu3 %v6774_v17 }
 0x990   : > { %6735 = vmatmul.bf16.gmra.mxu0 %v13389_v16 }
 0x991   : > { %7115 = vmatpush.bf16.msra.mxu0 %v6761_v54 }
 0x992   : > { %v6586_v2 = vpop.f32.mrf.mxu3 }
 0x993   : > { %v14035_v7 = vadd.f32 %v6615_v62, %v6586_v2  ;;  %7041 = vmatpush.bf16.msra.mxu3 %v6767_v0 }
 0x994   : > { %v6617_v60 = vpop.f32.mrf.mxu0 }
 0x995   : > { %7116 = vmatpush.bf16.msra.mxu0 %v6754_v57 }
 0x997   : > { %7042 = vmatpush.bf16.msra.mxu3 %v6760_v30 }
 0x99a   : > { %v6588_v13 = vpop.f32.mrf.mxu3 }
 0x99b   : > { %v14037_v59 = vadd.f32 %v6617_v60, %v6588_v13  ;;  %7043 = vmatpush.bf16.msra.mxu3 %v6753_v14 }
 0x99c   : > { %v14042_v16 = vpop.f32.mrf.mxu1 }
 0x99d   : > { %v6755_v38 = vpack.c.bf16 %v14037_v59, %v14035_v7  ;;  %v6620_v37 = vpop.f32.mrf.mxu0 }
 0x99e   : > { %9589 = vmatmul.msk.bf16.gmra.mxu2 %vm3737_vm9, %v13913_v58  ;;  %9598 = vmatmul.msk.bf16.vlgmr.msra.gmra.mxu3 %vm3737_vm9, %v13760_v43 }
 0x99f   : > { %9580 = vmatmul.msk.bf16.gmra.mxu1 %vm3737_vm9, %v13766_v52 }
 0x9a0   : > { %6740 = vmatmul.bf16.gmra.mxu0 %v13490_v47 }
 0x9a2   : > { %v6591_v22 = vpop.f32.mrf.mxu3 }
 0x9a3   : > { %v6621_v53 = vadd.f32 %v6620_v37, %v6591_v22 }
 0x9a4   : > { %v6901_v5 = vpop.f32.mrf.mxu1 }
 0x9a5   : > { %v6622_v49 = vpop.f32.mrf.mxu0  ;;  %7393 = vrot.lane.b32.xlu2 %v6901_v5, %s15242_s24 }
 0x9aa   : > { %v6593_v14 = vpop.f32.mrf.mxu3 }
 0x9ab   : > { %v6623_v33 = vadd.f32 %v6622_v49, %v6593_v14 }
 0x9ac   : > { %v6904_v42 = vpop.f32.mrf.mxu1 }
 0x9ad   : > { %v6625_v63 = vpop.f32.mrf.mxu0  ;;  %7429 = vrot.lane.b32.xlu2 %v6904_v42, %s10490_s25  ;;  %v6762_v27 = vpack.c.bf16 %v6623_v33, %v6621_v53 }
 0x9ae   : > { %9590 = vmatmul.msk.bf16.gmra.mxu2 %vm3737_vm9, %v13938_v25  ;;  %9599 = vmatmul.msk.bf16.gmra.mxu3 %vm3737_vm9, %v13779_v32 }
 0x9af   : > { %9581 = vmatmul.msk.bf16.gmra.mxu1 %vm3737_vm9, %v13799_v19 }
 0x9b0   : > { %6745 = vmatmul.bf16.gmra.mxu0 %v13508_v10 }
 0x9b2   : > { %v6596_v47 = vpop.f32.mrf.mxu3 }
 0x9b3   : > { %v6626_v46 = vadd.f32 %v6625_v63, %v6596_v47 }
 0x9b4   : > { %v6906_v11 = vpop.f32.mrf.mxu1 }
 0x9b5   : > { %v6627_v30 = vpop.f32.mrf.mxu0  ;;  %7465 = vrot.lane.b32.xlu2 %v6906_v11, %s10491_s26 }
 0x9ba   : > { %v6598_v29 = vpop.f32.mrf.mxu3 }
 0x9bb   : > { %v6628_v39 = vadd.f32 %v6627_v30, %v6598_v29 }
 0x9bc   : > { %v6909_v51 = vpop.f32.mrf.mxu1 }
 0x9bd   : > { %v6630_v31 = vpop.f32.mrf.mxu0  ;;  %7501 = vrot.lane.b32.xlu2 %v6909_v51, %s10492_s27  ;;  %v6769_v12 = vpack.c.bf16 %v6628_v39, %v6626_v46 }
 0x9be   : > { %9591 = vmatmul.msk.bf16.gmra.mxu2 %vm3737_vm9, %v13987_v23  ;;  %9600 = vmatmul.msk.bf16.gmra.mxu3 %vm3737_vm9, %v13819_v3 }
 0x9bf   : > { %9582 = vmatmul.msk.bf16.gmra.mxu1 %vm3737_vm9, %v13841_v36 }
 0x9c0   : > { %9611 = vmatmul.msk.bf16.vlgmr.msra.gmra.mxu0 %vm3737_vm9, %v13760_v43 }
 0x9c2   : > { %v6601_v10 = vpop.f32.mrf.mxu3 }
 0x9c3   : > { %v6631_v35 = vadd.f32 %v6630_v31, %v6601_v10 }
 0x9c4   : > { %v6911_v41 = vpop.f32.mrf.mxu1 }
 0x9c5   : > { %v6632_v48 = vpop.f32.mrf.mxu0  ;;  %7537 = vrot.lane.b32.xlu2 %v6911_v41, %s10493_s28 }
 0x9ca   : > { %v6603_v4 = vpop.f32.mrf.mxu3 }
 0x9cb   : > { %v6633_v0 = vadd.f32 %v6632_v48, %v6603_v4 }
 0x9cc   : > { %v6914_v18 = vpop.f32.mrf.mxu1 }
 0x9cd   : > { %v6776_v15 = vpack.c.bf16 %v6633_v0, %v6631_v35  ;;  %v14073_v50 = vpop.f32.mrf.mxu0  ;;  %7573 = vrot.lane.b32.xlu2 %v6914_v18, %s10494_s29 }
 0x9ce   : > { %9592 = vmatmul.msk.bf16.gmra.mxu2 %vm3737_vm9, %v14008_v26  ;;  %9601 = vmatmul.msk.bf16.gmra.mxu3 %vm3737_vm9, %v13874_v44 }
 0x9cf   : > { %9583 = vmatmul.msk.bf16.gmra.mxu1 %vm3737_vm9, %v13894_v1 }
 0x9d0   : > { %9612 = vmatmul.msk.bf16.gmra.mxu0 %vm3737_vm9, %v13779_v32  ;;  %7186 = vmatpush.bf16.msra.mxu1 %v6776_v15 }
 0x9d3   : > { %v6702_v28 = vpop.f32.mrf.mxu3 }
 0x9d4   : > { %v6916_v45 = vpop.f32.mrf.mxu1  ;;  %7187 = vmatpush.bf16.msra.mxu1 %v6769_v12 }
 0x9d5   : > { %v6675_v34 = vpop.f32.mrf.mxu0  ;;  %7609 = vrot.lane.b32.xlu2 %v6916_v45, %s10495_s11 }
 0x9d6   : > { %v6676_v11 = vadd.f32 %v6675_v34, %v13795_v8 }
 0x9d8   : > { %7188 = vmatpush.bf16.msra.mxu1 %v6762_v27 }
 0x9db   : > { %v6704_v62 = vpop.f32.mrf.mxu3 }
 0x9dc   : > { %v6919_v9 = vpop.f32.mrf.mxu1  ;;  %7189 = vmatpush.bf16.msra.mxu1 %v6755_v38 }
 0x9dd   : > { %v6678_v17 = vpop.f32.mrf.mxu0  ;;  %7645 = vrot.lane.b32.xlu2 %v6919_v9, %s15228_s12 }
 0x9de   : > { %9593 = vmatmul.msk.bf16.gmra.mxu2 %vm3737_vm9, %v13766_v52  ;;  %9602 = vmatmul.msk.bf16.gmra.mxu3 %vm3737_vm9, %v13913_v58  ;;  %v6679_v47 = vadd.f32 %v6678_v17, %v13823_v56 }
 0x9df   : > { %9584 = vmatmul.msk.bf16.gmra.mxu1 %vm3737_vm9, %v13917_v40 }
 0x9e0   : > { %9613 = vmatmul.msk.bf16.gmra.mxu0 %vm3737_vm9, %v13819_v3 }
 0x9e1   : > { %v14097_v20 = vpop.f32.mrf.mxu2 }
 0x9e3   : > { %v14100_v2 = vpop.f32.mrf.mxu3 }
 0x9e4   : > { %v6921_v54 = vpop.f32.mrf.mxu1 }
 0x9e5   : > { %v6680_v61 = vpop.f32.mrf.mxu0  ;;  %7681 = vrot.lane.b32.xlu2 %v6921_v54, %s10497_s13 }
 0x9e6   : > { %v6681_v49 = vadd.f32 %v6680_v61, %v13852_v6 }
 0x9e8   : > { %v6763_v30 = vpack.c.bf16 %v6681_v49, %v6679_v47 }
 0x9e9   : > { %v6974_v57 = vpop.f32.mrf.mxu2 }
 0x9eb   : > { %v6709_v13 = vpop.f32.mrf.mxu3 }
 0x9ec   : > { %v6924_v7 = vpop.f32.mrf.mxu1 }
 0x9ed   : > { %v6683_v60 = vpop.f32.mrf.mxu0  ;;  %7395 = vrot.lane.b32.xlu2 %v6974_v57, %s15242_s24 }
 0x9ee   : > { %9594 = vmatmul.msk.bf16.gmra.mxu2 %vm3737_vm9, %v13799_v19  ;;  %9603 = vmatmul.msk.bf16.gmra.mxu3 %vm3737_vm9, %v13938_v25  ;;  %v6684_v22 = vadd.f32 %v6683_v60, %v13886_v21  ;;  %v6674_v21 = vadd.f32 %v14073_v50, %v13774_v55 }
 0x9ef   : > { %9624 = vmatmul.msk.bf16.vlgmr.msra.gmra.mxu1 %vm3737_vm9, %v13760_v43 }
 0x9f0   : > { %9614 = vmatmul.msk.bf16.gmra.mxu0 %vm3737_vm9, %v13874_v44  ;;  %v6756_v8 = vpack.c.bf16 %v6676_v11, %v6674_v21 }
 0x9f1   : > { %v6977_v59 = vpop.f32.mrf.mxu2 }
 0x9f3   : > { %v14115_v63 = vpop.f32.mrf.mxu3 }
 0x9f4   : > { %v6926_v38 = vpop.f32.mrf.mxu1 }
 0x9f5   : > { %v6685_v37 = vpop.f32.mrf.mxu0  ;;  %7717 = vrot.lane.b32.xlu2 %v6924_v7, %s15230_s14 }
 0x9f6   : > { %v6686_v5 = vadd.f32 %v6685_v37, %v13908_v24 }
 0x9f8   : > { %v6770_v14 = vpack.c.bf16 %v6686_v5, %v6684_v22 }
 0x9f9   : > { %v6979_v42 = vpop.f32.mrf.mxu2 }
 0x9fa   : > { %7260 = vmatpush.bf16.msra.mxu2 %v6770_v14  ;;  %7467 = vrot.lane.b32.xlu1 %v6979_v42, %s10491_s26 }
 0x9fb   : > { %v14135_v55 = vpop.f32.mrf.mxu3 }
 0x9fc   : > { %v6929_v29 = vpop.f32.mrf.mxu1 }
 0x9fd   : > { %v6731_v51 = vpop.f32.mrf.mxu0  ;;  %7431 = vrot.lane.b32.xlu2 %v6977_v59, %s10490_s25 }
 0x9fe   : > { %v14123_v6 = vadd.f32 %v6731_v51, %v6702_v28  ;;  %7261 = vmatpush.bf16.msra.mxu2 %v6763_v30  ;;  %9604 = vmatmul.msk.bf16.gmra.mxu3 %vm3737_vm9, %v13987_v23 }
 0x9ff   : > { %9595 = vmatmul.msk.bf16.gmra.mxu2 %vm3737_vm9, %v13841_v36  ;;  %v14129_v56 = vpop.permute.xlu2 %7393  ;;  %9625 = vmatmul.msk.bf16.gmra.mxu1 %vm3737_vm9, %v13779_v32 }
 0xa00   : > { %9615 = vmatmul.msk.bf16.gmra.mxu0 %vm3737_vm9, %v13913_v58 }
 0xa01   : > { %v6982_v24 = vpop.f32.mrf.mxu2 }
 0xa02   : > { %7262 = vmatpush.bf16.msra.mxu2 %v6756_v8 }
 0xa03   : > { %v6717_v15 = vpop.f32.mrf.mxu3 }
 0xa04   : > { %v6931_v31 = vpop.f32.mrf.mxu1 }
 0xa05   : > { %v6733_v10 = vpop.f32.mrf.mxu0  ;;  %7753 = vrot.lane.b32.xlu2 %v6926_v38, %s10499_s15 }
 0xa06   : > { %v14138_v41 = vadd.f32 %v6733_v10, %v6704_v62 }
 0xa07   : > { %v14140_v48 = vpop.permute.xlu2 %7429 }
 0xa08   : > { %v6757_v4 = vpack.c.bf16 %v14138_v41, %v14123_v6 }
 0xa09   : > { %v6984_v35 = vpop.f32.mrf.mxu2 }
 0xa0b   : > { %v6719_v45 = vpop.f32.mrf.mxu3 }
 0xa0c   : > { %v6934_v0 = vpop.f32.mrf.mxu1 }
 0xa0d   : > { %v6736_v18 = vpop.f32.mrf.mxu0  ;;  %7789 = vrot.lane.b32.xlu2 %v6929_v29, %s10500_s16 }
 0xa0e   : > { %9605 = vmatmul.msk.bf16.gmra.mxu3 %vm3737_vm9, %v14008_v26  ;;  %v14157_v12 = vadd.f32 %v6736_v18, %v14100_v2 }
 0xa0f   : > { %9596 = vmatmul.msk.bf16.gmra.mxu2 %vm3737_vm9, %v13894_v1  ;;  %v14149_v50 = vpop.permute.xlu2 %7465  ;;  %9626 = vmatmul.msk.bf16.gmra.mxu1 %vm3737_vm9, %v13819_v3 }
 0xa10   : > { %9616 = vmatmul.msk.bf16.gmra.mxu0 %vm3737_vm9, %v13938_v25 }
 0xa11   : > { %v6987_v39 = vpop.f32.mrf.mxu2 }
 0xa14   : > { %v6936_v46 = vpop.f32.mrf.mxu1 }
 0xa15   : > { %v6738_v33 = vpop.f32.mrf.mxu0  ;;  %7503 = vrot.lane.b32.xlu2 %v6982_v24, %s10492_s27 }
 0xa16   : > { %v14159_v28 = vadd.f32 %v6738_v33, %v6709_v13 }
 0xa17   : > { %v14161_v53 = vpop.permute.xlu2 %7501 }
 0xa18   : > { %v6764_v34 = vpack.c.bf16 %v14159_v28, %v14157_v12 }
 0xa19   : > { %v6989_v27 = vpop.f32.mrf.mxu2 }
 0xa1a   : > { %7611 = vrot.lane.b32.xlu1 %v6989_v27, %s10495_s11 }
 0xa1c   : > { %v6939_v62 = vpop.f32.mrf.mxu1 }
 0xa1d   : > { %v6741_v9 = vpop.f32.mrf.mxu0  ;;  %7825 = vrot.lane.b32.xlu2 %v6931_v31, %s10501_s17 }
 0xa1e   : > { %9606 = vmatmul.msk.bf16.gmra.mxu3 %vm3737_vm9, %v13766_v52  ;;  %v6742_v8 = vadd.f32 %v6741_v9, %v14115_v63 }
 0xa1f   : > { %9597 = vmatmul.msk.bf16.gmra.mxu2 %vm3737_vm9, %v13917_v40  ;;  %v14171_v17 = vpop.permute.xlu2 %7537  ;;  %9627 = vmatmul.msk.bf16.gmra.mxu1 %vm3737_vm9, %v13874_v44 }
 0xa20   : > { %9617 = vmatmul.msk.bf16.gmra.mxu0 %vm3737_vm9, %v13987_v23 }
 0xa21   : > { %v6992_v54 = vpop.f32.mrf.mxu2  ;;  %v14177_v61 = vpop.f32.mrf.mxu3 }
 0xa22   : > { %7647 = vrot.lane.b32.xlu1 %v6992_v54, %s15228_s12 }
 0xa24   : > { %v6941_v2 = vpop.f32.mrf.mxu1 }
 0xa25   : > { %v6743_v57 = vpop.f32.mrf.mxu0  ;;  %7539 = vrot.lane.b32.xlu2 %v6984_v35, %s10493_s28 }
 0xa26   : > { %v6744_v30 = vadd.f32 %v6743_v57, %v14135_v55 }
 0xa27   : > { %v14181_v7 = vpop.permute.xlu2 %7573 }
 0xa28   : > { %v6771_v24 = vpack.c.bf16 %v6744_v30, %v6742_v8 }
 0xa29   : > { %v6994_v60 = vpop.f32.mrf.mxu2  ;;  %v14183_v13 = vpop.f32.mrf.mxu3 }
 0xa2a   : > { %7683 = vrot.lane.b32.xlu1 %v6994_v60, %s10497_s13 }
 0xa2c   : > { %v14186_v59 = vpop.f32.mrf.mxu1 }
 0xa2d   : > { %v6746_v38 = vpop.f32.mrf.mxu0  ;;  %7861 = vrot.lane.b32.xlu2 %v6934_v0, %s15234_s18 }
 0xa2e   : > { %9607 = vmatmul.msk.bf16.gmra.mxu3 %vm3737_vm9, %v13799_v19  ;;  %v6747_v42 = vadd.f32 %v6746_v38, %v6717_v15 }
 0xa2f   : > { %9637 = vmatmul.msk.bf16.vlgmr.msra.gmra.mxu2 %vm3737_vm9, %v13760_v43  ;;  %v14193_v37 = vpop.permute.xlu2 %7609  ;;  %9628 = vmatmul.msk.bf16.gmra.mxu1 %vm3737_vm9, %v13913_v58 }
 0xa30   : > { %9618 = vmatmul.msk.bf16.gmra.mxu0 %vm3737_vm9, %v14008_v26 }
 0xa31   : > { %v6997_v22 = vpop.f32.mrf.mxu2  ;;  %v14199_v5 = vpop.f32.mrf.mxu3 }
 0xa32   : > { %7719 = vrot.lane.b32.xlu1 %v6997_v22, %s15230_s14 }
 0xa34   : > { %v14202_v49 = vpop.f32.mrf.mxu1 }
 0xa35   : > { %v6748_v14 = vpop.f32.mrf.mxu0  ;;  %7575 = vrot.lane.b32.xlu2 %v6987_v39, %s10494_s29 }
 0xa36   : > { %v6749_v47 = vadd.f32 %v6748_v14, %v6719_v45 }
 0xa37   : > { %v14205_v11 = vpop.permute.xlu2 %7645 }
 0xa38   : > { %v6778_v29 = vpack.c.bf16 %v6749_v47, %v6747_v42 }
 0xa39   : > { %v6999_v51 = vpop.f32.mrf.mxu2  ;;  %v14208_v21 = vpop.f32.mrf.mxu3 }
 0xa3a   : > { %7332 = vmatpush.bf16.msra.mxu3 %v6778_v29  ;;  %7755 = vrot.lane.b32.xlu1 %v6999_v51, %s10499_s15 }
 0xa3c   : > { %v14212_v31 = vpop.f32.mrf.mxu1 }
 0xa3d   : > { %v14214_v10 = vpop.f32.mrf.mxu0  ;;  %7897 = vrot.lane.b32.xlu2 %v6936_v46, %s10503_s19 }
 0xa3e   : > { %15610 = vst [vmem:[#allocation10_spill] sm:$0xff] %v14214_v10  ;;  %7333 = vmatpush.bf16.msra.mxu3 %v6771_v24 }
 0xa3f   : > { %9608 = vmatmul.msk.bf16.gmra.mxu3 %vm3737_vm9, %v13841_v36  ;;  %9638 = vmatmul.msk.bf16.gmra.mxu2 %vm3737_vm9, %v13779_v32  ;;  %v14221_v55 = vpop.permute.xlu2 %7681 }
 0xa40   : > { %9629 = vmatmul.msk.bf16.gmra.mxu1 %vm3737_vm9, %v13938_v25  ;;  %9619 = vmatmul.msk.bf16.gmra.mxu0 %vm3737_vm9, %v13766_v52 }
 0xa41   : > { %v7002_v63 = vpop.f32.mrf.mxu2  ;;  %v7055_v35 = vpop.f32.mrf.mxu3 }
 0xa42   : > { %7334 = vmatpush.bf16.msra.mxu3 %v6764_v34  ;;  %7505 = vrot.lane.b32.xlu0 %v7055_v35, %s10492_s27 }
 0xa43   : > { %7791 = vrot.lane.b32.xlu1 %v7002_v63, %s10500_s16 }
 0xa44   : > { %v6951_v0 = vpop.f32.mrf.mxu1 }
 0xa45   : > { %v14229_v18 = vpop.f32.mrf.mxu0  ;;  %7933 = vrot.lane.b32.xlu2 %v6939_v62, %s15236_s20 }
 0xa46   : > { %7335 = vmatpush.bf16.msra.mxu3 %v6757_v4 }
 0xa47   : > { %v14235_v15 = vpop.permute.xlu2 %7395 }
 0xa49   : > { %v7004_v39 = vpop.f32.mrf.mxu2  ;;  %v14237_v46 = vpop.f32.mrf.mxu3 }
 0xa4b   : > { %8118 = vrot.lane.b32.xlu1 %v6951_v0, %s15232_s21 }
 0xa4c   : > { %v6954_v33 = vpop.f32.mrf.mxu1 }
 0xa4d   : > { %v14240_v12 = vpop.f32.mrf.mxu0  ;;  %7969 = vrot.lane.b32.xlu2 %v6941_v2, %s10506_s22  ;;  %8158 = vrot.lane.b32.xlu0 %v6954_v33, %s15226_s23  ;;  %s15238_s23 = smov 41  }
 0xa4f   : > { %9609 = vmatmul.msk.bf16.gmra.mxu3 %vm3737_vm9, %v13894_v1  ;;  %9639 = vmatmul.msk.bf16.gmra.mxu2 %vm3737_vm9, %v13819_v3  ;;  %v14248_v6 = vpop.permute.xlu2 %7717 }
 0xa50   : > { %9630 = vmatmul.msk.bf16.gmra.mxu1 %vm3737_vm9, %v13987_v23  ;;  %9620 = vmatmul.msk.bf16.gmra.mxu0 %vm3737_vm9, %v13799_v19 }
 0xa51   : > { %v7007_v41 = vpop.f32.mrf.mxu2  ;;  %v14254_v4 = vpop.f32.mrf.mxu3 }
 0xa53   : > { %7827 = vrot.lane.b32.xlu1 %v7004_v39, %s10501_s17 }
 0xa54   : > { %v14257_v28 = vpop.f32.mrf.mxu1 }
 0xa55   : > { %v14259_v45 = vpop.f32.mrf.mxu0  ;;  %7397 = vrot.lane.b32.xlu2 %v14183_v13, %s15242_s24 }
 0xa57   : > { %v14263_v34 = vpop.permute.xlu2 %7431 }
 0xa59   : > { %v7009_v27 = vpop.f32.mrf.mxu2  ;;  %v7062_v62 = vpop.f32.mrf.mxu3 }
 0xa5a   : > { %7613 = vrot.lane.b32.xlu0 %v7062_v62, %s10495_s11 }
 0xa5b   : > { %7863 = vrot.lane.b32.xlu1 %v7007_v41, %s15234_s18 }
 0xa5c   : > { %v14267_v9 = vpop.f32.mrf.mxu1 }
 0xa5d   : > { %15611 = vst [vmem:[#allocation9_spill] sm:$0xff] %v14267_v9  ;;  %v14269_v54 = vpop.f32.mrf.mxu0  ;;  %8005 = vrot.lane.b32.xlu2 %v14186_v59, %s15238_s23 }
 0xa5f   : > { %9610 = vmatmul.msk.bf16.gmra.mxu3 %vm3737_vm9, %v13917_v40  ;;  %9640 = vmatmul.msk.bf16.gmra.mxu2 %vm3737_vm9, %v13874_v44  ;;  %v14277_v2 = vpop.permute.xlu2 %7753 }
 0xa60   : > { %9631 = vmatmul.msk.bf16.gmra.mxu1 %vm3737_vm9, %v14008_v26  ;;  %9621 = vmatmul.msk.bf16.gmra.mxu0 %vm3737_vm9, %v13841_v36 }
 0xa61   : > { %v7012_v57 = vpop.f32.mrf.mxu2  ;;  %v7065_v60 = vpop.f32.mrf.mxu3 }
 0xa62   : > { %7649 = vrot.lane.b32.xlu0 %v7065_v60, %s15228_s12  ;;  %s10509_s12 = smov 40  }
 0xa63   : > { %7899 = vrot.lane.b32.xlu1 %v7009_v27, %s10503_s19 }
 0xa64   : > { %v6961_v13 = vpop.f32.mrf.mxu1 }
 0xa65   : > { %v14285_v59 = vpop.f32.mrf.mxu0  ;;  %7433 = vrot.lane.b32.xlu2 %v14199_v5, %s10490_s25 }
 0xa67   : > { %v14289_v38 = vpop.permute.xlu2 %7789 }
 0xa69   : > { %v7014_v22 = vpop.f32.mrf.mxu2  ;;  %v7067_v14 = vpop.f32.mrf.mxu3 }
 0xa6a   : > { %7685 = vrot.lane.b32.xlu0 %v7067_v14, %s10497_s13 }
 0xa6b   : > { %7935 = vrot.lane.b32.xlu1 %v7012_v57, %s15236_s20 }
 0xa6c   : > { %v14293_v42 = vpop.f32.mrf.mxu1  ;;  %v14341_v33 = vpop.permute.xlu1 %7467 }
 0xa6d   : > { %15612 = vst [vmem:[#allocation13_spill] sm:$0xff] %v14293_v42  ;;  %v14295_v47 = vpop.f32.mrf.mxu0  ;;  %8041 = vrot.lane.b32.xlu2 %v14202_v49, %s10509_s12 }
 0xa6f   : > { %9641 = vmatmul.msk.bf16.gmra.mxu2 %vm3737_vm9, %v13913_v58  ;;  %9650 = vmatmul.msk.bf16.vlgmr.msra.gmra.mxu3 %vm3737_vm9, %v13760_v43  ;;  %v14303_v5 = vpop.permute.xlu2 %7503 }
 0xa70   : > { %9632 = vmatmul.msk.bf16.gmra.mxu1 %vm3737_vm9, %v13766_v52  ;;  %9622 = vmatmul.msk.bf16.gmra.mxu0 %vm3737_vm9, %v13894_v1 }
 0xa71   : > { %v7017_v30 = vpop.f32.mrf.mxu2  ;;  %v7070_v29 = vpop.f32.mrf.mxu3 }
 0xa72   : > { %7721 = vrot.lane.b32.xlu0 %v7070_v29, %s15230_s14  ;;  %s10510_s14 = smov 16  }
 0xa73   : > { %7971 = vrot.lane.b32.xlu1 %v7014_v22, %s10506_s22 }
 0xa74   : > { %v14311_v49 = vpop.f32.mrf.mxu1 }
 0xa75   : > { %v14313_v51 = vpop.f32.mrf.mxu0  ;;  %7469 = vrot.lane.b32.xlu2 %v14208_v21, %s10491_s26 }
 0xa77   : > { %v14317_v43 = vpop.permute.xlu2 %7825 }
 0xa79   : > { %v7019_v8 = vpop.f32.mrf.mxu2  ;;  %v7072_v24 = vpop.f32.mrf.mxu3 }
 0xa7a   : > { %7757 = vrot.lane.b32.xlu0 %v7072_v24, %s10499_s15 }
 0xa7b   : > { %8007 = vrot.lane.b32.xlu1 %v7017_v30, %s15238_s23 }
 0xa7c   : > { %v14321_v63 = vpop.f32.mrf.mxu1 }
 0xa7d   : > { %v14323_v35 = vpop.f32.mrf.mxu0  ;;  %8078 = vrot.lane.b32.xlu2 %v14212_v31, %s10510_s14  ;;  %v7406_v31 = vsel %vm15245_vm10, %v14129_v56, %v14235_v15  ;;  %v7478_v56 = vsel %vm7477_vm12, %v14149_v50, %v14341_v33 }
 0xa7e   : > { %v7417_v27 = vadd.f32 %v7406_v31, %v14042_v16  ;;  %v7514_v16 = vsel %vm7513_vm13, %v14161_v53, %v14303_v5 }
 0xa7f   : > { %9642 = vmatmul.msk.bf16.gmra.mxu2 %vm3737_vm9, %v13938_v25  ;;  %9651 = vmatmul.msk.bf16.gmra.mxu3 %vm3737_vm9, %v13779_v32  ;;  %v14331_v21 = vpop.permute.xlu2 %7539  ;;  %v7442_v32 = vsel %vm15246_vm11, %v14140_v48, %v14263_v34 }
 0xa80   : > { %9633 = vmatmul.msk.bf16.gmra.mxu1 %vm3737_vm9, %v13799_v19  ;;  %9623 = vmatmul.msk.bf16.gmra.mxu0 %vm3737_vm9, %v13917_v40  ;;  %v7453_v57 = vadd.f32 %v7442_v32, %v7417_v27  ;;  %v7550_v50 = vsel %vm7549_vm14, %v14171_v17, %v14331_v21 }
 0xa81   : > { %v7075_v0 = vpop.f32.mrf.mxu3 }
 0xa82   : > { %v7022_v39 = vpop.f32.mrf.mxu2  ;;  %7793 = vrot.lane.b32.xlu0 %v7075_v0, %s10500_s16  ;;  %v7489_v13 = vadd.f32 %v7478_v56, %v7453_v57 }
 0xa83   : > { %8043 = vrot.lane.b32.xlu1 %v7019_v8, %s10509_s12 }
 0xa84   : > { %v14347_v41 = vpop.f32.mrf.mxu1  ;;  %v7525_v30 = vadd.f32 %v7514_v16, %v7489_v13 }
 0xa85   : > { %v14350_v62 = vpop.f32.mrf.mxu0  ;;  %7399 = vrot.lane.b32.xlu2 %v14229_v18, %s15242_s24 }
 0xa86   : > { %v7561_v53 = vadd.f32 %v7550_v50, %v7525_v30 }
 0xa87   : > { %v14357_v60 = vpop.permute.xlu2 %7861 }
 0xa89   : > { %v7077_v48 = vpop.f32.mrf.mxu3 }
 0xa8a   : > { %v7024_v22 = vpop.f32.mrf.mxu2  ;;  %7829 = vrot.lane.b32.xlu0 %v7077_v48, %s10501_s17 }
 0xa8b   : > { %8080 = vrot.lane.b32.xlu1 %v7022_v39, %s10510_s14 }
 0xa8c   : > { %v14367_v18 = vpop.f32.mrf.mxu1  ;;  %v14369_v14 = vpop.permute.xlu1 %7611 }
 0xa8d   : > { %v14371_v29 = vpop.f32.mrf.mxu0  ;;  %7541 = vrot.lane.b32.xlu2 %v14237_v46, %s10493_s28 }
 0xa8f   : > { %9643 = vmatmul.msk.bf16.gmra.mxu2 %vm3737_vm9, %v13987_v23  ;;  %9652 = vmatmul.msk.bf16.gmra.mxu3 %vm3737_vm9, %v13819_v3  ;;  %v14379_v8 = vpop.permute.xlu2 %7575  ;;  %v7622_v3 = vsel %vm7621_vm0, %v14193_v37, %v14369_v14 }
 0xa90   : > { %v7586_v17 = vsel %vm7585_vm15, %v14181_v7, %v14379_v8  ;;  %9634 = vmatmul.msk.bf16.gmra.mxu1 %vm3737_vm9, %v13841_v36 }
 0xa91   : > { %v7597_v24 = vadd.f32 %v7586_v17, %v7561_v53  ;;  %v7080_v46 = vpop.f32.mrf.mxu3 }
 0xa92   : > { %v14386_v0 = vpop.f32.mrf.mxu2  ;;  %8120 = vrot.lane.b32.xlu0 %v7024_v22, %s15232_s21  ;;  %s10511_s21 = smov 13  }
 0xa93   : > { %v7633_v32 = vadd.f32 %v7622_v3, %v7597_v24 }
 0xa94   : > { %v14392_v31 = vpop.f32.mrf.mxu1  ;;  %v14394_v39 = vpop.permute.xlu1 %7647 }
 0xa95   : > { %v14396_v7 = vpop.f32.mrf.mxu0  ;;  %v7658_v27 = vsel %vm7657_vm1, %v14205_v11, %v14394_v39  ;;  %7435 = vrot.lane.b32.xlu2 %v14240_v12, %s10490_s25 }
 0xa96   : > { %v7669_v56 = vadd.f32 %v7658_v27, %v7633_v32 }
 0xa97   : > { %v14403_v57 = vpop.permute.xlu2 %7897 }
 0xa99   : > { %v7082_v13 = vpop.f32.mrf.mxu3 }
 0xa9a   : > { %v14405_v48 = vpop.f32.mrf.mxu2  ;;  %7865 = vrot.lane.b32.xlu0 %v7080_v46, %s15234_s18  ;;  %s10512_s18 = smov 12  }
 0xa9c   : > { %v7206_v37 = vpop.f32.mrf.mxu1  ;;  %v14408_v16 = vpop.permute.xlu1 %7683 }
 0xa9d   : > { %v14410_v22 = vpop.f32.mrf.mxu0  ;;  %v7694_v11 = vsel %vm15247_vm2, %v14221_v55, %v14408_v16  ;;  %7577 = vrot.lane.b32.xlu2 %v14254_v4, %s10494_s29  ;;  %7581 = vrot.lane.b32.xlu1 %v7206_v37, %s10494_s29 }
 0xa9e   : > { %v7705_v12 = vadd.f32 %v7694_v11, %v7669_v56 }
 0xa9f   : > { %9644 = vmatmul.msk.bf16.gmra.mxu2 %vm3737_vm9, %v14008_v26  ;;  %9653 = vmatmul.msk.bf16.gmra.mxu3 %vm3737_vm9, %v13874_v44  ;;  %v14422_v50 = vpop.permute.xlu2 %7933 }
 0xaa0   : > { %9635 = vmatmul.msk.bf16.gmra.mxu1 %vm3737_vm9, %v13894_v1 }
 0xaa1   : > { %v7085_v30 = vpop.f32.mrf.mxu3 }
 0xaa2   : > { %v7032_v53 = vpop.f32.mrf.mxu2  ;;  %7901 = vrot.lane.b32.xlu0 %v7082_v13, %s10503_s19 }
 0xaa4   : > { %v7208_v55 = vpop.f32.mrf.mxu1  ;;  %v14427_v4 = vpop.permute.xlu1 %7719 }
 0xaa5   : > { %v14429_v17 = vpop.f32.mrf.mxu0  ;;  %v7730_v24 = vsel %vm7729_vm4, %v14248_v6, %v14427_v4  ;;  %8198 = vrot.lane.b32.xlu2 %v14257_v28, %s10511_s21  ;;  %8240 = vrot.lane.b32.xlu1 %v7032_v53, %s10512_s18 }
 0xaa6   : > { %v7741_v44 = vadd.f32 %v7730_v24, %v7705_v12 }
 0xaa7   : > { %v14437_v46 = vpop.permute.xlu2 %7969 }
 0xaa9   : > { %v7087_v3 = vpop.f32.mrf.mxu3 }
 0xaaa   : > { %v7034_v32 = vpop.f32.mrf.mxu2  ;;  %7937 = vrot.lane.b32.xlu0 %v7085_v30, %s15236_s20  ;;  %s15614_s20 = smov 97  }
 0xaac   : > { %v7211_v27 = vpop.f32.mrf.mxu1  ;;  %v14440_v56 = vpop.permute.xlu1 %7755 }
 0xaad   : > { %v14442_v13 = vpop.f32.mrf.mxu0  ;;  %v7766_v6 = vsel %vm7765_vm5, %v14277_v2, %v14440_v56  ;;  %7471 = vrot.lane.b32.xlu2 %v14259_v45, %s10491_s26  ;;  %7617 = vrot.lane.b32.xlu1 %v7208_v55, %s10495_s11 }
 0xaae   : > { %v7777_v28 = vadd.f32 %v7766_v6, %v7741_v44 }
 0xaaf   : > { %9645 = vmatmul.msk.bf16.gmra.mxu2 %vm3737_vm9, %v13766_v52  ;;  %9654 = vmatmul.msk.bf16.gmra.mxu3 %vm3737_vm9, %v13913_v58  ;;  %v14454_v37 = vpop.permute.xlu2 %7397 }
 0xab0   : > { %9636 = vmatmul.msk.bf16.gmra.mxu1 %vm3737_vm9, %v13917_v40 }
 0xab1   : > { %v7090_v11 = vpop.f32.mrf.mxu3 }
 0xab2   : > { %v14458_v12 = vpop.f32.mrf.mxu2  ;;  %7973 = vrot.lane.b32.xlu0 %v7087_v3, %s10506_s22  ;;  %v7407_v3 = vsel %vm15245_vm10, %v14235_v15, %v14454_v37 }
 0xab3   : > { %15613 = vst [vmem:[#allocation8_spill] sm:$0xff] %v14458_v12  ;;  %v7418_v6 = vadd.f32 %v7407_v3, %v14097_v20 }
 0xab4   : > { %v7213_v45 = vpop.f32.mrf.mxu1  ;;  %v14479_v32 = vpop.permute.xlu0 %7505 }
 0xab5   : > { %v14461_v2 = vpop.f32.mrf.mxu0  ;;  %v14463_v30 = vpop.permute.xlu1 %7791  ;;  %7507 = vrot.lane.b32.xlu2 %v14269_v54, %s10492_s27  ;;  %7653 = vrot.lane.b32.xlu1 %v7211_v27, %s15614_s20 }
 0xab6   : > { %v7802_v58 = vsel %vm15250_vm6, %v14289_v38, %v14463_v30 }
 0xab7   : > { %v7813_v53 = vadd.f32 %v7802_v58, %v7777_v28  ;;  %v14471_v55 = vpop.permute.xlu2 %8005 }
 0xab9   : > { %v7092_v24 = vpop.f32.mrf.mxu3 }
 0xaba   : > { %v14473_v44 = vpop.f32.mrf.mxu2  ;;  %8009 = vrot.lane.b32.xlu0 %v7090_v11, %s15238_s23  ;;  %s15619_s23 = smov 72  }
 0xabd   : > { %v7216_v54 = vpop.f32.mrf.mxu1  ;;  %v14481_v27 = vpop.f32.mrf.mxu0  ;;  %7543 = vrot.lane.b32.xlu2 %v14285_v59, %s10493_s28  ;;  %7689 = vrot.lane.b32.xlu1 %v7213_v45, %s10497_s13 }
 0xabe   : > { %15615 = vst [vmem:[#allocation52_spill] sm:$0xff] %v14481_v27  ;;  %v14486_v38 = vpop.permute.xlu1 %8118 }
 0xabf   : > { %9646 = vmatmul.msk.bf16.gmra.mxu2 %vm3737_vm9, %v13799_v19  ;;  %9655 = vmatmul.msk.bf16.gmra.mxu3 %vm3737_vm9, %v13938_v25  ;;  %v14493_v15 = vpop.permute.xlu2 %7433  ;;  %v14501_v20 = vpop.permute.xlu0 %8158 }
 0xac0   : > { %v7443_v28 = vsel %vm15246_vm11, %v14263_v34, %v14493_v15  ;;  %15617 = vst [vmem:[#allocation53_spill] sm:$0xff] %v14501_v20 }
 0xac1   : > { %v7454_v11 = vadd.f32 %v7443_v28, %v7418_v6 }
 0xac2   : > { %v7095_v59 = vpop.f32.mrf.mxu3  ;;  %v14498_v58 = vpop.f32.mrf.mxu2  ;;  %8045 = vrot.lane.b32.xlu0 %v7092_v24, %s10509_s12 }
 0xac3   : > { %15616 = vst [vmem:[#allocation51_spill] sm:$0xff] %v14498_v58 }
 0xac5   : > { %v7218_v45 = vpop.f32.mrf.mxu1  ;;  %v14503_v3 = vpop.f32.mrf.mxu0  ;;  %7579 = vrot.lane.b32.xlu2 %v14295_v47, %s10494_s29  ;;  %7725 = vrot.lane.b32.xlu1 %v7216_v54, %s15619_s23 }
 0xac6   : > { %15618 = vst [vmem:[#allocation12_spill] sm:$0xff] %v14503_v3  ;;  %v14508_v25 = vpop.permute.xlu1 %7827 }
 0xac7   : > { %v7838_v34 = vsel %vm15251_vm7, %v14317_v43, %v14508_v25  ;;  %v14513_v6 = vpop.permute.xlu2 %8041 }
 0xac8   : > { %v7849_v24 = vadd.f32 %v7838_v34, %v7813_v53 }
 0xaca   : > { %v14515_v28 = vpop.f32.mrf.mxu3  ;;  %v14517_v42 = vpop.f32.mrf.mxu2  ;;  %8082 = vrot.lane.b32.xlu0 %v7095_v59, %s10510_s14 }
 0xacb   : > { %15620 = vst [vmem:[#allocation55_spill] sm:$0xff] %v14515_v28 }
 0xacc   : > { %15621 = vst [vmem:[#allocation54_spill] sm:$0xff] %v14517_v42  ;;  %v14520_v12 = vpop.permute.xlu0 %7613 }
 0xacd   : > { %v7221_v47 = vpop.f32.mrf.mxu1  ;;  %v14522_v54 = vpop.f32.mrf.mxu0  ;;  %7401 = vrot.lane.b32.xlu2 %v14311_v49, %s15242_s24  ;;  %7761 = vrot.lane.b32.xlu1 %v7218_v45, %s10499_s15  ;;  %s15627_s24 = smov 14  }
 0xace   : > { %15622 = vst [vmem:[#allocation56_spill] sm:$0xff] %v14522_v54  ;;  %v14527_v43 = vpop.permute.xlu1 %7863 }
 0xacf   : > { %v7874_v53 = vsel %vm15241_vm8, %v14357_v60, %v14527_v43  ;;  %9647 = vmatmul.msk.bf16.gmra.mxu2 %vm3737_vm9, %v13841_v36  ;;  %9656 = vmatmul.msk.bf16.gmra.mxu3 %vm3737_vm9, %v13987_v23  ;;  %v14536_v59 = vpop.permute.xlu2 %7469  ;;  %vm15244_vm8 = vcmask 351232  }
 0xad0   : > { %v7885_v34 = vadd.f32 %v7874_v53, %v7849_v24  ;;  %v7479_v49 = vsel %vm7477_vm12, %v14341_v33, %v14536_v59 }
 0xad1   : > { %v7490_v45 = vadd.f32 %v7479_v49, %v7454_v11 }
 0xad2   : > { %v7100_v9 = vpop.f32.mrf.mxu3  ;;  %v14541_v54 = vpop.f32.mrf.mxu2 }
 0xad3   : > { %15623 = vst [vmem:[#allocation17_spill] sm:$0xff] %v14541_v54 }
 0xad4   : > { %v14543_v28 = vpop.permute.xlu0 %7649 }
 0xad5   : > { %v7223_v60 = vpop.f32.mrf.mxu1  ;;  %v14545_v42 = vpop.f32.mrf.mxu0  ;;  %7615 = vrot.lane.b32.xlu2 %v14313_v51, %s10495_s11  ;;  %7797 = vrot.lane.b32.xlu1 %v7221_v47, %s10500_s16 }
 0xad6   : > { %15624 = vst [vmem:[#allocation59_spill] sm:$0xff] %v14545_v42  ;;  %v14550_v23 = vpop.permute.xlu1 %7899 }
 0xad7   : > { %v7910_v33 = vsel %vm15243_vm3, %v14403_v57, %v14550_v23  ;;  %v14555_v11 = vpop.permute.xlu2 %8078  ;;  %vm7981_vm3 = vcmask 343040  }
 0xad8   : > { %v7921_v24 = vadd.f32 %v7910_v33, %v7885_v34 }
 0xada   : > { %v7102_v53 = vpop.f32.mrf.mxu3  ;;  %v14557_v49 = vpop.f32.mrf.mxu2 }
 0xadb   : > { %15625 = vst [vmem:[#allocation58_spill] sm:$0xff] %v14557_v49 }
 0xadc   : > { %v14559_v54 = vpop.permute.xlu0 %7685 }
 0xadd   : > { %v7226_v42 = vpop.f32.mrf.mxu1  ;;  %v14561_v10 = vpop.f32.mrf.mxu0  ;;  %7437 = vrot.lane.b32.xlu2 %v14321_v63, %s10490_s25  ;;  %8162 = vrot.lane.b32.xlu1 %v7100_v9, %s15627_s24 }
 0xade   : > { %15626 = vst [vmem:[#allocation61_spill] sm:$0xff] %v14561_v10  ;;  %v14566_v51 = vpop.permute.xlu1 %7935 }
 0xadf   : > { %v7946_v57 = vsel %vm15244_vm8, %v14422_v50, %v14566_v51  ;;  %9648 = vmatmul.msk.bf16.gmra.mxu2 %vm3737_vm9, %v13894_v1  ;;  %9657 = vmatmul.msk.bf16.gmra.mxu3 %vm3737_vm9, %v14008_v26  ;;  %v14575_v47 = vpop.permute.xlu2 %7399  ;;  %v7515_v26 = vsel %vm7513_vm13, %v14303_v5, %v14479_v32  ;;  %vm8017_vm8 = vcmask 334848  }
 0xae0   : > { %v7957_v34 = vadd.f32 %v7946_v57, %v7921_v24  ;;  %v7526_v24 = vadd.f32 %v7515_v26, %v7490_v45  ;;  %v7408_v5 = vsel %vm15245_vm10, %v14454_v37, %v14575_v47  ;;  %vm8053_vm10 = vcmask 326656  }
 0xae2   : > { %v7105_v33 = vpop.f32.mrf.mxu3  ;;  %v7279_v10 = vpop.f32.mrf.mxu2 }
 0xae3   : > { %7583 = vrot.lane.b32.xlu0 %v7279_v10, %s10494_s29  ;;  %s15628_s29 = smov 68  }
 0xae4   : > { %v14578_v9 = vpop.permute.xlu0 %7721 }
 0xae5   : > { %v7228_v63 = vpop.f32.mrf.mxu1  ;;  %v14580_v49 = vpop.f32.mrf.mxu0  ;;  %7651 = vrot.lane.b32.xlu2 %v14323_v35, %s15614_s20  ;;  %7833 = vrot.lane.b32.xlu1 %v7223_v60, %s10501_s17 }
 0xae6   : > { %v14588_v50 = vpop.permute.xlu1 %7971 }
 0xae7   : > { %v7982_v10 = vsel %vm7981_vm3, %v14437_v46, %v14588_v50  ;;  %v14593_v57 = vpop.permute.xlu2 %7541 }
 0xae8   : > { %v7993_v20 = vadd.f32 %v7982_v10, %v7957_v34  ;;  %v7551_v35 = vsel %vm7549_vm14, %v14331_v21, %v14593_v57  ;;  %v7419_v34 = vadd.f32 %v7408_v5, %v14177_v61 }
 0xae9   : > { %v7562_v3 = vadd.f32 %v7551_v35, %v7526_v24 }
 0xaea   : > { %v7107_v60 = vpop.f32.mrf.mxu3  ;;  %v7281_v58 = vpop.f32.mrf.mxu2 }
 0xaeb   : > { %8242 = vrot.lane.b32.xlu0 %v7105_v33, %s10512_s18 }
 0xaec   : > { %v14602_v27 = vpop.permute.xlu0 %7757 }
 0xaed   : > { %v14604_v46 = vpop.f32.mrf.mxu1  ;;  %v7173_v45 = vpop.f32.mrf.mxu0  ;;  %7473 = vrot.lane.b32.xlu2 %v14347_v41, %s10491_s26  ;;  %8202 = vrot.lane.b32.xlu1 %v7102_v53, %s10511_s21 }
 0xaee   : > { %v14609_v21 = vpop.permute.xlu1 %8007 }
 0xaef   : > { %v8018_v33 = vsel %vm8017_vm8, %v14471_v55, %v14609_v21  ;;  %9649 = vmatmul.msk.bf16.gmra.mxu2 %vm3737_vm9, %v13917_v40  ;;  %9658 = vmatmul.msk.bf16.gmra.mxu3 %vm3737_vm9, %v13766_v52  ;;  %v14619_v37 = vpop.permute.xlu2 %7435 }
 0xaf0   : > { %v8029_v26 = vadd.f32 %v8018_v33, %v7993_v20  ;;  %v7444_v41 = vsel %vm15246_vm11, %v14493_v15, %v14619_v37  ;;  %vm15249_vm11 = vcmask 130048  }
 0xaf1   : > { %v7455_v53 = vadd.f32 %v7444_v41, %v7419_v34 }
 0xaf2   : > { %v7284_v10 = vpop.f32.mrf.mxu2  ;;  %v7337_v61 = vpop.f32.mrf.mxu3 }
 0xaf3   : > { %7619 = vrot.lane.b32.xlu0 %v7281_v58, %s10495_s11  ;;  %s15629_s11 = smov 15  }
 0xaf4   : > { %v14625_v55 = vpop.permute.xlu0 %7793 }
 0xaf5   : > { %v14627_v24 = vpop.f32.mrf.mxu1  ;;  %v7175_v35 = vpop.f32.mrf.mxu0  ;;  %7687 = vrot.lane.b32.xlu2 %v14350_v62, %s10497_s13  ;;  %7869 = vrot.lane.b32.xlu1 %v7226_v42, %s15628_s29  ;;  %v7623_v62 = vsel %vm7621_vm0, %v14369_v14, %v14520_v12  ;;  %v7695_v14 = vsel %vm15247_vm2, %v14408_v16, %v14559_v54  ;;  %v7767_v16 = vsel %vm7765_vm5, %v14440_v56, %v14602_v27  ;;  %vm15248_vm2 = vcmask 121856  }
 0xaf6   : > { %v14632_v52 = vpop.permute.xlu1 %8043 }
 0xaf7   : > { %v8054_v15 = vsel %vm8053_vm10, %v14513_v6, %v14632_v52  ;;  %v14637_v20 = vpop.permute.xlu2 %7577  ;;  %v7659_v6 = vsel %vm7657_vm1, %v14394_v39, %v14543_v28 }
 0xaf8   : > { %v8065_v58 = vadd.f32 %v8054_v15, %v8029_v26  ;;  %v7587_v60 = vsel %vm7585_vm15, %v14379_v8, %v14637_v20 }
 0xaf9   : > { %v7598_v5 = vadd.f32 %v7587_v60, %v7562_v3 }
 0xafa   : > { %v7286_v34 = vpop.f32.mrf.mxu2  ;;  %v7338_v42 = vpop.f32.mrf.mxu3 }
 0xafb   : > { %v7634_v33 = vadd.f32 %v7623_v62, %v7598_v5  ;;  %8164 = vrot.lane.b32.xlu0 %v7173_v45, %s15627_s24 }
 0xafc   : > { %v14649_v26 = vpop.permute.xlu0 %7829 }
 0xafd   : > { %v7670_v41 = vadd.f32 %v7659_v6, %v7634_v33  ;;  %v14651_v61 = vpop.f32.mrf.mxu1  ;;  %v14653_v8 = vpop.f32.mrf.mxu0  ;;  %7509 = vrot.lane.b32.xlu2 %v14367_v18, %s10492_s27  ;;  %7905 = vrot.lane.b32.xlu1 %v7228_v63, %s10503_s19  ;;  %v7731_v18 = vsel %vm7729_vm4, %v14427_v4, %v14578_v9  ;;  %v7839_v56 = vsel %vm15251_vm7, %v14508_v25, %v14649_v26 }
 0xafe   : > { %v14661_v3 = vpop.permute.xlu1 %8080 }
 0xaff   : > { %v7706_v39 = vadd.f32 %v7695_v14, %v7670_v41  ;;  %v8093_v45 = vsel %vm15249_vm11, %v14555_v11, %v14661_v3  ;;  %9659 = vmatmul.msk.bf16.gmra.mxu3 %vm3737_vm9, %v13799_v19  ;;  %v14668_v15 = vpop.permute.xlu2 %8198  ;;  %v7803_v19 = vsel %vm15250_vm6, %v14463_v30, %v14625_v55 }
 0xb00   : > { %v8105_v63 = vadd.f32 %v8093_v45, %v8065_v58 }
 0xb01   : > { %v7742_v60 = vadd.f32 %v7731_v18, %v7706_v39 }
 0xb02   : > { %v7289_v5 = vpop.f32.mrf.mxu2  ;;  %v7340_v62 = vpop.f32.mrf.mxu3 }
 0xb03   : > { %v7778_v42 = vadd.f32 %v7767_v16, %v7742_v60  ;;  %7655 = vrot.lane.b32.xlu0 %v7284_v10, %s15614_s20  ;;  %s15631_s20 = smov 43  }
 0xb04   : > { %v14680_v11 = vpop.permute.xlu0 %8120 }
 0xb05   : > { %v7814_v33 = vadd.f32 %v7803_v19, %v7778_v42  ;;  %v7238_v4 = vpop.f32.mrf.mxu1  ;;  %v7180_v58 = vpop.f32.mrf.mxu0  ;;  %v8133_v6 = vsel %vm15248_vm2, %v14486_v38, %v14680_v11  ;;  %7723 = vrot.lane.b32.xlu2 %v14371_v29, %s15619_s23  ;;  %8124 = vrot.lane.b32.xlu1 %v14580_v49, %s15629_s11  ;;  %vm15630_vm2 = vcmask 556032  }
 0xb06   : > { %v14692_v30 = vadd.f32 %v8133_v6, %v8105_v63 }
 0xb07   : > { %v7850_v10 = vadd.f32 %v7839_v56, %v7814_v33  ;;  %v14694_v41 = vpop.permute.xlu2 %7471 }
 0xb08   : > { %v7480_v14 = vsel %vm7477_vm12, %v14536_v59, %v14694_v41 }
 0xb09   : > { %v7491_v38 = vadd.f32 %v7480_v14, %v7455_v53 }
 0xb0a   : > { %v7291_v39 = vpop.f32.mrf.mxu2  ;;  %v7341_v45 = vpop.f32.mrf.mxu3 }
 0xb0b   : > { %8204 = vrot.lane.b32.xlu0 %v7175_v35, %s10511_s21 }
 0xb0c   : > { %v14700_v29 = vpop.permute.xlu0 %7865 }
 0xb0d   : > { %v7241_v49 = vpop.f32.mrf.mxu1  ;;  %v7875_v25 = vsel %vm15630_vm2, %v14527_v43, %v14700_v29  ;;  %8160 = vrot.lane.b32.xlu2 %v14386_v0, %s15627_s24  ;;  %7941 = vrot.lane.b32.xlu1 %v14604_v46, %s15631_s20  ;;  %vm15632_vm2 = vcmask 359424  }
 0xb0e   : > { %v7886_v18 = vadd.f32 %v7875_v25, %v7850_v10 }
 0xb0f   : > { %9660 = vmatmul.msk.bf16.gmra.mxu3 %vm3737_vm9, %v13841_v36  ;;  %v14711_v59 = vpop.permute.xlu2 %7507 }
 0xb10   : > { %v7516_v43 = vsel %vm7513_vm13, %v14479_v32, %v14711_v59 }
 0xb11   : > { %v7527_v60 = vadd.f32 %v7516_v43, %v7491_v38 }
 0xb12   : > { %v7294_v53 = vpop.f32.mrf.mxu2  ;;  %v7343_v35 = vpop.f32.mrf.mxu3 }
 0xb13   : > { %7691 = vrot.lane.b32.xlu0 %v7286_v34, %s10497_s13  ;;  %v14726_v34 = vpop.permute.xlu1 %7581  ;;  %s15634_s13 = smov 41  }
 0xb14   : > { %v14717_v63 = vpop.permute.xlu0 %7901 }
 0xb15   : > { %v7243_v0 = vpop.f32.mrf.mxu1  ;;  %v7911_v46 = vsel %vm15632_vm2, %v14550_v23, %v14717_v63  ;;  %7545 = vrot.lane.b32.xlu2 %v14392_v31, %s10493_s28  ;;  %7977 = vrot.lane.b32.xlu1 %v14627_v24, %s10506_s22  ;;  %vm15633_vm2 = vcmask 351232  }
 0xb16   : > { %v7922_v36 = vadd.f32 %v7911_v46, %v7886_v18 }
 0xb17   : > { %v14728_v16 = vpop.permute.xlu2 %7543 }
 0xb18   : > { %v7552_v32 = vsel %vm7549_vm14, %v14593_v57, %v14728_v16 }
 0xb19   : > { %v7563_v62 = vadd.f32 %v7552_v32, %v7527_v60 }
 0xb1a   : > { %v7296_v42 = vpop.f32.mrf.mxu2  ;;  %v7344_v19 = vpop.f32.mrf.mxu3 }
 0xb1b   : > { %7727 = vrot.lane.b32.xlu0 %v7289_v5, %s15619_s23  ;;  %v14753_v6 = vpop.permute.xlu1 %8240 }
 0xb1c   : > { %v14734_v23 = vpop.permute.xlu0 %7937 }
 0xb1d   : > { %v14736_v31 = vpop.f32.mrf.mxu1  ;;  %v7947_v24 = vsel %vm15633_vm2, %v14566_v51, %v14734_v23  ;;  %7759 = vrot.lane.b32.xlu2 %v14396_v7, %s10499_s15  ;;  %8013 = vrot.lane.b32.xlu1 %v14651_v61, %s15634_s13  ;;  %vm8172_vm2 = vcmask 113664  }
 0xb1e   : > { %v7958_v57 = vadd.f32 %v7947_v24, %v7922_v36 }
 0xb1f   : > { %9661 = vmatmul.msk.bf16.gmra.mxu3 %vm3737_vm9, %v13894_v1  ;;  %v7580_v33 = vpop.permute.xlu2 %7579 }
 0xb20   : > { %v7588_v5 = vsel %vm7585_vm15, %v14637_v20, %v7580_v33  ;;  %v14751_v58 = vsel %vm7585_vm15, %v7580_v33, %v14726_v34 }
 0xb21   : > { %v7599_v51 = vadd.f32 %v7588_v5, %v7563_v62 }
 0xb22   : > { %v7299_v56 = vpop.f32.mrf.mxu2  ;;  %v7346_v7 = vpop.f32.mrf.mxu3 }
 0xb23   : > { %7763 = vrot.lane.b32.xlu0 %v7291_v39, %s10499_s15  ;;  %v14768_v25 = vpop.permute.xlu1 %7617  ;;  %s15635_s15 = smov 127  }
 0xb24   : > { %v14756_v61 = vpop.permute.xlu0 %7973 }
 0xb25   : > { %v14758_v10 = vpop.f32.mrf.mxu1  ;;  %v7983_v1 = vsel %vm7981_vm3, %v14588_v50, %v14756_v61  ;;  %8200 = vrot.lane.b32.xlu2 %v14405_v48, %s10511_s21  ;;  %8049 = vrot.lane.b32.xlu1 %v7238_v4, %s10509_s12 }
 0xb26   : > { %v7994_v20 = vadd.f32 %v7983_v1, %v7958_v57 }
 0xb27   : > { %v14766_v14 = vpop.permute.xlu2 %7401 }
 0xb2a   : > { %v7301_v38 = vpop.f32.mrf.mxu2  ;;  %v7347_v45 = vpop.f32.mrf.mxu3 }
 0xb2b   : > { %7799 = vrot.lane.b32.xlu0 %v7294_v53, %s10500_s16 }
 0xb2c   : > { %v14771_v39 = vpop.permute.xlu0 %8009 }
 0xb2d   : > { %v7251_v18 = vpop.f32.mrf.mxu1  ;;  %v8019_v50 = vsel %vm8017_vm8, %v14609_v21, %v14771_v39  ;;  %7795 = vrot.lane.b32.xlu2 %v14410_v22, %s10500_s16  ;;  %8086 = vrot.lane.b32.xlu1 %v7241_v49, %s10510_s14  ;;  %v14790_v49 = vpop.permute.xlu1 %7653 }
 0xb2e   : > { %v8030_v48 = vadd.f32 %v8019_v50, %v7994_v20  ;;  %v15637_v50 = vld [vmem:[#allocation52_spill] sm:$0xff] }
 0xb2f   : > { %9662 = vmatmul.msk.bf16.gmra.mxu3 %vm3737_vm9, %v13917_v40  ;;  %v7616_v4 = vpop.permute.xlu2 %7615  ;;  %vm15636_vm9 = vcmask 785408  }
 0xb30   : > { %v7624_v53 = vsel %vm7621_vm0, %v14520_v12, %v7616_v4  ;;  %v14785_v35 = vsel %vm7621_vm0, %v7616_v4, %v14768_v25 }
 0xb31   : > { %v7635_v43 = vadd.f32 %v7624_v53, %v7599_v51  ;;  %v15638_v53 = vld [vmem:[#allocation51_spill] sm:$0xff] }
 0xb32   : > { %v7304_v46 = vpop.f32.mrf.mxu2  ;;  %v7349_v21 = vpop.f32.mrf.mxu3 }
 0xb33   : > { %8126 = vrot.lane.b32.xlu0 %v7243_v0, %s15629_s11 }
 0xb34   : > { %v14788_v22 = vpop.permute.xlu0 %8045 }
 0xb35   : > { %v7253_v36 = vpop.f32.mrf.mxu1  ;;  %v8055_v40 = vsel %vm8053_vm10, %v14632_v52, %v14788_v22  ;;  %7831 = vrot.lane.b32.xlu2 %v14429_v17, %s10501_s17  ;;  %8246 = vrot.lane.b32.xlu1 %v7251_v18, %s10512_s18  ;;  %v14810_v17 = vpop.permute.xlu1 %7689 }
 0xb36   : > { %v8066_v12 = vadd.f32 %v8055_v40, %v8030_v48 }
 0xb37   : > { %v14798_v60 = vpop.permute.xlu2 %7437 }
 0xb3a   : > { %v7306_v32 = vpop.f32.mrf.mxu2  ;;  %v7350_v62 = vpop.f32.mrf.mxu3 }
 0xb3b   : > { %7835 = vrot.lane.b32.xlu0 %v7296_v42, %s10501_s17 }
 0xb3c   : > { %v14801_v0 = vpop.permute.xlu0 %8082 }
 0xb3d   : > { %v8094_v19 = vsel %vm15249_vm11, %v14661_v3, %v14801_v0  ;;  %7867 = vrot.lane.b32.xlu2 %v14442_v13, %s15628_s29  ;;  %v14822_v13 = vpop.permute.xlu1 %7725  ;;  %vm15641_vm11 = vcmask 1031168  }
 0xb3e   : > { %v14808_v52 = vadd.f32 %v8094_v19, %v8066_v12 }
 0xb3f   : > { %v14812_v24 = vpop.permute.xlu2 %7651 }
 0xb40   : > { %v7660_v57 = vsel %vm7657_vm1, %v14543_v28, %v14812_v24 }
 0xb41   : > { %v7671_v42 = vadd.f32 %v7660_v57, %v7635_v43  ;;  %v7445_v57 = vsel %vm15641_vm11, %v14619_v37, %v14798_v60  ;;  %vm15646_vm11 = vcmask 785408  }
 0xb42   : > { %v7309_v33 = vpop.f32.mrf.mxu2  ;;  %v7352_v5 = vpop.f32.mrf.mxu3 }
 0xb43   : > { %7871 = vrot.lane.b32.xlu0 %v7299_v56, %s15628_s29 }
 0xb45   : > { %7903 = vrot.lane.b32.xlu2 %v14461_v2, %s10503_s19  ;;  %v14829_v18 = vpop.permute.xlu1 %7761 }
 0xb47   : > { %v14820_v3 = vpop.permute.xlu2 %7473 }
 0xb4a   : > { %v7311_v51 = vpop.f32.mrf.mxu2  ;;  %v7353_v7 = vpop.f32.mrf.mxu3 }
 0xb4b   : > { %7907 = vrot.lane.b32.xlu0 %v7301_v38, %s10503_s19  ;;  %v15643_v7 = vld [vmem:[#allocation10_spill] sm:$0xff] }
 0xb4d   : > { %7403 = vrot.lane.b32.xlu2 %v14473_v44, %s15635_s15 }
 0xb4f   : > { %v7688_v28 = vpop.permute.xlu2 %7687 }
 0xb50   : > { %v7696_v1 = vsel %vm15636_vm9, %v14559_v54, %v7688_v28  ;;  %v14841_v54 = vpop.permute.xlu1 %7797  ;;  %vm15640_vm9 = vcmask 1039360  }
 0xb51   : > { %v7707_v20 = vadd.f32 %v7696_v1, %v7671_v42  ;;  %v7409_v62 = vsel %vm15640_vm9, %v14575_v47, %v14766_v14  ;;  %v15642_v42 = vld [vmem:[#allocation53_spill] sm:$0xff]  ;;  %v7481_v47 = vsel %vm7477_vm12, %v14694_v41, %v14820_v3  ;;  %vm8212_vm9 = vcmask 105472  }
 0xb52   : > { %v7314_v56 = vpop.f32.mrf.mxu2  ;;  %v7355_v45 = vpop.f32.mrf.mxu3  ;;  %v7420_v1 = vadd.f32 %v7409_v62, %v15643_v7 }
 0xb53   : > { %7943 = vrot.lane.b32.xlu0 %v7304_v46, %s15631_s20 }
 0xb55   : > { %v14832_v2 = vpop.permute.xlu0 %7583  ;;  %7939 = vrot.lane.b32.xlu2 %v15637_v50, %s15631_s20 }
 0xb57   : > { %v14836_v38 = vpop.permute.xlu2 %7509 }
 0xb58   : > { %v14858_v19 = vpop.permute.xlu1 %8162  ;;  %v7517_v37 = vsel %vm7513_vm13, %v14711_v59, %v14836_v38 }
 0xb5a   : > { %v14838_v48 = vpop.f32.mrf.mxu2  ;;  %v7356_v44 = vpop.f32.mrf.mxu3 }
 0xb5b   : > { %7979 = vrot.lane.b32.xlu0 %v7306_v32, %s10506_s22  ;;  %v15639_v32 = vld [vmem:[#allocation12_spill] sm:$0xff]  ;;  %v7456_v44 = vadd.f32 %v7445_v57, %v7420_v1 }
 0xb5d   : > { %v14843_v4 = vpop.permute.xlu0 %8242  ;;  %7439 = vrot.lane.b32.xlu2 %v15638_v53, %s10490_s25  ;;  %v7492_v53 = vadd.f32 %v7481_v47, %v7456_v44 }
 0xb5f   : > { %v7724_v43 = vpop.permute.xlu2 %7723 }
 0xb60   : > { %v7732_v46 = vsel %vm7729_vm4, %v14578_v9, %v7724_v43  ;;  %v14890_v59 = vpop.permute.xlu1 %7833 }
 0xb61   : > { %v7743_v21 = vadd.f32 %v7732_v46, %v7707_v20 }
 0xb62   : > { %v7319_v36 = vpop.f32.mrf.mxu2  ;;  %v7358_v40 = vpop.f32.mrf.mxu3 }
 0xb63   : > { %8015 = vrot.lane.b32.xlu0 %v7309_v33, %s15634_s13  ;;  %8168 = vrot.lane.b32.xlu1 %v7319_v36, %s15627_s24  ;;  %v7528_v36 = vadd.f32 %v7517_v37, %v7492_v53 }
 0xb65   : > { %v14851_v12 = vpop.permute.xlu0 %7619  ;;  %7975 = vrot.lane.b32.xlu2 %v15639_v32, %s10506_s22 }
 0xb67   : > { %v8161_v9 = vpop.permute.xlu2 %8160 }
 0xb68   : > { %v8173_v33 = vsel %vm8172_vm2, %v15642_v42, %v8161_v9  ;;  %v14867_v5 = vsel %vm8172_vm2, %v8161_v9, %v14858_v19  ;;  %v15645_v42 = vld [vmem:[#allocation55_spill] sm:$0xff] }
 0xb69   : > { %v8185_v20 = vadd.f32 %v8173_v33, %v14692_v30  ;;  %v15644_v30 = vld [vmem:[#allocation54_spill] sm:$0xff]  ;;  %v7661_v33 = vsel %vm7657_vm1, %v14812_v24, %v14790_v49 }
 0xb6a   : > { %v7321_v45 = vpop.f32.mrf.mxu2  ;;  %v7359_v50 = vpop.f32.mrf.mxu3 }
 0xb6b   : > { %8051 = vrot.lane.b32.xlu0 %v7311_v51, %s10509_s12  ;;  %8208 = vrot.lane.b32.xlu1 %v7321_v45, %s10511_s21 }
 0xb6d   : > { %v14879_v46 = vpop.permute.xlu0 %8164  ;;  %7475 = vrot.lane.b32.xlu2 %v15644_v30, %s10491_s26  ;;  %v15647_v30 = vld [vmem:[#allocation56_spill] sm:$0xff] }
 0xb6f   : > { %v14883_v40 = vpop.permute.xlu2 %7545 }
 0xb70   : > { %v7553_v41 = vsel %vm7549_vm14, %v14728_v16, %v14883_v40 }
 0xb71   : > { %v7564_v51 = vadd.f32 %v7553_v41, %v7528_v36 }
 0xb72   : > { %v7324_v32 = vpop.f32.mrf.mxu2  ;;  %v7361_v62 = vpop.f32.mrf.mxu3 }
 0xb73   : > { %v7600_v9 = vadd.f32 %v14751_v58, %v7564_v51  ;;  %8088 = vrot.lane.b32.xlu0 %v7314_v56, %s10510_s14  ;;  %v7697_v58 = vsel %vm15646_vm11, %v7688_v28, %v14810_v17  ;;  %v14911_v28 = vpop.permute.xlu1 %8202  ;;  %vm15651_vm11 = vcmask 556032  }
 0xb75   : > { %v7636_v57 = vadd.f32 %v14785_v35, %v7600_v9  ;;  %8122 = vrot.lane.b32.xlu2 %v15645_v42, %s15629_s11  ;;  %v14898_v7 = vpop.permute.xlu0 %7655  ;;  %v7733_v35 = vsel %vm7729_vm4, %v7724_v43, %v14822_v13 }
 0xb77   : > { %v7760_v16 = vpop.permute.xlu2 %7759  ;;  %v7672_v1 = vadd.f32 %v7661_v33, %v7636_v57 }
 0xb78   : > { %v7768_v56 = vsel %vm7765_vm5, %v14602_v27, %v7760_v16  ;;  %v7769_v24 = vsel %vm7765_vm5, %v7760_v16, %v14829_v18 }
 0xb79   : > { %v7708_v47 = vadd.f32 %v7697_v58, %v7672_v1  ;;  %v7779_v45 = vadd.f32 %v7768_v56, %v7743_v21  ;;  %v15649_v1 = vld [vmem:[#allocation59_spill] sm:$0xff] }
 0xb7a   : > { %v7326_v50 = vpop.f32.mrf.mxu2  ;;  %v7362_v44 = vpop.f32.mrf.mxu3 }
 0xb7b   : > { %v7744_v37 = vadd.f32 %v7733_v35, %v7708_v47  ;;  %8248 = vrot.lane.b32.xlu0 %v7324_v32, %s10512_s18  ;;  %v15648_v32 = vld [vmem:[#allocation17_spill] sm:$0xff]  ;;  %v14937_v47 = vpop.permute.xlu1 %7869  ;;  %v15650_v44 = vld [vmem:[#allocation58_spill] sm:$0xff] }
 0xb7d   : > { %v7780_v53 = vadd.f32 %v7769_v24, %v7744_v37  ;;  %8011 = vrot.lane.b32.xlu2 %v15647_v30, %s15634_s13  ;;  %v14919_v36 = vpop.permute.xlu0 %8204 }
 0xb7f   : > { %v8201_v27 = vpop.permute.xlu2 %8200 }
 0xb80   : > { %v8213_v21 = vsel %vm8212_vm9, %v14668_v15, %v8201_v27  ;;  %v14917_v43 = vsel %vm8212_vm9, %v8201_v27, %v14911_v28 }
 0xb81   : > { %v14921_v41 = vadd.f32 %v8213_v21, %v8185_v20 }
 0xb82   : > { %v7364_v51 = vpop.f32.mrf.mxu3 }
 0xb83   : > { %v14947_v21 = vpop.permute.xlu1 %7905  ;;  %v15653_v51 = vld [vmem:[#allocation61_spill] sm:$0xff] }
 0xb85   : > { %7511 = vrot.lane.b32.xlu2 %v15648_v32, %s10492_s27  ;;  %v14929_v16 = vpop.permute.xlu0 %7691 }
 0xb87   : > { %v7796_v62 = vpop.permute.xlu2 %7795 }
 0xb88   : > { %v7804_v9 = vsel %vm15250_vm6, %v14625_v55, %v7796_v62  ;;  %v7805_v57 = vsel %vm15250_vm6, %v7796_v62, %v14841_v54  ;;  %vm15652_vm6 = vmmov %vm15651_vm11 }
 0xb89   : > { %v7815_v15 = vadd.f32 %v7804_v9, %v7779_v45  ;;  %v7816_v42 = vadd.f32 %v7805_v57, %v7780_v53 }
 0xb8a   : > { %v7365_v33 = vpop.f32.mrf.mxu3 }
 0xb8b   : > { %v15656_v33 = vld [vmem:[#allocation9_spill] sm:$0xff] }
 0xb8d   : > { %8047 = vrot.lane.b32.xlu2 %v15649_v1, %s10509_s12  ;;  %v14939_v45 = vpop.permute.xlu0 %7727  ;;  %v14961_v1 = vpop.permute.xlu1 %8124 }
 0xb8f   : > { %v7832_v20 = vpop.permute.xlu2 %7831 }
 0xb90   : > { %v7840_v58 = vsel %vm15251_vm7, %v14649_v26, %v7832_v20  ;;  %v7841_v56 = vsel %vm15251_vm7, %v7832_v20, %v14890_v59  ;;  %vm15654_vm7 = vcmask 359424  }
 0xb91   : > { %v7851_v55 = vadd.f32 %v7840_v58, %v7815_v15  ;;  %v7852_v35 = vadd.f32 %v7841_v56, %v7816_v42 }
 0xb92   : > { %v7367_v50 = vpop.f32.mrf.mxu3 }
 0xb95   : > { %7547 = vrot.lane.b32.xlu2 %v15650_v44, %s10493_s28  ;;  %v14952_v32 = vpop.permute.xlu0 %7763  ;;  %v14970_v56 = vpop.permute.xlu1 %7941 }
 0xb97   : > { %v7868_v37 = vpop.permute.xlu2 %7867 }
 0xb98   : > { %v7876_v24 = vsel %vm15651_vm11, %v14700_v29, %v7868_v37  ;;  %v7877_v26 = vsel %vm15652_vm6, %v7868_v37, %v14937_v47  ;;  %vm15655_vm11 = vmmov %vm15654_vm7  ;;  %vm15657_vm6 = vcmask 351232  }
 0xb99   : > { %v7887_v53 = vadd.f32 %v7876_v24, %v7851_v55  ;;  %v7888_v30 = vadd.f32 %v7877_v26, %v7852_v35 }
 0xb9a   : > { %v7369_v27 = vpop.f32.mrf.mxu3 }
 0xb9b   : > { %8130 = vrot.lane.b32.xlu1 %v7369_v27, %s15629_s11  ;;  %v15661_v27 = vld [vmem:[#allocation13_spill] sm:$0xff] }
 0xb9d   : > { %8084 = vrot.lane.b32.xlu2 %v15653_v51, %s10510_s14  ;;  %v14965_v58 = vpop.permute.xlu0 %7799 }
 0xb9f   : > { %v7904_v62 = vpop.permute.xlu2 %7903 }
 0xba0   : > { %v7912_v9 = vsel %vm15654_vm7, %v14717_v63, %v7904_v62  ;;  %v7913_v29 = vsel %vm15655_vm11, %v7904_v62, %v14947_v21  ;;  %vm15658_vm7 = vmmov %vm15657_vm6  ;;  %vm15659_vm11 = vcmask 1039360  }
 0xba1   : > { %v7923_v57 = vadd.f32 %v7912_v9, %v7887_v53  ;;  %v7924_v15 = vadd.f32 %v7913_v29, %v7888_v30 }
 0xba2   : > { %v7372_v42 = vpop.f32.mrf.mxu3 }
 0xba3   : > { %8170 = vrot.lane.b32.xlu0 %v7372_v42, %s15627_s24  ;;  %8238 = vrot.lane.b32.xlu1 %v15656_v33, %s10512_s18 }
 0xba5   : > { %8244 = vrot.lane.b32.xlu2 %v14653_v8, %s10512_s18  ;;  %v8271_v8 = vld [vmem:[%s15174_s8] sm:$0x7]  ;;  %v14979_v53 = vpop.permute.xlu0 %8126 }
 0xba7   : > { %v7404_v20 = vpop.permute.xlu2 %7403 }
 0xbaa   : > { %v7374_v63 = vpop.f32.mrf.mxu3 }
 0xbab   : > { %8210 = vrot.lane.b32.xlu0 %v7374_v63, %s10511_s21 }
 0xbad   : > { %8166 = vrot.lane.b32.xlu2 %v14736_v31, %s15627_s24  ;;  %v7410_v31 = vsel %vm15659_vm11, %v14766_v14, %v7404_v20  ;;  %v14989_v42 = vpop.permute.xlu0 %7835  ;;  %v14993_v14 = vpop.permute.xlu1 %7977  ;;  %s10393_s24 = smul.u32 24, %s15680_s10 }
 0xbae   : > { %v7421_v51 = vadd.f32 %v7410_v31, %v15661_v27 }
 0xbaf   : > { %v7940_v55 = vpop.permute.xlu2 %7939  ;;  %s332_s28 = scalar_lea.vmem %s15175_s9, %s10393_s24 }
 0xbb0   : > { %v7948_v35 = vsel %vm15657_vm6, %v14734_v23, %v7940_v55  ;;  %v7949_v44 = vsel %vm15658_vm7, %v7940_v55, %v14970_v56  ;;  %v15660_v23 = vld [vmem:[#allocation8_spill] sm:$0xff]  ;;  %vm15662_vm6 = vcmask 1031168   ;;  %vm15663_vm7 = vcmask 121856  }
 0xbb1   : > { %v7959_v37 = vadd.f32 %v7948_v35, %v7923_v57  ;;  %v7960_v24 = vadd.f32 %v7949_v44, %v7924_v15  ;;  %v7422_v30 = vadd.f32 %v7404_v20, %v15660_v23 }
 0xbb2   : > { %v7377_v26 = vpop.f32.mrf.mxu3 }
 0xbb3   : > { %8274 = vperm.xlu0 %10428, %v8271_v8  }
 0xbb5   : > { %8206 = vrot.lane.b32.xlu2 %v14758_v10, %s10511_s21 }
 0xbb7   : > { %v7440_v62 = vpop.permute.xlu2 %7439 }
 0xbb8   : > { %v7446_v9 = vsel %vm15662_vm6, %v14798_v60, %v7440_v62  ;;  %v7458_v29 = vadd.f32 %v7440_v62, %v7422_v30  ;;  %v15000_v60 = vpop.permute.xlu0 %7871 }
 0xbb9   : > { %v7457_v57 = vadd.f32 %v7446_v9, %v7421_v51 }
 0xbba   : > { %v7379_v15 = vpop.f32.mrf.mxu3 }
 0xbbd   : > { %8128 = vrot.lane.b32.xlu2 %v14838_v48, %s15629_s11 }
 0xbbf   : > { %v7976_v33 = vpop.permute.xlu2 %7975 }
 0xbc0   : > { %v7984_v10 = vsel %vm7981_vm3, %v14756_v61, %v7976_v33  ;;  %v7985_v20 = vsel %vm7981_vm3, %v7976_v33, %v14993_v14  ;;  %v15005_v8 = vpop.permute.xlu0 %7907 }
 0xbc1   : > { %v7995_v63 = vadd.f32 %v7984_v10, %v7959_v37  ;;  %v7996_v55 = vadd.f32 %v7985_v20, %v7960_v24  ;;  %v15012_v24 = vpop.permute.xlu1 %8013 }
 0xbc5   : > { %8090 = vrot.lane.b32.xlu2 %v7367_v50, %s10510_s14 }
 0xbc7   : > { %v7476_v35 = vpop.permute.xlu2 %7475 }
 0xbc8   : > { %v15020_v27 = vpop.permute.xlu0 %7943  ;;  %v7482_v62 = vsel %vm7477_vm12, %v14820_v3, %v7476_v35  ;;  %v7494_v9 = vadd.f32 %v7476_v35, %v7458_v29  ;;  %v7590_v3 = vsel %vm7585_vm15, %v14726_v34, %v14832_v2  ;;  %vm15664_vm12 = vcmask 785408  }
 0xbc9   : > { %v7493_v15 = vadd.f32 %v7482_v62, %v7457_v57  ;;  %v7626_v57 = vsel %vm7621_vm0, %v14768_v25, %v14851_v12  ;;  %v7698_v25 = vsel %vm15664_vm12, %v14810_v17, %v14929_v16  ;;  %vm15667_vm15 = vcmask 572416  }
 0xbca   : > { %vm15668_vm0 = vcmask 564224  }
 0xbcd   : > { %8250 = vrot.lane.b32.xlu2 %v7377_v26, %s10512_s18 }
 0xbcf   : > { %v8123_v44 = vpop.permute.xlu2 %8122 }
 0xbd0   : > { %v8134_v48 = vsel %vm15663_vm7, %v14680_v11, %v8123_v44  ;;  %v15022_v51 = vpop.permute.xlu0 %7979 }
 0xbd1   : > { %v8146_v61 = vadd.f32 %v8134_v48, %v14808_v52 }
 0xbd3   : > { %v8186_v31 = vadd.f32 %v14867_v5, %v8146_v61  ;;  %v15024_v5 = vpop.permute.xlu1 %8049 }
 0xbd5   : > { %v15010_v37 = vadd.f32 %v14917_v43, %v8186_v31 }
 0xbd7   : > { %v8012_v50 = vpop.permute.xlu2 %8011 }
 0xbd8   : > { %v8020_v23 = vsel %vm8017_vm8, %v14771_v39, %v8012_v50  ;;  %v8021_v26 = vsel %vm8017_vm8, %v8012_v50, %v15012_v24  ;;  %v15032_v10 = vpop.permute.xlu0 %8015 }
 0xbd9   : > { %v8031_v30 = vadd.f32 %v8020_v23, %v7995_v63  ;;  %v15018_v11 = vadd.f32 %v8021_v26, %v7996_v55  ;;  %v7662_v23 = vsel %vm7657_vm1, %v14790_v49, %v14898_v7  ;;  %v7734_v49 = vsel %vm7729_vm4, %v14822_v13, %v14939_v45 }
 0xbda   : > { %vm15669_vm1 = vcmask 556032   ;;  %vm15670_vm4 = vcmask 359424  }
 0xbdb   : > { %v15036_v61 = vpop.permute.xlu1 %8086 }
 0xbdf   : > { %v7512_v52 = vpop.permute.xlu2 %7511 }
 0xbe0   : > { %v7518_v39 = vsel %vm7513_vm13, %v14836_v38, %v7512_v52  ;;  %v7530_v33 = vadd.f32 %v7512_v52, %v7494_v9  ;;  %vm15665_vm13 = vcmask 130048  }
 0xbe1   : > { %v7529_v20 = vadd.f32 %v7518_v39, %v7493_v15  ;;  %vm15672_vm11 = vmmov %vm15665_vm13 }
 0xbe3   : > { %v15067_v15 = vpop.permute.xlu1 %8246 }
 0xbe7   : > { %v15026_v43 = vpop.permute.xlu2 %8047 }
 0xbe8   : > { %v8056_v35 = vsel %vm8053_vm10, %v14788_v22, %v15026_v43 }
 0xbe9   : > { %v8067_v26 = vadd.f32 %v8056_v35, %v8031_v30 }
 0xbef   : > { %v7548_v63 = vpop.permute.xlu2 %7547 }
 0xbf0   : > { %v7554_v55 = vsel %vm7549_vm14, %v14883_v40, %v7548_v63  ;;  %v7566_v48 = vadd.f32 %v7548_v63, %v7530_v33  ;;  %vm15666_vm14 = vmmov %vm15663_vm7  ;;  %v7770_v33 = vsel %vm7765_vm5, %v14829_v18, %v14952_v32  ;;  %v7842_v18 = vsel %vm15668_vm0, %v14890_v59, %v14989_v42 }
 0xbf1   : > { %v7565_v31 = vadd.f32 %v7554_v55, %v7529_v20  ;;  %vm15671_vm5 = vcmask 351232  }
 0xbf2   : > { %v7602_v29 = vadd.f32 %v14832_v2, %v7566_v48  ;;  %v7950_v59 = vsel %vm15671_vm5, %v14970_v56, %v15020_v27  ;;  %v8022_v56 = vsel %vm8017_vm8, %v15012_v24, %v15032_v10  ;;  %vm15674_vm8 = vmmov %vm15672_vm11 }
 0xbf3   : > { %v7601_v38 = vadd.f32 %v7590_v3, %v7565_v31 }
 0xbf4   : > { %v7638_v40 = vadd.f32 %v14851_v12, %v7602_v29  ;;  %v15059_v12 = vpop.permute.xlu0 %8051  ;;  %v8169_v29 = vpop.permute.xlu1 %8168 }
 0xbf5   : > { %v7637_v50 = vadd.f32 %v7626_v57, %v7601_v38 }
 0xbf6   : > { %v7674_v34 = vadd.f32 %v14898_v7, %v7638_v40  ;;  %v8135_v7 = vsel %vm15666_vm14, %v8123_v44, %v14961_v1  ;;  %v7806_v44 = vsel %vm15667_vm15, %v14841_v54, %v14965_v58 }
 0xbf7   : > { %v7673_v2 = vadd.f32 %v7662_v23, %v7637_v50  ;;  %v8085_v52 = vpop.permute.xlu2 %8084 }
 0xbf8   : > { %v7710_v62 = vadd.f32 %v14929_v16, %v7674_v34  ;;  %v8095_v22 = vsel %vm15665_vm13, %v14801_v0, %v8085_v52  ;;  %v8175_v0 = vsel %vm8172_vm2, %v14858_v19, %v14879_v46  ;;  %vm8292_vm13 = vcmask 1043456  }
 0xbf9   : > { %v7709_v9 = vadd.f32 %v7698_v25, %v7673_v2  ;;  %v8107_v39 = vadd.f32 %v8095_v22, %v8067_v26  ;;  %v7986_v26 = vsel %vm7981_vm3, %v14993_v14, %v15022_v51  ;;  %v8096_v25 = vsel %vm15672_vm11, %v8085_v52, %v15036_v61  ;;  %vm15673_vm3 = vmmov %vm15663_vm7 }
 0xbfa   : > { %v7746_v30 = vadd.f32 %v14939_v45, %v7710_v62  ;;  %v8215_v45 = vsel %vm8212_vm9, %v14911_v28, %v14919_v36  ;;  %v7878_v28 = vsel %vm15669_vm1, %v14937_v47, %v15000_v60  ;;  %v8136_v24 = vsel %vm15673_vm3, %v14961_v1, %v14979_v53  ;;  %vm15675_vm6 = vmmov %vm15673_vm3 }
 0xbfb   : > { %v7745_v17 = vadd.f32 %v7734_v49, %v7709_v9  ;;  %v8147_v16 = vadd.f32 %v8135_v7, %v8107_v39  ;;  %vm15676_vm7 = vmmov %vm15674_vm8 }
 0xbfc   : > { %v7782_v20 = vadd.f32 %v14952_v32, %v7746_v30  ;;  %v8089_v38 = vpop.permute.xlu0 %8088  ;;  %vm15677_vm12 = vmmov %vm15673_vm3 }
 0xbfd   : > { %v7781_v13 = vadd.f32 %v7770_v33, %v7745_v17  ;;  %v8187_v63 = vadd.f32 %v8175_v0, %v8147_v16 }
 0xbfe   : > { %v7818_v55 = vadd.f32 %v14965_v58, %v7782_v20  ;;  %v7914_v58 = vsel %vm15670_vm4, %v14947_v21, %v15005_v8  ;;  %v8057_v21 = vsel %vm8053_vm10, %v15026_v43, %v15024_v5  ;;  %v8058_v43 = vsel %vm8053_vm10, %v15024_v5, %v15059_v12 }
 0xbff   : > { %v7817_v48 = vadd.f32 %v7806_v44, %v7781_v13  ;;  %v8245_v19 = vpop.permute.xlu2 %8244  ;;  %v15083_v31 = vadd.f32 %v8215_v45, %v8187_v63  ;;  %v8068_v9 = vadd.f32 %v8057_v21, %v15018_v11  ;;  %v8097_v11 = vsel %vm15674_vm8, %v15036_v61, %v8089_v38 }
 0xc00   : > { %v7854_v32 = vadd.f32 %v14989_v42, %v7818_v55  ;;  %v8209_v42 = vpop.permute.xlu1 %8208  ;;  %vm8252_vm10 = vcmask 97280  }
 0xc01   : > { %v7853_v3 = vadd.f32 %v7842_v18, %v7817_v48  ;;  %v8256_v44 = vsel %vm8252_vm10, %v8245_v19, %v15067_v15 }
 0xc02   : > { %v7890_v40 = vadd.f32 %v15000_v60, %v7854_v32 }
 0xc03   : > { %v7889_v54 = vadd.f32 %v7878_v28, %v7853_v3 }
 0xc04   : > { %v15099_v50 = vpop.permute.xlu0 %8248  ;;  %v7926_v34 = vadd.f32 %v15005_v8, %v7890_v40 }
 0xc05   : > { %v7925_v35 = vadd.f32 %v7914_v58, %v7889_v54 }
 0xc06   : > { %v7962_v60 = vadd.f32 %v15020_v27, %v7926_v34  ;;  %v8108_v27 = vadd.f32 %v8096_v25, %v8068_v9 }
 0xc07   : > { %v8167_v57 = vpop.permute.xlu2 %8166  ;;  %v7961_v23 = vadd.f32 %v7950_v59, %v7925_v35 }
 0xc08   : > { %v7998_v39 = vadd.f32 %v15022_v51, %v7962_v60  ;;  %v8176_v52 = vsel %vm8172_vm2, %v14879_v46, %v8167_v57  ;;  %v8148_v30 = vadd.f32 %v8136_v24, %v8108_v27  ;;  %v8177_v63 = vsel %vm8172_vm2, %v8167_v57, %v8169_v29 }
 0xc09   : > { %v7997_v2 = vadd.f32 %v7986_v26, %v7961_v23 }
 0xc0a   : > { %v8034_v7 = vadd.f32 %v15032_v10, %v7998_v39  ;;  %v8188_v0 = vadd.f32 %v8176_v52, %v8148_v30 }
 0xc0b   : > { %v8033_v22 = vadd.f32 %v8022_v56, %v7997_v2 }
 0xc0c   : > { %v8070_v20 = vadd.f32 %v15059_v12, %v8034_v7  ;;  %v8254_v12 = vsel %vm8252_vm10, %v14753_v6, %v14843_v4 }
 0xc0d   : > { %v8131_v62 = vpop.permute.xlu1 %8130  ;;  %v8069_v49 = vadd.f32 %v8058_v43, %v8033_v22  ;;  %v8266_v18 = vadd.f32 %v8254_v12, %v15010_v37 }
 0xc0f   : > { %v8207_v47 = vpop.permute.xlu2 %8206  ;;  %v8109_v17 = vadd.f32 %v8097_v11, %v8069_v49 }
 0xc10   : > { %v8216_v5 = vsel %vm8212_vm9, %v14919_v36, %v8207_v47  ;;  %v8217_v58 = vsel %vm8212_vm9, %v8207_v47, %v8209_v42 }
 0xc11   : > { %v8228_v10 = vadd.f32 %v8216_v5, %v8188_v0 }
 0xc13   : > { %v8268_v32 = vadd.f32 %v8256_v44, %v8228_v10 }
 0xc15   : > { %v8171_v8 = vpop.permute.xlu0 %8170  ;;  %v8239_v33 = vpop.permute.xlu1 %8238 }
 0xc16   : > { %v8253_v36 = vsel %vm8252_vm10, %v8239_v33, %v14753_v6  ;;  %v8178_v3 = vsel %vm8172_vm2, %v8169_v29, %v8171_v8  ;;  %vm8302_vm2 = vcmask 260100  }
 0xc17   : > { %v8129_v14 = vpop.permute.xlu2 %8128 }
 0xc18   : > { %v8137_v51 = vsel %vm15675_vm6, %v14979_v53, %v8129_v14  ;;  %v8255_v53 = vsel %vm8252_vm10, %v14843_v4, %v8245_v19  ;;  %v8138_v45 = vsel %vm15677_vm12, %v8129_v14, %v8131_v62 }
 0xc19   : > { %v8149_v1 = vadd.f32 %v8137_v51, %v8109_v17  ;;  %v8267_v28 = vadd.f32 %v8255_v53, %v15083_v31 }
 0xc1b   : > { %v8189_v55 = vadd.f32 %v8177_v63, %v8149_v1 }
 0xc1d   : > { %v8211_v16 = vpop.permute.xlu0 %8210  ;;  %v8229_v35 = vadd.f32 %v8217_v58, %v8189_v55 }
 0xc1e   : > { %v8218_v6 = vsel %vm8212_vm9, %v8209_v42, %v8211_v16  ;;  %v8257_v42 = vsel %vm8252_vm10, %v15067_v15, %v15099_v50  ;;  %vm15678_vm9 = vcmask 1042432  }
 0xc1f   : > { %v8091_v46 = vpop.permute.xlu2 %8090  ;;  %v8269_v2 = vadd.f32 %v8257_v42, %v8229_v35  ;;  %vm8303_vm14 = vmor %vm8302_vm2, %vm15678_vm9 }
 0xc20   : > { %v8098_v61 = vsel %vm15676_vm7, %v8089_v38, %v8091_v46  ;;  %v8265_v38 = vadd.f32 %v8253_v36, %v14921_v41 }
 0xc21   : > { %v8110_v13 = vadd.f32 %v8098_v61, %v8070_v20 }
 0xc23   : > { %v8150_v48 = vadd.f32 %v8138_v45, %v8110_v13 }
 0xc25   : > { %v8275_v54 = vpop.permute.xlu0 %8274  ;;  %v8190_v57 = vadd.f32 %v8178_v3, %v8150_v48 }
 0xc26   : > { %v8278_v4 = vadd.f32 %v8275_v54, %v8266_v18  ;;  %v8280_v19 = vadd.f32 %v8275_v54, %v8268_v32  ;;  %v8277_v40 = vadd.f32 %v8275_v54, %v8265_v38  ;;  %v8279_v23 = vadd.f32 %v8275_v54, %v8267_v28 }
 0xc27   : > { %v8251_v37 = vpop.permute.xlu2 %8250  ;;  %v8230_v59 = vadd.f32 %v8218_v6, %v8190_v57  ;;  %v8281_v60 = vadd.f32 %v8275_v54, %v8269_v2 }
 0xc28   : > { %v8289_v29 = vrot.slane %v8278_v4, 4  ;;  %v8290_v34 = vrot.slane %v8280_v19, 4  ;;  %v8258_v41 = vsel %vm8252_vm10, %v15099_v50, %v8251_v37 }
 0xc29   : > { %v8270_v31 = vadd.f32 %v8258_v41, %v8230_v59 }
 0xc2a   : > { %v8293_v47 = vsel %vm8292_vm13, %v8277_v40, %v8289_v29  ;;  %v8294_v26 = vsel %vm8292_vm13, %v8279_v23, %v8290_v34 }
 0xc2b   : > { %v8282_v21 = vadd.f32 %v8275_v54, %v8270_v31  ;;  %8299 = vst [vmem:[%s332_s28] sm:$0x77] %v8293_v47 }
 0xc2c   : > { %8300 = vst [vmem:[%s332_s28 + $0x8] sm:$0x77] %v8294_v26 }
 0xc2d   : > { %v8291_v56 = vrot.slane %v8282_v21, 4 }
 0xc2f   : > { %v8295_v25 = vsel %vm8292_vm13, %v8281_v60, %v8291_v56 }
 0xc30   : > { %8304 = vst.msk [vmem:[%s332_s28 + $0x10] sm:$0x77] %vm8303_vm14, %v8295_v25 }
 0xc31 PF: > { %s19_s30 = sadd.s32 1, %s10485_s30  }
 0xc32   : > { %p16_p4 = scmp.ge.s32.totalorder %s19_s30, 4  }
 0xc34   :  { %18 = sbr.rel (!%p16_p4) target bundleno = 1 (0x1), region = 102 }

</bundles_post_ra>
